<compile_context>
chip_gen: v5e
topology: v5e:2x2
jax: 0.10.0
libtpu: 0.0.40
codegen_flags: <defaults>
</compile_context>

<pallas_src>
import numpy as np
import jax
import jax.numpy as jnp
from jax.experimental import pallas as pl
from jax.experimental.pallas import tpu as pltpu


# ----------------------------- fused Pallas kernel --------------------------

def fused_img_kernel(x_ref, s1, s2, s3, s4, w1, w2, w3, w4,
                     b1, b2, b3, b4, wh, bh, o_ref):
    """Per-sample fused forward. x_ref: (1, H*W, Cin); o_ref: (1, 1, D)."""

    def conv_elu_inorm(act, s_ref, w_ref, b_ref):
        # act: (P_in, Cin); s_ref: (9, P_out, P_in); w_ref: (9, Cin, Cout)
        p_out = s_ref.shape[1]
        c_out = w_ref.shape[2]
        acc = jnp.zeros((p_out, c_out), jnp.float32)
        for k in range(9):                      # static unroll over the 9 taps
            shifted = jnp.dot(s_ref[k], act, preferred_element_type=jnp.float32)
            acc = acc + jnp.dot(shifted, w_ref[k],
                                preferred_element_type=jnp.float32)
        y = acc + b_ref[...]
        # ELU(alpha=1.0)
        y = jnp.where(y > 0, y, jnp.exp(jnp.minimum(y, 0.0)) - 1.0)
        # InstanceNorm2d: per-channel over spatial, biased var, eps=1e-5, no affine
        mean = jnp.mean(y, axis=0, keepdims=True)
        var = jnp.mean(y * y, axis=0, keepdims=True) - mean * mean
        return (y - mean) * jax.lax.rsqrt(var + 1e-5)

    act = x_ref[0]                               # (H*W, Cin)
    act = conv_elu_inorm(act, s1, w1, b1)
    act = conv_elu_inorm(act, s2, w2, b2)
    act = conv_elu_inorm(act, s3, w3, b3)
    act = conv_elu_inorm(act, s4, w4, b4)        # (P4, 32)

    # Head: adaptive pool + flatten + fc, folded into Whead[p, c, d].
    out = bh[...]                                # (1, D)
    for p in range(wh.shape[0]):                 # P4 is tiny (e.g. 4)
        out = out + jnp.dot(act[p:p + 1, :], wh[p],
                            preferred_element_type=jnp.float32)
    o_ref[0] = out


# ----------------------------- wrapper --------------------------------------

def img_module_forward(x_nchw, consts):
    n, c, h, w = x_nchw.shape
    x = jnp.transpose(x_nchw, (0, 2, 3, 1)).reshape(n, h * w, c).astype(jnp.float32)

    args = [x] + [consts[k] for k in ("s1", "s2", "s3", "s4",
                                      "w1", "w2", "w3", "w4",
                                      "b1", "b2", "b3", "b4", "wh", "bh")]
    d = consts["wh"].shape[-1]

    def const_spec(a):
        return pl.BlockSpec(tuple(a.shape), lambda i: (0,) * a.ndim)

    out = pl.pallas_call(
        fused_img_kernel,
        out_shape=jax.ShapeDtypeStruct((n, 1, d), jnp.float32),
        grid=(n,),
        in_specs=[pl.BlockSpec((1, h * w, c), lambda i: (i, 0, 0))]
                + [const_spec(a) for a in args[1:]],
        out_specs=pl.BlockSpec((1, 1, d), lambda i: (i, 0, 0)),
        compiler_params=pltpu.CompilerParams(
            dimension_semantics=("arbitrary",)),   # tiny batch: one core
    )(*args)
    return out.reshape(n, d)


# ----------------------------- constant / param prep ------------------------

def _conv_out(s):                       # kernel=3, stride=2, pad=1
    return (s - 1) // 2 + 1


def _tap_selection(h_in, w_in):
    """S[k, i*Wo+j, h*Win+w] = 1 iff tap k=(dy,dx) of output (i,j) reads (h,w).
    Stride-2 shift and zero padding are folded in (out-of-range taps -> 0)."""
    h_out, w_out = _conv_out(h_in), _conv_out(w_in)
    s = np.zeros((9, h_out * w_out, h_in * w_in), np.float32)
    for dy in range(3):
        for dx in range(3):
            k = dy * 3 + dx
            for i in range(h_out):
                hh = 2 * i + dy - 1
                if hh < 0 or hh >= h_in:
                    continue
                for j in range(w_out):
                    ww = 2 * j + dx - 1
                    if 0 <= ww < w_in:
                        s[k, i * w_out + j, hh * w_in + ww] = 1.0
    return s, h_out, w_out


def _adaptive_pool_mat(n_in, n_out=3):
    p = np.zeros((n_out, n_in), np.float32)
    for i in range(n_out):
        st = (i * n_in) // n_out
        en = -((-(i + 1) * n_in) // n_out)      # ceil
        p[i, st:en] = 1.0 / (en - st)
    return p


def init_params(key, in_ch, last_fc_dim):
    chs = [in_ch, 32, 32, 32, 32]
    params = {}
    for i in range(4):
        key, kw, kb = jax.random.split(key, 3)
        fan_in = 9 * chs[i]
        params[f"w{i+1}"] = (jax.random.normal(kw, (3, 3, chs[i], chs[i + 1]),
                                               jnp.float32) / np.sqrt(fan_in))
        params[f"b{i+1}"] = jax.random.normal(kb, (chs[i + 1],), jnp.float32) * 0.01
    if last_fc_dim > 0:
        key, kw, kb = jax.random.split(key, 3)
        params["fc_w"] = (jax.random.normal(kw, (288, last_fc_dim), jnp.float32)
                          / np.sqrt(288.0))
        params["fc_b"] = jax.random.normal(kb, (last_fc_dim,), jnp.float32) * 0.01
    return params


def prepare_constants(params, in_ch, h, w, last_fc_dim):
    """One-time (hoisted) build of selection matrices, tap weights, folded head."""
    consts = {}
    chs = [in_ch, 32, 32, 32, 32]
    hh, ww = h, w
    for i in range(4):
        s, hh, ww = _tap_selection(hh, ww)
        consts[f"s{i+1}"] = jnp.asarray(s)                               # (9,Pout,Pin)
        consts[f"w{i+1}"] = params[f"w{i+1}"].reshape(9, chs[i], chs[i + 1])
        consts[f"b{i+1}"] = params[f"b{i+1}"].reshape(1, chs[i + 1])

    hf, wf, c = hh, ww, 32
    ph, pw = _adaptive_pool_mat(hf), _adaptive_pool_mat(wf)
    g = np.einsum("ih,jw->hwij", ph, pw).reshape(hf * wf, 9)  # [p, i*3+j], p=h*Wf+w
    if last_fc_dim > 0:
        fc3 = params["fc_w"].reshape(c, 9, last_fc_dim)       # flat index = c*9 + m
        consts["wh"] = jnp.einsum("pm,cmd->pcd", jnp.asarray(g), fc3)   # (P4,32,D)
        consts["bh"] = params["fc_b"].reshape(1, last_fc_dim)
    else:
        wh = np.zeros((hf * wf, c, c * 9), np.float32)        # pool+flatten only
        for ci in range(c):
            wh[:, ci, ci * 9:(ci + 1) * 9] = g
        consts["wh"] = jnp.asarray(wh)
        consts["bh"] = jnp.zeros((1, c * 9), jnp.float32)
    return consts


# ----------------------------- pure-JAX reference ---------------------------

def reference_forward(x_nchw, params, last_fc_dim):
    x = jnp.transpose(x_nchw, (0, 2, 3, 1)).astype(jnp.float32)
    chs = [x.shape[-1], 32, 32, 32, 32]
    for i in range(4):
        wgt = params[f"w{i+1}"]                                # (3,3,Cin,Cout)
        y = jax.lax.conv_general_dilated(
            x, wgt, window_strides=(2, 2), padding=((1, 1), (1, 1)),
            dimension_numbers=("NHWC", "HWIO", "NHWC"))
        y = y + params[f"b{i+1}"]
        y = jnp.where(y > 0, y, jnp.exp(jnp.minimum(y, 0.0)) - 1.0)
        mean = jnp.mean(y, axis=(1, 2), keepdims=True)
        var = jnp.mean(jnp.square(y - mean), axis=(1, 2), keepdims=True)
        x = (y - mean) * jax.lax.rsqrt(var + 1e-5)
        _ = chs[i]
    n, hf, wf, c = x.shape
    ph = jnp.asarray(_adaptive_pool_mat(hf))
    pw = jnp.asarray(_adaptive_pool_mat(wf))
    pooled = jnp.einsum("ih,jw,nhwc->ncij", ph, pw, x)         # NCHW order
    flat = pooled.reshape(n, c * 9)
    if last_fc_dim > 0:
        return flat @ params["fc_w"] + params["fc_b"]
    return flat


# ----------------------------- main ------------------------------------------

if __name__ == "__main__":
    key = jax.random.PRNGKey(0)
    k_in, k_par = jax.random.split(key)

    # input_size = (24, 24, 4) -> in_channels = input_size[2] = 4
    N, C, H, W = 2, 4, 24, 24
    last_fc_dim = 64

    x = jax.random.normal(k_in, (N, C, H, W), jnp.float32)
    params = init_params(k_par, C, last_fc_dim)
    consts = prepare_constants(params, C, H, W, last_fc_dim)   # hoisted, one-time

    fwd = jax.jit(img_module_forward)
    out = jax.block_until_ready(fwd(x, consts))

    ref = jax.block_until_ready(reference_forward(x, params, last_fc_dim))
    np.testing.assert_allclose(np.asarray(out), np.asarray(ref), rtol=1e-2, atol=1e-2)
    assert out.shape == (N, last_fc_dim)

    print("KERNEL_OK")
</pallas_src>

<mosaic_0001>
module attributes {stable_mosaic.version = 11 : i64} {
  func.func @fused_img_kernel(%arg0: i32, %arg1: memref<1x576x4xf32, #tpu.memory_space<vmem>>, %arg2: memref<9x144x576xf32, #tpu.memory_space<vmem>>, %arg3: memref<9x36x144xf32, #tpu.memory_space<vmem>>, %arg4: memref<9x9x36xf32, #tpu.memory_space<vmem>>, %arg5: memref<9x4x9xf32, #tpu.memory_space<vmem>>, %arg6: memref<9x4x32xf32, #tpu.memory_space<vmem>>, %arg7: memref<9x32x32xf32, #tpu.memory_space<vmem>>, %arg8: memref<9x32x32xf32, #tpu.memory_space<vmem>>, %arg9: memref<9x32x32xf32, #tpu.memory_space<vmem>>, %arg10: memref<1x32xf32, #tpu.memory_space<vmem>>, %arg11: memref<1x32xf32, #tpu.memory_space<vmem>>, %arg12: memref<1x32xf32, #tpu.memory_space<vmem>>, %arg13: memref<1x32xf32, #tpu.memory_space<vmem>>, %arg14: memref<4x32x64xf32, #tpu.memory_space<vmem>>, %arg15: memref<1x64xf32, #tpu.memory_space<vmem>>, %arg16: memref<1x1x64xf32, #tpu.memory_space<vmem>>) attributes {dimension_semantics = [#tpu.dimension_semantics<arbitrary>], iteration_bounds = array<i64: 2>, scalar_prefetch = 0 : i64, scratch_operands = 0 : i64, tpu.core_type = #tpu.core_type<tc>, window_params = [{transform_indices = @transform_0, window_bounds = array<i64: 1, 576, 4>}, {pipeline_mode = #tpu.pipeline_mode<synchronous>, transform_indices = @transform_1, window_bounds = array<i64: 9, 144, 576>}, {pipeline_mode = #tpu.pipeline_mode<synchronous>, transform_indices = @transform_2, window_bounds = array<i64: 9, 36, 144>}, {pipeline_mode = #tpu.pipeline_mode<synchronous>, transform_indices = @transform_3, window_bounds = array<i64: 9, 9, 36>}, {pipeline_mode = #tpu.pipeline_mode<synchronous>, transform_indices = @transform_4, window_bounds = array<i64: 9, 4, 9>}, {pipeline_mode = #tpu.pipeline_mode<synchronous>, transform_indices = @transform_5, window_bounds = array<i64: 9, 4, 32>}, {pipeline_mode = #tpu.pipeline_mode<synchronous>, transform_indices = @transform_6, window_bounds = array<i64: 9, 32, 32>}, {pipeline_mode = #tpu.pipeline_mode<synchronous>, transform_indices = @transform_7, window_bounds = array<i64: 9, 32, 32>}, {pipeline_mode = #tpu.pipeline_mode<synchronous>, transform_indices = @transform_8, window_bounds = array<i64: 9, 32, 32>}, {pipeline_mode = #tpu.pipeline_mode<synchronous>, transform_indices = @transform_9, window_bounds = array<i64: 1, 32>}, {pipeline_mode = #tpu.pipeline_mode<synchronous>, transform_indices = @transform_10, window_bounds = array<i64: 1, 32>}, {pipeline_mode = #tpu.pipeline_mode<synchronous>, transform_indices = @transform_11, window_bounds = array<i64: 1, 32>}, {pipeline_mode = #tpu.pipeline_mode<synchronous>, transform_indices = @transform_12, window_bounds = array<i64: 1, 32>}, {pipeline_mode = #tpu.pipeline_mode<synchronous>, transform_indices = @transform_13, window_bounds = array<i64: 4, 32, 64>}, {pipeline_mode = #tpu.pipeline_mode<synchronous>, transform_indices = @transform_14, window_bounds = array<i64: 1, 64>}, {transform_indices = @transform_15, window_bounds = array<i64: 1, 1, 64>}]} {
    %c0 = arith.constant 0 : index
    %c0_0 = arith.constant 0 : index
    %c0_1 = arith.constant 0 : index
    %0 = vector.load %arg1[%c0, %c0_0, %c0_1] : memref<1x576x4xf32, #tpu.memory_space<vmem>>, vector<1x576x4xf32>
    %1 = vector.shape_cast %0 : vector<1x576x4xf32> to vector<576x4xf32>
    %cst = arith.constant 0.000000e+00 : f32
    %2 = vector.broadcast %cst : f32 to vector<144x32xf32>
    %c0_2 = arith.constant 0 : index
    %c0_3 = arith.constant 0 : index
    %c0_4 = arith.constant 0 : index
    %3 = vector.load %arg2[%c0_2, %c0_3, %c0_4] : memref<9x144x576xf32, #tpu.memory_space<vmem>>, vector<1x144x576xf32>
    %4 = vector.shape_cast %3 : vector<1x144x576xf32> to vector<144x576xf32>
    %cst_5 = arith.constant dense<0.000000e+00> : vector<144x4xf32>
    %5 = tpu.matmul %4, %1, %cst_5 {dimension_numbers = #tpu.dot_dimension_numbers<[1], [0], [0], [1], [0, 0, 1, 1], [], []>} : vector<144x576xf32>, vector<576x4xf32>, vector<144x4xf32> -> vector<144x4xf32>
    %c0_6 = arith.constant 0 : index
    %c0_7 = arith.constant 0 : index
    %c0_8 = arith.constant 0 : index
    %6 = vector.load %arg6[%c0_6, %c0_7, %c0_8] : memref<9x4x32xf32, #tpu.memory_space<vmem>>, vector<1x4x32xf32>
    %7 = vector.shape_cast %6 : vector<1x4x32xf32> to vector<4x32xf32>
    %cst_9 = arith.constant dense<0.000000e+00> : vector<144x32xf32>
    %8 = tpu.matmul %5, %7, %cst_9 {dimension_numbers = #tpu.dot_dimension_numbers<[1], [0], [0], [1], [0, 0, 1, 1], [], []>} : vector<144x4xf32>, vector<4x32xf32>, vector<144x32xf32> -> vector<144x32xf32>
    %9 = arith.addf %2, %8 : vector<144x32xf32>
    %c1 = arith.constant 1 : index
    %c0_10 = arith.constant 0 : index
    %c0_11 = arith.constant 0 : index
    %10 = vector.load %arg2[%c1, %c0_10, %c0_11] : memref<9x144x576xf32, #tpu.memory_space<vmem>>, vector<1x144x576xf32>
    %11 = vector.shape_cast %10 : vector<1x144x576xf32> to vector<144x576xf32>
    %cst_12 = arith.constant dense<0.000000e+00> : vector<144x4xf32>
    %12 = tpu.matmul %11, %1, %cst_12 {dimension_numbers = #tpu.dot_dimension_numbers<[1], [0], [0], [1], [0, 0, 1, 1], [], []>} : vector<144x576xf32>, vector<576x4xf32>, vector<144x4xf32> -> vector<144x4xf32>
    %c1_13 = arith.constant 1 : index
    %c0_14 = arith.constant 0 : index
    %c0_15 = arith.constant 0 : index
    %13 = vector.load %arg6[%c1_13, %c0_14, %c0_15] : memref<9x4x32xf32, #tpu.memory_space<vmem>>, vector<1x4x32xf32>
    %14 = vector.shape_cast %13 : vector<1x4x32xf32> to vector<4x32xf32>
    %cst_16 = arith.constant dense<0.000000e+00> : vector<144x32xf32>
    %15 = tpu.matmul %12, %14, %cst_16 {dimension_numbers = #tpu.dot_dimension_numbers<[1], [0], [0], [1], [0, 0, 1, 1], [], []>} : vector<144x4xf32>, vector<4x32xf32>, vector<144x32xf32> -> vector<144x32xf32>
    %16 = arith.addf %9, %15 : vector<144x32xf32>
    %c2 = arith.constant 2 : index
    %c0_17 = arith.constant 0 : index
    %c0_18 = arith.constant 0 : index
    %17 = vector.load %arg2[%c2, %c0_17, %c0_18] : memref<9x144x576xf32, #tpu.memory_space<vmem>>, vector<1x144x576xf32>
    %18 = vector.shape_cast %17 : vector<1x144x576xf32> to vector<144x576xf32>
    %cst_19 = arith.constant dense<0.000000e+00> : vector<144x4xf32>
    %19 = tpu.matmul %18, %1, %cst_19 {dimension_numbers = #tpu.dot_dimension_numbers<[1], [0], [0], [1], [0, 0, 1, 1], [], []>} : vector<144x576xf32>, vector<576x4xf32>, vector<144x4xf32> -> vector<144x4xf32>
    %c2_20 = arith.constant 2 : index
    %c0_21 = arith.constant 0 : index
    %c0_22 = arith.constant 0 : index
    %20 = vector.load %arg6[%c2_20, %c0_21, %c0_22] : memref<9x4x32xf32, #tpu.memory_space<vmem>>, vector<1x4x32xf32>
    %21 = vector.shape_cast %20 : vector<1x4x32xf32> to vector<4x32xf32>
    %cst_23 = arith.constant dense<0.000000e+00> : vector<144x32xf32>
    %22 = tpu.matmul %19, %21, %cst_23 {dimension_numbers = #tpu.dot_dimension_numbers<[1], [0], [0], [1], [0, 0, 1, 1], [], []>} : vector<144x4xf32>, vector<4x32xf32>, vector<144x32xf32> -> vector<144x32xf32>
    %23 = arith.addf %16, %22 : vector<144x32xf32>
    %c3 = arith.constant 3 : index
    %c0_24 = arith.constant 0 : index
    %c0_25 = arith.constant 0 : index
    %24 = vector.load %arg2[%c3, %c0_24, %c0_25] : memref<9x144x576xf32, #tpu.memory_space<vmem>>, vector<1x144x576xf32>
    %25 = vector.shape_cast %24 : vector<1x144x576xf32> to vector<144x576xf32>
    %cst_26 = arith.constant dense<0.000000e+00> : vector<144x4xf32>
    %26 = tpu.matmul %25, %1, %cst_26 {dimension_numbers = #tpu.dot_dimension_numbers<[1], [0], [0], [1], [0, 0, 1, 1], [], []>} : vector<144x576xf32>, vector<576x4xf32>, vector<144x4xf32> -> vector<144x4xf32>
    %c3_27 = arith.constant 3 : index
    %c0_28 = arith.constant 0 : index
    %c0_29 = arith.constant 0 : index
    %27 = vector.load %arg6[%c3_27, %c0_28, %c0_29] : memref<9x4x32xf32, #tpu.memory_space<vmem>>, vector<1x4x32xf32>
    %28 = vector.shape_cast %27 : vector<1x4x32xf32> to vector<4x32xf32>
    %cst_30 = arith.constant dense<0.000000e+00> : vector<144x32xf32>
    %29 = tpu.matmul %26, %28, %cst_30 {dimension_numbers = #tpu.dot_dimension_numbers<[1], [0], [0], [1], [0, 0, 1, 1], [], []>} : vector<144x4xf32>, vector<4x32xf32>, vector<144x32xf32> -> vector<144x32xf32>
    %30 = arith.addf %23, %29 : vector<144x32xf32>
    %c4 = arith.constant 4 : index
    %c0_31 = arith.constant 0 : index
    %c0_32 = arith.constant 0 : index
    %31 = vector.load %arg2[%c4, %c0_31, %c0_32] : memref<9x144x576xf32, #tpu.memory_space<vmem>>, vector<1x144x576xf32>
    %32 = vector.shape_cast %31 : vector<1x144x576xf32> to vector<144x576xf32>
    %cst_33 = arith.constant dense<0.000000e+00> : vector<144x4xf32>
    %33 = tpu.matmul %32, %1, %cst_33 {dimension_numbers = #tpu.dot_dimension_numbers<[1], [0], [0], [1], [0, 0, 1, 1], [], []>} : vector<144x576xf32>, vector<576x4xf32>, vector<144x4xf32> -> vector<144x4xf32>
    %c4_34 = arith.constant 4 : index
    %c0_35 = arith.constant 0 : index
    %c0_36 = arith.constant 0 : index
    %34 = vector.load %arg6[%c4_34, %c0_35, %c0_36] : memref<9x4x32xf32, #tpu.memory_space<vmem>>, vector<1x4x32xf32>
    %35 = vector.shape_cast %34 : vector<1x4x32xf32> to vector<4x32xf32>
    %cst_37 = arith.constant dense<0.000000e+00> : vector<144x32xf32>
    %36 = tpu.matmul %33, %35, %cst_37 {dimension_numbers = #tpu.dot_dimension_numbers<[1], [0], [0], [1], [0, 0, 1, 1], [], []>} : vector<144x4xf32>, vector<4x32xf32>, vector<144x32xf32> -> vector<144x32xf32>
    %37 = arith.addf %30, %36 : vector<144x32xf32>
    %c5 = arith.constant 5 : index
    %c0_38 = arith.constant 0 : index
    %c0_39 = arith.constant 0 : index
    %38 = vector.load %arg2[%c5, %c0_38, %c0_39] : memref<9x144x576xf32, #tpu.memory_space<vmem>>, vector<1x144x576xf32>
    %39 = vector.shape_cast %38 : vector<1x144x576xf32> to vector<144x576xf32>
    %cst_40 = arith.constant dense<0.000000e+00> : vector<144x4xf32>
    %40 = tpu.matmul %39, %1, %cst_40 {dimension_numbers = #tpu.dot_dimension_numbers<[1], [0], [0], [1], [0, 0, 1, 1], [], []>} : vector<144x576xf32>, vector<576x4xf32>, vector<144x4xf32> -> vector<144x4xf32>
    %c5_41 = arith.constant 5 : index
    %c0_42 = arith.constant 0 : index
    %c0_43 = arith.constant 0 : index
    %41 = vector.load %arg6[%c5_41, %c0_42, %c0_43] : memref<9x4x32xf32, #tpu.memory_space<vmem>>, vector<1x4x32xf32>
    %42 = vector.shape_cast %41 : vector<1x4x32xf32> to vector<4x32xf32>
    %cst_44 = arith.constant dense<0.000000e+00> : vector<144x32xf32>
    %43 = tpu.matmul %40, %42, %cst_44 {dimension_numbers = #tpu.dot_dimension_numbers<[1], [0], [0], [1], [0, 0, 1, 1], [], []>} : vector<144x4xf32>, vector<4x32xf32>, vector<144x32xf32> -> vector<144x32xf32>
    %44 = arith.addf %37, %43 : vector<144x32xf32>
    %c6 = arith.constant 6 : index
    %c0_45 = arith.constant 0 : index
    %c0_46 = arith.constant 0 : index
    %45 = vector.load %arg2[%c6, %c0_45, %c0_46] : memref<9x144x576xf32, #tpu.memory_space<vmem>>, vector<1x144x576xf32>
    %46 = vector.shape_cast %45 : vector<1x144x576xf32> to vector<144x576xf32>
    %cst_47 = arith.constant dense<0.000000e+00> : vector<144x4xf32>
    %47 = tpu.matmul %46, %1, %cst_47 {dimension_numbers = #tpu.dot_dimension_numbers<[1], [0], [0], [1], [0, 0, 1, 1], [], []>} : vector<144x576xf32>, vector<576x4xf32>, vector<144x4xf32> -> vector<144x4xf32>
    %c6_48 = arith.constant 6 : index
    %c0_49 = arith.constant 0 : index
    %c0_50 = arith.constant 0 : index
    %48 = vector.load %arg6[%c6_48, %c0_49, %c0_50] : memref<9x4x32xf32, #tpu.memory_space<vmem>>, vector<1x4x32xf32>
    %49 = vector.shape_cast %48 : vector<1x4x32xf32> to vector<4x32xf32>
    %cst_51 = arith.constant dense<0.000000e+00> : vector<144x32xf32>
    %50 = tpu.matmul %47, %49, %cst_51 {dimension_numbers = #tpu.dot_dimension_numbers<[1], [0], [0], [1], [0, 0, 1, 1], [], []>} : vector<144x4xf32>, vector<4x32xf32>, vector<144x32xf32> -> vector<144x32xf32>
    %51 = arith.addf %44, %50 : vector<144x32xf32>
    %c7 = arith.constant 7 : index
    %c0_52 = arith.constant 0 : index
    %c0_53 = arith.constant 0 : index
    %52 = vector.load %arg2[%c7, %c0_52, %c0_53] : memref<9x144x576xf32, #tpu.memory_space<vmem>>, vector<1x144x576xf32>
    %53 = vector.shape_cast %52 : vector<1x144x576xf32> to vector<144x576xf32>
    %cst_54 = arith.constant dense<0.000000e+00> : vector<144x4xf32>
    %54 = tpu.matmul %53, %1, %cst_54 {dimension_numbers = #tpu.dot_dimension_numbers<[1], [0], [0], [1], [0, 0, 1, 1], [], []>} : vector<144x576xf32>, vector<576x4xf32>, vector<144x4xf32> -> vector<144x4xf32>
    %c7_55 = arith.constant 7 : index
    %c0_56 = arith.constant 0 : index
    %c0_57 = arith.constant 0 : index
    %55 = vector.load %arg6[%c7_55, %c0_56, %c0_57] : memref<9x4x32xf32, #tpu.memory_space<vmem>>, vector<1x4x32xf32>
    %56 = vector.shape_cast %55 : vector<1x4x32xf32> to vector<4x32xf32>
    %cst_58 = arith.constant dense<0.000000e+00> : vector<144x32xf32>
    %57 = tpu.matmul %54, %56, %cst_58 {dimension_numbers = #tpu.dot_dimension_numbers<[1], [0], [0], [1], [0, 0, 1, 1], [], []>} : vector<144x4xf32>, vector<4x32xf32>, vector<144x32xf32> -> vector<144x32xf32>
    %58 = arith.addf %51, %57 : vector<144x32xf32>
    %c8 = arith.constant 8 : index
    %c0_59 = arith.constant 0 : index
    %c0_60 = arith.constant 0 : index
    %59 = vector.load %arg2[%c8, %c0_59, %c0_60] : memref<9x144x576xf32, #tpu.memory_space<vmem>>, vector<1x144x576xf32>
    %60 = vector.shape_cast %59 : vector<1x144x576xf32> to vector<144x576xf32>
    %cst_61 = arith.constant dense<0.000000e+00> : vector<144x4xf32>
    %61 = tpu.matmul %60, %1, %cst_61 {dimension_numbers = #tpu.dot_dimension_numbers<[1], [0], [0], [1], [0, 0, 1, 1], [], []>} : vector<144x576xf32>, vector<576x4xf32>, vector<144x4xf32> -> vector<144x4xf32>
    %c8_62 = arith.constant 8 : index
    %c0_63 = arith.constant 0 : index
    %c0_64 = arith.constant 0 : index
    %62 = vector.load %arg6[%c8_62, %c0_63, %c0_64] : memref<9x4x32xf32, #tpu.memory_space<vmem>>, vector<1x4x32xf32>
    %63 = vector.shape_cast %62 : vector<1x4x32xf32> to vector<4x32xf32>
    %cst_65 = arith.constant dense<0.000000e+00> : vector<144x32xf32>
    %64 = tpu.matmul %61, %63, %cst_65 {dimension_numbers = #tpu.dot_dimension_numbers<[1], [0], [0], [1], [0, 0, 1, 1], [], []>} : vector<144x4xf32>, vector<4x32xf32>, vector<144x32xf32> -> vector<144x32xf32>
    %65 = arith.addf %58, %64 : vector<144x32xf32>
    %c0_66 = arith.constant 0 : index
    %c0_67 = arith.constant 0 : index
    %66 = vector.load %arg10[%c0_66, %c0_67] : memref<1x32xf32, #tpu.memory_space<vmem>>, vector<1x32xf32>
    %67 = vector.broadcast %66 : vector<1x32xf32> to vector<144x32xf32>
    %68 = arith.addf %65, %67 : vector<144x32xf32>
    %cst_68 = arith.constant 0.000000e+00 : f32
    %69 = vector.broadcast %cst_68 : f32 to vector<144x32xf32>
    %70 = arith.cmpf ogt, %68, %69 : vector<144x32xf32>
    %cst_69 = arith.constant 0.000000e+00 : f32
    %71 = vector.broadcast %cst_69 : f32 to vector<144x32xf32>
    %72 = arith.minimumf %68, %71 : vector<144x32xf32>
    %73 = math.exp %72 : vector<144x32xf32>
    %cst_70 = arith.constant 1.000000e+00 : f32
    %74 = vector.broadcast %cst_70 : f32 to vector<144x32xf32>
    %75 = arith.subf %73, %74 : vector<144x32xf32>
    %76 = arith.select %70, %68, %75 : vector<144x32xi1>, vector<144x32xf32>
    %cst_71 = arith.constant dense<0.000000e+00> : vector<32xf32>
    %77 = vector.multi_reduction <add>, %76, %cst_71 [0] : vector<144x32xf32> to vector<32xf32>
    %78 = vector.shape_cast %77 : vector<32xf32> to vector<1x32xf32>
    %cst_72 = arith.constant 1.440000e+02 : f32
    %79 = vector.broadcast %cst_72 : f32 to vector<1x32xf32>
    %80 = arith.divf %78, %79 : vector<1x32xf32>
    %81 = arith.mulf %76, %76 : vector<144x32xf32>
    %cst_73 = arith.constant dense<0.000000e+00> : vector<32xf32>
    %82 = vector.multi_reduction <add>, %81, %cst_73 [0] : vector<144x32xf32> to vector<32xf32>
    %83 = vector.shape_cast %82 : vector<32xf32> to vector<1x32xf32>
    %cst_74 = arith.constant 1.440000e+02 : f32
    %84 = vector.broadcast %cst_74 : f32 to vector<1x32xf32>
    %85 = arith.divf %83, %84 : vector<1x32xf32>
    %86 = arith.mulf %80, %80 : vector<1x32xf32>
    %87 = arith.subf %85, %86 : vector<1x32xf32>
    %88 = vector.broadcast %80 : vector<1x32xf32> to vector<144x32xf32>
    %89 = arith.subf %76, %88 : vector<144x32xf32>
    %cst_75 = arith.constant 9.99999974E-6 : f32
    %90 = vector.broadcast %cst_75 : f32 to vector<1x32xf32>
    %91 = arith.addf %87, %90 : vector<1x32xf32>
    %92 = math.rsqrt %91 : vector<1x32xf32>
    %93 = vector.broadcast %92 : vector<1x32xf32> to vector<144x32xf32>
    %94 = arith.mulf %89, %93 : vector<144x32xf32>
    %cst_76 = arith.constant 0.000000e+00 : f32
    %95 = vector.broadcast %cst_76 : f32 to vector<36x32xf32>
    %c0_77 = arith.constant 0 : index
    %c0_78 = arith.constant 0 : index
    %c0_79 = arith.constant 0 : index
    %96 = vector.load %arg3[%c0_77, %c0_78, %c0_79] : memref<9x36x144xf32, #tpu.memory_space<vmem>>, vector<1x36x144xf32>
    %97 = vector.shape_cast %96 : vector<1x36x144xf32> to vector<36x144xf32>
    %cst_80 = arith.constant dense<0.000000e+00> : vector<36x32xf32>
    %98 = tpu.matmul %97, %94, %cst_80 {dimension_numbers = #tpu.dot_dimension_numbers<[1], [0], [0], [1], [0, 0, 1, 1], [], []>} : vector<36x144xf32>, vector<144x32xf32>, vector<36x32xf32> -> vector<36x32xf32>
    %c0_81 = arith.constant 0 : index
    %c0_82 = arith.constant 0 : index
    %c0_83 = arith.constant 0 : index
    %99 = vector.load %arg7[%c0_81, %c0_82, %c0_83] : memref<9x32x32xf32, #tpu.memory_space<vmem>>, vector<1x32x32xf32>
    %100 = vector.shape_cast %99 : vector<1x32x32xf32> to vector<32x32xf32>
    %cst_84 = arith.constant dense<0.000000e+00> : vector<36x32xf32>
    %101 = tpu.matmul %98, %100, %cst_84 {dimension_numbers = #tpu.dot_dimension_numbers<[1], [0], [0], [1], [0, 0, 1, 1], [], []>} : vector<36x32xf32>, vector<32x32xf32>, vector<36x32xf32> -> vector<36x32xf32>
    %102 = arith.addf %95, %101 : vector<36x32xf32>
    %c1_85 = arith.constant 1 : index
    %c0_86 = arith.constant 0 : index
    %c0_87 = arith.constant 0 : index
    %103 = vector.load %arg3[%c1_85, %c0_86, %c0_87] : memref<9x36x144xf32, #tpu.memory_space<vmem>>, vector<1x36x144xf32>
    %104 = vector.shape_cast %103 : vector<1x36x144xf32> to vector<36x144xf32>
    %cst_88 = arith.constant dense<0.000000e+00> : vector<36x32xf32>
    %105 = tpu.matmul %104, %94, %cst_88 {dimension_numbers = #tpu.dot_dimension_numbers<[1], [0], [0], [1], [0, 0, 1, 1], [], []>} : vector<36x144xf32>, vector<144x32xf32>, vector<36x32xf32> -> vector<36x32xf32>
    %c1_89 = arith.constant 1 : index
    %c0_90 = arith.constant 0 : index
    %c0_91 = arith.constant 0 : index
    %106 = vector.load %arg7[%c1_89, %c0_90, %c0_91] : memref<9x32x32xf32, #tpu.memory_space<vmem>>, vector<1x32x32xf32>
    %107 = vector.shape_cast %106 : vector<1x32x32xf32> to vector<32x32xf32>
    %cst_92 = arith.constant dense<0.000000e+00> : vector<36x32xf32>
    %108 = tpu.matmul %105, %107, %cst_92 {dimension_numbers = #tpu.dot_dimension_numbers<[1], [0], [0], [1], [0, 0, 1, 1], [], []>} : vector<36x32xf32>, vector<32x32xf32>, vector<36x32xf32> -> vector<36x32xf32>
    %109 = arith.addf %102, %108 : vector<36x32xf32>
    %c2_93 = arith.constant 2 : index
    %c0_94 = arith.constant 0 : index
    %c0_95 = arith.constant 0 : index
    %110 = vector.load %arg3[%c2_93, %c0_94, %c0_95] : memref<9x36x144xf32, #tpu.memory_space<vmem>>, vector<1x36x144xf32>
    %111 = vector.shape_cast %110 : vector<1x36x144xf32> to vector<36x144xf32>
    %cst_96 = arith.constant dense<0.000000e+00> : vector<36x32xf32>
    %112 = tpu.matmul %111, %94, %cst_96 {dimension_numbers = #tpu.dot_dimension_numbers<[1], [0], [0], [1], [0, 0, 1, 1], [], []>} : vector<36x144xf32>, vector<144x32xf32>, vector<36x32xf32> -> vector<36x32xf32>
    %c2_97 = arith.constant 2 : index
    %c0_98 = arith.constant 0 : index
    %c0_99 = arith.constant 0 : index
    %113 = vector.load %arg7[%c2_97, %c0_98, %c0_99] : memref<9x32x32xf32, #tpu.memory_space<vmem>>, vector<1x32x32xf32>
    %114 = vector.shape_cast %113 : vector<1x32x32xf32> to vector<32x32xf32>
    %cst_100 = arith.constant dense<0.000000e+00> : vector<36x32xf32>
    %115 = tpu.matmul %112, %114, %cst_100 {dimension_numbers = #tpu.dot_dimension_numbers<[1], [0], [0], [1], [0, 0, 1, 1], [], []>} : vector<36x32xf32>, vector<32x32xf32>, vector<36x32xf32> -> vector<36x32xf32>
    %116 = arith.addf %109, %115 : vector<36x32xf32>
    %c3_101 = arith.constant 3 : index
    %c0_102 = arith.constant 0 : index
    %c0_103 = arith.constant 0 : index
    %117 = vector.load %arg3[%c3_101, %c0_102, %c0_103] : memref<9x36x144xf32, #tpu.memory_space<vmem>>, vector<1x36x144xf32>
    %118 = vector.shape_cast %117 : vector<1x36x144xf32> to vector<36x144xf32>
    %cst_104 = arith.constant dense<0.000000e+00> : vector<36x32xf32>
    %119 = tpu.matmul %118, %94, %cst_104 {dimension_numbers = #tpu.dot_dimension_numbers<[1], [0], [0], [1], [0, 0, 1, 1], [], []>} : vector<36x144xf32>, vector<144x32xf32>, vector<36x32xf32> -> vector<36x32xf32>
    %c3_105 = arith.constant 3 : index
    %c0_106 = arith.constant 0 : index
    %c0_107 = arith.constant 0 : index
    %120 = vector.load %arg7[%c3_105, %c0_106, %c0_107] : memref<9x32x32xf32, #tpu.memory_space<vmem>>, vector<1x32x32xf32>
    %121 = vector.shape_cast %120 : vector<1x32x32xf32> to vector<32x32xf32>
    %cst_108 = arith.constant dense<0.000000e+00> : vector<36x32xf32>
    %122 = tpu.matmul %119, %121, %cst_108 {dimension_numbers = #tpu.dot_dimension_numbers<[1], [0], [0], [1], [0, 0, 1, 1], [], []>} : vector<36x32xf32>, vector<32x32xf32>, vector<36x32xf32> -> vector<36x32xf32>
    %123 = arith.addf %116, %122 : vector<36x32xf32>
    %c4_109 = arith.constant 4 : index
    %c0_110 = arith.constant 0 : index
    %c0_111 = arith.constant 0 : index
    %124 = vector.load %arg3[%c4_109, %c0_110, %c0_111] : memref<9x36x144xf32, #tpu.memory_space<vmem>>, vector<1x36x144xf32>
    %125 = vector.shape_cast %124 : vector<1x36x144xf32> to vector<36x144xf32>
    %cst_112 = arith.constant dense<0.000000e+00> : vector<36x32xf32>
    %126 = tpu.matmul %125, %94, %cst_112 {dimension_numbers = #tpu.dot_dimension_numbers<[1], [0], [0], [1], [0, 0, 1, 1], [], []>} : vector<36x144xf32>, vector<144x32xf32>, vector<36x32xf32> -> vector<36x32xf32>
    %c4_113 = arith.constant 4 : index
    %c0_114 = arith.constant 0 : index
    %c0_115 = arith.constant 0 : index
    %127 = vector.load %arg7[%c4_113, %c0_114, %c0_115] : memref<9x32x32xf32, #tpu.memory_space<vmem>>, vector<1x32x32xf32>
    %128 = vector.shape_cast %127 : vector<1x32x32xf32> to vector<32x32xf32>
    %cst_116 = arith.constant dense<0.000000e+00> : vector<36x32xf32>
    %129 = tpu.matmul %126, %128, %cst_116 {dimension_numbers = #tpu.dot_dimension_numbers<[1], [0], [0], [1], [0, 0, 1, 1], [], []>} : vector<36x32xf32>, vector<32x32xf32>, vector<36x32xf32> -> vector<36x32xf32>
    %130 = arith.addf %123, %129 : vector<36x32xf32>
    %c5_117 = arith.constant 5 : index
    %c0_118 = arith.constant 0 : index
    %c0_119 = arith.constant 0 : index
    %131 = vector.load %arg3[%c5_117, %c0_118, %c0_119] : memref<9x36x144xf32, #tpu.memory_space<vmem>>, vector<1x36x144xf32>
    %132 = vector.shape_cast %131 : vector<1x36x144xf32> to vector<36x144xf32>
    %cst_120 = arith.constant dense<0.000000e+00> : vector<36x32xf32>
    %133 = tpu.matmul %132, %94, %cst_120 {dimension_numbers = #tpu.dot_dimension_numbers<[1], [0], [0], [1], [0, 0, 1, 1], [], []>} : vector<36x144xf32>, vector<144x32xf32>, vector<36x32xf32> -> vector<36x32xf32>
    %c5_121 = arith.constant 5 : index
    %c0_122 = arith.constant 0 : index
    %c0_123 = arith.constant 0 : index
    %134 = vector.load %arg7[%c5_121, %c0_122, %c0_123] : memref<9x32x32xf32, #tpu.memory_space<vmem>>, vector<1x32x32xf32>
    %135 = vector.shape_cast %134 : vector<1x32x32xf32> to vector<32x32xf32>
    %cst_124 = arith.constant dense<0.000000e+00> : vector<36x32xf32>
    %136 = tpu.matmul %133, %135, %cst_124 {dimension_numbers = #tpu.dot_dimension_numbers<[1], [0], [0], [1], [0, 0, 1, 1], [], []>} : vector<36x32xf32>, vector<32x32xf32>, vector<36x32xf32> -> vector<36x32xf32>
    %137 = arith.addf %130, %136 : vector<36x32xf32>
    %c6_125 = arith.constant 6 : index
    %c0_126 = arith.constant 0 : index
    %c0_127 = arith.constant 0 : index
    %138 = vector.load %arg3[%c6_125, %c0_126, %c0_127] : memref<9x36x144xf32, #tpu.memory_space<vmem>>, vector<1x36x144xf32>
    %139 = vector.shape_cast %138 : vector<1x36x144xf32> to vector<36x144xf32>
    %cst_128 = arith.constant dense<0.000000e+00> : vector<36x32xf32>
    %140 = tpu.matmul %139, %94, %cst_128 {dimension_numbers = #tpu.dot_dimension_numbers<[1], [0], [0], [1], [0, 0, 1, 1], [], []>} : vector<36x144xf32>, vector<144x32xf32>, vector<36x32xf32> -> vector<36x32xf32>
    %c6_129 = arith.constant 6 : index
    %c0_130 = arith.constant 0 : index
    %c0_131 = arith.constant 0 : index
    %141 = vector.load %arg7[%c6_129, %c0_130, %c0_131] : memref<9x32x32xf32, #tpu.memory_space<vmem>>, vector<1x32x32xf32>
    %142 = vector.shape_cast %141 : vector<1x32x32xf32> to vector<32x32xf32>
    %cst_132 = arith.constant dense<0.000000e+00> : vector<36x32xf32>
    %143 = tpu.matmul %140, %142, %cst_132 {dimension_numbers = #tpu.dot_dimension_numbers<[1], [0], [0], [1], [0, 0, 1, 1], [], []>} : vector<36x32xf32>, vector<32x32xf32>, vector<36x32xf32> -> vector<36x32xf32>
    %144 = arith.addf %137, %143 : vector<36x32xf32>
    %c7_133 = arith.constant 7 : index
    %c0_134 = arith.constant 0 : index
    %c0_135 = arith.constant 0 : index
    %145 = vector.load %arg3[%c7_133, %c0_134, %c0_135] : memref<9x36x144xf32, #tpu.memory_space<vmem>>, vector<1x36x144xf32>
    %146 = vector.shape_cast %145 : vector<1x36x144xf32> to vector<36x144xf32>
    %cst_136 = arith.constant dense<0.000000e+00> : vector<36x32xf32>
    %147 = tpu.matmul %146, %94, %cst_136 {dimension_numbers = #tpu.dot_dimension_numbers<[1], [0], [0], [1], [0, 0, 1, 1], [], []>} : vector<36x144xf32>, vector<144x32xf32>, vector<36x32xf32> -> vector<36x32xf32>
    %c7_137 = arith.constant 7 : index
    %c0_138 = arith.constant 0 : index
    %c0_139 = arith.constant 0 : index
    %148 = vector.load %arg7[%c7_137, %c0_138, %c0_139] : memref<9x32x32xf32, #tpu.memory_space<vmem>>, vector<1x32x32xf32>
    %149 = vector.shape_cast %148 : vector<1x32x32xf32> to vector<32x32xf32>
    %cst_140 = arith.constant dense<0.000000e+00> : vector<36x32xf32>
    %150 = tpu.matmul %147, %149, %cst_140 {dimension_numbers = #tpu.dot_dimension_numbers<[1], [0], [0], [1], [0, 0, 1, 1], [], []>} : vector<36x32xf32>, vector<32x32xf32>, vector<36x32xf32> -> vector<36x32xf32>
    %151 = arith.addf %144, %150 : vector<36x32xf32>
    %c8_141 = arith.constant 8 : index
    %c0_142 = arith.constant 0 : index
    %c0_143 = arith.constant 0 : index
    %152 = vector.load %arg3[%c8_141, %c0_142, %c0_143] : memref<9x36x144xf32, #tpu.memory_space<vmem>>, vector<1x36x144xf32>
    %153 = vector.shape_cast %152 : vector<1x36x144xf32> to vector<36x144xf32>
    %cst_144 = arith.constant dense<0.000000e+00> : vector<36x32xf32>
    %154 = tpu.matmul %153, %94, %cst_144 {dimension_numbers = #tpu.dot_dimension_numbers<[1], [0], [0], [1], [0, 0, 1, 1], [], []>} : vector<36x144xf32>, vector<144x32xf32>, vector<36x32xf32> -> vector<36x32xf32>
    %c8_145 = arith.constant 8 : index
    %c0_146 = arith.constant 0 : index
    %c0_147 = arith.constant 0 : index
    %155 = vector.load %arg7[%c8_145, %c0_146, %c0_147] : memref<9x32x32xf32, #tpu.memory_space<vmem>>, vector<1x32x32xf32>
    %156 = vector.shape_cast %155 : vector<1x32x32xf32> to vector<32x32xf32>
    %cst_148 = arith.constant dense<0.000000e+00> : vector<36x32xf32>
    %157 = tpu.matmul %154, %156, %cst_148 {dimension_numbers = #tpu.dot_dimension_numbers<[1], [0], [0], [1], [0, 0, 1, 1], [], []>} : vector<36x32xf32>, vector<32x32xf32>, vector<36x32xf32> -> vector<36x32xf32>
    %158 = arith.addf %151, %157 : vector<36x32xf32>
    %c0_149 = arith.constant 0 : index
    %c0_150 = arith.constant 0 : index
    %159 = vector.load %arg11[%c0_149, %c0_150] : memref<1x32xf32, #tpu.memory_space<vmem>>, vector<1x32xf32>
    %160 = vector.broadcast %159 : vector<1x32xf32> to vector<36x32xf32>
    %161 = arith.addf %158, %160 : vector<36x32xf32>
    %cst_151 = arith.constant 0.000000e+00 : f32
    %162 = vector.broadcast %cst_151 : f32 to vector<36x32xf32>
    %163 = arith.cmpf ogt, %161, %162 : vector<36x32xf32>
    %cst_152 = arith.constant 0.000000e+00 : f32
    %164 = vector.broadcast %cst_152 : f32 to vector<36x32xf32>
    %165 = arith.minimumf %161, %164 : vector<36x32xf32>
    %166 = math.exp %165 : vector<36x32xf32>
    %cst_153 = arith.constant 1.000000e+00 : f32
    %167 = vector.broadcast %cst_153 : f32 to vector<36x32xf32>
    %168 = arith.subf %166, %167 : vector<36x32xf32>
    %169 = arith.select %163, %161, %168 : vector<36x32xi1>, vector<36x32xf32>
    %cst_154 = arith.constant dense<0.000000e+00> : vector<32xf32>
    %170 = vector.multi_reduction <add>, %169, %cst_154 [0] : vector<36x32xf32> to vector<32xf32>
    %171 = vector.shape_cast %170 : vector<32xf32> to vector<1x32xf32>
    %cst_155 = arith.constant 3.600000e+01 : f32
    %172 = vector.broadcast %cst_155 : f32 to vector<1x32xf32>
    %173 = arith.divf %171, %172 : vector<1x32xf32>
    %174 = arith.mulf %169, %169 : vector<36x32xf32>
    %cst_156 = arith.constant dense<0.000000e+00> : vector<32xf32>
    %175 = vector.multi_reduction <add>, %174, %cst_156 [0] : vector<36x32xf32> to vector<32xf32>
    %176 = vector.shape_cast %175 : vector<32xf32> to vector<1x32xf32>
    %cst_157 = arith.constant 3.600000e+01 : f32
    %177 = vector.broadcast %cst_157 : f32 to vector<1x32xf32>
    %178 = arith.divf %176, %177 : vector<1x32xf32>
    %179 = arith.mulf %173, %173 : vector<1x32xf32>
    %180 = arith.subf %178, %179 : vector<1x32xf32>
    %181 = vector.broadcast %173 : vector<1x32xf32> to vector<36x32xf32>
    %182 = arith.subf %169, %181 : vector<36x32xf32>
    %cst_158 = arith.constant 9.99999974E-6 : f32
    %183 = vector.broadcast %cst_158 : f32 to vector<1x32xf32>
    %184 = arith.addf %180, %183 : vector<1x32xf32>
    %185 = math.rsqrt %184 : vector<1x32xf32>
    %186 = vector.broadcast %185 : vector<1x32xf32> to vector<36x32xf32>
    %187 = arith.mulf %182, %186 : vector<36x32xf32>
    %cst_159 = arith.constant 0.000000e+00 : f32
    %188 = vector.broadcast %cst_159 : f32 to vector<9x32xf32>
    %c0_160 = arith.constant 0 : index
    %c0_161 = arith.constant 0 : index
    %c0_162 = arith.constant 0 : index
    %189 = vector.load %arg4[%c0_160, %c0_161, %c0_162] : memref<9x9x36xf32, #tpu.memory_space<vmem>>, vector<1x9x36xf32>
    %190 = vector.shape_cast %189 : vector<1x9x36xf32> to vector<9x36xf32>
    %cst_163 = arith.constant dense<0.000000e+00> : vector<9x32xf32>
    %191 = tpu.matmul %190, %187, %cst_163 {dimension_numbers = #tpu.dot_dimension_numbers<[1], [0], [0], [1], [0, 0, 1, 1], [], []>} : vector<9x36xf32>, vector<36x32xf32>, vector<9x32xf32> -> vector<9x32xf32>
    %c0_164 = arith.constant 0 : index
    %c0_165 = arith.constant 0 : index
    %c0_166 = arith.constant 0 : index
    %192 = vector.load %arg8[%c0_164, %c0_165, %c0_166] : memref<9x32x32xf32, #tpu.memory_space<vmem>>, vector<1x32x32xf32>
    %193 = vector.shape_cast %192 : vector<1x32x32xf32> to vector<32x32xf32>
    %cst_167 = arith.constant dense<0.000000e+00> : vector<9x32xf32>
    %194 = tpu.matmul %191, %193, %cst_167 {dimension_numbers = #tpu.dot_dimension_numbers<[1], [0], [0], [1], [0, 0, 1, 1], [], []>} : vector<9x32xf32>, vector<32x32xf32>, vector<9x32xf32> -> vector<9x32xf32>
    %195 = arith.addf %188, %194 : vector<9x32xf32>
    %c1_168 = arith.constant 1 : index
    %c0_169 = arith.constant 0 : index
    %c0_170 = arith.constant 0 : index
    %196 = vector.load %arg4[%c1_168, %c0_169, %c0_170] : memref<9x9x36xf32, #tpu.memory_space<vmem>>, vector<1x9x36xf32>
    %197 = vector.shape_cast %196 : vector<1x9x36xf32> to vector<9x36xf32>
    %cst_171 = arith.constant dense<0.000000e+00> : vector<9x32xf32>
    %198 = tpu.matmul %197, %187, %cst_171 {dimension_numbers = #tpu.dot_dimension_numbers<[1], [0], [0], [1], [0, 0, 1, 1], [], []>} : vector<9x36xf32>, vector<36x32xf32>, vector<9x32xf32> -> vector<9x32xf32>
    %c1_172 = arith.constant 1 : index
    %c0_173 = arith.constant 0 : index
    %c0_174 = arith.constant 0 : index
    %199 = vector.load %arg8[%c1_172, %c0_173, %c0_174] : memref<9x32x32xf32, #tpu.memory_space<vmem>>, vector<1x32x32xf32>
    %200 = vector.shape_cast %199 : vector<1x32x32xf32> to vector<32x32xf32>
    %cst_175 = arith.constant dense<0.000000e+00> : vector<9x32xf32>
    %201 = tpu.matmul %198, %200, %cst_175 {dimension_numbers = #tpu.dot_dimension_numbers<[1], [0], [0], [1], [0, 0, 1, 1], [], []>} : vector<9x32xf32>, vector<32x32xf32>, vector<9x32xf32> -> vector<9x32xf32>
    %202 = arith.addf %195, %201 : vector<9x32xf32>
    %c2_176 = arith.constant 2 : index
    %c0_177 = arith.constant 0 : index
    %c0_178 = arith.constant 0 : index
    %203 = vector.load %arg4[%c2_176, %c0_177, %c0_178] : memref<9x9x36xf32, #tpu.memory_space<vmem>>, vector<1x9x36xf32>
    %204 = vector.shape_cast %203 : vector<1x9x36xf32> to vector<9x36xf32>
    %cst_179 = arith.constant dense<0.000000e+00> : vector<9x32xf32>
    %205 = tpu.matmul %204, %187, %cst_179 {dimension_numbers = #tpu.dot_dimension_numbers<[1], [0], [0], [1], [0, 0, 1, 1], [], []>} : vector<9x36xf32>, vector<36x32xf32>, vector<9x32xf32> -> vector<9x32xf32>
    %c2_180 = arith.constant 2 : index
    %c0_181 = arith.constant 0 : index
    %c0_182 = arith.constant 0 : index
    %206 = vector.load %arg8[%c2_180, %c0_181, %c0_182] : memref<9x32x32xf32, #tpu.memory_space<vmem>>, vector<1x32x32xf32>
    %207 = vector.shape_cast %206 : vector<1x32x32xf32> to vector<32x32xf32>
    %cst_183 = arith.constant dense<0.000000e+00> : vector<9x32xf32>
    %208 = tpu.matmul %205, %207, %cst_183 {dimension_numbers = #tpu.dot_dimension_numbers<[1], [0], [0], [1], [0, 0, 1, 1], [], []>} : vector<9x32xf32>, vector<32x32xf32>, vector<9x32xf32> -> vector<9x32xf32>
    %209 = arith.addf %202, %208 : vector<9x32xf32>
    %c3_184 = arith.constant 3 : index
    %c0_185 = arith.constant 0 : index
    %c0_186 = arith.constant 0 : index
    %210 = vector.load %arg4[%c3_184, %c0_185, %c0_186] : memref<9x9x36xf32, #tpu.memory_space<vmem>>, vector<1x9x36xf32>
    %211 = vector.shape_cast %210 : vector<1x9x36xf32> to vector<9x36xf32>
    %cst_187 = arith.constant dense<0.000000e+00> : vector<9x32xf32>
    %212 = tpu.matmul %211, %187, %cst_187 {dimension_numbers = #tpu.dot_dimension_numbers<[1], [0], [0], [1], [0, 0, 1, 1], [], []>} : vector<9x36xf32>, vector<36x32xf32>, vector<9x32xf32> -> vector<9x32xf32>
    %c3_188 = arith.constant 3 : index
    %c0_189 = arith.constant 0 : index
    %c0_190 = arith.constant 0 : index
    %213 = vector.load %arg8[%c3_188, %c0_189, %c0_190] : memref<9x32x32xf32, #tpu.memory_space<vmem>>, vector<1x32x32xf32>
    %214 = vector.shape_cast %213 : vector<1x32x32xf32> to vector<32x32xf32>
    %cst_191 = arith.constant dense<0.000000e+00> : vector<9x32xf32>
    %215 = tpu.matmul %212, %214, %cst_191 {dimension_numbers = #tpu.dot_dimension_numbers<[1], [0], [0], [1], [0, 0, 1, 1], [], []>} : vector<9x32xf32>, vector<32x32xf32>, vector<9x32xf32> -> vector<9x32xf32>
    %216 = arith.addf %209, %215 : vector<9x32xf32>
    %c4_192 = arith.constant 4 : index
    %c0_193 = arith.constant 0 : index
    %c0_194 = arith.constant 0 : index
    %217 = vector.load %arg4[%c4_192, %c0_193, %c0_194] : memref<9x9x36xf32, #tpu.memory_space<vmem>>, vector<1x9x36xf32>
    %218 = vector.shape_cast %217 : vector<1x9x36xf32> to vector<9x36xf32>
    %cst_195 = arith.constant dense<0.000000e+00> : vector<9x32xf32>
    %219 = tpu.matmul %218, %187, %cst_195 {dimension_numbers = #tpu.dot_dimension_numbers<[1], [0], [0], [1], [0, 0, 1, 1], [], []>} : vector<9x36xf32>, vector<36x32xf32>, vector<9x32xf32> -> vector<9x32xf32>
    %c4_196 = arith.constant 4 : index
    %c0_197 = arith.constant 0 : index
    %c0_198 = arith.constant 0 : index
    %220 = vector.load %arg8[%c4_196, %c0_197, %c0_198] : memref<9x32x32xf32, #tpu.memory_space<vmem>>, vector<1x32x32xf32>
    %221 = vector.shape_cast %220 : vector<1x32x32xf32> to vector<32x32xf32>
    %cst_199 = arith.constant dense<0.000000e+00> : vector<9x32xf32>
    %222 = tpu.matmul %219, %221, %cst_199 {dimension_numbers = #tpu.dot_dimension_numbers<[1], [0], [0], [1], [0, 0, 1, 1], [], []>} : vector<9x32xf32>, vector<32x32xf32>, vector<9x32xf32> -> vector<9x32xf32>
    %223 = arith.addf %216, %222 : vector<9x32xf32>
    %c5_200 = arith.constant 5 : index
    %c0_201 = arith.constant 0 : index
    %c0_202 = arith.constant 0 : index
    %224 = vector.load %arg4[%c5_200, %c0_201, %c0_202] : memref<9x9x36xf32, #tpu.memory_space<vmem>>, vector<1x9x36xf32>
    %225 = vector.shape_cast %224 : vector<1x9x36xf32> to vector<9x36xf32>
    %cst_203 = arith.constant dense<0.000000e+00> : vector<9x32xf32>
    %226 = tpu.matmul %225, %187, %cst_203 {dimension_numbers = #tpu.dot_dimension_numbers<[1], [0], [0], [1], [0, 0, 1, 1], [], []>} : vector<9x36xf32>, vector<36x32xf32>, vector<9x32xf32> -> vector<9x32xf32>
    %c5_204 = arith.constant 5 : index
    %c0_205 = arith.constant 0 : index
    %c0_206 = arith.constant 0 : index
    %227 = vector.load %arg8[%c5_204, %c0_205, %c0_206] : memref<9x32x32xf32, #tpu.memory_space<vmem>>, vector<1x32x32xf32>
    %228 = vector.shape_cast %227 : vector<1x32x32xf32> to vector<32x32xf32>
    %cst_207 = arith.constant dense<0.000000e+00> : vector<9x32xf32>
    %229 = tpu.matmul %226, %228, %cst_207 {dimension_numbers = #tpu.dot_dimension_numbers<[1], [0], [0], [1], [0, 0, 1, 1], [], []>} : vector<9x32xf32>, vector<32x32xf32>, vector<9x32xf32> -> vector<9x32xf32>
    %230 = arith.addf %223, %229 : vector<9x32xf32>
    %c6_208 = arith.constant 6 : index
    %c0_209 = arith.constant 0 : index
    %c0_210 = arith.constant 0 : index
    %231 = vector.load %arg4[%c6_208, %c0_209, %c0_210] : memref<9x9x36xf32, #tpu.memory_space<vmem>>, vector<1x9x36xf32>
    %232 = vector.shape_cast %231 : vector<1x9x36xf32> to vector<9x36xf32>
    %cst_211 = arith.constant dense<0.000000e+00> : vector<9x32xf32>
    %233 = tpu.matmul %232, %187, %cst_211 {dimension_numbers = #tpu.dot_dimension_numbers<[1], [0], [0], [1], [0, 0, 1, 1], [], []>} : vector<9x36xf32>, vector<36x32xf32>, vector<9x32xf32> -> vector<9x32xf32>
    %c6_212 = arith.constant 6 : index
    %c0_213 = arith.constant 0 : index
    %c0_214 = arith.constant 0 : index
    %234 = vector.load %arg8[%c6_212, %c0_213, %c0_214] : memref<9x32x32xf32, #tpu.memory_space<vmem>>, vector<1x32x32xf32>
    %235 = vector.shape_cast %234 : vector<1x32x32xf32> to vector<32x32xf32>
    %cst_215 = arith.constant dense<0.000000e+00> : vector<9x32xf32>
    %236 = tpu.matmul %233, %235, %cst_215 {dimension_numbers = #tpu.dot_dimension_numbers<[1], [0], [0], [1], [0, 0, 1, 1], [], []>} : vector<9x32xf32>, vector<32x32xf32>, vector<9x32xf32> -> vector<9x32xf32>
    %237 = arith.addf %230, %236 : vector<9x32xf32>
    %c7_216 = arith.constant 7 : index
    %c0_217 = arith.constant 0 : index
    %c0_218 = arith.constant 0 : index
    %238 = vector.load %arg4[%c7_216, %c0_217, %c0_218] : memref<9x9x36xf32, #tpu.memory_space<vmem>>, vector<1x9x36xf32>
    %239 = vector.shape_cast %238 : vector<1x9x36xf32> to vector<9x36xf32>
    %cst_219 = arith.constant dense<0.000000e+00> : vector<9x32xf32>
    %240 = tpu.matmul %239, %187, %cst_219 {dimension_numbers = #tpu.dot_dimension_numbers<[1], [0], [0], [1], [0, 0, 1, 1], [], []>} : vector<9x36xf32>, vector<36x32xf32>, vector<9x32xf32> -> vector<9x32xf32>
    %c7_220 = arith.constant 7 : index
    %c0_221 = arith.constant 0 : index
    %c0_222 = arith.constant 0 : index
    %241 = vector.load %arg8[%c7_220, %c0_221, %c0_222] : memref<9x32x32xf32, #tpu.memory_space<vmem>>, vector<1x32x32xf32>
    %242 = vector.shape_cast %241 : vector<1x32x32xf32> to vector<32x32xf32>
    %cst_223 = arith.constant dense<0.000000e+00> : vector<9x32xf32>
    %243 = tpu.matmul %240, %242, %cst_223 {dimension_numbers = #tpu.dot_dimension_numbers<[1], [0], [0], [1], [0, 0, 1, 1], [], []>} : vector<9x32xf32>, vector<32x32xf32>, vector<9x32xf32> -> vector<9x32xf32>
    %244 = arith.addf %237, %243 : vector<9x32xf32>
    %c8_224 = arith.constant 8 : index
    %c0_225 = arith.constant 0 : index
    %c0_226 = arith.constant 0 : index
    %245 = vector.load %arg4[%c8_224, %c0_225, %c0_226] : memref<9x9x36xf32, #tpu.memory_space<vmem>>, vector<1x9x36xf32>
    %246 = vector.shape_cast %245 : vector<1x9x36xf32> to vector<9x36xf32>
    %cst_227 = arith.constant dense<0.000000e+00> : vector<9x32xf32>
    %247 = tpu.matmul %246, %187, %cst_227 {dimension_numbers = #tpu.dot_dimension_numbers<[1], [0], [0], [1], [0, 0, 1, 1], [], []>} : vector<9x36xf32>, vector<36x32xf32>, vector<9x32xf32> -> vector<9x32xf32>
    %c8_228 = arith.constant 8 : index
    %c0_229 = arith.constant 0 : index
    %c0_230 = arith.constant 0 : index
    %248 = vector.load %arg8[%c8_228, %c0_229, %c0_230] : memref<9x32x32xf32, #tpu.memory_space<vmem>>, vector<1x32x32xf32>
    %249 = vector.shape_cast %248 : vector<1x32x32xf32> to vector<32x32xf32>
    %cst_231 = arith.constant dense<0.000000e+00> : vector<9x32xf32>
    %250 = tpu.matmul %247, %249, %cst_231 {dimension_numbers = #tpu.dot_dimension_numbers<[1], [0], [0], [1], [0, 0, 1, 1], [], []>} : vector<9x32xf32>, vector<32x32xf32>, vector<9x32xf32> -> vector<9x32xf32>
    %251 = arith.addf %244, %250 : vector<9x32xf32>
    %c0_232 = arith.constant 0 : index
    %c0_233 = arith.constant 0 : index
    %252 = vector.load %arg12[%c0_232, %c0_233] : memref<1x32xf32, #tpu.memory_space<vmem>>, vector<1x32xf32>
    %253 = vector.broadcast %252 : vector<1x32xf32> to vector<9x32xf32>
    %254 = arith.addf %251, %253 : vector<9x32xf32>
    %cst_234 = arith.constant 0.000000e+00 : f32
    %255 = vector.broadcast %cst_234 : f32 to vector<9x32xf32>
    %256 = arith.cmpf ogt, %254, %255 : vector<9x32xf32>
    %cst_235 = arith.constant 0.000000e+00 : f32
    %257 = vector.broadcast %cst_235 : f32 to vector<9x32xf32>
    %258 = arith.minimumf %254, %257 : vector<9x32xf32>
    %259 = math.exp %258 : vector<9x32xf32>
    %cst_236 = arith.constant 1.000000e+00 : f32
    %260 = vector.broadcast %cst_236 : f32 to vector<9x32xf32>
    %261 = arith.subf %259, %260 : vector<9x32xf32>
    %262 = arith.select %256, %254, %261 : vector<9x32xi1>, vector<9x32xf32>
    %cst_237 = arith.constant dense<0.000000e+00> : vector<32xf32>
    %263 = vector.multi_reduction <add>, %262, %cst_237 [0] : vector<9x32xf32> to vector<32xf32>
    %264 = vector.shape_cast %263 : vector<32xf32> to vector<1x32xf32>
    %cst_238 = arith.constant 9.000000e+00 : f32
    %265 = vector.broadcast %cst_238 : f32 to vector<1x32xf32>
    %266 = arith.divf %264, %265 : vector<1x32xf32>
    %267 = arith.mulf %262, %262 : vector<9x32xf32>
    %cst_239 = arith.constant dense<0.000000e+00> : vector<32xf32>
    %268 = vector.multi_reduction <add>, %267, %cst_239 [0] : vector<9x32xf32> to vector<32xf32>
    %269 = vector.shape_cast %268 : vector<32xf32> to vector<1x32xf32>
    %cst_240 = arith.constant 9.000000e+00 : f32
    %270 = vector.broadcast %cst_240 : f32 to vector<1x32xf32>
    %271 = arith.divf %269, %270 : vector<1x32xf32>
    %272 = arith.mulf %266, %266 : vector<1x32xf32>
    %273 = arith.subf %271, %272 : vector<1x32xf32>
    %274 = vector.broadcast %266 : vector<1x32xf32> to vector<9x32xf32>
    %275 = arith.subf %262, %274 : vector<9x32xf32>
    %cst_241 = arith.constant 9.99999974E-6 : f32
    %276 = vector.broadcast %cst_241 : f32 to vector<1x32xf32>
    %277 = arith.addf %273, %276 : vector<1x32xf32>
    %278 = math.rsqrt %277 : vector<1x32xf32>
    %279 = vector.broadcast %278 : vector<1x32xf32> to vector<9x32xf32>
    %280 = arith.mulf %275, %279 : vector<9x32xf32>
    %cst_242 = arith.constant 0.000000e+00 : f32
    %281 = vector.broadcast %cst_242 : f32 to vector<4x32xf32>
    %c0_243 = arith.constant 0 : index
    %c0_244 = arith.constant 0 : index
    %c0_245 = arith.constant 0 : index
    %282 = vector.load %arg5[%c0_243, %c0_244, %c0_245] : memref<9x4x9xf32, #tpu.memory_space<vmem>>, vector<1x4x9xf32>
    %283 = vector.shape_cast %282 : vector<1x4x9xf32> to vector<4x9xf32>
    %cst_246 = arith.constant dense<0.000000e+00> : vector<4x32xf32>
    %284 = tpu.matmul %283, %280, %cst_246 {dimension_numbers = #tpu.dot_dimension_numbers<[1], [0], [0], [1], [0, 0, 1, 1], [], []>} : vector<4x9xf32>, vector<9x32xf32>, vector<4x32xf32> -> vector<4x32xf32>
    %c0_247 = arith.constant 0 : index
    %c0_248 = arith.constant 0 : index
    %c0_249 = arith.constant 0 : index
    %285 = vector.load %arg9[%c0_247, %c0_248, %c0_249] : memref<9x32x32xf32, #tpu.memory_space<vmem>>, vector<1x32x32xf32>
    %286 = vector.shape_cast %285 : vector<1x32x32xf32> to vector<32x32xf32>
    %cst_250 = arith.constant dense<0.000000e+00> : vector<4x32xf32>
    %287 = tpu.matmul %284, %286, %cst_250 {dimension_numbers = #tpu.dot_dimension_numbers<[1], [0], [0], [1], [0, 0, 1, 1], [], []>} : vector<4x32xf32>, vector<32x32xf32>, vector<4x32xf32> -> vector<4x32xf32>
    %288 = arith.addf %281, %287 : vector<4x32xf32>
    %c1_251 = arith.constant 1 : index
    %c0_252 = arith.constant 0 : index
    %c0_253 = arith.constant 0 : index
    %289 = vector.load %arg5[%c1_251, %c0_252, %c0_253] : memref<9x4x9xf32, #tpu.memory_space<vmem>>, vector<1x4x9xf32>
    %290 = vector.shape_cast %289 : vector<1x4x9xf32> to vector<4x9xf32>
    %cst_254 = arith.constant dense<0.000000e+00> : vector<4x32xf32>
    %291 = tpu.matmul %290, %280, %cst_254 {dimension_numbers = #tpu.dot_dimension_numbers<[1], [0], [0], [1], [0, 0, 1, 1], [], []>} : vector<4x9xf32>, vector<9x32xf32>, vector<4x32xf32> -> vector<4x32xf32>
    %c1_255 = arith.constant 1 : index
    %c0_256 = arith.constant 0 : index
    %c0_257 = arith.constant 0 : index
    %292 = vector.load %arg9[%c1_255, %c0_256, %c0_257] : memref<9x32x32xf32, #tpu.memory_space<vmem>>, vector<1x32x32xf32>
    %293 = vector.shape_cast %292 : vector<1x32x32xf32> to vector<32x32xf32>
    %cst_258 = arith.constant dense<0.000000e+00> : vector<4x32xf32>
    %294 = tpu.matmul %291, %293, %cst_258 {dimension_numbers = #tpu.dot_dimension_numbers<[1], [0], [0], [1], [0, 0, 1, 1], [], []>} : vector<4x32xf32>, vector<32x32xf32>, vector<4x32xf32> -> vector<4x32xf32>
    %295 = arith.addf %288, %294 : vector<4x32xf32>
    %c2_259 = arith.constant 2 : index
    %c0_260 = arith.constant 0 : index
    %c0_261 = arith.constant 0 : index
    %296 = vector.load %arg5[%c2_259, %c0_260, %c0_261] : memref<9x4x9xf32, #tpu.memory_space<vmem>>, vector<1x4x9xf32>
    %297 = vector.shape_cast %296 : vector<1x4x9xf32> to vector<4x9xf32>
    %cst_262 = arith.constant dense<0.000000e+00> : vector<4x32xf32>
    %298 = tpu.matmul %297, %280, %cst_262 {dimension_numbers = #tpu.dot_dimension_numbers<[1], [0], [0], [1], [0, 0, 1, 1], [], []>} : vector<4x9xf32>, vector<9x32xf32>, vector<4x32xf32> -> vector<4x32xf32>
    %c2_263 = arith.constant 2 : index
    %c0_264 = arith.constant 0 : index
    %c0_265 = arith.constant 0 : index
    %299 = vector.load %arg9[%c2_263, %c0_264, %c0_265] : memref<9x32x32xf32, #tpu.memory_space<vmem>>, vector<1x32x32xf32>
    %300 = vector.shape_cast %299 : vector<1x32x32xf32> to vector<32x32xf32>
    %cst_266 = arith.constant dense<0.000000e+00> : vector<4x32xf32>
    %301 = tpu.matmul %298, %300, %cst_266 {dimension_numbers = #tpu.dot_dimension_numbers<[1], [0], [0], [1], [0, 0, 1, 1], [], []>} : vector<4x32xf32>, vector<32x32xf32>, vector<4x32xf32> -> vector<4x32xf32>
    %302 = arith.addf %295, %301 : vector<4x32xf32>
    %c3_267 = arith.constant 3 : index
    %c0_268 = arith.constant 0 : index
    %c0_269 = arith.constant 0 : index
    %303 = vector.load %arg5[%c3_267, %c0_268, %c0_269] : memref<9x4x9xf32, #tpu.memory_space<vmem>>, vector<1x4x9xf32>
    %304 = vector.shape_cast %303 : vector<1x4x9xf32> to vector<4x9xf32>
    %cst_270 = arith.constant dense<0.000000e+00> : vector<4x32xf32>
    %305 = tpu.matmul %304, %280, %cst_270 {dimension_numbers = #tpu.dot_dimension_numbers<[1], [0], [0], [1], [0, 0, 1, 1], [], []>} : vector<4x9xf32>, vector<9x32xf32>, vector<4x32xf32> -> vector<4x32xf32>
    %c3_271 = arith.constant 3 : index
    %c0_272 = arith.constant 0 : index
    %c0_273 = arith.constant 0 : index
    %306 = vector.load %arg9[%c3_271, %c0_272, %c0_273] : memref<9x32x32xf32, #tpu.memory_space<vmem>>, vector<1x32x32xf32>
    %307 = vector.shape_cast %306 : vector<1x32x32xf32> to vector<32x32xf32>
    %cst_274 = arith.constant dense<0.000000e+00> : vector<4x32xf32>
    %308 = tpu.matmul %305, %307, %cst_274 {dimension_numbers = #tpu.dot_dimension_numbers<[1], [0], [0], [1], [0, 0, 1, 1], [], []>} : vector<4x32xf32>, vector<32x32xf32>, vector<4x32xf32> -> vector<4x32xf32>
    %309 = arith.addf %302, %308 : vector<4x32xf32>
    %c4_275 = arith.constant 4 : index
    %c0_276 = arith.constant 0 : index
    %c0_277 = arith.constant 0 : index
    %310 = vector.load %arg5[%c4_275, %c0_276, %c0_277] : memref<9x4x9xf32, #tpu.memory_space<vmem>>, vector<1x4x9xf32>
    %311 = vector.shape_cast %310 : vector<1x4x9xf32> to vector<4x9xf32>
    %cst_278 = arith.constant dense<0.000000e+00> : vector<4x32xf32>
    %312 = tpu.matmul %311, %280, %cst_278 {dimension_numbers = #tpu.dot_dimension_numbers<[1], [0], [0], [1], [0, 0, 1, 1], [], []>} : vector<4x9xf32>, vector<9x32xf32>, vector<4x32xf32> -> vector<4x32xf32>
    %c4_279 = arith.constant 4 : index
    %c0_280 = arith.constant 0 : index
    %c0_281 = arith.constant 0 : index
    %313 = vector.load %arg9[%c4_279, %c0_280, %c0_281] : memref<9x32x32xf32, #tpu.memory_space<vmem>>, vector<1x32x32xf32>
    %314 = vector.shape_cast %313 : vector<1x32x32xf32> to vector<32x32xf32>
    %cst_282 = arith.constant dense<0.000000e+00> : vector<4x32xf32>
    %315 = tpu.matmul %312, %314, %cst_282 {dimension_numbers = #tpu.dot_dimension_numbers<[1], [0], [0], [1], [0, 0, 1, 1], [], []>} : vector<4x32xf32>, vector<32x32xf32>, vector<4x32xf32> -> vector<4x32xf32>
    %316 = arith.addf %309, %315 : vector<4x32xf32>
    %c5_283 = arith.constant 5 : index
    %c0_284 = arith.constant 0 : index
    %c0_285 = arith.constant 0 : index
    %317 = vector.load %arg5[%c5_283, %c0_284, %c0_285] : memref<9x4x9xf32, #tpu.memory_space<vmem>>, vector<1x4x9xf32>
    %318 = vector.shape_cast %317 : vector<1x4x9xf32> to vector<4x9xf32>
    %cst_286 = arith.constant dense<0.000000e+00> : vector<4x32xf32>
    %319 = tpu.matmul %318, %280, %cst_286 {dimension_numbers = #tpu.dot_dimension_numbers<[1], [0], [0], [1], [0, 0, 1, 1], [], []>} : vector<4x9xf32>, vector<9x32xf32>, vector<4x32xf32> -> vector<4x32xf32>
    %c5_287 = arith.constant 5 : index
    %c0_288 = arith.constant 0 : index
    %c0_289 = arith.constant 0 : index
    %320 = vector.load %arg9[%c5_287, %c0_288, %c0_289] : memref<9x32x32xf32, #tpu.memory_space<vmem>>, vector<1x32x32xf32>
    %321 = vector.shape_cast %320 : vector<1x32x32xf32> to vector<32x32xf32>
    %cst_290 = arith.constant dense<0.000000e+00> : vector<4x32xf32>
    %322 = tpu.matmul %319, %321, %cst_290 {dimension_numbers = #tpu.dot_dimension_numbers<[1], [0], [0], [1], [0, 0, 1, 1], [], []>} : vector<4x32xf32>, vector<32x32xf32>, vector<4x32xf32> -> vector<4x32xf32>
    %323 = arith.addf %316, %322 : vector<4x32xf32>
    %c6_291 = arith.constant 6 : index
    %c0_292 = arith.constant 0 : index
    %c0_293 = arith.constant 0 : index
    %324 = vector.load %arg5[%c6_291, %c0_292, %c0_293] : memref<9x4x9xf32, #tpu.memory_space<vmem>>, vector<1x4x9xf32>
    %325 = vector.shape_cast %324 : vector<1x4x9xf32> to vector<4x9xf32>
    %cst_294 = arith.constant dense<0.000000e+00> : vector<4x32xf32>
    %326 = tpu.matmul %325, %280, %cst_294 {dimension_numbers = #tpu.dot_dimension_numbers<[1], [0], [0], [1], [0, 0, 1, 1], [], []>} : vector<4x9xf32>, vector<9x32xf32>, vector<4x32xf32> -> vector<4x32xf32>
    %c6_295 = arith.constant 6 : index
    %c0_296 = arith.constant 0 : index
    %c0_297 = arith.constant 0 : index
    %327 = vector.load %arg9[%c6_295, %c0_296, %c0_297] : memref<9x32x32xf32, #tpu.memory_space<vmem>>, vector<1x32x32xf32>
    %328 = vector.shape_cast %327 : vector<1x32x32xf32> to vector<32x32xf32>
    %cst_298 = arith.constant dense<0.000000e+00> : vector<4x32xf32>
    %329 = tpu.matmul %326, %328, %cst_298 {dimension_numbers = #tpu.dot_dimension_numbers<[1], [0], [0], [1], [0, 0, 1, 1], [], []>} : vector<4x32xf32>, vector<32x32xf32>, vector<4x32xf32> -> vector<4x32xf32>
    %330 = arith.addf %323, %329 : vector<4x32xf32>
    %c7_299 = arith.constant 7 : index
    %c0_300 = arith.constant 0 : index
    %c0_301 = arith.constant 0 : index
    %331 = vector.load %arg5[%c7_299, %c0_300, %c0_301] : memref<9x4x9xf32, #tpu.memory_space<vmem>>, vector<1x4x9xf32>
    %332 = vector.shape_cast %331 : vector<1x4x9xf32> to vector<4x9xf32>
    %cst_302 = arith.constant dense<0.000000e+00> : vector<4x32xf32>
    %333 = tpu.matmul %332, %280, %cst_302 {dimension_numbers = #tpu.dot_dimension_numbers<[1], [0], [0], [1], [0, 0, 1, 1], [], []>} : vector<4x9xf32>, vector<9x32xf32>, vector<4x32xf32> -> vector<4x32xf32>
    %c7_303 = arith.constant 7 : index
    %c0_304 = arith.constant 0 : index
    %c0_305 = arith.constant 0 : index
    %334 = vector.load %arg9[%c7_303, %c0_304, %c0_305] : memref<9x32x32xf32, #tpu.memory_space<vmem>>, vector<1x32x32xf32>
    %335 = vector.shape_cast %334 : vector<1x32x32xf32> to vector<32x32xf32>
    %cst_306 = arith.constant dense<0.000000e+00> : vector<4x32xf32>
    %336 = tpu.matmul %333, %335, %cst_306 {dimension_numbers = #tpu.dot_dimension_numbers<[1], [0], [0], [1], [0, 0, 1, 1], [], []>} : vector<4x32xf32>, vector<32x32xf32>, vector<4x32xf32> -> vector<4x32xf32>
    %337 = arith.addf %330, %336 : vector<4x32xf32>
    %c8_307 = arith.constant 8 : index
    %c0_308 = arith.constant 0 : index
    %c0_309 = arith.constant 0 : index
    %338 = vector.load %arg5[%c8_307, %c0_308, %c0_309] : memref<9x4x9xf32, #tpu.memory_space<vmem>>, vector<1x4x9xf32>
    %339 = vector.shape_cast %338 : vector<1x4x9xf32> to vector<4x9xf32>
    %cst_310 = arith.constant dense<0.000000e+00> : vector<4x32xf32>
    %340 = tpu.matmul %339, %280, %cst_310 {dimension_numbers = #tpu.dot_dimension_numbers<[1], [0], [0], [1], [0, 0, 1, 1], [], []>} : vector<4x9xf32>, vector<9x32xf32>, vector<4x32xf32> -> vector<4x32xf32>
    %c8_311 = arith.constant 8 : index
    %c0_312 = arith.constant 0 : index
    %c0_313 = arith.constant 0 : index
    %341 = vector.load %arg9[%c8_311, %c0_312, %c0_313] : memref<9x32x32xf32, #tpu.memory_space<vmem>>, vector<1x32x32xf32>
    %342 = vector.shape_cast %341 : vector<1x32x32xf32> to vector<32x32xf32>
    %cst_314 = arith.constant dense<0.000000e+00> : vector<4x32xf32>
    %343 = tpu.matmul %340, %342, %cst_314 {dimension_numbers = #tpu.dot_dimension_numbers<[1], [0], [0], [1], [0, 0, 1, 1], [], []>} : vector<4x32xf32>, vector<32x32xf32>, vector<4x32xf32> -> vector<4x32xf32>
    %344 = arith.addf %337, %343 : vector<4x32xf32>
    %c0_315 = arith.constant 0 : index
    %c0_316 = arith.constant 0 : index
    %345 = vector.load %arg13[%c0_315, %c0_316] : memref<1x32xf32, #tpu.memory_space<vmem>>, vector<1x32xf32>
    %346 = vector.broadcast %345 : vector<1x32xf32> to vector<4x32xf32>
    %347 = arith.addf %344, %346 : vector<4x32xf32>
    %cst_317 = arith.constant 0.000000e+00 : f32
    %348 = vector.broadcast %cst_317 : f32 to vector<4x32xf32>
    %349 = arith.cmpf ogt, %347, %348 : vector<4x32xf32>
    %cst_318 = arith.constant 0.000000e+00 : f32
    %350 = vector.broadcast %cst_318 : f32 to vector<4x32xf32>
    %351 = arith.minimumf %347, %350 : vector<4x32xf32>
    %352 = math.exp %351 : vector<4x32xf32>
    %cst_319 = arith.constant 1.000000e+00 : f32
    %353 = vector.broadcast %cst_319 : f32 to vector<4x32xf32>
    %354 = arith.subf %352, %353 : vector<4x32xf32>
    %355 = arith.select %349, %347, %354 : vector<4x32xi1>, vector<4x32xf32>
    %cst_320 = arith.constant dense<0.000000e+00> : vector<32xf32>
    %356 = vector.multi_reduction <add>, %355, %cst_320 [0] : vector<4x32xf32> to vector<32xf32>
    %357 = vector.shape_cast %356 : vector<32xf32> to vector<1x32xf32>
    %cst_321 = arith.constant 4.000000e+00 : f32
    %358 = vector.broadcast %cst_321 : f32 to vector<1x32xf32>
    %359 = arith.divf %357, %358 : vector<1x32xf32>
    %360 = arith.mulf %355, %355 : vector<4x32xf32>
    %cst_322 = arith.constant dense<0.000000e+00> : vector<32xf32>
    %361 = vector.multi_reduction <add>, %360, %cst_322 [0] : vector<4x32xf32> to vector<32xf32>
    %362 = vector.shape_cast %361 : vector<32xf32> to vector<1x32xf32>
    %cst_323 = arith.constant 4.000000e+00 : f32
    %363 = vector.broadcast %cst_323 : f32 to vector<1x32xf32>
    %364 = arith.divf %362, %363 : vector<1x32xf32>
    %365 = arith.mulf %359, %359 : vector<1x32xf32>
    %366 = arith.subf %364, %365 : vector<1x32xf32>
    %367 = vector.broadcast %359 : vector<1x32xf32> to vector<4x32xf32>
    %368 = arith.subf %355, %367 : vector<4x32xf32>
    %cst_324 = arith.constant 9.99999974E-6 : f32
    %369 = vector.broadcast %cst_324 : f32 to vector<1x32xf32>
    %370 = arith.addf %366, %369 : vector<1x32xf32>
    %371 = math.rsqrt %370 : vector<1x32xf32>
    %372 = vector.broadcast %371 : vector<1x32xf32> to vector<4x32xf32>
    %373 = arith.mulf %368, %372 : vector<4x32xf32>
    %c0_325 = arith.constant 0 : index
    %c0_326 = arith.constant 0 : index
    %374 = vector.load %arg15[%c0_325, %c0_326] : memref<1x64xf32, #tpu.memory_space<vmem>>, vector<1x64xf32>
    %375 = vector.extract_strided_slice %373 {offsets = [0, 0], sizes = [1, 32], strides = [1, 1]} : vector<4x32xf32> to vector<1x32xf32>
    %c0_327 = arith.constant 0 : index
    %c0_328 = arith.constant 0 : index
    %c0_329 = arith.constant 0 : index
    %376 = vector.load %arg14[%c0_327, %c0_328, %c0_329] : memref<4x32x64xf32, #tpu.memory_space<vmem>>, vector<1x32x64xf32>
    %377 = vector.shape_cast %376 : vector<1x32x64xf32> to vector<32x64xf32>
    %cst_330 = arith.constant dense<0.000000e+00> : vector<1x64xf32>
    %378 = tpu.matmul %375, %377, %cst_330 {dimension_numbers = #tpu.dot_dimension_numbers<[1], [0], [0], [1], [0, 0, 1, 1], [], []>} : vector<1x32xf32>, vector<32x64xf32>, vector<1x64xf32> -> vector<1x64xf32>
    %379 = arith.addf %374, %378 : vector<1x64xf32>
    %380 = vector.extract_strided_slice %373 {offsets = [1, 0], sizes = [1, 32], strides = [1, 1]} : vector<4x32xf32> to vector<1x32xf32>
    %c1_331 = arith.constant 1 : index
    %c0_332 = arith.constant 0 : index
    %c0_333 = arith.constant 0 : index
    %381 = vector.load %arg14[%c1_331, %c0_332, %c0_333] : memref<4x32x64xf32, #tpu.memory_space<vmem>>, vector<1x32x64xf32>
    %382 = vector.shape_cast %381 : vector<1x32x64xf32> to vector<32x64xf32>
    %cst_334 = arith.constant dense<0.000000e+00> : vector<1x64xf32>
    %383 = tpu.matmul %380, %382, %cst_334 {dimension_numbers = #tpu.dot_dimension_numbers<[1], [0], [0], [1], [0, 0, 1, 1], [], []>} : vector<1x32xf32>, vector<32x64xf32>, vector<1x64xf32> -> vector<1x64xf32>
    %384 = arith.addf %379, %383 : vector<1x64xf32>
    %385 = vector.extract_strided_slice %373 {offsets = [2, 0], sizes = [1, 32], strides = [1, 1]} : vector<4x32xf32> to vector<1x32xf32>
    %c2_335 = arith.constant 2 : index
    %c0_336 = arith.constant 0 : index
    %c0_337 = arith.constant 0 : index
    %386 = vector.load %arg14[%c2_335, %c0_336, %c0_337] : memref<4x32x64xf32, #tpu.memory_space<vmem>>, vector<1x32x64xf32>
    %387 = vector.shape_cast %386 : vector<1x32x64xf32> to vector<32x64xf32>
    %cst_338 = arith.constant dense<0.000000e+00> : vector<1x64xf32>
    %388 = tpu.matmul %385, %387, %cst_338 {dimension_numbers = #tpu.dot_dimension_numbers<[1], [0], [0], [1], [0, 0, 1, 1], [], []>} : vector<1x32xf32>, vector<32x64xf32>, vector<1x64xf32> -> vector<1x64xf32>
    %389 = arith.addf %384, %388 : vector<1x64xf32>
    %390 = vector.extract_strided_slice %373 {offsets = [3, 0], sizes = [1, 32], strides = [1, 1]} : vector<4x32xf32> to vector<1x32xf32>
    %c3_339 = arith.constant 3 : index
    %c0_340 = arith.constant 0 : index
    %c0_341 = arith.constant 0 : index
    %391 = vector.load %arg14[%c3_339, %c0_340, %c0_341] : memref<4x32x64xf32, #tpu.memory_space<vmem>>, vector<1x32x64xf32>
    %392 = vector.shape_cast %391 : vector<1x32x64xf32> to vector<32x64xf32>
    %cst_342 = arith.constant dense<0.000000e+00> : vector<1x64xf32>
    %393 = tpu.matmul %390, %392, %cst_342 {dimension_numbers = #tpu.dot_dimension_numbers<[1], [0], [0], [1], [0, 0, 1, 1], [], []>} : vector<1x32xf32>, vector<32x64xf32>, vector<1x64xf32> -> vector<1x64xf32>
    %394 = arith.addf %389, %393 : vector<1x64xf32>
    %c0_343 = arith.constant 0 : index
    %c0_344 = arith.constant 0 : index
    %c0_345 = arith.constant 0 : index
    %395 = vector.load %arg16[%c0_343, %c0_344, %c0_345] : memref<1x1x64xf32, #tpu.memory_space<vmem>>, vector<1x1x64xf32>
    %396 = vector.shape_cast %395 : vector<1x1x64xf32> to vector<1x64xf32>
    %397 = vector.shape_cast %394 : vector<1x64xf32> to vector<1x1x64xf32>
    tpu.vector_store %arg16[%c0_343, %c0_344, %c0_345], %397 {strides = array<i32>} : memref<1x1x64xf32, #tpu.memory_space<vmem>>, vector<1x1x64xf32>,
    return
  }
  func.func @transform_0(%arg0: i32) -> (i32, i32, i32) {
    %c0_i32 = arith.constant 0 : i32
    %c0_i32_0 = arith.constant 0 : i32
    %c0_i32_1 = arith.constant 0 : i32
    return %arg0, %c0_i32, %c0_i32_0 : i32, i32, i32
  }
  func.func @transform_1(%arg0: i32) -> (i32, i32, i32) {
    %c0_i32 = arith.constant 0 : i32
    %c0_i32_0 = arith.constant 0 : i32
    %c0_i32_1 = arith.constant 0 : i32
    %c0_i32_2 = arith.constant 0 : i32
    return %c0_i32, %c0_i32_0, %c0_i32_1 : i32, i32, i32
  }
  func.func @transform_2(%arg0: i32) -> (i32, i32, i32) {
    %c0_i32 = arith.constant 0 : i32
    %c0_i32_0 = arith.constant 0 : i32
    %c0_i32_1 = arith.constant 0 : i32
    %c0_i32_2 = arith.constant 0 : i32
    return %c0_i32, %c0_i32_0, %c0_i32_1 : i32, i32, i32
  }
  func.func @transform_3(%arg0: i32) -> (i32, i32, i32) {
    %c0_i32 = arith.constant 0 : i32
    %c0_i32_0 = arith.constant 0 : i32
    %c0_i32_1 = arith.constant 0 : i32
    %c0_i32_2 = arith.constant 0 : i32
    return %c0_i32, %c0_i32_0, %c0_i32_1 : i32, i32, i32
  }
  func.func @transform_4(%arg0: i32) -> (i32, i32, i32) {
    %c0_i32 = arith.constant 0 : i32
    %c0_i32_0 = arith.constant 0 : i32
    %c0_i32_1 = arith.constant 0 : i32
    %c0_i32_2 = arith.constant 0 : i32
    return %c0_i32, %c0_i32_0, %c0_i32_1 : i32, i32, i32
  }
  func.func @transform_5(%arg0: i32) -> (i32, i32, i32) {
    %c0_i32 = arith.constant 0 : i32
    %c0_i32_0 = arith.constant 0 : i32
    %c0_i32_1 = arith.constant 0 : i32
    %c0_i32_2 = arith.constant 0 : i32
    return %c0_i32, %c0_i32_0, %c0_i32_1 : i32, i32, i32
  }
  func.func @transform_6(%arg0: i32) -> (i32, i32, i32) {
    %c0_i32 = arith.constant 0 : i32
    %c0_i32_0 = arith.constant 0 : i32
    %c0_i32_1 = arith.constant 0 : i32
    %c0_i32_2 = arith.constant 0 : i32
    return %c0_i32, %c0_i32_0, %c0_i32_1 : i32, i32, i32
  }
  func.func @transform_7(%arg0: i32) -> (i32, i32, i32) {
    %c0_i32 = arith.constant 0 : i32
    %c0_i32_0 = arith.constant 0 : i32
    %c0_i32_1 = arith.constant 0 : i32
    %c0_i32_2 = arith.constant 0 : i32
    return %c0_i32, %c0_i32_0, %c0_i32_1 : i32, i32, i32
  }
  func.func @transform_8(%arg0: i32) -> (i32, i32, i32) {
    %c0_i32 = arith.constant 0 : i32
    %c0_i32_0 = arith.constant 0 : i32
    %c0_i32_1 = arith.constant 0 : i32
    %c0_i32_2 = arith.constant 0 : i32
    return %c0_i32, %c0_i32_0, %c0_i32_1 : i32, i32, i32
  }
  func.func @transform_9(%arg0: i32) -> (i32, i32) {
    %c0_i32 = arith.constant 0 : i32
    %c0_i32_0 = arith.constant 0 : i32
    %c0_i32_1 = arith.constant 0 : i32
    return %c0_i32, %c0_i32_0 : i32, i32
  }
  func.func @transform_10(%arg0: i32) -> (i32, i32) {
    %c0_i32 = arith.constant 0 : i32
    %c0_i32_0 = arith.constant 0 : i32
    %c0_i32_1 = arith.constant 0 : i32
    return %c0_i32, %c0_i32_0 : i32, i32
  }
  func.func @transform_11(%arg0: i32) -> (i32, i32) {
    %c0_i32 = arith.constant 0 : i32
    %c0_i32_0 = arith.constant 0 : i32
    %c0_i32_1 = arith.constant 0 : i32
    return %c0_i32, %c0_i32_0 : i32, i32
  }
  func.func @transform_12(%arg0: i32) -> (i32, i32) {
    %c0_i32 = arith.constant 0 : i32
    %c0_i32_0 = arith.constant 0 : i32
    %c0_i32_1 = arith.constant 0 : i32
    return %c0_i32, %c0_i32_0 : i32, i32
  }
  func.func @transform_13(%arg0: i32) -> (i32, i32, i32) {
    %c0_i32 = arith.constant 0 : i32
    %c0_i32_0 = arith.constant 0 : i32
    %c0_i32_1 = arith.constant 0 : i32
    %c0_i32_2 = arith.constant 0 : i32
    return %c0_i32, %c0_i32_0, %c0_i32_1 : i32, i32, i32
  }
  func.func @transform_14(%arg0: i32) -> (i32, i32) {
    %c0_i32 = arith.constant 0 : i32
    %c0_i32_0 = arith.constant 0 : i32
    %c0_i32_1 = arith.constant 0 : i32
    return %c0_i32, %c0_i32_0 : i32, i32
  }
  func.func @transform_15(%arg0: i32) -> (i32, i32, i32) {
    %c0_i32 = arith.constant 0 : i32
    %c0_i32_0 = arith.constant 0 : i32
    %c0_i32_1 = arith.constant 0 : i32
    return %arg0, %c0_i32, %c0_i32_0 : i32, i32, i32
  }
}

</mosaic_0001>

<bundles_post_ra>
// kernel: img_module_forward.1
= control target key start
LH: loop header
LB: loop body
LE: loop exit
PB: predicated region body
PF: predicated region fallthrough
CT: control target
= control target key end

     0   :  { %s15793_s0 = inlined_call_operand.vmem [shape: f32[2,576,4], index: 0, kind: input, shape index: {}]   ;;  %s15794_s1 = inlined_call_operand.hbm [shape: f32[9,144,576], index: 1, kind: input, shape index: {}]   ;;  %s15795_s2 = inlined_call_operand.hbm [shape: f32[9,36,144], index: 2, kind: input, shape index: {}]   ;;  %s15796_s3 = inlined_call_operand.hbm [shape: f32[9,9,36], index: 3, kind: input, shape index: {}]   ;;  %s15797_s4 = inlined_call_operand.hbm [shape: f32[9,4,9], index: 4, kind: input, shape index: {}]   ;;  %s15798_s5 = inlined_call_operand.hbm [shape: f32[9,4,32], index: 5, kind: input, shape index: {}]   ;;  %s15799_s6 = inlined_call_operand.hbm [shape: f32[9,32,32], index: 6, kind: input, shape index: {}]   ;;  %s15800_s7 = inlined_call_operand.hbm [shape: f32[9,32,32], index: 7, kind: input, shape index: {}]   ;;  %s15801_s8 = inlined_call_operand.hbm [shape: f32[9,32,32], index: 8, kind: input, shape index: {}]   ;;  %s15802_s9 = inlined_call_operand.hbm [shape: f32[1,32], index: 9, kind: input, shape index: {}]   ;;  %s15803_s10 = inlined_call_operand.hbm [shape: f32[1,32], index: 10, kind: input, shape index: {}]   ;;  %s15804_s11 = inlined_call_operand.hbm [shape: f32[1,32], index: 11, kind: input, shape index: {}]   ;;  %s15805_s12 = inlined_call_operand.hbm [shape: f32[1,32], index: 12, kind: input, shape index: {}]   ;;  %s15806_s13 = inlined_call_operand.hbm [shape: f32[4,32,64], index: 13, kind: input, shape index: {}]   ;;  %s15807_s14 = inlined_call_operand.hbm [shape: f32[1,64], index: 14, kind: input, shape index: {}]   ;;  %s15808_s15 = inlined_call_operand.hbm [shape: f32[2,1,64], index: 15, kind: output, shape index: {}]  }
   0x1   :  { %15891 = sst [smem:[#allocation112_spill]] %s15794_s1 }
   0x2   :  { %15892 = sst [smem:[#allocation113_spill]] %s15795_s2 }
   0x3   :  { %15893 = sst [smem:[#allocation114_spill]] %s15797_s4 }
   0x4   :  { %15894 = sst [smem:[#allocation115_spill]] %s15799_s6 }
   0x5   :  { %15895 = sst [smem:[#allocation116_spill]] %s15808_s15 }
   0x6   :  { %20 = vsyncpa [#allocation3], 0 }
   0x7   :  { %21 = vsyncpa [#allocation6], 0 }
   0x8   :  { %22 = vsyncpa [#allocation9], 0 }
   0x9   :  { %23 = vsyncpa [#allocation12], 0 }
   0xa   :  { %24 = vsyncpa [#allocation15], 0 }
   0xb   :  { %25 = vsyncpa [#allocation18], 0 }
   0xc   :  { %26 = vsyncpa [#allocation21], 0 }
   0xd   :  { %27 = vsyncpa [#allocation24], 0 }
   0xe   :  { %28 = vsyncpa [#allocation4], 0 }
   0xf   :  { %30 = vsyncpa [#allocation4 + $0x1], 0  ;;  %s11536_s18 = smov 0   ;;  %s11538_s19 = smov 0  }
  0x10   :  { %s11540_s20 = smov 0   ;;  %s11542_s21 = smov 0  }
  0x11 LB: > { %15896 = sst [smem:[#allocation35_spill]] %s11416_s18  ;;  %s11557_s22 = sadd.s32 4294967295, %s11428_s21   ;;  %s11428_s21 = sphi %s11542_s21, %s16267_s21   ;;  %s11424_s20 = sphi %s11540_s20, %s16269_s20   ;;  %s11420_s19 = sphi %s11538_s19, %s16271_s19   ;;  %s11416_s18 = sphi %s11536_s18, %s16270_s18  }
  0x12   : > { %15897 = sst [smem:[#allocation36_spill]] %s11424_s20  ;;  %s9825_s23 = sadd.s32 4294967294, %s11428_s21  }
  0x13   : > { %15898 = sst [smem:[#allocation37_spill]] %s11428_s21  ;;  %s11561_s24 = sadd.s32 1, %s11428_s21  }
  0x14   : > { %15899 = sst [smem:[#allocation38_spill]] %s11561_s24  ;;  %s363_s25 = sadd.s32 1, %s11424_s20 }
  0x15   : > { %s360_s26 = ssub.s32 %s11428_s21, %s11561_s24  ;;  %p373_p0 = scmp.ne.s32.totalorder %s11424_s20, %s11420_s19 }
  0x16   : > { %p361_p1 = scmp.eq.s32.totalorder %s360_s26, 0  ;;  %p374_p2 = scmp.eq.s32.totalorder %s11557_s22, 1 }
  0x17   : > { %p379_p3 = scmp.ne.s32.totalorder %s11420_s19, %s11416_s18  ;;  %p380_p4 = scmp.eq.s32.totalorder %s9825_s23, 1 }
  0x18   : > { %s11572_s27 = scalar_select %p361_p1, %s11424_s20, %s363_s25  }
  0x19   : > { %p11574_p5 = por %p374_p2, %p373_p0  ;;  %p11578_p6 = por %p380_p4, %p379_p3 }
  0x1a   : > { %15900 = sst [smem:[#allocation39_spill]] %s11572_s27  ;;  %p9826_p7 = scmp.ge.s32.totalorder %s11428_s21, 1 }
  0x1b   : > { %s15901_s28 = scalar_select %p11574_p5, 1, 0 }
  0x1c   : > { %s15903_s29 = scalar_select %p11578_p6, 1, 0 }
  0x1d   : > { %15902 = sst [smem:[#allocation40_spill]] %s15901_s28  ;;  %p387_p8 = scmp.lt.s32.totalorder %s11428_s21, 3 }
  0x1e   : > { %15904 = sst [smem:[#allocation41_spill]] %s15903_s29  ;;  %p10491_p9 = scmp.eq.s32.totalorder %s11557_s22, 0 }
  0x1f   : > { %p11585_p10 = pnand %p9826_p7, %p387_p8  ;;  %s15906_s2 = sld [smem:[#allocation113_spill]] }
  0x20   : > { %s11430_s25 = smov [#allocation5]   ;;  %s15908_s4 = sld [smem:[#allocation114_spill]] }
  0x21   : > { %p10444_p11 = pneg %p11585_p10  ;;  %s414_s26 = sshll.u32 %s11430_s25, 4  ;;  %s415_s26 = int_to_ptr.vmem [resolvable:$true] %s414_s26 }
  0x22   : > { %s11431_s16 = smov 256   ;;  %s11432_s17 = smov 16  }
  0x23   : > { %p11596_p12 = pnand %p10491_p9, %p10444_p11  ;;  %s15818_s18 = smov 64  }
  0x24   : > { %s15819_s21 = smov 4   ;;  %s15909_s6 = sld [smem:[#allocation115_spill]] }
  0x25   : > { %s412_s23 = sshll.u32 %s15906_s2, 4  ;;  %s11433_s2 = smov [#allocation8]   ;;  %s413_s23 = int_to_ptr.hbm [resolvable:$true] %s412_s23 }
  0x26   : > { %s440_s29 = sshll.u32 %s15908_s4, 4  ;;  %s442_s25 = sshll.u32 %s11433_s2, 4  ;;  %s441_s29 = int_to_ptr.hbm [resolvable:$true] %s440_s29  ;;  %s443_s25 = int_to_ptr.vmem [resolvable:$true] %s442_s25 }
  0x27   : > { %10450 = dma.hbm_to_vmem [thread:$0]  (!%p11596_p12), %s413_s23, 11520, %s415_s26, [#allocation6], %s11431_s16, %s11431_s16, %s11432_s17  }
  0x28   : > { %10456 = dma.hbm_to_vmem [thread:$0]  (!%p11596_p12), %s441_s29, 576, %s443_s25, [#allocation9], %s15818_s18, %s15818_s18, %s15819_s21  }
  0x29   : > { %s11436_s28 = smov [#allocation11]   ;;  %s496_s2 = sshll.u32 %s15801_s8, 4  ;;  %s497_s2 = int_to_ptr.hbm [resolvable:$true] %s496_s2 }
  0x2a   : > { %s468_s4 = sshll.u32 %s15909_s6, 4  ;;  %s470_s15 = sshll.u32 %s11436_s28, 4  ;;  %s469_s4 = int_to_ptr.hbm [resolvable:$true] %s468_s4  ;;  %s471_s15 = int_to_ptr.vmem [resolvable:$true] %s470_s15 }
  0x2b   : > { %s15820_s16 = smov 128   ;;  %s11438_s17 = smov 8  }
  0x2c   : > { %10462 = dma.hbm_to_vmem [thread:$0]  (!%p11596_p12), %s469_s4, 4608, %s471_s15, [#allocation12], %s15820_s16, %s15820_s16, %s11438_s17  }
  0x2d   : > { %s11439_s29 = smov [#allocation14]   ;;  %s523_s28 = sshll.u32 %s15803_s10, 4  ;;  %s524_s28 = int_to_ptr.hbm [resolvable:$true] %s523_s28 }
  0x2e   : > { %s498_s25 = sshll.u32 %s11439_s29, 4  ;;  %s547_s18 = sshll.u32 %s15805_s12, 4  ;;  %s499_s25 = int_to_ptr.vmem [resolvable:$true] %s498_s25  ;;  %s548_s18 = int_to_ptr.hbm [resolvable:$true] %s547_s18 }
  0x2f   : > { %10468 = dma.hbm_to_vmem [thread:$0]  (!%p11596_p12), %s497_s2, 4608, %s499_s25, [#allocation15], %s15820_s16, %s15820_s16, %s11438_s17  }
  0x30   : > { %s11440_s4 = smov [#allocation17]   ;;  %s11441_s29 = smov [#allocation20]  }
  0x31   : > { %s525_s15 = sshll.u32 %s11440_s4, 4  ;;  %s549_s20 = sshll.u32 %s11441_s29, 4  ;;  %s526_s15 = int_to_ptr.vmem [resolvable:$true] %s525_s15  ;;  %s550_s20 = int_to_ptr.vmem [resolvable:$true] %s549_s20 }
  0x32   : > { %10474 = dma.hbm_to_vmem [thread:$0]  (!%p11596_p12), %s524_s28, 16, %s526_s15, [#allocation18]  }
  0x33   : > { %s15910_s1 = sld [smem:[#allocation112_spill]]  ;;  %s11442_s2 = smov [#allocation2]  }
  0x34   : > { %10480 = dma.hbm_to_vmem [thread:$0]  (!%p11596_p12), %s548_s18, 16, %s550_s20, [#allocation21]  }
  0x35   : > { %s400_s25 = sshll.u32 %s11442_s2, 4  ;;  %s426_s4 = sshll.u32 %s15796_s3, 4  ;;  %s401_s25 = int_to_ptr.vmem [resolvable:$true] %s400_s25  ;;  %s427_s4 = int_to_ptr.hbm [resolvable:$true] %s426_s4 }
  0x36   : > { %s11443_s28 = smov 640   ;;  %s11444_s15 = smov 40  }
  0x37   : > { %s11445_s21 = smov [#allocation7]   ;;  %s454_s18 = sshll.u32 %s15798_s5, 4  ;;  %s455_s18 = int_to_ptr.hbm [resolvable:$true] %s454_s18 }
  0x38   : > { %s428_s29 = sshll.u32 %s11445_s21, 4  ;;  %s15911_s20 = smov 128   ;;  %s429_s29 = int_to_ptr.vmem [resolvable:$true] %s428_s29 }
  0x39   : > { %s398_s6 = sshll.u32 %s15910_s1, 4  ;;  %s482_s26 = sshll.u32 %s15800_s7, 4  ;;  %s399_s6 = int_to_ptr.hbm [resolvable:$true] %s398_s6  ;;  %s483_s26 = int_to_ptr.hbm [resolvable:$true] %s482_s26 }
  0x3a   : > { %10447 = dma.hbm_to_vmem [thread:$0]  (!%p11596_p12), %s399_s6, 103680, %s401_s25, [#allocation3], %s11443_s28, %s11443_s28, %s11444_s15  }
  0x3b   : > { %10453 = dma.hbm_to_vmem [thread:$0]  (!%p11596_p12), %s427_s4, 2304, %s429_s29, [#allocation6], %s15911_s20, %s15911_s20, %s11438_s17  }
  0x3c   : > { %s11446_s6 = smov [#allocation10]   ;;  %s15912_s16 = smov 4  }
  0x3d   : > { %s456_s25 = sshll.u32 %s11446_s6, 4  ;;  %s15913_s28 = smov 64   ;;  %s457_s25 = int_to_ptr.vmem [resolvable:$true] %s456_s25 }
  0x3e   : > { %10459 = dma.hbm_to_vmem [thread:$0]  (!%p11596_p12), %s455_s18, 576, %s457_s25, [#allocation9], %s15913_s28, %s15913_s28, %s15912_s16  }
  0x3f   : > { %s11447_s15 = smov [#allocation13]   ;;  %s511_s4 = sshll.u32 %s15802_s9, 4  ;;  %s512_s4 = int_to_ptr.hbm [resolvable:$true] %s511_s4 }
  0x40   : > { %s484_s21 = sshll.u32 %s11447_s15, 4  ;;  %s535_s23 = sshll.u32 %s15804_s11, 4  ;;  %s485_s21 = int_to_ptr.vmem [resolvable:$true] %s484_s21  ;;  %s536_s23 = int_to_ptr.hbm [resolvable:$true] %s535_s23 }
  0x41   : > { %10465 = dma.hbm_to_vmem [thread:$0]  (!%p11596_p12), %s483_s26, 4608, %s485_s21, [#allocation12], %s15911_s20, %s15911_s20, %s11438_s17  }
  0x42   : > { %s11448_s6 = smov [#allocation16]   ;;  %s11449_s1 = smov [#allocation19]  }
  0x43   : > { %s513_s18 = sshll.u32 %s11448_s6, 4  ;;  %s537_s25 = sshll.u32 %s11449_s1, 4  ;;  %s514_s18 = int_to_ptr.vmem [resolvable:$true] %s513_s18  ;;  %s538_s25 = int_to_ptr.vmem [resolvable:$true] %s537_s25 }
  0x44   : > { %10471 = dma.hbm_to_vmem [thread:$0]  (!%p11596_p12), %s512_s4, 16, %s514_s18, [#allocation15]  }
  0x45   : > { %s558_s15 = sshll.u32 %s15806_s13, 4  ;;  %s573_s24 = sshll.u32 %s15807_s14, 4  ;;  %s559_s15 = int_to_ptr.hbm [resolvable:$true] %s558_s15  ;;  %s574_s24 = int_to_ptr.hbm [resolvable:$true] %s573_s24 }
  0x46   : > { %10477 = dma.hbm_to_vmem [thread:$0]  (!%p11596_p12), %s536_s23, 16, %s538_s25, [#allocation18]  }
  0x47   : > { %s11450_s29 = smov [#allocation22]   ;;  %s11451_s4 = smov [#allocation23]  }
  0x48   : > { %s560_s2 = sshll.u32 %s11450_s29, 4  ;;  %s575_s6 = sshll.u32 %s11451_s4, 4  ;;  %s561_s2 = int_to_ptr.vmem [resolvable:$true] %s560_s2  ;;  %s576_s6 = int_to_ptr.vmem [resolvable:$true] %s575_s6 }
  0x49   : > { %10483 = dma.hbm_to_vmem [thread:$0]  (!%p11596_p12), %s559_s15, 2048, %s561_s2, [#allocation21], %s15911_s20, %s15911_s20, %s11438_s17  }
  0x4a   : > { %10486 = dma.hbm_to_vmem [thread:$0]  (!%p11596_p12), %s574_s24, 16, %s576_s6, [#allocation24]  }
  0x4b   : > { %596 = sbr.rel (%p11585_p10) target bundleno = 5086 (0x13de), region = 80 }
  0x50   : > { %11379 = dma.done.wait (%p10491_p9), [#allocation3], 103680  }
  0x51   : > { %11381 = vsyncadd (%p10491_p9), [#allocation3], 4294863616 }
  0x52   : > { %11383 = dma.done.wait (%p10491_p9), [#allocation6], 13824  }
  0x53   : > { %11385 = vsyncadd (%p10491_p9), [#allocation6], 4294953472 }
  0x54   : > { %11387 = dma.done.wait (%p10491_p9), [#allocation9], 1152  }
  0x55   : > { %11389 = vsyncadd (%p10491_p9), [#allocation9], 4294966144 }
  0x56   : > { %11391 = dma.done.wait (%p10491_p9), [#allocation12], 9216  }
  0x57   : > { %11393 = vsyncadd (%p10491_p9), [#allocation12], 4294958080 }
  0x58   : > { %11395 = dma.done.wait (%p10491_p9), [#allocation15], 4624  }
  0x59   : > { %11397 = vsyncadd (%p10491_p9), [#allocation15], 4294962672 }
  0x5a   : > { %11399 = dma.done.wait (%p10491_p9), [#allocation18], 32  }
  0x5b   : > { %11401 = vsyncadd (%p10491_p9), [#allocation18], 4294967264 }
  0x5c   : > { %11403 = dma.done.wait (%p10491_p9), [#allocation21], 2064  }
  0x5d   : > { %11405 = vsyncadd (%p10491_p9), [#allocation21], 4294965232 }
  0x5e   : > { %11407 = dma.done.wait (%p10491_p9), [#allocation24], 16  }
  0x5f   : > { %11409 = vsyncadd (%p10491_p9), [#allocation24], 4294967280  ;;  %p709_p13 = scmp.lt.s32.totalorder %s11557_s22, 1  ;;  %vm876_vm0 = vcmask 523264   ;;  %vm1844_vm1 = vcmask 1043456   ;;  %vm1789_vm2 = vcmask 31744  }
  0x60   : > { %vm6713_vm7 = vcmask 261120   ;;  %s707_s18 = sand.u32 1, %s11420_s19   ;;  %s16262_s16 = sld [smem:[#allocation116_spill]] }
  0x61   : > { %s710_s27 = scalar_select %p709_p13, %s11557_s22, 1 }
  0x62   : > { %s708_s26 = scalar_lea.vmem [#allocation25], %s707_s18  ;;  %s9622_s29 = scalar_lea.sflag [#allocation4], %s707_s18 }
  0x63   : > { %s10385_s30 = smul.u32 576, %s710_s27  ;;  %s9632_s21 = sshll.u32 %s708_s26, 4  ;;  %s9633_s21 = int_to_ptr.vmem [resolvable:$true] %s9632_s21 }
  0x65   : > { %s11727_s23 = scalar_lea.vmem %s15793_s0, %s10385_s30 }
  0x66   : > { %v11730_v0 = vld [vmem:[%s11727_s23 + $0x78] sm:$0xff]  ;;  %v11744_v4 = vld [vmem:[%s11727_s23 + $0x70] sm:$0xff]  ;;  %v11758_v8 = vld [vmem:[%s11727_s23 + $0x68] sm:$0xff]  ;;  %s9630_s28 = scalar_lea.hbm %s16262_s16, %s11557_s22  ;;  %s11354_s27 = scalar_lea.hbm %s16262_s16, 2 }
  0x67   : > { %v11733_v1 = vld [vmem:[%s11727_s23 + $0xf8] sm:$0xff]  ;;  %931 = vmatpush.msra.mxu0 %v11730_v0  ;;  %v11747_v5 = vld [vmem:[%s11727_s23 + $0xf0] sm:$0xff]  ;;  %v11763_v9 = vld [vmem:[%s11727_s23 + $0xe8] sm:$0xff]  ;;  %s9634_s24 = sshll.u32 %s9630_s28, 4  ;;  %s9635_s24 = int_to_ptr.hbm [resolvable:$true] %s9634_s24 }
  0x68   : > { %v11736_v2 = vld [vmem:[%s11727_s23 + $0x178] sm:$0xff]  ;;  %1002 = vmatpush.msra.mxu1 %v11733_v1  ;;  %v11752_v6 = vld [vmem:[%s11727_s23 + $0x170] sm:$0xff]  ;;  %v11766_v10 = vld [vmem:[%s11727_s23 + $0x168] sm:$0xff]  ;;  %s11348_s2 = sshra.s32 %s9635_s24, 4  ;;  %s11349_s2 = int_to_ptr.hbm [resolvable:$true] %s11348_s2 }
  0x69   : > { %v11741_v3 = vld [vmem:[%s11727_s23 + $0x1f8] sm:$0xff]  ;;  %1073 = vmatpush.msra.mxu2 %v11736_v2  ;;  %v11755_v7 = vld [vmem:[%s11727_s23 + $0x1f0] sm:$0xff]  ;;  %932 = vmatpush.msra.mxu0 %v11744_v4  ;;  %v11769_v11 = vld [vmem:[%s11727_s23 + $0x1e8] sm:$0xff]  ;;  %s11350_s4 = scalar_lea.hbm %s11349_s2, 1  ;;  %p11355_p3 = scmp.lt.s32.totalorder %s11349_s2, %s16262_s16 }
  0x6a   : > { %1144 = vmatpush.msra.mxu3 %v11741_v3  ;;  %1003 = vmatpush.msra.mxu1 %v11747_v5  ;;  %v11774_v12 = vld [vmem:[%s11727_s23 + $0x60] sm:$0xff]  ;;  %v11790_v16 = vld [vmem:[%s11727_s23 + $0x58] sm:$0xff]  ;;  %v11806_v20 = vld [vmem:[%s11727_s23 + $0x50] sm:$0xff]  ;;  %p11351_p0 = scmp.ne.s32.totalorder %s11349_s2, %s11350_s4  ;;  %p11356_p4 = scmp.lt.s32.totalorder %s11354_s27, %s11350_s4 }
  0x6b   : > { %1074 = vmatpush.msra.mxu2 %v11752_v6  ;;  %v11777_v13 = vld [vmem:[%s11727_s23 + $0xe0] sm:$0xff]  ;;  %933 = vmatpush.msra.mxu0 %v11758_v8  ;;  %v11793_v17 = vld [vmem:[%s11727_s23 + $0xd8] sm:$0xff]  ;;  %v11809_v21 = vld [vmem:[%s11727_s23 + $0xd0] sm:$0xff] }
  0x6c   : > { %1145 = vmatpush.msra.mxu3 %v11755_v7  ;;  %1004 = vmatpush.msra.mxu1 %v11763_v9  ;;  %v11782_v14 = vld [vmem:[%s11727_s23 + $0x160] sm:$0xff]  ;;  %v11798_v18 = vld [vmem:[%s11727_s23 + $0x158] sm:$0xff]  ;;  %v11814_v22 = vld [vmem:[%s11727_s23 + $0x150] sm:$0xff]  ;;  %p11352_p1 = pnand %p11351_p0, %p11574_p5  ;;  %p11357_p7 = por %p11356_p4, %p11355_p3 }
  0x6d   : > { %v11785_v15 = vld [vmem:[%s11727_s23 + $0x1e0] sm:$0xff]  ;;  %1075 = vmatpush.msra.mxu2 %v11766_v10  ;;  %934 = vmatpush.msra.mxu0 %v11774_v12  ;;  %v11801_v19 = vld [vmem:[%s11727_s23 + $0x1d8] sm:$0xff]  ;;  %v11817_v23 = vld [vmem:[%s11727_s23 + $0x1d0] sm:$0xff] }
  0x6e   : > { %1146 = vmatpush.msra.mxu3 %v11769_v11  ;;  %1005 = vmatpush.msra.mxu1 %v11777_v13  ;;  %v11822_v24 = vld [vmem:[%s11727_s23 + $0x48] sm:$0xff]  ;;  %v11838_v28 = vld [vmem:[%s11727_s23 + $0x40] sm:$0xff]  ;;  %v11854_v32 = vld [vmem:[%s11727_s23 + $0x38] sm:$0xff]  ;;  %p11353_p2 = pneg %p11352_p1 }
  0x6f   : > { %1076 = vmatpush.msra.mxu2 %v11782_v14  ;;  %935 = vmatpush.msra.mxu0 %v11790_v16  ;;  %v11825_v25 = vld [vmem:[%s11727_s23 + $0xc8] sm:$0xff]  ;;  %v11841_v29 = vld [vmem:[%s11727_s23 + $0xc0] sm:$0xff]  ;;  %v11857_v33 = vld [vmem:[%s11727_s23 + $0xb8] sm:$0xff] }
  0x70   : > { %1147 = vmatpush.msra.mxu3 %v11785_v15  ;;  %1006 = vmatpush.msra.mxu1 %v11793_v17  ;;  %v11830_v26 = vld [vmem:[%s11727_s23 + $0x148] sm:$0xff]  ;;  %v11846_v30 = vld [vmem:[%s11727_s23 + $0x140] sm:$0xff]  ;;  %v11862_v34 = vld [vmem:[%s11727_s23 + $0x138] sm:$0xff]  ;;  %p11358_p8 = pnand %p11357_p7, %p11353_p2 }
  0x71   : > { %1077 = vmatpush.msra.mxu2 %v11798_v18  ;;  %936 = vmatpush.msra.mxu0 %v11806_v20  ;;  %v11833_v27 = vld [vmem:[%s11727_s23 + $0x1c8] sm:$0xff]  ;;  %v11849_v31 = vld [vmem:[%s11727_s23 + $0x1c0] sm:$0xff]  ;;  %v11865_v35 = vld [vmem:[%s11727_s23 + $0x1b8] sm:$0xff] }
  0x72   : > { %1148 = vmatpush.msra.mxu3 %v11801_v19  ;;  %1007 = vmatpush.msra.mxu1 %v11809_v21  ;;  %15914 = vst [vmem:[#allocation42_spill] sm:$0xff] %v11865_v35  ;;  %v11870_v36 = vld [vmem:[%s11727_s23 + $0x30] sm:$0xff]  ;;  %v11886_v40 = vld [vmem:[%s11727_s23 + $0x28] sm:$0xff]  ;;  %v11902_v44 = vld [vmem:[%s11727_s23 + $0x20] sm:$0xff] }
  0x73   : > { %1078 = vmatpush.msra.mxu2 %v11814_v22  ;;  %937 = vmatpush.msra.mxu0 %v11822_v24  ;;  %v11873_v37 = vld [vmem:[%s11727_s23 + $0xb0] sm:$0xff]  ;;  %v11889_v41 = vld [vmem:[%s11727_s23 + $0xa8] sm:$0xff]  ;;  %v11905_v45 = vld [vmem:[%s11727_s23 + $0xa0] sm:$0xff] }
  0x74   : > { %1149 = vmatpush.msra.mxu3 %v11817_v23  ;;  %1008 = vmatpush.msra.mxu1 %v11825_v25  ;;  %v11878_v38 = vld [vmem:[%s11727_s23 + $0x130] sm:$0xff]  ;;  %v11894_v42 = vld [vmem:[%s11727_s23 + $0x128] sm:$0xff]  ;;  %v11910_v46 = vld [vmem:[%s11727_s23 + $0x120] sm:$0xff] }
  0x75   : > { %1079 = vmatpush.msra.mxu2 %v11830_v26  ;;  %938 = vmatpush.msra.mxu0 %v11838_v28  ;;  %v11881_v39 = vld [vmem:[%s11727_s23 + $0x1b0] sm:$0xff]  ;;  %v11897_v43 = vld [vmem:[%s11727_s23 + $0x1a8] sm:$0xff]  ;;  %v11913_v47 = vld [vmem:[%s11727_s23 + $0x1a0] sm:$0xff] }
  0x76   : > { %1150 = vmatpush.msra.mxu3 %v11833_v27  ;;  %1009 = vmatpush.msra.mxu1 %v11841_v29  ;;  %15915 = vst [vmem:[#allocation43_spill] sm:$0xff] %v11881_v39  ;;  %v11918_v48 = vld [vmem:[%s11727_s23 + $0x18] sm:$0xff]  ;;  %v11934_v52 = vld [vmem:[%s11727_s23 + $0x10] sm:$0xff]  ;;  %v11948_v56 = vld [vmem:[%s11727_s23 + $0x8] sm:$0xff] }
  0x77   : > { %1080 = vmatpush.msra.mxu2 %v11846_v30  ;;  %939 = vmatpush.msra.mxu0 %v11854_v32  ;;  %15916 = vst [vmem:[#allocation44_spill] sm:$0xff] %v11897_v43  ;;  %v11921_v49 = vld [vmem:[%s11727_s23 + $0x98] sm:$0xff]  ;;  %v11937_v53 = vld [vmem:[%s11727_s23 + $0x90] sm:$0xff]  ;;  %v11953_v57 = vld [vmem:[%s11727_s23 + $0x88] sm:$0xff] }
  0x78   : > { %1151 = vmatpush.msra.mxu3 %v11849_v31  ;;  %1010 = vmatpush.msra.mxu1 %v11857_v33  ;;  %15917 = vst [vmem:[#allocation45_spill] sm:$0xff] %v11913_v47  ;;  %v11926_v50 = vld [vmem:[%s11727_s23 + $0x118] sm:$0xff]  ;;  %v11942_v54 = vld [vmem:[%s11727_s23 + $0x110] sm:$0xff]  ;;  %v11956_v58 = vld [vmem:[%s11727_s23 + $0x108] sm:$0xff] }
  0x79   : > { %1081 = vmatpush.msra.mxu2 %v11862_v34  ;;  %940 = vmatpush.msra.mxu0 %v11870_v36  ;;  %v11929_v51 = vld [vmem:[%s11727_s23 + $0x198] sm:$0xff]  ;;  %v11945_v55 = vld [vmem:[%s11727_s23 + $0x190] sm:$0xff]  ;;  %v11959_v59 = vld [vmem:[%s11727_s23 + $0x188] sm:$0xff] }
  0x7a   : > { %1152 = vmatpush.msra.mxu3 %v11865_v35  ;;  %1011 = vmatpush.msra.mxu1 %v11873_v37  ;;  %15918 = vst [vmem:[#allocation46_spill] sm:$0xff] %v11929_v51  ;;  %v11966_v60 = vld [vmem:[%s11727_s23] sm:$0xff]  ;;  %v793_v35 = vld [vmem:[#allocation2 + $0x38] sm:$0xff] }
  0x7b   : > { %1082 = vmatpush.msra.mxu2 %v11878_v38  ;;  %941 = vmatpush.msra.mxu0 %v11886_v40  ;;  %15919 = vst [vmem:[#allocation47_spill] sm:$0xff] %v11945_v55  ;;  %v11969_v61 = vld [vmem:[%s11727_s23 + $0x80] sm:$0xff] }
  0x7c   : > { %1153 = vmatpush.msra.mxu3 %v11881_v39  ;;  %1012 = vmatpush.msra.mxu1 %v11889_v41  ;;  %15920 = vst [vmem:[#allocation48_spill] sm:$0xff] %v11959_v59  ;;  %v11974_v62 = vld [vmem:[%s11727_s23 + $0x100] sm:$0xff]  ;;  %v792_v39 = vld [vmem:[#allocation2 + $0x30] sm:$0xff] }
  0x7d   : > { %1083 = vmatpush.msra.mxu2 %v11894_v42  ;;  %942 = vmatpush.msra.mxu0 %v11902_v44  ;;  %v11977_v63 = vld [vmem:[%s11727_s23 + $0x180] sm:$0xff] }
  0x7e   : > { %1154 = vmatpush.msra.mxu3 %v11897_v43  ;;  %1013 = vmatpush.msra.mxu1 %v11905_v45  ;;  %15921 = vst [vmem:[#allocation49_spill] sm:$0xff] %v11977_v63  ;;  %v789_v43 = vld [vmem:[#allocation2 + $0x18] sm:$0xff] }
  0x7f   : > { %1084 = vmatpush.msra.mxu2 %v11910_v46  ;;  %943 = vmatpush.msra.mxu0 %v11918_v48 }
  0x80   : > { %1155 = vmatpush.msra.mxu3 %v11913_v47  ;;  %1014 = vmatpush.msra.mxu1 %v11921_v49  ;;  %v787_v47 = vld [vmem:[#allocation2 + $0x8] sm:$0xff] }
  0x81   : > { %1085 = vmatpush.msra.mxu2 %v11926_v50  ;;  %944 = vmatpush.msra.mxu0 %v11934_v52 }
  0x82   : > { %1156 = vmatpush.msra.mxu3 %v11929_v51  ;;  %1015 = vmatpush.msra.mxu1 %v11937_v53  ;;  %v786_v51 = vld [vmem:[#allocation2] sm:$0xff] }
  0x83   : > { %1086 = vmatpush.msra.mxu2 %v11942_v54  ;;  %945 = vmatpush.msra.mxu0 %v11948_v56 }
  0x84   : > { %1157 = vmatpush.msra.mxu3 %v11945_v55  ;;  %1016 = vmatpush.msra.mxu1 %v11953_v57  ;;  %v788_v55 = vld [vmem:[#allocation2 + $0x10] sm:$0xff] }
  0x85   : > { %1087 = vmatpush.msra.mxu2 %v11956_v58  ;;  %946 = vmatpush.msra.mxu0 %v11966_v60 }
  0x86   : > { %1158 = vmatpush.msra.mxu3 %v11959_v59  ;;  %1017 = vmatpush.msra.mxu1 %v11969_v61  ;;  %v791_v59 = vld [vmem:[#allocation2 + $0x28] sm:$0xff] }
  0x87   : > { %1088 = vmatpush.msra.mxu2 %v11974_v62  ;;  %947 = vmatmul.f32.vlgmr.msra.gmra.mxu0 %v786_v51  ;;  %v817_v51 = vld [vmem:[#allocation2 + $0xf8] sm:$0xff] }
  0x88   : > { %1159 = vmatpush.msra.mxu3 %v11977_v63  ;;  %1018 = vmatmul.f32.vlgmr.msra.gmra.mxu1 %v787_v47  ;;  %v794_v63 = vld [vmem:[#allocation2 + $0x40] sm:$0xff] }
  0x89   : > { %1089 = vmatmul.f32.vlgmr.msra.gmra.mxu2 %v788_v55  ;;  %1160 = vmatmul.f32.vlgmr.msra.gmra.mxu3 %v789_v43  ;;  %v799_v43 = vld [vmem:[#allocation2 + $0x68] sm:$0xff]  ;;  %v814_v47 = vld [vmem:[#allocation2 + $0xe0] sm:$0xff] }
  0x8a   : > { %1503 = vmatpush.msrb.mxu2 %v11733_v1  ;;  %1574 = vmatpush.msrb.mxu3 %v11736_v2  ;;  %v796_v2 = vld [vmem:[#allocation2 + $0x50] sm:$0xff]  ;;  %v819_v55 = vld [vmem:[#allocation2 + $0x108] sm:$0xff] }
  0x8b   : > { %1432 = vmatpush.msrb.mxu1 %v11730_v0 }
  0x8c   : > { %1504 = vmatpush.msrb.mxu2 %v11747_v5  ;;  %1575 = vmatpush.msrb.mxu3 %v11752_v6  ;;  %v797_v6 = vld [vmem:[#allocation2 + $0x58] sm:$0xff] }
  0x8d   : > { %1433 = vmatpush.msrb.mxu1 %v11744_v4 }
  0x8e   : > { %1505 = vmatpush.msrb.mxu2 %v11763_v9  ;;  %1576 = vmatpush.msrb.mxu3 %v11766_v10  ;;  %v798_v10 = vld [vmem:[#allocation2 + $0x60] sm:$0xff] }
  0x8f   : > { %1434 = vmatpush.msrb.mxu1 %v11758_v8  ;;  %950 = vmatmul.f32.gmra.mxu0 %v791_v59  ;;  %v822_v59 = vld [vmem:[#allocation2 + $0x120] sm:$0xff] }
  0x90   : > { %1021 = vmatmul.f32.gmra.mxu1 %v792_v39  ;;  %1506 = vmatpush.msrb.mxu2 %v11777_v13  ;;  %v809_v39 = vld [vmem:[#allocation2 + $0xb8] sm:$0xff] }
  0x91   : > { %1092 = vmatmul.f32.gmra.mxu2 %v793_v35  ;;  %1163 = vmatmul.f32.gmra.mxu3 %v794_v63  ;;  %v804_v35 = vld [vmem:[#allocation2 + $0x90] sm:$0xff]  ;;  %v823_v63 = vld [vmem:[#allocation2 + $0x128] sm:$0xff] }
  0x92   : > { %1577 = vmatpush.msrb.mxu3 %v11782_v14  ;;  %1435 = vmatpush.msrb.mxu1 %v11774_v12  ;;  %v801_v14 = vld [vmem:[#allocation2 + $0x78] sm:$0xff] }
  0x93   : > { %1507 = vmatpush.msrb.mxu2 %v11793_v17 }
  0x94   : > { %1578 = vmatpush.msrb.mxu3 %v11798_v18  ;;  %1436 = vmatpush.msrb.mxu1 %v11790_v16  ;;  %v802_v18 = vld [vmem:[#allocation2 + $0x80] sm:$0xff] }
  0x95   : > { %1508 = vmatpush.msrb.mxu2 %v11809_v21 }
  0x96   : > { %1579 = vmatpush.msrb.mxu3 %v11814_v22  ;;  %1437 = vmatpush.msrb.mxu1 %v11806_v20  ;;  %v803_v22 = vld [vmem:[#allocation2 + $0x88] sm:$0xff] }
  0x97   : > { %953 = vmatmul.f32.gmra.mxu0 %v796_v2  ;;  %1509 = vmatpush.msrb.mxu2 %v11825_v25  ;;  %v824_v2 = vld [vmem:[#allocation2 + $0x130] sm:$0xff] }
  0x98   : > { %1024 = vmatmul.f32.gmra.mxu1 %v797_v6  ;;  %1580 = vmatpush.msrb.mxu3 %v11830_v26  ;;  %v806_v26 = vld [vmem:[#allocation2 + $0xa0] sm:$0xff] }
  0x99   : > { %1095 = vmatmul.f32.gmra.mxu2 %v798_v10  ;;  %1166 = vmatmul.f32.gmra.mxu3 %v799_v43  ;;  %v826_v6 = vld [vmem:[#allocation2 + $0x140] sm:$0xff]  ;;  %v828_v10 = vld [vmem:[#allocation2 + $0x150] sm:$0xff]  ;;  %v829_v43 = vld [vmem:[#allocation2 + $0x158] sm:$0xff] }
  0x9a   : > { %1438 = vmatpush.msrb.mxu1 %v11822_v24  ;;  %1510 = vmatpush.msrb.mxu2 %v11841_v29 }
  0x9b   : > { %1581 = vmatpush.msrb.mxu3 %v11846_v30  ;;  %v807_v30 = vld [vmem:[#allocation2 + $0xa8] sm:$0xff] }
  0x9c   : > { %1439 = vmatpush.msrb.mxu1 %v11838_v28  ;;  %1511 = vmatpush.msrb.mxu2 %v11857_v33 }
  0x9d   : > { %1582 = vmatpush.msrb.mxu3 %v11862_v34  ;;  %v808_v34 = vld [vmem:[#allocation2 + $0xb0] sm:$0xff] }
  0x9e   : > { %1440 = vmatpush.msrb.mxu1 %v11854_v32  ;;  %1512 = vmatpush.msrb.mxu2 %v11873_v37 }
  0x9f   : > { %956 = vmatmul.f32.gmra.mxu0 %v801_v14  ;;  %1583 = vmatpush.msrb.mxu3 %v11878_v38  ;;  %v811_v38 = vld [vmem:[#allocation2 + $0xc8] sm:$0xff] }
  0xa0   : > { %1027 = vmatmul.f32.gmra.mxu1 %v802_v18  ;;  %1513 = vmatpush.msrb.mxu2 %v11889_v41  ;;  %v831_v14 = vld [vmem:[#allocation2 + $0x168] sm:$0xff]  ;;  %v832_v18 = vld [vmem:[#allocation2 + $0x170] sm:$0xff] }
  0xa1   : > { %1098 = vmatmul.f32.gmra.mxu2 %v803_v22  ;;  %1169 = vmatmul.f32.gmra.mxu3 %v804_v35  ;;  %v833_v22 = vld [vmem:[#allocation2 + $0x178] sm:$0xff]  ;;  %v834_v35 = vld [vmem:[#allocation2 + $0x180] sm:$0xff] }
  0xa2   : > { %1441 = vmatpush.msrb.mxu1 %v11870_v36  ;;  %1584 = vmatpush.msrb.mxu3 %v11894_v42  ;;  %v812_v42 = vld [vmem:[#allocation2 + $0xd0] sm:$0xff] }
  0xa3   : > { %1514 = vmatpush.msrb.mxu2 %v11905_v45 }
  0xa4   : > { %1442 = vmatpush.msrb.mxu1 %v11886_v40  ;;  %1585 = vmatpush.msrb.mxu3 %v11910_v46  ;;  %v813_v46 = vld [vmem:[#allocation2 + $0xd8] sm:$0xff] }
  0xa5   : > { %1515 = vmatpush.msrb.mxu2 %v11921_v49 }
  0xa6   : > { %1443 = vmatpush.msrb.mxu1 %v11902_v44  ;;  %1586 = vmatpush.msrb.mxu3 %v11926_v50  ;;  %v816_v50 = vld [vmem:[#allocation2 + $0xf0] sm:$0xff] }
  0xa7   : > { %959 = vmatmul.f32.gmra.mxu0 %v806_v26  ;;  %1516 = vmatpush.msrb.mxu2 %v11937_v53  ;;  %v836_v26 = vld [vmem:[#allocation2 + $0x190] sm:$0xff] }
  0xa8   : > { %1030 = vmatmul.f32.gmra.mxu1 %v807_v30  ;;  %1587 = vmatpush.msrb.mxu3 %v11942_v54  ;;  %v818_v54 = vld [vmem:[#allocation2 + $0x100] sm:$0xff]  ;;  %v837_v30 = vld [vmem:[#allocation2 + $0x198] sm:$0xff] }
  0xa9   : > { %1101 = vmatmul.f32.gmra.mxu2 %v808_v34  ;;  %1172 = vmatmul.f32.gmra.mxu3 %v809_v39  ;;  %v838_v34 = vld [vmem:[#allocation2 + $0x1a0] sm:$0xff]  ;;  %v839_v39 = vld [vmem:[#allocation2 + $0x1a8] sm:$0xff] }
  0xaa   : > { %1444 = vmatpush.msrb.mxu1 %v11918_v48  ;;  %1517 = vmatpush.msrb.mxu2 %v11953_v57 }
  0xab   : > { %1588 = vmatpush.msrb.mxu3 %v11956_v58  ;;  %v821_v58 = vld [vmem:[#allocation2 + $0x118] sm:$0xff] }
  0xac   : > { %1445 = vmatpush.msrb.mxu1 %v11934_v52  ;;  %1518 = vmatpush.msrb.mxu2 %v11969_v61 }
  0xad   : > { %1589 = vmatpush.msrb.mxu3 %v11974_v62  ;;  %v827_v62 = vld [vmem:[#allocation2 + $0x148] sm:$0xff] }
  0xae   : > { %1446 = vmatpush.msrb.mxu1 %v11948_v56 }
  0xaf   : > { %962 = vmatmul.f32.gmra.mxu0 %v811_v38  ;;  %v12034_v38 = vld [vmem:[%s11727_s23 + $0x238] sm:$0xff] }
  0xb0   : > { %1033 = vmatmul.f32.gmra.mxu1 %v812_v42  ;;  %1223 = vmatpush.msrb.mxu0 %v12034_v38  ;;  %v841_v42 = vld [vmem:[#allocation2 + $0x1b8] sm:$0xff] }
  0xb1   : > { %1104 = vmatmul.f32.gmra.mxu2 %v813_v46  ;;  %1175 = vmatmul.f32.gmra.mxu3 %v814_v47  ;;  %v842_v46 = vld [vmem:[#allocation2 + $0x1c0] sm:$0xff]  ;;  %v843_v47 = vld [vmem:[#allocation2 + $0x1c8] sm:$0xff] }
  0xb2   : > { %1447 = vmatpush.msrb.mxu1 %v11966_v60 }
  0xb4   : > { %1724 = vmatpush.msra.mxu1 %v12034_v38 }
  0xb7   : > { %965 = vmatmul.f32.gmra.mxu0 %v816_v50  ;;  %v844_v50 = vld [vmem:[#allocation2 + $0x1d0] sm:$0xff] }
  0xb8   : > { %1036 = vmatmul.f32.gmra.mxu1 %v817_v51  ;;  %v846_v51 = vld [vmem:[#allocation2 + $0x1e0] sm:$0xff] }
  0xb9   : > { %1107 = vmatmul.f32.gmra.mxu2 %v818_v54  ;;  %1178 = vmatmul.f32.gmra.mxu3 %v819_v55  ;;  %v847_v54 = vld [vmem:[#allocation2 + $0x1e8] sm:$0xff]  ;;  %v848_v55 = vld [vmem:[#allocation2 + $0x1f0] sm:$0xff] }
  0xbf   : > { %968 = vmatmul.f32.gmra.mxu0 %v821_v58  ;;  %v849_v58 = vld [vmem:[#allocation2 + $0x1f8] sm:$0xff] }
  0xc0   : > { %1039 = vmatmul.f32.gmra.mxu1 %v822_v59  ;;  %v12039_v59 = vld [vmem:[%s11727_s23 + $0x230] sm:$0xff] }
  0xc1   : > { %1110 = vmatmul.f32.gmra.mxu2 %v823_v63  ;;  %1181 = vmatmul.f32.gmra.mxu3 %v824_v2  ;;  %v851_v63 = vld [vmem:[#allocation2 + $0x208] sm:$0xff]  ;;  %v852_v2 = vld [vmem:[#allocation2 + $0x210] sm:$0xff] }
  0xc2   : > { %1224 = vmatpush.msrb.mxu0 %v12039_v59  ;;  %1725 = vmatpush.msra.mxu1 %v12039_v59 }
  0xc7   : > { %971 = vmatmul.f32.gmra.mxu0 %v826_v6  ;;  %v12044_v6 = vld [vmem:[%s11727_s23 + $0x228] sm:$0xff] }
  0xc8   : > { %1042 = vmatmul.f32.gmra.mxu1 %v827_v62  ;;  %v853_v62 = vld [vmem:[#allocation2 + $0x218] sm:$0xff]  ;;  %1225 = vmatpush.msrb.mxu0 %v12044_v6 }
  0xc9   : > { %1113 = vmatmul.f32.gmra.mxu2 %v828_v10  ;;  %1184 = vmatmul.f32.gmra.mxu3 %v829_v43  ;;  %v854_v10 = vld [vmem:[#allocation2 + $0x220] sm:$0xff] }
  0xca   : > { %1726 = vmatpush.msra.mxu1 %v12044_v6  ;;  %v12049_v43 = vld [vmem:[%s11727_s23 + $0x220] sm:$0xff] }
  0xcb   : > { %1226 = vmatpush.msrb.mxu0 %v12049_v43 }
  0xcc   : > { %1727 = vmatpush.msra.mxu1 %v12049_v43 }
  0xcf   : > { %974 = vmatmul.f32.gmra.mxu0 %v831_v14  ;;  %v12052_v14 = vld [vmem:[%s11727_s23 + $0x218] sm:$0xff] }
  0xd0   : > { %1045 = vmatmul.f32.gmra.mxu1 %v832_v18  ;;  %v12057_v18 = vld [vmem:[%s11727_s23 + $0x210] sm:$0xff]  ;;  %1227 = vmatpush.msrb.mxu0 %v12052_v14 }
  0xd1   : > { %1116 = vmatmul.f32.gmra.mxu2 %v833_v22  ;;  %1187 = vmatmul.f32.gmra.mxu3 %v834_v35  ;;  %v856_v22 = vld [vmem:[#allocation2 + $0x230] sm:$0xff]  ;;  %v857_v35 = vld [vmem:[#allocation2 + $0x238] sm:$0xff] }
  0xd2   : > { %1728 = vmatpush.msra.mxu1 %v12052_v14  ;;  %1228 = vmatpush.msrb.mxu0 %v12057_v18 }
  0xd4   : > { %1729 = vmatpush.msra.mxu1 %v12057_v18 }
  0xd7   : > { %977 = vmatmul.f32.gmra.mxu0 %v836_v26  ;;  %v858_v26 = vld [vmem:[#allocation2 + $0x240] sm:$0xff] }
  0xd8   : > { %1048 = vmatmul.f32.gmra.mxu1 %v837_v30  ;;  %v859_v30 = vld [vmem:[#allocation2 + $0x248] sm:$0xff] }
  0xd9   : > { %1119 = vmatmul.f32.gmra.mxu2 %v838_v34  ;;  %1190 = vmatmul.f32.gmra.mxu3 %v839_v39  ;;  %v12064_v34 = vld [vmem:[%s11727_s23 + $0x208] sm:$0xff]  ;;  %v12067_v39 = vld [vmem:[%s11727_s23 + $0x200] sm:$0xff] }
  0xda   : > { %1229 = vmatpush.msrb.mxu0 %v12064_v34  ;;  %1730 = vmatpush.msra.mxu1 %v12064_v34 }
  0xdc   : > { %1230 = vmatpush.msrb.mxu0 %v12067_v39  ;;  %1731 = vmatpush.msra.mxu1 %v12067_v39 }
  0xde   : > { %1645 = vmatpush.msra.mxu0 %v11741_v3 }
  0xdf   : > { %980 = vmatmul.f32.gmra.mxu0 %v841_v42  ;;  %v861_v42 = vld [vmem:[#allocation2 + $0x258] sm:$0xff] }
  0xe0   : > { %1051 = vmatmul.f32.gmra.mxu1 %v842_v46  ;;  %v862_v46 = vld [vmem:[#allocation2 + $0x260] sm:$0xff]  ;;  %1646 = vmatpush.msra.mxu0 %v11755_v7 }
  0xe1   : > { %1122 = vmatmul.f32.gmra.mxu2 %v843_v47  ;;  %1193 = vmatmul.f32.gmra.mxu3 %v844_v50  ;;  %v863_v47 = vld [vmem:[#allocation2 + $0x268] sm:$0xff]  ;;  %v864_v50 = vld [vmem:[#allocation2 + $0x270] sm:$0xff] }
  0xe2   : > { %1647 = vmatpush.msra.mxu0 %v11769_v11 }
  0xe4   : > { %1648 = vmatpush.msra.mxu0 %v11785_v15 }
  0xe6   : > { %1649 = vmatpush.msra.mxu0 %v11801_v19 }
  0xe7   : > { %983 = vmatmul.f32.gmra.mxu0 %v846_v51 }
  0xe8   : > { %1054 = vmatmul.f32.gmra.mxu1 %v847_v54  ;;  %1650 = vmatpush.msra.mxu0 %v11817_v23  ;;  %v15922_v23 = vld [vmem:[#allocation42_spill] sm:$0xff] }
  0xe9   : > { %1125 = vmatmul.f32.gmra.mxu2 %v848_v55  ;;  %1196 = vmatmul.f32.gmra.mxu3 %v849_v58  ;;  %v866_v55 = vld [vmem:[#allocation2 + $0x280] sm:$0xff]  ;;  %v867_v58 = vld [vmem:[#allocation2 + $0x288] sm:$0xff] }
  0xea   : > { %1651 = vmatpush.msra.mxu0 %v11833_v27 }
  0xec   : > { %1652 = vmatpush.msra.mxu0 %v11849_v31  ;;  %v1289_v31 = vld [vmem:[#allocation2 + $0x2d8] sm:$0xff] }
  0xee   : > { %1653 = vmatpush.msra.mxu0 %v15922_v23  ;;  %v1293_v23 = vld [vmem:[#allocation2 + $0x2f8] sm:$0xff] }
  0xef   : > { %986 = vmatmul.f32.gmra.mxu0 %v851_v63  ;;  %v868_v63 = vld [vmem:[#allocation2 + $0x290] sm:$0xff] }
  0xf0   : > { %1057 = vmatmul.f32.gmra.mxu1 %v852_v2  ;;  %v869_v2 = vld [vmem:[#allocation2 + $0x298] sm:$0xff] }
  0xf1   : > { %1128 = vmatmul.f32.gmra.mxu2 %v853_v62  ;;  %1199 = vmatmul.f32.gmra.mxu3 %v854_v10 }
  0xf7   : > { %989 = vmatmul.f32.gmra.mxu0 %v856_v22  ;;  %v871_v22 = vld [vmem:[#allocation2 + $0x2a8] sm:$0xff] }
  0xf8   : > { %1060 = vmatmul.f32.gmra.mxu1 %v857_v35  ;;  %v872_v35 = vld [vmem:[#allocation2 + $0x2b0] sm:$0xff] }
  0xf9   : > { %1131 = vmatmul.f32.gmra.mxu2 %v858_v26  ;;  %1202 = vmatmul.f32.gmra.mxu3 %v859_v30  ;;  %v873_v26 = vld [vmem:[#allocation2 + $0x2b8] sm:$0xff]  ;;  %v874_v30 = vld [vmem:[#allocation2 + $0x2c0] sm:$0xff] }
  0xff   : > { %992 = vmatmul.f32.gmra.mxu0 %v861_v42 }
 0x100   : > { %1063 = vmatmul.f32.gmra.mxu1 %v862_v46 }
 0x101   : > { %1134 = vmatmul.f32.gmra.mxu2 %v863_v47  ;;  %1205 = vmatmul.f32.gmra.mxu3 %v864_v50  ;;  %v15923_v47 = vld [vmem:[#allocation43_spill] sm:$0xff] }
 0x102   : > { %1654 = vmatpush.msra.mxu0 %v15923_v47 }
 0x104   : > { %v948_v51 = vpop.f32.mrf.mxu0 }
 0x105   : > { %v1019_v54 = vpop.f32.mrf.mxu1 }
 0x106   : > { %v1020_v3 = vadd.f32 %v1019_v54, %v948_v51 }
 0x107   : > { %995 = vmatmul.f32.gmra.mxu0 %v866_v55  ;;  %v790_v55 = vld [vmem:[#allocation2 + $0x20] sm:$0xff] }
 0x108   : > { %1066 = vmatmul.f32.gmra.mxu1 %v867_v58  ;;  %v1288_v58 = vld [vmem:[#allocation2 + $0x2d0] sm:$0xff] }
 0x109   : > { %1137 = vmatmul.f32.gmra.mxu2 %v868_v63  ;;  %1208 = vmatmul.f32.gmra.mxu3 %v869_v2  ;;  %v1290_v63 = vld [vmem:[#allocation2 + $0x2e0] sm:$0xff]  ;;  %v15924_v2 = vld [vmem:[#allocation44_spill] sm:$0xff] }
 0x10a   : > { %1655 = vmatpush.msra.mxu0 %v15924_v2  ;;  %v1299_v2 = vld [vmem:[#allocation2 + $0x328] sm:$0xff] }
 0x10c   : > { %v1090_v7 = vpop.f32.mrf.mxu2  ;;  %v1161_v62 = vpop.f32.mrf.mxu3 }
 0x10d   : > { %v1091_v11 = vadd.f32 %v1090_v7, %v1020_v3  ;;  %v951_v15 = vpop.f32.mrf.mxu0  ;;  %v1022_v10 = vpop.f32.mrf.mxu1  ;;  %v15925_v7 = vld [vmem:[#allocation45_spill] sm:$0xff] }
 0x10e   : > { %v1023_v42 = vadd.f32 %v1022_v10, %v951_v15  ;;  %1656 = vmatpush.msra.mxu0 %v15925_v7  ;;  %v15926_v10 = vld [vmem:[#allocation46_spill] sm:$0xff]  ;;  %v1300_v7 = vld [vmem:[#allocation2 + $0x330] sm:$0xff] }
 0x10f   : > { %v12081_v19 = vadd.f32 %v1161_v62, %v1091_v11  ;;  %998 = vmatmul.f32.gmra.mxu0 %v871_v22 }
 0x110   : > { %1069 = vmatmul.f32.gmra.mxu1 %v872_v35  ;;  %1657 = vmatpush.msra.mxu0 %v15926_v10  ;;  %v1303_v10 = vld [vmem:[#allocation2 + $0x348] sm:$0xff] }
 0x111   : > { %1140 = vmatmul.f32.gmra.mxu2 %v873_v26  ;;  %1211 = vmatmul.f32.gmra.mxu3 %v874_v30  ;;  %v795_v30 = vld [vmem:[#allocation2 + $0x48] sm:$0xff] }
 0x114   : > { %v1093_v46 = vpop.f32.mrf.mxu2  ;;  %v1164_v27 = vpop.f32.mrf.mxu3 }
 0x115   : > { %v1094_v50 = vadd.f32 %v1093_v46, %v1023_v42  ;;  %v954_v51 = vpop.f32.mrf.mxu0  ;;  %v1025_v54 = vpop.f32.mrf.mxu1  ;;  %v1294_v42 = vld [vmem:[#allocation2 + $0x300] sm:$0xff]  ;;  %v1295_v46 = vld [vmem:[#allocation2 + $0x308] sm:$0xff] }
 0x116   : > { %v1026_v62 = vadd.f32 %v1025_v54, %v954_v51  ;;  %v15929_v54 = vld [vmem:[#allocation49_spill] sm:$0xff] }
 0x117   : > { %v12086_v3 = vadd.f32 %v1164_v27, %v1094_v50  ;;  %9858 = vmatmul.msk.f32.vlgmr.msrb.gmra.mxu0 %vm876_vm0, %v790_v55  ;;  %v15927_v27 = vld [vmem:[#allocation47_spill] sm:$0xff] }
 0x118   : > { %1448 = vmatmul.f32.vlgmr.msrb.gmra.mxu1 %v1288_v58  ;;  %1658 = vmatpush.msra.mxu0 %v15927_v27 }
 0x119   : > { %1519 = vmatmul.f32.vlgmr.msrb.gmra.mxu2 %v1289_v31  ;;  %1590 = vmatmul.f32.vlgmr.msrb.gmra.mxu3 %v1290_v63  ;;  %v800_v31 = vld [vmem:[#allocation2 + $0x70] sm:$0xff]  ;;  %v1298_v63 = vld [vmem:[#allocation2 + $0x320] sm:$0xff] }
 0x11a   : > { %2263 = vmatpush.msrb.mxu1 %v11733_v1  ;;  %v15928_v1 = vld [vmem:[#allocation48_spill] sm:$0xff] }
 0x11b   : > { %1659 = vmatpush.msra.mxu0 %v15928_v1  ;;  %v815_v1 = vld [vmem:[#allocation2 + $0xe8] sm:$0xff] }
 0x11c   : > { %v1096_v11 = vpop.f32.mrf.mxu2  ;;  %v1167_v15 = vpop.f32.mrf.mxu3  ;;  %2264 = vmatpush.msrb.mxu1 %v11747_v5 }
 0x11d   : > { %v1097_v22 = vadd.f32 %v1096_v11, %v1026_v62  ;;  %v957_v35 = vpop.f32.mrf.mxu0  ;;  %v1028_v26 = vpop.f32.mrf.mxu1  ;;  %1660 = vmatpush.msra.mxu0 %v15929_v54 }
 0x11e   : > { %2265 = vmatpush.msrb.mxu1 %v11763_v9  ;;  %v1029_v5 = vadd.f32 %v1028_v26, %v957_v35  ;;  %v1305_v35 = vld [vmem:[#allocation2 + $0x358] sm:$0xff] }
 0x11f   : > { %v12095_v47 = vadd.f32 %v1167_v15, %v1097_v22  ;;  %9859 = vmatmul.msk.f32.gmra.mxu0 %vm876_vm0, %v795_v30  ;;  %v1304_v22 = vld [vmem:[#allocation2 + $0x350] sm:$0xff]  ;;  %v810_v30 = vld [vmem:[#allocation2 + $0xc0] sm:$0xff] }
 0x120   : > { %1451 = vmatmul.f32.gmra.mxu1 %v1293_v23  ;;  %2192 = vmatpush.msrb.mxu0 %v11730_v0  ;;  %v1308_v23 = vld [vmem:[#allocation2 + $0x370] sm:$0xff] }
 0x121   : > { %1522 = vmatmul.f32.gmra.mxu2 %v1294_v42  ;;  %1593 = vmatmul.f32.gmra.mxu3 %v1295_v46  ;;  %v1309_v42 = vld [vmem:[#allocation2 + $0x378] sm:$0xff]  ;;  %v1310_v46 = vld [vmem:[#allocation2 + $0x380] sm:$0xff] }
 0x122   : > { %2266 = vmatpush.msrb.mxu1 %v11777_v13  ;;  %2193 = vmatpush.msrb.mxu0 %v11744_v4  ;;  %v805_v4 = vld [vmem:[#allocation2 + $0x98] sm:$0xff] }
 0x124   : > { %v1099_v50 = vpop.f32.mrf.mxu2  ;;  %v1170_v51 = vpop.f32.mrf.mxu3  ;;  %2267 = vmatpush.msrb.mxu1 %v11793_v17  ;;  %2194 = vmatpush.msrb.mxu0 %v11758_v8 }
 0x125   : > { %v1100_v55 = vadd.f32 %v1099_v50, %v1029_v5  ;;  %v960_v9 = vpop.f32.mrf.mxu0  ;;  %v1031_v58 = vpop.f32.mrf.mxu1  ;;  %v1313_v5 = vld [vmem:[#allocation2 + $0x398] sm:$0xff]  ;;  %v1314_v50 = vld [vmem:[#allocation2 + $0x3a0] sm:$0xff] }
 0x126   : > { %2268 = vmatpush.msrb.mxu1 %v11809_v21  ;;  %v1032_v13 = vadd.f32 %v1031_v58, %v960_v9  ;;  %2195 = vmatpush.msrb.mxu0 %v11774_v12  ;;  %v1318_v9 = vld [vmem:[#allocation2 + $0x3c0] sm:$0xff]  ;;  %v1319_v58 = vld [vmem:[#allocation2 + $0x3c8] sm:$0xff] }
 0x127   : > { %v12104_v62 = vadd.f32 %v1170_v51, %v1100_v55  ;;  %9860 = vmatmul.msk.f32.gmra.mxu0 %vm876_vm0, %v800_v31  ;;  %v1315_v51 = vld [vmem:[#allocation2 + $0x3a8] sm:$0xff]  ;;  %v1320_v31 = vld [vmem:[#allocation2 + $0x3d0] sm:$0xff] }
 0x128   : > { %1454 = vmatmul.f32.gmra.mxu1 %v1298_v63  ;;  %2196 = vmatpush.msrb.mxu0 %v11790_v16 }
 0x129   : > { %1525 = vmatmul.f32.gmra.mxu2 %v1299_v2  ;;  %1596 = vmatmul.f32.gmra.mxu3 %v1300_v7 }
 0x12a   : > { %2269 = vmatpush.msrb.mxu1 %v11825_v25  ;;  %2197 = vmatpush.msrb.mxu0 %v11806_v20 }
 0x12c   : > { %v1102_v17 = vpop.f32.mrf.mxu2  ;;  %v1173_v0 = vpop.f32.mrf.mxu3  ;;  %2270 = vmatpush.msrb.mxu1 %v11841_v29  ;;  %2198 = vmatpush.msrb.mxu0 %v11822_v24 }
 0x12d   : > { %v1103_v21 = vadd.f32 %v1102_v17, %v1032_v13  ;;  %v963_v11 = vpop.f32.mrf.mxu0  ;;  %v1034_v15 = vpop.f32.mrf.mxu1  ;;  %v825_v17 = vld [vmem:[#allocation2 + $0x138] sm:$0xff] }
 0x12e   : > { %2271 = vmatpush.msrb.mxu1 %v11857_v33  ;;  %v1035_v12 = vadd.f32 %v1034_v15, %v963_v11  ;;  %2199 = vmatpush.msrb.mxu0 %v11838_v28 }
 0x12f   : > { %v12114_v8 = vadd.f32 %v1173_v0, %v1103_v21  ;;  %9861 = vmatmul.msk.f32.gmra.mxu0 %vm876_vm0, %v805_v4  ;;  %v1323_v0 = vld [vmem:[#allocation2 + $0x3e8] sm:$0xff]  ;;  %v1325_v21 = vld [vmem:[#allocation2 + $0x3f8] sm:$0xff] }
 0x130   : > { %1457 = vmatmul.f32.gmra.mxu1 %v1303_v10  ;;  %2200 = vmatpush.msrb.mxu0 %v11854_v32 }
 0x131   : > { %1528 = vmatmul.f32.gmra.mxu2 %v1304_v22  ;;  %1599 = vmatmul.f32.gmra.mxu3 %v1305_v35  ;;  %v830_v35 = vld [vmem:[#allocation2 + $0x160] sm:$0xff] }
 0x132   : > { %2272 = vmatpush.msrb.mxu1 %v11873_v37  ;;  %2201 = vmatpush.msrb.mxu0 %v11870_v36 }
 0x134   : > { %v1105_v25 = vpop.f32.mrf.mxu2  ;;  %v1176_v29 = vpop.f32.mrf.mxu3  ;;  %2273 = vmatpush.msrb.mxu1 %v11889_v41  ;;  %2202 = vmatpush.msrb.mxu0 %v11886_v40 }
 0x135   : > { %v1106_v16 = vadd.f32 %v1105_v25, %v1035_v12  ;;  %v966_v33 = vpop.f32.mrf.mxu0  ;;  %v1037_v26 = vpop.f32.mrf.mxu1  ;;  %v1328_v12 = vld [vmem:[#allocation2 + $0x410] sm:$0xff]  ;;  %v1329_v25 = vld [vmem:[#allocation2 + $0x418] sm:$0xff] }
 0x136   : > { %2274 = vmatpush.msrb.mxu1 %v11905_v45  ;;  %v1038_v24 = vadd.f32 %v1037_v26, %v966_v33  ;;  %2203 = vmatpush.msrb.mxu0 %v11902_v44 }
 0x137   : > { %v12123_v20 = vadd.f32 %v1176_v29, %v1106_v16  ;;  %9862 = vmatmul.msk.f32.gmra.mxu0 %vm876_vm0, %v810_v30  ;;  %v1330_v29 = vld [vmem:[#allocation2 + $0x420] sm:$0xff] }
 0x138   : > { %1460 = vmatmul.f32.gmra.mxu1 %v1308_v23  ;;  %2204 = vmatpush.msrb.mxu0 %v11918_v48 }
 0x139   : > { %1531 = vmatmul.f32.gmra.mxu2 %v1309_v42  ;;  %1602 = vmatmul.f32.gmra.mxu3 %v1310_v46 }
 0x13a   : > { %2275 = vmatpush.msrb.mxu1 %v11921_v49  ;;  %2205 = vmatpush.msrb.mxu0 %v11934_v52  ;;  %v1324_v52 = vld [vmem:[#allocation2 + $0x3f0] sm:$0xff] }
 0x13c   : > { %v1108_v37 = vpop.f32.mrf.mxu2  ;;  %v1179_v41 = vpop.f32.mrf.mxu3  ;;  %2276 = vmatpush.msrb.mxu1 %v11937_v53  ;;  %2206 = vmatpush.msrb.mxu0 %v11948_v56 }
 0x13d   : > { %v1109_v28 = vadd.f32 %v1108_v37, %v1038_v24  ;;  %v969_v45 = vpop.f32.mrf.mxu0  ;;  %v1040_v27 = vpop.f32.mrf.mxu1  ;;  %v835_v24 = vld [vmem:[#allocation2 + $0x188] sm:$0xff]  ;;  %v1333_v37 = vld [vmem:[#allocation2 + $0x438] sm:$0xff] }
 0x13e   : > { %2277 = vmatpush.msrb.mxu1 %v11953_v57  ;;  %v1041_v36 = vadd.f32 %v1040_v27, %v969_v45  ;;  %v820_v57 = vld [vmem:[#allocation2 + $0x110] sm:$0xff]  ;;  %2207 = vmatpush.msrb.mxu0 %v11966_v60 }
 0x13f   : > { %v12132_v32 = vadd.f32 %v1179_v41, %v1109_v28  ;;  %9863 = vmatmul.msk.f32.gmra.mxu0 %vm876_vm0, %v815_v1  ;;  %v1334_v41 = vld [vmem:[#allocation2 + $0x440] sm:$0xff]  ;;  %v1335_v28 = vld [vmem:[#allocation2 + $0x448] sm:$0xff] }
 0x140   : > { %1463 = vmatmul.f32.gmra.mxu1 %v1313_v5 }
 0x141   : > { %1534 = vmatmul.f32.gmra.mxu2 %v1314_v50  ;;  %1605 = vmatmul.f32.gmra.mxu3 %v1315_v51 }
 0x142   : > { %2278 = vmatpush.msrb.mxu1 %v11969_v61 }
 0x144   : > { %v1111_v49 = vpop.f32.mrf.mxu2  ;;  %v1182_v53 = vpop.f32.mrf.mxu3 }
 0x145   : > { %v1112_v54 = vadd.f32 %v1111_v49, %v1041_v36  ;;  %v972_v40 = vpop.f32.mrf.mxu0  ;;  %v1043_v55 = vpop.f32.mrf.mxu1  ;;  %v840_v49 = vld [vmem:[#allocation2 + $0x1b0] sm:$0xff] }
 0x146   : > { %v1044_v44 = vadd.f32 %v1043_v55, %v972_v40  ;;  %v1340_v40 = vld [vmem:[#allocation2 + $0x470] sm:$0xff] }
 0x147   : > { %v12139_v63 = vadd.f32 %v1182_v53, %v1112_v54  ;;  %9864 = vmatmul.msk.f32.gmra.mxu0 %vm876_vm0, %v820_v57  ;;  %v1338_v53 = vld [vmem:[#allocation2 + $0x460] sm:$0xff]  ;;  %v1339_v54 = vld [vmem:[#allocation2 + $0x468] sm:$0xff] }
 0x148   : > { %1466 = vmatmul.f32.gmra.mxu1 %v1318_v9 }
 0x149   : > { %1537 = vmatmul.f32.gmra.mxu2 %v1319_v58  ;;  %1608 = vmatmul.f32.gmra.mxu3 %v1320_v31 }
 0x14c   : > { %v1114_v48 = vpop.f32.mrf.mxu2  ;;  %v1185_v61 = vpop.f32.mrf.mxu3 }
 0x14d   : > { %v1115_v2 = vadd.f32 %v1114_v48, %v1044_v44  ;;  %v975_v7 = vpop.f32.mrf.mxu0  ;;  %v1046_v13 = vpop.f32.mrf.mxu1  ;;  %v845_v44 = vld [vmem:[#allocation2 + $0x1d8] sm:$0xff]  ;;  %v1343_v48 = vld [vmem:[#allocation2 + $0x488] sm:$0xff] }
 0x14e   : > { %v1047_v56 = vadd.f32 %v1046_v13, %v975_v7 }
 0x14f   : > { %v12144_v11 = vadd.f32 %v1185_v61, %v1115_v2  ;;  %9865 = vmatmul.msk.f32.gmra.mxu0 %vm876_vm0, %v825_v17  ;;  %v1344_v61 = vld [vmem:[#allocation2 + $0x490] sm:$0xff]  ;;  %v1345_v2 = vld [vmem:[#allocation2 + $0x498] sm:$0xff] }
 0x150   : > { %1469 = vmatmul.f32.gmra.mxu1 %v1323_v0 }
 0x151   : > { %1540 = vmatmul.f32.gmra.mxu2 %v1324_v52  ;;  %1611 = vmatmul.f32.gmra.mxu3 %v1325_v21  ;;  %v850_v52 = vld [vmem:[#allocation2 + $0x200] sm:$0xff]  ;;  %v1348_v21 = vld [vmem:[#allocation2 + $0x4b0] sm:$0xff] }
 0x154   : > { %v1117_v15 = vpop.f32.mrf.mxu2  ;;  %v1188_v4 = vpop.f32.mrf.mxu3 }
 0x155   : > { %v1118_v10 = vadd.f32 %v1117_v15, %v1047_v56  ;;  %v978_v22 = vpop.f32.mrf.mxu0  ;;  %v1049_v60 = vpop.f32.mrf.mxu1  ;;  %v1349_v56 = vld [vmem:[#allocation2 + $0x4b8] sm:$0xff]  ;;  %v1350_v15 = vld [vmem:[#allocation2 + $0x4c0] sm:$0xff] }
 0x156   : > { %v1050_v33 = vadd.f32 %v1049_v60, %v978_v22 }
 0x157   : > { %v12147_v16 = vadd.f32 %v1188_v4, %v1118_v10  ;;  %9866 = vmatmul.msk.f32.gmra.mxu0 %vm876_vm0, %v830_v35  ;;  %v855_v35 = vld [vmem:[#allocation2 + $0x228] sm:$0xff] }
 0x158   : > { %1472 = vmatmul.f32.gmra.mxu1 %v1328_v12  ;;  %v1353_v12 = vld [vmem:[#allocation2 + $0x4d8] sm:$0xff] }
 0x159   : > { %1543 = vmatmul.f32.gmra.mxu2 %v1329_v25  ;;  %1614 = vmatmul.f32.gmra.mxu3 %v1330_v29  ;;  %v1354_v25 = vld [vmem:[#allocation2 + $0x4e0] sm:$0xff]  ;;  %v1355_v29 = vld [vmem:[#allocation2 + $0x4e8] sm:$0xff] }
 0x15c   : > { %v1120_v26 = vpop.f32.mrf.mxu2  ;;  %v1191_v30 = vpop.f32.mrf.mxu3 }
 0x15d   : > { %v1121_v23 = vadd.f32 %v1120_v26, %v1050_v33  ;;  %v981_v42 = vpop.f32.mrf.mxu0  ;;  %v1052_v46 = vpop.f32.mrf.mxu1 }
 0x15e   : > { %v1053_v27 = vadd.f32 %v1052_v46, %v981_v42  ;;  %v860_v42 = vld [vmem:[#allocation2 + $0x250] sm:$0xff]  ;;  %v1358_v46 = vld [vmem:[#allocation2 + $0x500] sm:$0xff] }
 0x15f   : > { %v12150_v45 = vadd.f32 %v1191_v30, %v1121_v23  ;;  %9867 = vmatmul.msk.f32.gmra.mxu0 %vm876_vm0, %v835_v24  ;;  %v1359_v24 = vld [vmem:[#allocation2 + $0x508] sm:$0xff] }
 0x160   : > { %1475 = vmatmul.f32.gmra.mxu1 %v1333_v37  ;;  %v1360_v37 = vld [vmem:[#allocation2 + $0x510] sm:$0xff] }
 0x161   : > { %1546 = vmatmul.f32.gmra.mxu2 %v1334_v41  ;;  %1617 = vmatmul.f32.gmra.mxu3 %v1335_v28  ;;  %v1286_v41 = vld [vmem:[#allocation10] sm:$0xf]  ;;  %v10650_v28 = vld [vmem:[%s11727_s23 + $0x1f8] sm:$0xff] }
 0x162   : > { %9913 = vmatpush.msk.msra.mxu3 %vm1844_vm1, %v1286_v41  ;;  %v10657_v41 = vld [vmem:[%s11727_s23 + $0x1c0] sm:$0xff] }
 0x164   : > { %v1123_v1 = vpop.f32.mrf.mxu2  ;;  %v1194_v5 = vpop.f32.mrf.mxu3  ;;  %2405 = vmatpush.msrb.mxu3 %v10650_v28 }
 0x165   : > { %v1124_v50 = vadd.f32 %v1123_v1, %v1053_v27  ;;  %v12153_v51 = vpop.f32.mrf.mxu0  ;;  %v12155_v36 = vpop.f32.mrf.mxu1 }
 0x167   : > { %v12157_v55 = vadd.f32 %v1194_v5, %v1124_v50  ;;  %9868 = vmatmul.msk.f32.gmra.mxu0 %vm876_vm0, %v840_v49  ;;  %v865_v49 = vld [vmem:[#allocation2 + $0x278] sm:$0xff] }
 0x168   : > { %1478 = vmatmul.f32.gmra.mxu1 %v1338_v53  ;;  %v1363_v53 = vld [vmem:[#allocation2 + $0x528] sm:$0xff] }
 0x169   : > { %1549 = vmatmul.f32.gmra.mxu2 %v1339_v54  ;;  %1620 = vmatmul.f32.gmra.mxu3 %v1340_v40  ;;  %v10651_v54 = vld [vmem:[%s11727_s23 + $0x1f0] sm:$0xff] }
 0x16a   : > { %2406 = vmatpush.msrb.mxu3 %v10651_v54  ;;  %v1364_v40 = vld [vmem:[#allocation2 + $0x530] sm:$0xff]  ;;  %v875_v54 = vld [vmem:[#allocation2 + $0x2c8] sm:$0xff] }
 0x16c   : > { %v12160_v57 = vpop.f32.mrf.mxu2  ;;  %v12162_v9 = vpop.f32.mrf.mxu3 }
 0x16d   : > { %v12164_v58 = vpop.f32.mrf.mxu0  ;;  %v12166_v31 = vpop.f32.mrf.mxu1 }
 0x16f   : > { %9869 = vmatmul.msk.f32.gmra.mxu0 %vm876_vm0, %v845_v44  ;;  %v1365_v44 = vld [vmem:[#allocation2 + $0x538] sm:$0xff] }
 0x170   : > { %1481 = vmatmul.f32.gmra.mxu1 %v1343_v48  ;;  %v10652_v48 = vld [vmem:[%s11727_s23 + $0x1e8] sm:$0xff] }
 0x171   : > { %1552 = vmatmul.f32.gmra.mxu2 %v1344_v61  ;;  %1623 = vmatmul.f32.gmra.mxu3 %v1345_v2  ;;  %v10653_v61 = vld [vmem:[%s11727_s23 + $0x1e0] sm:$0xff] }
 0x172   : > { %2407 = vmatpush.msrb.mxu3 %v10652_v48  ;;  %v1375_v48 = vld [vmem:[#allocation2 + $0x588] sm:$0xff] }
 0x174   : > { %v12169_v7 = vpop.f32.mrf.mxu2  ;;  %v12171_v13 = vpop.f32.mrf.mxu3  ;;  %2408 = vmatpush.msrb.mxu3 %v10653_v61  ;;  %v10658_v61 = vld [vmem:[%s11727_s23 + $0x1b8] sm:$0xff] }
 0x175   : > { %v12173_v17 = vpop.f32.mrf.mxu0  ;;  %v12175_v0 = vpop.f32.mrf.mxu1 }
 0x177   : > { %9870 = vmatmul.msk.f32.gmra.mxu0 %vm876_vm0, %v850_v52 }
 0x178   : > { %1484 = vmatmul.f32.gmra.mxu1 %v1348_v21  ;;  %v10654_v21 = vld [vmem:[%s11727_s23 + $0x1d8] sm:$0xff] }
 0x179   : > { %1555 = vmatmul.f32.gmra.mxu2 %v1349_v56  ;;  %1626 = vmatmul.f32.gmra.mxu3 %v1350_v15 }
 0x17a   : > { %2409 = vmatpush.msrb.mxu3 %v10654_v21 }
 0x17c   : > { %v12178_v4 = vpop.f32.mrf.mxu2  ;;  %v12180_v10 = vpop.f32.mrf.mxu3 }
 0x17d   : > { %v12182_v22 = vpop.f32.mrf.mxu0  ;;  %v12184_v60 = vpop.f32.mrf.mxu1 }
 0x17f   : > { %9871 = vmatmul.msk.f32.gmra.mxu0 %vm876_vm0, %v855_v35  ;;  %v870_v35 = vld [vmem:[#allocation2 + $0x2a0] sm:$0xff] }
 0x180   : > { %1487 = vmatmul.f32.gmra.mxu1 %v1353_v12  ;;  %v1368_v12 = vld [vmem:[#allocation2 + $0x550] sm:$0xff] }
 0x181   : > { %1558 = vmatmul.f32.gmra.mxu2 %v1354_v25  ;;  %1629 = vmatmul.f32.gmra.mxu3 %v1355_v29  ;;  %v1369_v25 = vld [vmem:[#allocation2 + $0x558] sm:$0xff]  ;;  %v1370_v29 = vld [vmem:[#allocation2 + $0x560] sm:$0xff] }
 0x184   : > { %v12187_v33 = vpop.f32.mrf.mxu2  ;;  %v12189_v26 = vpop.f32.mrf.mxu3 }
 0x185   : > { %v12191_v30 = vpop.f32.mrf.mxu0  ;;  %v12193_v23 = vpop.f32.mrf.mxu1 }
 0x187   : > { %9872 = vmatmul.msk.f32.gmra.mxu0 %vm876_vm0, %v860_v42  ;;  %v10655_v42 = vld [vmem:[%s11727_s23 + $0x1d0] sm:$0xff] }
 0x188   : > { %1490 = vmatmul.f32.gmra.mxu1 %v1358_v46  ;;  %2410 = vmatpush.msrb.mxu3 %v10655_v42  ;;  %v10656_v46 = vld [vmem:[%s11727_s23 + $0x1c8] sm:$0xff] }
 0x189   : > { %1561 = vmatmul.f32.gmra.mxu2 %v1359_v24  ;;  %1632 = vmatmul.f32.gmra.mxu3 %v1360_v37 }
 0x18a   : > { %2411 = vmatpush.msrb.mxu3 %v10656_v46 }
 0x18c   : > { %v12198_v27 = vpop.f32.mrf.mxu2  ;;  %v12200_v1 = vpop.f32.mrf.mxu3  ;;  %2412 = vmatpush.msrb.mxu3 %v10657_v41  ;;  %v10661_v41 = vld [vmem:[%s11727_s23 + $0x1a0] sm:$0xff] }
 0x18d   : > { %v12202_v5 = vpop.f32.mrf.mxu0  ;;  %v12204_v50 = vpop.f32.mrf.mxu1 }
 0x18e   : > { %2413 = vmatpush.msrb.mxu3 %v10658_v61 }
 0x18f   : > { %9873 = vmatmul.msk.f32.gmra.mxu0 %vm876_vm0, %v865_v49 }
 0x190   : > { %1493 = vmatmul.f32.gmra.mxu1 %v1363_v53 }
 0x191   : > { %1564 = vmatmul.f32.gmra.mxu2 %v1364_v40  ;;  %1635 = vmatmul.f32.gmra.mxu3 %v1365_v44  ;;  %v1373_v40 = vld [vmem:[#allocation2 + $0x578] sm:$0xff]  ;;  %v1374_v44 = vld [vmem:[#allocation2 + $0x580] sm:$0xff] }
 0x194   : > { %v12210_v2 = vpop.f32.mrf.mxu2  ;;  %v12212_v52 = vpop.f32.mrf.mxu3 }
 0x195   : > { %v1232_v56 = vpop.f32.mrf.mxu0  ;;  %v1449_v15 = vpop.f32.mrf.mxu1 }
 0x197   : > { %9874 = vmatmul.msk.f32.gmra.mxu0 %vm876_vm0, %v870_v35  ;;  %v10659_v35 = vld [vmem:[%s11727_s23 + $0x1b0] sm:$0xff] }
 0x198   : > { %1496 = vmatmul.f32.gmra.mxu1 %v1368_v12  ;;  %2414 = vmatpush.msrb.mxu3 %v10659_v35  ;;  %v1296_v35 = vld [vmem:[#allocation2 + $0x310] sm:$0xff] }
 0x199   : > { %1567 = vmatmul.f32.gmra.mxu2 %v1369_v25  ;;  %1638 = vmatmul.f32.gmra.mxu3 %v1370_v29  ;;  %v10660_v25 = vld [vmem:[%s11727_s23 + $0x1a8] sm:$0xff] }
 0x19a   : > { %2415 = vmatpush.msrb.mxu3 %v10660_v25 }
 0x19c   : > { %v1520_v24 = vpop.f32.mrf.mxu2  ;;  %v1591_v37 = vpop.f32.mrf.mxu3  ;;  %2416 = vmatpush.msrb.mxu3 %v10661_v41  ;;  %v10667_v41 = vld [vmem:[%s11727_s23 + $0xf0] sm:$0xff] }
 0x19d   : > { %v1521_v28 = vadd.f32 %v1520_v24, %v1449_v15  ;;  %v1235_v49 = vpop.f32.mrf.mxu0  ;;  %v1452_v53 = vpop.f32.mrf.mxu1  ;;  %v1291_v24 = vld [vmem:[#allocation2 + $0x2e8] sm:$0xff] }
 0x19f   : > { %v12220_v21 = vadd.f32 %v1591_v37, %v1521_v28  ;;  %9875 = vmatmul.msk.f32.gmra.mxu0 %vm876_vm0, %v875_v54  ;;  %v1292_v37 = vld [vmem:[#allocation2 + $0x2f0] sm:$0xff]  ;;  %v1233_v28 = vadd.f32 %v1232_v56, %v12081_v19 }
 0x1a0   : > { %1499 = vmatmul.f32.gmra.mxu1 %v1373_v40 }
 0x1a1   : > { %1570 = vmatmul.f32.gmra.mxu2 %v1374_v44  ;;  %1641 = vmatmul.f32.gmra.mxu3 %v1375_v48  ;;  %v10663_v48 = vld [vmem:[%s11727_s23 + $0x190] sm:$0xff] }
 0x1a4   : > { %v1523_v15 = vpop.f32.mrf.mxu2  ;;  %v1594_v12 = vpop.f32.mrf.mxu3 }
 0x1a5   : > { %v1524_v29 = vadd.f32 %v1523_v15, %v1452_v53  ;;  %v1238_v42 = vpop.f32.mrf.mxu0  ;;  %v1455_v46 = vpop.f32.mrf.mxu1  ;;  %v10662_v53 = vld [vmem:[%s11727_s23 + $0x198] sm:$0xff] }
 0x1a6   : > { %2417 = vmatpush.msrb.mxu3 %v10662_v53  ;;  %v1297_v15 = vld [vmem:[#allocation2 + $0x318] sm:$0xff]  ;;  %v10669_v53 = vld [vmem:[%s11727_s23 + $0xe0] sm:$0xff] }
 0x1a7   : > { %v12227_v54 = vadd.f32 %v1594_v12, %v1524_v29  ;;  %1661 = vmatmul.f32.vlgmr.msra.gmra.mxu0 %v1291_v24  ;;  %v10664_v12 = vld [vmem:[%s11727_s23 + $0x188] sm:$0xff]  ;;  %v1301_v24 = vld [vmem:[#allocation2 + $0x338] sm:$0xff] }
 0x1a8   : > { %9876 = vmatmul.msk.f32.vlgmr.msra.gmra.mxu1 %vm876_vm0, %v1292_v37  ;;  %2484 = vmatpush.msra.mxu0 %v12034_v38  ;;  %v1236_v38 = vadd.f32 %v1235_v49, %v12086_v3  ;;  %v1302_v37 = vld [vmem:[#allocation2 + $0x340] sm:$0xff] }
 0x1a9   : > { %9914 = vmatmul.msk.f32.vlgmr.msra.gmra.mxu3 %vm1789_vm2, %v1233_v28 }
 0x1aa   : > { %2485 = vmatpush.msra.mxu0 %v12039_v59  ;;  %2418 = vmatpush.msrb.mxu3 %v10663_v48  ;;  %v10665_v59 = vld [vmem:[%s11727_s23 + $0x180] sm:$0xff] }
 0x1ac   : > { %v1526_v40 = vpop.f32.mrf.mxu2  ;;  %v1597_v44 = vpop.f32.mrf.mxu3  ;;  %2486 = vmatpush.msra.mxu0 %v12044_v6  ;;  %2419 = vmatpush.msrb.mxu3 %v10664_v12  ;;  %v10666_v6 = vld [vmem:[%s11727_s23 + $0xf8] sm:$0xff]  ;;  %v10672_v12 = vld [vmem:[%s11727_s23 + $0xc8] sm:$0xff] }
 0x1ad   : > { %v1527_v19 = vadd.f32 %v1526_v40, %v1455_v46  ;;  %v1241_v56 = vpop.f32.mrf.mxu0  ;;  %v1458_v61 = vpop.f32.mrf.mxu1 }
 0x1ae   : > { %2487 = vmatpush.msra.mxu0 %v12049_v43  ;;  %2420 = vmatpush.msrb.mxu3 %v10665_v59 }
 0x1af   : > { %v12238_v25 = vadd.f32 %v1597_v44, %v1527_v19  ;;  %1664 = vmatmul.f32.gmra.mxu0 %v1296_v35  ;;  %v10670_v44 = vld [vmem:[%s11727_s23 + $0xd8] sm:$0xff]  ;;  %v1307_v19 = vld [vmem:[#allocation2 + $0x368] sm:$0xff]  ;;  %v1242_v35 = vadd.f32 %v1241_v56, %v12104_v62  ;;  %v1312_v56 = vld [vmem:[#allocation2 + $0x390] sm:$0xff] }
 0x1b0   : > { %9877 = vmatmul.msk.f32.gmra.mxu1 %vm876_vm0, %v1297_v15  ;;  %2488 = vmatpush.msra.mxu0 %v12052_v14  ;;  %v1239_v14 = vadd.f32 %v1238_v42, %v12095_v47  ;;  %v1311_v62 = vld [vmem:[#allocation2 + $0x388] sm:$0xff] }
 0x1b1   : > { %9915 = vmatmul.msk.f32.gmra.mxu3 %vm1789_vm2, %v1236_v38 }
 0x1b2   : > { %2489 = vmatpush.msra.mxu0 %v12057_v18  ;;  %2911 = vmatpush.msra.mxu3 %v10666_v6  ;;  %v10668_v18 = vld [vmem:[%s11727_s23 + $0xe8] sm:$0xff]  ;;  %v10673_v6 = vld [vmem:[%s11727_s23 + $0xc0] sm:$0xff] }
 0x1b4   : > { %v1529_v3 = vpop.f32.mrf.mxu2  ;;  %v1600_v49 = vpop.f32.mrf.mxu3  ;;  %2490 = vmatpush.msra.mxu0 %v12064_v34  ;;  %2912 = vmatpush.msra.mxu3 %v10667_v41  ;;  %v10675_v41 = vld [vmem:[%s11727_s23 + $0xb0] sm:$0xff] }
 0x1b5   : > { %v1530_v29 = vadd.f32 %v1529_v3, %v1458_v61  ;;  %v1244_v43 = vpop.f32.mrf.mxu0  ;;  %v1461_v46 = vpop.f32.mrf.mxu1  ;;  %v10671_v61 = vld [vmem:[%s11727_s23 + $0xd0] sm:$0xff] }
 0x1b6   : > { %2491 = vmatpush.msra.mxu0 %v12067_v39  ;;  %2913 = vmatpush.msra.mxu3 %v10668_v18  ;;  %v1306_v39 = vld [vmem:[#allocation2 + $0x360] sm:$0xff] }
 0x1b7   : > { %v12250_v28 = vadd.f32 %v1600_v49, %v1530_v29  ;;  %1667 = vmatmul.f32.gmra.mxu0 %v1301_v24  ;;  %v1245_v24 = vadd.f32 %v1244_v43, %v12114_v8  ;;  %v1316_v8 = vld [vmem:[#allocation2 + $0x3b0] sm:$0xff]  ;;  %v1317_v43 = vld [vmem:[#allocation2 + $0x3b8] sm:$0xff] }
 0x1b8   : > { %9878 = vmatmul.msk.f32.gmra.mxu1 %vm876_vm0, %v1302_v37  ;;  %2914 = vmatpush.msra.mxu3 %v10669_v53  ;;  %v10676_v53 = vld [vmem:[%s11727_s23 + $0xa8] sm:$0xff] }
 0x1b9   : > { %9916 = vmatmul.msk.f32.gmra.mxu3 %vm1789_vm2, %v1239_v14 }
 0x1ba   : > { %2915 = vmatpush.msra.mxu3 %v10670_v44 }
 0x1bc   : > { %v1532_v40 = vpop.f32.mrf.mxu2  ;;  %v1603_v34 = vpop.f32.mrf.mxu3  ;;  %2916 = vmatpush.msra.mxu3 %v10671_v61 }
 0x1bd   : > { %v1533_v47 = vadd.f32 %v1532_v40, %v1461_v46  ;;  %v1247_v42 = vpop.f32.mrf.mxu0  ;;  %v1464_v48 = vpop.f32.mrf.mxu1  ;;  %v10674_v46 = vld [vmem:[%s11727_s23 + $0xb8] sm:$0xff] }
 0x1be   : > { %2917 = vmatpush.msra.mxu3 %v10672_v12  ;;  %v10679_v12 = vld [vmem:[%s11727_s23 + $0x90] sm:$0xff] }
 0x1bf   : > { %v12260_v15 = vadd.f32 %v1603_v34, %v1533_v47  ;;  %1670 = vmatmul.f32.gmra.mxu0 %v1306_v39  ;;  %v10677_v47 = vld [vmem:[%s11727_s23 + $0xa0] sm:$0xff] }
 0x1c0   : > { %9879 = vmatmul.msk.f32.gmra.mxu1 %vm876_vm0, %v1307_v19  ;;  %2918 = vmatpush.msra.mxu3 %v10673_v6  ;;  %v10678_v19 = vld [vmem:[%s11727_s23 + $0x98] sm:$0xff] }
 0x1c1   : > { %9917 = vmatmul.msk.f32.gmra.mxu3 %vm1789_vm2, %v1242_v35 }
 0x1c2   : > { %2919 = vmatpush.msra.mxu3 %v10674_v46 }
 0x1c4   : > { %v1535_v38 = vpop.f32.mrf.mxu2  ;;  %v1606_v59 = vpop.f32.mrf.mxu3  ;;  %2920 = vmatpush.msra.mxu3 %v10675_v41 }
 0x1c5   : > { %v1536_v3 = vadd.f32 %v1535_v38, %v1464_v48  ;;  %v1250_v49 = vpop.f32.mrf.mxu0  ;;  %v1467_v29 = vpop.f32.mrf.mxu1  ;;  %v1248_v48 = vadd.f32 %v1247_v42, %v12123_v20  ;;  %v1322_v20 = vld [vmem:[#allocation2 + $0x3e0] sm:$0xff]  ;;  %v10680_v42 = vld [vmem:[%s11727_s23 + $0x88] sm:$0xff] }
 0x1c6   : > { %2921 = vmatpush.msra.mxu3 %v10676_v53  ;;  %v1326_v53 = vld [vmem:[#allocation2 + $0x400] sm:$0xff] }
 0x1c7   : > { %v12268_v37 = vadd.f32 %v1606_v59, %v1536_v3  ;;  %1673 = vmatmul.f32.gmra.mxu0 %v1311_v62  ;;  %v1321_v3 = vld [vmem:[#allocation2 + $0x3d8] sm:$0xff] }
 0x1c8   : > { %9880 = vmatmul.msk.f32.gmra.mxu1 %vm876_vm0, %v1312_v56  ;;  %2922 = vmatpush.msra.mxu3 %v10677_v47  ;;  %v10681_v56 = vld [vmem:[%s11727_s23 + $0x80] sm:$0xff] }
 0x1c9   : > { %9918 = vmatmul.msk.f32.gmra.mxu3 %vm1789_vm2, %v1245_v24 }
 0x1ca   : > { %2923 = vmatpush.msra.mxu3 %v10678_v19  ;;  %v1331_v19 = vld [vmem:[#allocation2 + $0x428] sm:$0xff] }
 0x1cc   : > { %v1538_v14 = vpop.f32.mrf.mxu2  ;;  %v1609_v18 = vpop.f32.mrf.mxu3  ;;  %2924 = vmatpush.msra.mxu3 %v10679_v12 }
 0x1cd   : > { %v1539_v40 = vadd.f32 %v1538_v14, %v1467_v29  ;;  %v1253_v34 = vpop.f32.mrf.mxu0  ;;  %v1470_v44 = vpop.f32.mrf.mxu1  ;;  %v1251_v29 = vadd.f32 %v1250_v49, %v12132_v32 }
 0x1ce   : > { %2925 = vmatpush.msra.mxu3 %v10680_v42  ;;  %v1337_v42 = vld [vmem:[#allocation2 + $0x458] sm:$0xff] }
 0x1cf   : > { %v12276_v39 = vadd.f32 %v1609_v18, %v1539_v40  ;;  %1676 = vmatmul.f32.gmra.mxu0 %v1316_v8  ;;  %v1327_v40 = vld [vmem:[#allocation2 + $0x408] sm:$0xff] }
 0x1d0   : > { %9881 = vmatmul.msk.f32.gmra.mxu1 %vm876_vm0, %v1317_v43  ;;  %2926 = vmatpush.msra.mxu3 %v10681_v56 }
 0x1d1   : > { %9919 = vmatmul.msk.f32.gmra.mxu3 %vm1789_vm2, %v1248_v48 }
 0x1d4   : > { %v1541_v61 = vpop.f32.mrf.mxu2  ;;  %v1612_v35 = vpop.f32.mrf.mxu3 }
 0x1d5   : > { %v1542_v38 = vadd.f32 %v1541_v61, %v1470_v44  ;;  %v1256_v59 = vpop.f32.mrf.mxu0  ;;  %v1473_v6 = vpop.f32.mrf.mxu1  ;;  %v1254_v44 = vadd.f32 %v1253_v34, %v12139_v63  ;;  %v1332_v61 = vld [vmem:[#allocation2 + $0x430] sm:$0xff] }
 0x1d7   : > { %v12284_v62 = vadd.f32 %v1612_v35, %v1542_v38  ;;  %1679 = vmatmul.f32.gmra.mxu0 %v1321_v3  ;;  %v1257_v35 = vadd.f32 %v1256_v59, %v12144_v11  ;;  %v1788_v11 = vld [vmem:[#allocation10 + $0x4] sm:$0xf] }
 0x1d8   : > { %9882 = vmatmul.msk.f32.gmra.mxu1 %vm876_vm0, %v1322_v20  ;;  %v1336_v20 = vld [vmem:[#allocation2 + $0x450] sm:$0xff]  ;;  %9894 = vmatpush.msk.msra.mxu2 %vm1844_vm1, %v1788_v11  ;;  %v12306_v59 = vld [vmem:[%s11727_s23 + $0x178] sm:$0xff]  ;;  %v1059_v11 = vadd.f32 %v12166_v31, %v12164_v58 }
 0x1d9   : > { %9920 = vmatmul.msk.f32.gmra.mxu3 %vm1789_vm2, %v1251_v29 }
 0x1da   : > { %2334 = vmatpush.msrb.mxu2 %v12306_v59 }
 0x1dc   : > { %v1544_v46 = vpop.f32.mrf.mxu2  ;;  %v1615_v24 = vpop.f32.mrf.mxu3 }
 0x1dd   : > { %v1545_v41 = vadd.f32 %v1544_v46, %v1473_v6  ;;  %v1259_v14 = vpop.f32.mrf.mxu0  ;;  %v1476_v18 = vpop.f32.mrf.mxu1 }
 0x1de   : > { %v1260_v29 = vadd.f32 %v1259_v14, %v12147_v16 }
 0x1df   : > { %v12290_v8 = vadd.f32 %v1615_v24, %v1545_v41  ;;  %1682 = vmatmul.f32.gmra.mxu0 %v1326_v53  ;;  %v12310_v24 = vld [vmem:[%s11727_s23 + $0x170] sm:$0xff]  ;;  %v1342_v53 = vld [vmem:[#allocation2 + $0x480] sm:$0xff] }
 0x1e0   : > { %9883 = vmatmul.msk.f32.gmra.mxu1 %vm876_vm0, %v1327_v40  ;;  %2335 = vmatpush.msrb.mxu2 %v12310_v24 }
 0x1e1   : > { %9921 = vmatmul.msk.f32.gmra.mxu3 %vm1789_vm2, %v1254_v44  ;;  %v12316_v44 = vld [vmem:[%s11727_s23 + $0x168] sm:$0xff] }
 0x1e2   : > { %2336 = vmatpush.msrb.mxu2 %v12316_v44 }
 0x1e4   : > { %v1547_v32 = vpop.f32.mrf.mxu2  ;;  %v1618_v49 = vpop.f32.mrf.mxu3 }
 0x1e5   : > { %v1548_v43 = vadd.f32 %v1547_v32, %v1476_v18  ;;  %v1262_v47 = vpop.f32.mrf.mxu0  ;;  %v1479_v48 = vpop.f32.mrf.mxu1  ;;  %v1341_v18 = vld [vmem:[#allocation2 + $0x478] sm:$0xff] }
 0x1e6   : > { %v1263_v32 = vadd.f32 %v1262_v47, %v12150_v45  ;;  %v1346_v47 = vld [vmem:[#allocation2 + $0x4a0] sm:$0xff] }
 0x1e7   : > { %v12295_v12 = vadd.f32 %v1618_v49, %v1548_v43  ;;  %1685 = vmatmul.f32.gmra.mxu0 %v1331_v19  ;;  %v12325_v43 = vld [vmem:[%s11727_s23 + $0x160] sm:$0xff] }
 0x1e8   : > { %9884 = vmatmul.msk.f32.gmra.mxu1 %vm876_vm0, %v1332_v61  ;;  %2337 = vmatpush.msrb.mxu2 %v12325_v43  ;;  %v1347_v61 = vld [vmem:[#allocation2 + $0x4a8] sm:$0xff] }
 0x1e9   : > { %9922 = vmatmul.msk.f32.gmra.mxu3 %vm1789_vm2, %v1257_v35  ;;  %v12335_v35 = vld [vmem:[%s11727_s23 + $0x150] sm:$0xff] }
 0x1ec   : > { %v1550_v63 = vpop.f32.mrf.mxu2  ;;  %v1621_v34 = vpop.f32.mrf.mxu3 }
 0x1ed   : > { %v1551_v38 = vadd.f32 %v1550_v63, %v1479_v48  ;;  %v1265_v6 = vpop.f32.mrf.mxu0  ;;  %v1482_v3 = vpop.f32.mrf.mxu1  ;;  %v12329_v48 = vld [vmem:[%s11727_s23 + $0x158] sm:$0xff]  ;;  %v1056_v63 = vadd.f32 %v12155_v36, %v12153_v51 }
 0x1ee   : > { %2338 = vmatpush.msrb.mxu2 %v12329_v48  ;;  %v12353_v51 = vld [vmem:[%s11727_s23 + $0x138] sm:$0xff] }
 0x1ef   : > { %v12300_v56 = vadd.f32 %v1621_v34, %v1551_v38  ;;  %1688 = vmatmul.f32.gmra.mxu0 %v1336_v20  ;;  %v1266_v34 = vadd.f32 %v1265_v6, %v12157_v55  ;;  %v12342_v38 = vld [vmem:[%s11727_s23 + $0x148] sm:$0xff]  ;;  %v12349_v20 = vld [vmem:[%s11727_s23 + $0x140] sm:$0xff] }
 0x1f0   : > { %9885 = vmatmul.msk.f32.gmra.mxu1 %vm876_vm0, %v1337_v42  ;;  %2339 = vmatpush.msrb.mxu2 %v12335_v35  ;;  %v1351_v42 = vld [vmem:[#allocation2 + $0x4c8] sm:$0xff] }
 0x1f1   : > { %9923 = vmatmul.msk.f32.gmra.mxu3 %vm1789_vm2, %v1260_v29  ;;  %v1352_v29 = vld [vmem:[#allocation2 + $0x4d0] sm:$0xff] }
 0x1f2   : > { %2340 = vmatpush.msrb.mxu2 %v12342_v38 }
 0x1f4   : > { %v1553_v46 = vpop.f32.mrf.mxu2  ;;  %v1624_v40 = vpop.f32.mrf.mxu3  ;;  %2341 = vmatpush.msrb.mxu2 %v12349_v20 }
 0x1f5   : > { %v1554_v16 = vadd.f32 %v1553_v46, %v1482_v3  ;;  %v1268_v41 = vpop.f32.mrf.mxu0  ;;  %v12313_v14 = vpop.f32.mrf.mxu1  ;;  %v1127_v3 = vadd.f32 %v12160_v57, %v1056_v63  ;;  %v12360_v57 = vld [vmem:[%s11727_s23 + $0x130] sm:$0xff]  ;;  %v12390_v63 = vld [vmem:[%s11727_s23 + $0x108] sm:$0xff] }
 0x1f6   : > { %2342 = vmatpush.msrb.mxu2 %v12353_v51 }
 0x1f7   : > { %v12320_v49 = vadd.f32 %v1624_v40, %v1554_v16  ;;  %1691 = vmatmul.f32.gmra.mxu0 %v1341_v18  ;;  %v1198_v36 = vadd.f32 %v12162_v9, %v1127_v3  ;;  %v12366_v16 = vld [vmem:[%s11727_s23 + $0x128] sm:$0xff]  ;;  %v1130_v9 = vadd.f32 %v12169_v7, %v1059_v11  ;;  %v12373_v18 = vld [vmem:[%s11727_s23 + $0x120] sm:$0xff]  ;;  %v1356_v40 = vld [vmem:[#allocation2 + $0x4f0] sm:$0xff]  ;;  %v1062_v7 = vadd.f32 %v12175_v0, %v12173_v17 }
 0x1f8   : > { %9886 = vmatmul.msk.f32.gmra.mxu1 %vm876_vm0, %v1342_v53  ;;  %2343 = vmatpush.msrb.mxu2 %v12360_v57  ;;  %v12377_v53 = vld [vmem:[%s11727_s23 + $0x118] sm:$0xff] }
 0x1f9   : > { %9924 = vmatmul.msk.f32.gmra.mxu3 %vm1789_vm2, %v1263_v32  ;;  %v1269_v46 = vadd.f32 %v1268_v41, %v1198_v36  ;;  %v1201_v58 = vadd.f32 %v12171_v13, %v1130_v9  ;;  %v1357_v32 = vld [vmem:[#allocation2 + $0x4f8] sm:$0xff]  ;;  %v1133_v13 = vadd.f32 %v12178_v4, %v1062_v7  ;;  %v1366_v9 = vld [vmem:[#allocation2 + $0x540] sm:$0xff]  ;;  %v1372_v7 = vld [vmem:[#allocation2 + $0x570] sm:$0xff] }
 0x1fa   : > { %2344 = vmatpush.msrb.mxu2 %v12366_v16  ;;  %v1361_v0 = vld [vmem:[#allocation2 + $0x518] sm:$0xff] }
 0x1fb   : > { %v1204_v3 = vadd.f32 %v12180_v10, %v1133_v13  ;;  %v1376_v13 = vld [vmem:[#allocation2 + $0x590] sm:$0xff] }
 0x1fc   : > { %2345 = vmatpush.msrb.mxu2 %v12373_v18 }
 0x1fd   : > { %v1271_v19 = vpop.f32.mrf.mxu0  ;;  %v12332_v45 = vpop.f32.mrf.mxu1 }
 0x1fe   : > { %2346 = vmatpush.msrb.mxu2 %v12377_v53 }
 0x1ff   : > { %1694 = vmatmul.f32.gmra.mxu0 %v1346_v47  ;;  %v12384_v47 = vld [vmem:[%s11727_s23 + $0x110] sm:$0xff] }
 0x200   : > { %9887 = vmatmul.msk.f32.gmra.mxu1 %vm876_vm0, %v1347_v61  ;;  %2347 = vmatpush.msrb.mxu2 %v12384_v47  ;;  %v1272_v61 = vadd.f32 %v1271_v19, %v1201_v58  ;;  %v1362_v19 = vld [vmem:[#allocation2 + $0x520] sm:$0xff]  ;;  %v1367_v58 = vld [vmem:[#allocation2 + $0x548] sm:$0xff] }
 0x201   : > { %9925 = vmatmul.msk.f32.gmra.mxu3 %vm1789_vm2, %v1266_v34  ;;  %v12397_v34 = vld [vmem:[%s11727_s23 + $0x100] sm:$0xff] }
 0x202   : > { %2348 = vmatpush.msrb.mxu2 %v12390_v63 }
 0x204   : > { %2349 = vmatpush.msrb.mxu2 %v12397_v34 }
 0x205   : > { %v1274_v55 = vpop.f32.mrf.mxu0  ;;  %v12357_v6 = vpop.f32.mrf.mxu1 }
 0x207   : > { %1697 = vmatmul.f32.gmra.mxu0 %v1351_v42  ;;  %v1065_v42 = vadd.f32 %v12184_v60, %v12182_v22 }
 0x208   : > { %9888 = vmatmul.msk.f32.gmra.mxu1 %vm876_vm0, %v1352_v29  ;;  %v1275_v29 = vadd.f32 %v1274_v55, %v1204_v3  ;;  %v1371_v55 = vld [vmem:[#allocation2 + $0x568] sm:$0xff]  ;;  %v1377_v3 = vld [vmem:[#allocation2 + $0x598] sm:$0xff] }
 0x209   : > { %9926 = vmatmul.msk.f32.gmra.mxu3 %vm1789_vm2, %v1269_v46  ;;  %v1136_v4 = vadd.f32 %v12187_v33, %v1065_v42 }
 0x20b   : > { %v1207_v11 = vadd.f32 %v12189_v26, %v1136_v4 }
 0x20d   : > { %v1277_v31 = vpop.f32.mrf.mxu0  ;;  %v12381_v41 = vpop.f32.mrf.mxu1 }
 0x20f   : > { %1700 = vmatmul.f32.gmra.mxu0 %v1356_v40  ;;  %v1068_v40 = vadd.f32 %v12193_v23, %v12191_v30  ;;  %v1071_v30 = vadd.f32 %v12204_v50, %v12202_v5 }
 0x210   : > { %9889 = vmatmul.msk.f32.gmra.mxu1 %vm876_vm0, %v1357_v32  ;;  %v1278_v32 = vadd.f32 %v1277_v31, %v1207_v11 }
 0x211   : > { %9927 = vmatmul.msk.f32.gmra.mxu3 %vm1789_vm2, %v1272_v61  ;;  %v1139_v22 = vadd.f32 %v12198_v27, %v1068_v40  ;;  %v1142_v27 = vadd.f32 %v12210_v2, %v1071_v30  ;;  %v12474_v30 = vld [vmem:[%s11727_s23 + $0x30] sm:$0xff] }
 0x213   : > { %v1210_v60 = vadd.f32 %v12200_v1, %v1139_v22  ;;  %v12425_v1 = vld [vmem:[%s11727_s23 + $0x78] sm:$0xff] }
 0x215   : > { %v1280_v36 = vpop.f32.mrf.mxu0  ;;  %v12401_v17 = vpop.f32.mrf.mxu1 }
 0x216   : > { %v1281_v23 = vadd.f32 %v1280_v36, %v1210_v60  ;;  %v12430_v36 = vld [vmem:[%s11727_s23 + $0x70] sm:$0xff]  ;;  %v12461_v60 = vld [vmem:[%s11727_s23 + $0x40] sm:$0xff] }
 0x217   : > { %1703 = vmatmul.f32.gmra.mxu0 %v1361_v0 }
 0x218   : > { %9890 = vmatmul.msk.f32.gmra.mxu1 %vm876_vm0, %v1362_v19  ;;  %v12435_v19 = vld [vmem:[%s11727_s23 + $0x68] sm:$0xff] }
 0x219   : > { %9928 = vmatmul.msk.f32.gmra.mxu3 %vm1789_vm2, %v1275_v29  ;;  %v12444_v29 = vpop.f32.mrf.mxu3 }
 0x21d   : > { %v1283_v46 = vpop.f32.mrf.mxu0  ;;  %v12409_v10 = vpop.f32.mrf.mxu1 }
 0x21f   : > { %1706 = vmatmul.f32.gmra.mxu0 %v1366_v9  ;;  %v2049_v9 = vld [vmem:[#allocation2 + $0x5a8] sm:$0xff] }
 0x220   : > { %9891 = vmatmul.msk.f32.gmra.mxu1 %vm876_vm0, %v1367_v58  ;;  %v12452_v58 = vld [vmem:[%s11727_s23 + $0x50] sm:$0xff] }
 0x221   : > { %9929 = vmatmul.msk.f32.gmra.mxu3 %vm1789_vm2, %v1278_v32  ;;  %v12457_v32 = vld [vmem:[%s11727_s23 + $0x48] sm:$0xff] }
 0x225   : > { %v1662_v33 = vpop.f32.mrf.mxu0  ;;  %v1733_v26 = vpop.f32.mrf.mxu1 }
 0x226   : > { %v1663_v61 = vadd.f32 %v1662_v33, %v12220_v21  ;;  %v1213_v21 = vadd.f32 %v12212_v52, %v1142_v27  ;;  %v12441_v52 = vld [vmem:[%s11727_s23 + $0x60] sm:$0xff]  ;;  %v12467_v33 = vld [vmem:[%s11727_s23 + $0x38] sm:$0xff]  ;;  %v2058_v27 = vld [vmem:[#allocation2 + $0x5f0] sm:$0xff] }
 0x227   : > { %1709 = vmatmul.f32.gmra.mxu0 %v1371_v55 }
 0x228   : > { %v1734_v31 = vadd.f32 %v1733_v26, %v1663_v61  ;;  %9892 = vmatmul.msk.f32.gmra.mxu1 %vm876_vm0, %v1372_v7  ;;  %v1284_v0 = vadd.f32 %v1283_v46, %v1213_v21  ;;  %v2048_v46 = vld [vmem:[#allocation2 + $0x5a0] sm:$0xff]  ;;  %v2053_v7 = vld [vmem:[#allocation2 + $0x5c8] sm:$0xff]  ;;  %v2054_v61 = vld [vmem:[#allocation2 + $0x5d0] sm:$0xff] }
 0x229   : > { %9930 = vmatmul.msk.f32.gmra.mxu3 %vm1789_vm2, %v1281_v23  ;;  %v12480_v23 = vld [vmem:[%s11727_s23 + $0x28] sm:$0xff]  ;;  %v2059_v21 = vld [vmem:[#allocation2 + $0x5f8] sm:$0xff] }
 0x22a   : > { %9895 = vmatmul.msk.f32.vlgmr.msra.gmra.mxu2 %vm1789_vm2, %v1734_v31  ;;  %v12485_v31 = vld [vmem:[%s11727_s23 + $0x20] sm:$0xff] }
 0x22b   : > { %2840 = vmatpush.msra.mxu2 %v12425_v1 }
 0x22d   : > { %v1665_v5 = vpop.f32.mrf.mxu0  ;;  %v1736_v50 = vpop.f32.mrf.mxu1  ;;  %2841 = vmatpush.msra.mxu2 %v12430_v36 }
 0x22e   : > { %v1666_v2 = vadd.f32 %v1665_v5, %v12227_v54  ;;  %v12448_v54 = vld [vmem:[%s11727_s23 + $0x58] sm:$0xff]  ;;  %v12496_v5 = vld [vmem:[%s11727_s23 + $0x10] sm:$0xff] }
 0x22f   : > { %2842 = vmatpush.msra.mxu2 %v12435_v19  ;;  %1712 = vmatmul.f32.gmra.mxu0 %v1376_v13  ;;  %v12504_v13 = vld [vmem:[%s11727_s23 + $0x8] sm:$0xff] }
 0x230   : > { %v1737_v42 = vadd.f32 %v1736_v50, %v1666_v2  ;;  %9893 = vmatmul.msk.f32.gmra.mxu1 %vm876_vm0, %v1377_v3  ;;  %v12509_v3 = vld [vmem:[%s11727_s23] sm:$0xff]  ;;  %v2063_v2 = vld [vmem:[#allocation2 + $0x618] sm:$0xff] }
 0x231   : > { %9931 = vmatmul.msk.f32.gmra.mxu3 %vm1789_vm2, %v1284_v0  ;;  %2843 = vmatpush.msra.mxu2 %v12441_v52  ;;  %v2064_v0 = vld [vmem:[#allocation2 + $0x620] sm:$0xff] }
 0x232   : > { %9896 = vmatmul.msk.f32.gmra.mxu2 %vm1789_vm2, %v1737_v42 }
 0x233   : > { %2844 = vmatpush.msra.mxu2 %v12448_v54 }
 0x235   : > { %v1668_v4 = vpop.f32.mrf.mxu0  ;;  %v1739_v11 = vpop.f32.mrf.mxu1  ;;  %2845 = vmatpush.msra.mxu2 %v12452_v58 }
 0x236   : > { %v1669_v40 = vadd.f32 %v1668_v4, %v12238_v25  ;;  %v12471_v25 = vpop.f32.mrf.mxu3 }
 0x237   : > { %2846 = vmatpush.msra.mxu2 %v12457_v32  ;;  %2208 = vmatmul.f32.vlgmr.msrb.gmra.mxu0 %v2048_v46  ;;  %v2069_v46 = vld [vmem:[#allocation2 + $0x648] sm:$0xff] }
 0x238   : > { %v1740_v22 = vadd.f32 %v1739_v11, %v1669_v40  ;;  %2279 = vmatmul.f32.vlgmr.msrb.gmra.mxu1 %v2049_v9  ;;  %2982 = vmatpush.msrb.mxu0 %v12306_v59  ;;  %v2068_v11 = vld [vmem:[#allocation2 + $0x640] sm:$0xff]  ;;  %v2074_v40 = vld [vmem:[#allocation2 + $0x670] sm:$0xff] }
 0x239   : > { %2847 = vmatpush.msra.mxu2 %v12461_v60 }
 0x23a   : > { %9897 = vmatmul.msk.f32.gmra.mxu2 %vm1789_vm2, %v1740_v22  ;;  %2983 = vmatpush.msrb.mxu0 %v12310_v24 }
 0x23b   : > { %2848 = vmatpush.msra.mxu2 %v12467_v33 }
 0x23c   : > { %2984 = vmatpush.msrb.mxu0 %v12316_v44 }
 0x23d   : > { %v1671_v26 = vpop.f32.mrf.mxu0  ;;  %v1742_v55 = vpop.f32.mrf.mxu1  ;;  %2849 = vmatpush.msra.mxu2 %v12474_v30 }
 0x23e   : > { %v1672_v59 = vadd.f32 %v1671_v26, %v12250_v28  ;;  %2985 = vmatpush.msrb.mxu0 %v12325_v43  ;;  %v12491_v28 = vld [vmem:[%s11727_s23 + $0x18] sm:$0xff] }
 0x23f   : > { %2850 = vmatpush.msra.mxu2 %v12480_v23  ;;  %2211 = vmatmul.f32.gmra.mxu0 %v2053_v7  ;;  %v2079_v7 = vld [vmem:[#allocation2 + $0x698] sm:$0xff] }
 0x240   : > { %v1743_v24 = vadd.f32 %v1742_v55, %v1672_v59  ;;  %2282 = vmatmul.f32.gmra.mxu1 %v2054_v61  ;;  %2986 = vmatpush.msrb.mxu0 %v12329_v48  ;;  %v12500_v48 = vpop.f32.mrf.mxu3  ;;  %v2078_v55 = vld [vmem:[#allocation2 + $0x690] sm:$0xff] }
 0x241   : > { %2851 = vmatpush.msra.mxu2 %v12485_v31 }
 0x242   : > { %9898 = vmatmul.msk.f32.gmra.mxu2 %vm1789_vm2, %v1743_v24  ;;  %2987 = vmatpush.msrb.mxu0 %v12335_v35 }
 0x243   : > { %2852 = vmatpush.msra.mxu2 %v12491_v28 }
 0x244   : > { %2988 = vmatpush.msrb.mxu0 %v12342_v38 }
 0x245   : > { %v1674_v44 = vpop.f32.mrf.mxu0  ;;  %v1745_v43 = vpop.f32.mrf.mxu1  ;;  %2853 = vmatpush.msra.mxu2 %v12496_v5 }
 0x246   : > { %v1675_v50 = vadd.f32 %v1674_v44, %v12260_v15  ;;  %2989 = vmatpush.msrb.mxu0 %v12349_v20  ;;  %v2083_v44 = vld [vmem:[#allocation2 + $0x6b8] sm:$0xff] }
 0x247   : > { %2854 = vmatpush.msra.mxu2 %v12504_v13  ;;  %2214 = vmatmul.f32.gmra.mxu0 %v2058_v27 }
 0x248   : > { %v1746_v35 = vadd.f32 %v1745_v43, %v1675_v50  ;;  %2285 = vmatmul.f32.gmra.mxu1 %v2059_v21  ;;  %2990 = vmatpush.msrb.mxu0 %v12353_v51  ;;  %v12518_v42 = vpop.f32.mrf.mxu3  ;;  %v2084_v43 = vld [vmem:[#allocation2 + $0x6c0] sm:$0xff] }
 0x249   : > { %2855 = vmatpush.msra.mxu2 %v12509_v3 }
 0x24a   : > { %9899 = vmatmul.msk.f32.gmra.mxu2 %vm1789_vm2, %v1746_v35  ;;  %2991 = vmatpush.msrb.mxu0 %v12360_v57  ;;  %v1556_v35 = vpop.f32.mrf.mxu2 }
 0x24c   : > { %2992 = vmatpush.msrb.mxu0 %v12366_v16 }
 0x24d   : > { %v1677_v15 = vpop.f32.mrf.mxu0  ;;  %v1748_v38 = vpop.f32.mrf.mxu1 }
 0x24e   : > { %v1678_v20 = vadd.f32 %v1677_v15, %v12268_v37  ;;  %2993 = vmatpush.msrb.mxu0 %v12373_v18 }
 0x24f   : > { %2217 = vmatmul.f32.gmra.mxu0 %v2063_v2  ;;  %v2089_v2 = vld [vmem:[#allocation2 + $0x6e8] sm:$0xff] }
 0x250   : > { %v1749_v4 = vadd.f32 %v1748_v38, %v1678_v20  ;;  %2288 = vmatmul.f32.gmra.mxu1 %v2064_v0  ;;  %2994 = vmatpush.msrb.mxu0 %v12377_v53  ;;  %v12526_v18 = vpop.f32.mrf.mxu3  ;;  %v2088_v38 = vld [vmem:[#allocation2 + $0x6e0] sm:$0xff] }
 0x252   : > { %9900 = vmatmul.msk.f32.gmra.mxu2 %vm1789_vm2, %v1749_v4  ;;  %2995 = vmatpush.msrb.mxu0 %v12384_v47  ;;  %v2073_v47 = vld [vmem:[#allocation2 + $0x668] sm:$0xff] }
 0x254   : > { %2996 = vmatpush.msrb.mxu0 %v12390_v63 }
 0x255   : > { %v1680_v51 = vpop.f32.mrf.mxu0  ;;  %v1751_v57 = vpop.f32.mrf.mxu1 }
 0x256   : > { %v1681_v37 = vadd.f32 %v1680_v51, %v12276_v39  ;;  %2997 = vmatpush.msrb.mxu0 %v12397_v34 }
 0x257   : > { %2220 = vmatmul.f32.gmra.mxu0 %v2068_v11  ;;  %v2093_v11 = vld [vmem:[#allocation2 + $0x708] sm:$0xff] }
 0x258   : > { %v1752_v16 = vadd.f32 %v1751_v57, %v1681_v37  ;;  %2291 = vmatmul.f32.gmra.mxu1 %v2069_v46  ;;  %v12531_v39 = vpop.f32.mrf.mxu3  ;;  %v2094_v46 = vld [vmem:[#allocation2 + $0x710] sm:$0xff] }
 0x25a   : > { %9901 = vmatmul.msk.f32.gmra.mxu2 %vm1789_vm2, %v1752_v16  ;;  %v1557_v16 = vadd.f32 %v1556_v35, %v12313_v14 }
 0x25d   : > { %v1683_v53 = vpop.f32.mrf.mxu0  ;;  %v1754_v9 = vpop.f32.mrf.mxu1 }
 0x25e   : > { %v1684_v22 = vadd.f32 %v1683_v53, %v12284_v62 }
 0x25f   : > { %2223 = vmatmul.f32.gmra.mxu0 %v2073_v47 }
 0x260   : > { %v1755_v26 = vadd.f32 %v1754_v9, %v1684_v22  ;;  %2294 = vmatmul.f32.gmra.mxu1 %v2074_v40  ;;  %v12535_v27 = vpop.f32.mrf.mxu3  ;;  %v1628_v9 = vadd.f32 %v12444_v29, %v1557_v16  ;;  %v2098_v22 = vld [vmem:[#allocation2 + $0x730] sm:$0xff]  ;;  %v2103_v29 = vld [vmem:[#allocation2 + $0x758] sm:$0xff] }
 0x261   : > { %15930 = vst [vmem:[#allocation42_spill] sm:$0xff] %v12535_v27  ;;  %v2696_v27 = vld [vmem:[#allocation2 + $0x870] sm:$0xff] }
 0x262   : > { %9902 = vmatmul.msk.f32.gmra.mxu2 %vm1789_vm2, %v1755_v26  ;;  %v2099_v26 = vld [vmem:[#allocation2 + $0x738] sm:$0xff] }
 0x265   : > { %v1686_v63 = vpop.f32.mrf.mxu0  ;;  %v1757_v34 = vpop.f32.mrf.mxu1 }
 0x266   : > { %v1687_v61 = vadd.f32 %v1686_v63, %v12290_v8 }
 0x267   : > { %2226 = vmatmul.f32.gmra.mxu0 %v2078_v55 }
 0x268   : > { %v1758_v59 = vadd.f32 %v1757_v34, %v1687_v61  ;;  %2297 = vmatmul.f32.gmra.mxu1 %v2079_v7  ;;  %v12540_v20 = vpop.f32.mrf.mxu3 }
 0x269   : > { %15931 = vst [vmem:[#allocation43_spill] sm:$0xff] %v12540_v20  ;;  %v2135_v20 = vld [vmem:[#allocation2 + $0x858] sm:$0xff] }
 0x26a   : > { %9903 = vmatmul.msk.f32.gmra.mxu2 %vm1789_vm2, %v1758_v59 }
 0x26d   : > { %v1689_v24 = vpop.f32.mrf.mxu0  ;;  %v1760_v62 = vpop.f32.mrf.mxu1 }
 0x26e   : > { %v1690_v21 = vadd.f32 %v1689_v24, %v12295_v12  ;;  %v1559_v12 = vpop.f32.mrf.mxu2  ;;  %v2104_v24 = vld [vmem:[#allocation2 + $0x760] sm:$0xff] }
 0x26f   : > { %2229 = vmatmul.f32.gmra.mxu0 %v2083_v44  ;;  %v1560_v55 = vadd.f32 %v1559_v12, %v12332_v45 }
 0x270   : > { %v1761_v50 = vadd.f32 %v1760_v62, %v1690_v21  ;;  %2300 = vmatmul.f32.gmra.mxu1 %v2084_v43 }
 0x271   : > { %v1631_v14 = vadd.f32 %v12471_v25, %v1560_v55  ;;  %v2108_v25 = vld [vmem:[#allocation2 + $0x780] sm:$0xff] }
 0x272   : > { %9904 = vmatmul.msk.f32.gmra.mxu2 %vm1789_vm2, %v1761_v50 }
 0x275   : > { %v1692_v8 = vpop.f32.mrf.mxu0  ;;  %v1763_v15 = vpop.f32.mrf.mxu1 }
 0x276   : > { %v1693_v0 = vadd.f32 %v1692_v8, %v12300_v56  ;;  %v12545_v56 = vpop.f32.mrf.mxu3  ;;  %v1562_v63 = vpop.f32.mrf.mxu2  ;;  %v2109_v8 = vld [vmem:[#allocation2 + $0x788] sm:$0xff] }
 0x277   : > { %2232 = vmatmul.f32.gmra.mxu0 %v2088_v38  ;;  %15932 = vst [vmem:[#allocation44_spill] sm:$0xff] %v12545_v56  ;;  %v1563_v44 = vadd.f32 %v1562_v63, %v12357_v6 }
 0x278   : > { %v1764_v4 = vadd.f32 %v1763_v15, %v1693_v0  ;;  %2303 = vmatmul.f32.gmra.mxu1 %v2089_v2 }
 0x279   : > { %v1634_v45 = vadd.f32 %v12500_v48, %v1563_v44 }
 0x27a   : > { %9905 = vmatmul.msk.f32.gmra.mxu2 %vm1789_vm2, %v1764_v4  ;;  %v2051_v4 = vld [vmem:[#allocation2 + $0x5b8] sm:$0xff] }
 0x27b   : > { %2421 = vmatmul.f32.vlgmr.msrb.gmra.mxu3 %v2051_v4  ;;  %v12590_v4 = vld [vmem:[%s11727_s23 + $0x230] sm:$0xff] }
 0x27d   : > { %v1695_v51 = vpop.f32.mrf.mxu0  ;;  %v1766_v57 = vpop.f32.mrf.mxu1 }
 0x27e   : > { %v1696_v37 = vadd.f32 %v1695_v51, %v12320_v49  ;;  %v12552_v7 = vpop.f32.mrf.mxu3  ;;  %v1565_v43 = vpop.f32.mrf.mxu2 }
 0x27f   : > { %2235 = vmatmul.f32.gmra.mxu0 %v2093_v11  ;;  %15933 = vst [vmem:[#allocation45_spill] sm:$0xff] %v12552_v7  ;;  %v1566_v2 = vadd.f32 %v1565_v43, %v12381_v41  ;;  %v2114_v11 = vld [vmem:[#allocation2 + $0x7b0] sm:$0xff]  ;;  %v2707_v7 = vld [vmem:[#allocation2 + $0x8c8] sm:$0xff] }
 0x280   : > { %v1767_v53 = vadd.f32 %v1766_v57, %v1696_v37  ;;  %2306 = vmatmul.f32.gmra.mxu1 %v2094_v46  ;;  %v2113_v57 = vld [vmem:[#allocation2 + $0x7a8] sm:$0xff] }
 0x281   : > { %v1637_v12 = vadd.f32 %v12518_v42, %v1566_v2 }
 0x282   : > { %9906 = vmatmul.msk.f32.gmra.mxu2 %vm1789_vm2, %v1767_v53  ;;  %v2056_v53 = vld [vmem:[#allocation2 + $0x5e0] sm:$0xff] }
 0x283   : > { %2424 = vmatmul.f32.gmra.mxu3 %v2056_v53  ;;  %v2052_v53 = vld [vmem:[#allocation2 + $0x5c0] sm:$0xff] }
 0x285   : > { %v1698_v47 = vpop.f32.mrf.mxu0  ;;  %v1769_v40 = vpop.f32.mrf.mxu1 }
 0x286   : > { %v1699_v34 = vadd.f32 %v1698_v47, %v1628_v9  ;;  %v12557_v15 = vpop.f32.mrf.mxu3  ;;  %v1568_v6 = vpop.f32.mrf.mxu2 }
 0x287   : > { %2238 = vmatmul.f32.gmra.mxu0 %v2098_v22  ;;  %15934 = vst [vmem:[#allocation46_spill] sm:$0xff] %v12557_v15  ;;  %v1569_v37 = vadd.f32 %v1568_v6, %v12401_v17  ;;  %v2118_v22 = vld [vmem:[#allocation2 + $0x7d0] sm:$0xff] }
 0x288   : > { %v1770_v49 = vadd.f32 %v1769_v40, %v1699_v34  ;;  %2309 = vmatmul.f32.gmra.mxu1 %v2099_v26  ;;  %v2119_v26 = vld [vmem:[#allocation2 + $0x7d8] sm:$0xff]  ;;  %v2134_v6 = vld [vmem:[#allocation2 + $0x850] sm:$0xff] }
 0x289   : > { %v1640_v9 = vadd.f32 %v12526_v18, %v1569_v37 }
 0x28a   : > { %9907 = vmatmul.msk.f32.gmra.mxu2 %vm1789_vm2, %v1770_v49  ;;  %v2061_v49 = vld [vmem:[#allocation2 + $0x608] sm:$0xff] }
 0x28b   : > { %2427 = vmatmul.f32.gmra.mxu3 %v2061_v49  ;;  %v2065_v49 = vld [vmem:[#allocation2 + $0x628] sm:$0xff] }
 0x28d   : > { %v1701_v61 = vpop.f32.mrf.mxu0  ;;  %v1772_v59 = vpop.f32.mrf.mxu1 }
 0x28e   : > { %v1702_v62 = vadd.f32 %v1701_v61, %v1631_v14  ;;  %v12563_v16 = vpop.f32.mrf.mxu3  ;;  %v1571_v47 = vpop.f32.mrf.mxu2 }
 0x28f   : > { %2241 = vmatmul.f32.gmra.mxu0 %v2103_v29  ;;  %15935 = vst [vmem:[#allocation47_spill] sm:$0xff] %v12563_v16  ;;  %v1572_v34 = vadd.f32 %v1571_v47, %v12409_v10  ;;  %v2124_v29 = vld [vmem:[#allocation2 + $0x800] sm:$0xff]  ;;  %v2066_v10 = vld [vmem:[#allocation2 + $0x630] sm:$0xff] }
 0x290   : > { %v1773_v21 = vadd.f32 %v1772_v59, %v1702_v62  ;;  %2312 = vmatmul.f32.gmra.mxu1 %v2104_v24  ;;  %v2123_v59 = vld [vmem:[#allocation2 + $0x7f8] sm:$0xff]  ;;  %v2060_v47 = vld [vmem:[#allocation2 + $0x600] sm:$0xff] }
 0x291   : > { %v1643_v14 = vadd.f32 %v12531_v39, %v1572_v34 }
 0x292   : > { %9908 = vmatmul.msk.f32.gmra.mxu2 %vm1789_vm2, %v1773_v21 }
 0x293   : > { %2430 = vmatmul.f32.gmra.mxu3 %v2066_v10  ;;  %v2077_v10 = vld [vmem:[#allocation2 + $0x688] sm:$0xff] }
 0x295   : > { %v1704_v50 = vpop.f32.mrf.mxu0  ;;  %v1775_v35 = vpop.f32.mrf.mxu1 }
 0x296   : > { %v1705_v38 = vadd.f32 %v1704_v50, %v1634_v45  ;;  %v12568_v55 = vpop.f32.mrf.mxu3  ;;  %v2128_v45 = vld [vmem:[#allocation2 + $0x820] sm:$0xff]  ;;  %v2129_v50 = vld [vmem:[#allocation2 + $0x828] sm:$0xff] }
 0x297   : > { %2244 = vmatmul.f32.gmra.mxu0 %v2108_v25  ;;  %15936 = vst [vmem:[#allocation48_spill] sm:$0xff] %v12568_v55  ;;  %v2071_v25 = vld [vmem:[#allocation2 + $0x658] sm:$0xff] }
 0x298   : > { %v1776_v0 = vadd.f32 %v1775_v35, %v1705_v38  ;;  %2315 = vmatmul.f32.gmra.mxu1 %v2109_v8  ;;  %v2050_v35 = vld [vmem:[#allocation2 + $0x5b0] sm:$0xff]  ;;  %v12582_v8 = vld [vmem:[%s11727_s23 + $0x238] sm:$0xff] }
 0x29a   : > { %9909 = vmatmul.msk.f32.gmra.mxu2 %vm1789_vm2, %v1776_v0  ;;  %v2133_v0 = vld [vmem:[#allocation2 + $0x848] sm:$0xff] }
 0x29b   : > { %2433 = vmatmul.f32.gmra.mxu3 %v2071_v25  ;;  %v2082_v25 = vld [vmem:[#allocation2 + $0x6b0] sm:$0xff] }
 0x29d   : > { %v1707_v48 = vpop.f32.mrf.mxu0  ;;  %v1778_v51 = vpop.f32.mrf.mxu1 }
 0x29e   : > { %v1708_v46 = vadd.f32 %v1707_v48, %v1637_v12  ;;  %v12575_v43 = vpop.f32.mrf.mxu3  ;;  %v2055_v48 = vld [vmem:[#allocation2 + $0x5d8] sm:$0xff] }
 0x29f   : > { %2247 = vmatmul.f32.gmra.mxu0 %v2113_v57  ;;  %15938 = vst [vmem:[#allocation50_spill] sm:$0xff] %v12575_v43  ;;  %v12600_v57 = vld [vmem:[%s11727_s23 + $0x220] sm:$0xff] }
 0x2a0   : > { %v1779_v41 = vadd.f32 %v1778_v51, %v1708_v46  ;;  %2318 = vmatmul.f32.gmra.mxu1 %v2114_v11  ;;  %v12596_v51 = vld [vmem:[%s11727_s23 + $0x228] sm:$0xff]  ;;  %v2076_v11 = vld [vmem:[#allocation2 + $0x680] sm:$0xff]  ;;  %v12604_v46 = vld [vmem:[%s11727_s23 + $0x218] sm:$0xff] }
 0x2a2   : > { %9910 = vmatmul.msk.f32.gmra.mxu2 %vm1789_vm2, %v1779_v41 }
 0x2a3   : > { %2436 = vmatmul.f32.gmra.mxu3 %v2076_v11 }
 0x2a5   : > { %v1710_v42 = vpop.f32.mrf.mxu0  ;;  %v1781_v40 = vpop.f32.mrf.mxu1 }
 0x2a6   : > { %v1711_v63 = vadd.f32 %v1710_v42, %v1640_v9  ;;  %v12593_v12 = vpop.f32.mrf.mxu3  ;;  %v12612_v9 = vld [vmem:[%s11727_s23 + $0x210] sm:$0xff]  ;;  %v12616_v42 = vld [vmem:[%s11727_s23 + $0x208] sm:$0xff] }
 0x2a7   : > { %2250 = vmatmul.f32.gmra.mxu0 %v2118_v22  ;;  %15941 = vst [vmem:[#allocation53_spill] sm:$0xff] %v12593_v12  ;;  %v12623_v22 = vld [vmem:[%s11727_s23 + $0x200] sm:$0xff]  ;;  %v12780_v12 = vld [vmem:[%s11727_s23 + $0x188] sm:$0xff] }
 0x2a8   : > { %v1782_v17 = vadd.f32 %v1781_v40, %v1711_v63  ;;  %2321 = vmatmul.f32.gmra.mxu1 %v2119_v26  ;;  %v2081_v26 = vld [vmem:[#allocation2 + $0x6a8] sm:$0xff] }
 0x2aa   : > { %9911 = vmatmul.msk.f32.gmra.mxu2 %vm1789_vm2, %v1782_v17  ;;  %v2057_v17 = vld [vmem:[#allocation2 + $0x5e8] sm:$0xff] }
 0x2ab   : > { %2439 = vmatmul.f32.gmra.mxu3 %v2081_v26  ;;  %v2095_v26 = vld [vmem:[#allocation2 + $0x718] sm:$0xff] }
 0x2ad   : > { %v1713_v18 = vpop.f32.mrf.mxu0  ;;  %v12572_v61 = vpop.f32.mrf.mxu2 }
 0x2ae   : > { %15937 = vst [vmem:[#allocation49_spill] sm:$0xff] %v12572_v61  ;;  %v1714_v24 = vadd.f32 %v1713_v18, %v1643_v14  ;;  %v1784_v62 = vpop.f32.mrf.mxu1  ;;  %v12619_v40 = vpop.f32.mrf.mxu3  ;;  %v2086_v14 = vld [vmem:[#allocation2 + $0x6d0] sm:$0xff]  ;;  %v12868_v61 = vld [vmem:[%s11727_s23 + $0x158] sm:$0xff] }
 0x2af   : > { %2253 = vmatmul.f32.gmra.mxu0 %v2123_v59  ;;  %15943 = vst [vmem:[#allocation55_spill] sm:$0xff] %v12619_v40  ;;  %v2062_v59 = vld [vmem:[#allocation2 + $0x610] sm:$0xff]  ;;  %v2697_v40 = vld [vmem:[#allocation2 + $0x878] sm:$0xff] }
 0x2b0   : > { %v1785_v44 = vadd.f32 %v1784_v62, %v1714_v24  ;;  %2324 = vmatmul.f32.gmra.mxu1 %v2124_v29  ;;  %v2067_v24 = vld [vmem:[#allocation2 + $0x638] sm:$0xff]  ;;  %v2072_v62 = vld [vmem:[#allocation2 + $0x660] sm:$0xff] }
 0x2b2   : > { %9912 = vmatmul.msk.f32.gmra.mxu2 %vm1789_vm2, %v1785_v44  ;;  %v2080_v44 = vld [vmem:[#allocation2 + $0x6a0] sm:$0xff] }
 0x2b3   : > { %2442 = vmatmul.f32.gmra.mxu3 %v2086_v14 }
 0x2b5   : > { %v12577_v21 = vpop.f32.mrf.mxu2  ;;  %v12579_v39 = vpop.f32.mrf.mxu0 }
 0x2b6   : > { %15939 = vst [vmem:[#allocation51_spill] sm:$0xff] %v12577_v21 }
 0x2b7   : > { %2256 = vmatmul.f32.gmra.mxu0 %v2128_v45  ;;  %v2085_v45 = vld [vmem:[#allocation2 + $0x6c8] sm:$0xff] }
 0x2b8   : > { %2327 = vmatmul.f32.gmra.mxu1 %v2129_v50 }
 0x2ba   : > { %2350 = vmatmul.f32.vlgmr.msrb.gmra.mxu2 %v2050_v35 }
 0x2bb   : > { %3132 = vmatpush.msrb.mxu2 %v12582_v8 }
 0x2bd   : > { %v12585_v38 = vpop.f32.mrf.mxu2  ;;  %v12587_v2 = vpop.f32.mrf.mxu0  ;;  %3133 = vmatpush.msrb.mxu2 %v12590_v4 }
 0x2be   : > { %15940 = vst [vmem:[#allocation52_spill] sm:$0xff] %v12585_v38 }
 0x2bf   : > { %3134 = vmatpush.msrb.mxu2 %v12596_v51  ;;  %2259 = vmatmul.f32.gmra.mxu0 %v2133_v0  ;;  %v2090_v0 = vld [vmem:[#allocation2 + $0x6f0] sm:$0xff] }
 0x2c0   : > { %2330 = vmatmul.f32.gmra.mxu1 %v2134_v6 }
 0x2c1   : > { %3135 = vmatpush.msrb.mxu2 %v12600_v57 }
 0x2c2   : > { %2353 = vmatmul.f32.gmra.mxu2 %v2055_v48  ;;  %v2111_v48 = vld [vmem:[#allocation2 + $0x798] sm:$0xff] }
 0x2c3   : > { %3136 = vmatpush.msrb.mxu2 %v12604_v46 }
 0x2c5   : > { %v12607_v37 = vpop.f32.mrf.mxu2  ;;  %v12609_v41 = vpop.f32.mrf.mxu0  ;;  %3137 = vmatpush.msrb.mxu2 %v12612_v9 }
 0x2c6   : > { %15942 = vst [vmem:[#allocation54_spill] sm:$0xff] %v12607_v37 }
 0x2c7   : > { %3138 = vmatpush.msrb.mxu2 %v12616_v42  ;;  %9932 = vmatmul.msk.f32.vlgmr.msra.gmra.mxu0 %vm876_vm0, %v2052_v53 }
 0x2c8   : > { %3488 = vmatpush.msra.mxu0 %v12425_v1  ;;  %v12636_v1 = vpop.f32.mrf.mxu3 }
 0x2c9   : > { %3139 = vmatpush.msrb.mxu2 %v12623_v22  ;;  %15945 = vst [vmem:[#allocation57_spill] sm:$0xff] %v12636_v1  ;;  %v12765_v1 = vld [vmem:[%s11727_s23 + $0x1a0] sm:$0xff] }
 0x2ca   : > { %2356 = vmatmul.f32.gmra.mxu2 %v2060_v47  ;;  %3489 = vmatpush.msra.mxu0 %v12430_v36  ;;  %v2087_v47 = vld [vmem:[#allocation2 + $0x6d8] sm:$0xff] }
 0x2cc   : > { %3490 = vmatpush.msra.mxu0 %v12435_v19  ;;  %v2070_v19 = vld [vmem:[#allocation2 + $0x650] sm:$0xff] }
 0x2cd   : > { %v12628_v63 = vpop.f32.mrf.mxu2  ;;  %v12630_v34 = vpop.f32.mrf.mxu0 }
 0x2ce   : > { %15944 = vst [vmem:[#allocation56_spill] sm:$0xff] %v12628_v63  ;;  %3491 = vmatpush.msra.mxu0 %v12441_v52  ;;  %v2091_v52 = vld [vmem:[#allocation2 + $0x6f8] sm:$0xff]  ;;  %v2130_v63 = vld [vmem:[#allocation2 + $0x830] sm:$0xff] }
 0x2cf   : > { %9933 = vmatmul.msk.f32.gmra.mxu0 %vm876_vm0, %v2057_v17  ;;  %2445 = vmatmul.f32.gmra.mxu3 %v2091_v52  ;;  %v2116_v17 = vld [vmem:[#allocation2 + $0x7c0] sm:$0xff] }
 0x2d0   : > { %3492 = vmatpush.msra.mxu0 %v12448_v54  ;;  %v12648_v54 = vpop.f32.mrf.mxu3  ;;  %v2100_v52 = vld [vmem:[#allocation2 + $0x740] sm:$0xff] }
 0x2d1   : > { %15947 = vst [vmem:[#allocation59_spill] sm:$0xff] %v12648_v54 }
 0x2d2   : > { %2359 = vmatmul.f32.gmra.mxu2 %v2065_v49  ;;  %3493 = vmatpush.msra.mxu0 %v12452_v58 }
 0x2d4   : > { %3494 = vmatpush.msra.mxu0 %v12457_v32  ;;  %v2075_v32 = vld [vmem:[#allocation2 + $0x678] sm:$0xff] }
 0x2d5   : > { %v12639_v36 = vpop.f32.mrf.mxu2  ;;  %v12641_v18 = vpop.f32.mrf.mxu0 }
 0x2d6   : > { %15946 = vst [vmem:[#allocation58_spill] sm:$0xff] %v12639_v36  ;;  %3495 = vmatpush.msra.mxu0 %v12461_v60  ;;  %v2096_v60 = vld [vmem:[#allocation2 + $0x720] sm:$0xff] }
 0x2d7   : > { %9934 = vmatmul.msk.f32.gmra.mxu0 %vm876_vm0, %v2062_v59  ;;  %2448 = vmatmul.f32.gmra.mxu3 %v2096_v60 }
 0x2d8   : > { %3496 = vmatpush.msra.mxu0 %v12467_v33 }
 0x2da   : > { %2362 = vmatmul.f32.gmra.mxu2 %v2070_v19  ;;  %3497 = vmatpush.msra.mxu0 %v12474_v30  ;;  %v2092_v19 = vld [vmem:[#allocation2 + $0x700] sm:$0xff] }
 0x2dc   : > { %3498 = vmatpush.msra.mxu0 %v12480_v23  ;;  %v12664_v23 = vpop.f32.mrf.mxu3 }
 0x2dd   : > { %v12650_v58 = vpop.f32.mrf.mxu2  ;;  %v12652_v29 = vpop.f32.mrf.mxu0  ;;  %15950 = vst [vmem:[#allocation62_spill] sm:$0xff] %v12664_v23  ;;  %v12753_v23 = vld [vmem:[%s11727_s23 + $0x1b0] sm:$0xff] }
 0x2de   : > { %15948 = vst [vmem:[#allocation60_spill] sm:$0xff] %v12650_v58  ;;  %3499 = vmatpush.msra.mxu0 %v12485_v31  ;;  %v2101_v31 = vld [vmem:[#allocation2 + $0x748] sm:$0xff] }
 0x2df   : > { %9935 = vmatmul.msk.f32.gmra.mxu0 %vm876_vm0, %v2067_v24  ;;  %2451 = vmatmul.f32.gmra.mxu3 %v2101_v31  ;;  %v2121_v24 = vld [vmem:[#allocation2 + $0x7e8] sm:$0xff]  ;;  %v2548_v31 = vld [vmem:[#allocation10 + $0x8] sm:$0xf] }
 0x2e0   : > { %3500 = vmatpush.msra.mxu0 %v12491_v28  ;;  %9950 = vmatpush.msk.msra.mxu1 %vm1844_vm1, %v2548_v31  ;;  %v2131_v31 = vld [vmem:[#allocation2 + $0x838] sm:$0xff] }
 0x2e2   : > { %2365 = vmatmul.f32.gmra.mxu2 %v2075_v32  ;;  %3501 = vmatpush.msra.mxu0 %v12496_v5 }
 0x2e4   : > { %3502 = vmatpush.msra.mxu0 %v12504_v13  ;;  %v12672_v50 = vpop.f32.mrf.mxu3  ;;  %v2106_v13 = vld [vmem:[#allocation2 + $0x770] sm:$0xff] }
 0x2e5   : > { %v12659_v33 = vpop.f32.mrf.mxu2  ;;  %v12661_v30 = vpop.f32.mrf.mxu0  ;;  %15952 = vst [vmem:[#allocation64_spill] sm:$0xff] %v12672_v50  ;;  %v2115_v50 = vld [vmem:[#allocation2 + $0x7b8] sm:$0xff] }
 0x2e6   : > { %15949 = vst [vmem:[#allocation61_spill] sm:$0xff] %v12659_v33  ;;  %3503 = vmatpush.msra.mxu0 %v12509_v3  ;;  %v12788_v33 = vld [vmem:[%s11727_s23 + $0x180] sm:$0xff] }
 0x2e7   : > { %9936 = vmatmul.msk.f32.gmra.mxu0 %vm876_vm0, %v2072_v62  ;;  %2454 = vmatmul.f32.gmra.mxu3 %v2106_v13  ;;  %v2097_v62 = vld [vmem:[#allocation2 + $0x728] sm:$0xff]  ;;  %v2126_v13 = vld [vmem:[#allocation2 + $0x810] sm:$0xff] }
 0x2ea   : > { %2368 = vmatmul.f32.gmra.mxu2 %v2080_v44 }
 0x2ec   : > { %v12680_v6 = vpop.f32.mrf.mxu3 }
 0x2ed   : > { %v12668_v28 = vpop.f32.mrf.mxu2  ;;  %v12670_v5 = vpop.f32.mrf.mxu0  ;;  %15954 = vst [vmem:[#allocation66_spill] sm:$0xff] %v12680_v6 }
 0x2ee   : > { %15951 = vst [vmem:[#allocation63_spill] sm:$0xff] %v12668_v28 }
 0x2ef   : > { %9937 = vmatmul.msk.f32.gmra.mxu0 %vm876_vm0, %v2077_v10  ;;  %2457 = vmatmul.f32.gmra.mxu3 %v2111_v48  ;;  %v2105_v10 = vld [vmem:[#allocation2 + $0x768] sm:$0xff] }
 0x2f0   : > { %v12713_v48 = vld [vmem:[%s11727_s23 + $0x1e8] sm:$0xff] }
 0x2f2   : > { %2371 = vmatmul.f32.gmra.mxu2 %v2085_v45  ;;  %v12703_v45 = vld [vmem:[%s11727_s23 + $0x1f8] sm:$0xff] }
 0x2f3   : > { %3053 = vmatpush.msrb.mxu1 %v12703_v45 }
 0x2f4   : > { %v12687_v49 = vpop.f32.mrf.mxu3 }
 0x2f5   : > { %v12675_v35 = vpop.f32.mrf.mxu2  ;;  %v12677_v3 = vpop.f32.mrf.mxu0  ;;  %15956 = vst [vmem:[#allocation68_spill] sm:$0xff] %v12687_v49  ;;  %v2107_v49 = vld [vmem:[#allocation2 + $0x778] sm:$0xff] }
 0x2f6   : > { %15953 = vst [vmem:[#allocation65_spill] sm:$0xff] %v12675_v35  ;;  %v12776_v35 = vld [vmem:[%s11727_s23 + $0x190] sm:$0xff] }
 0x2f7   : > { %9938 = vmatmul.msk.f32.gmra.mxu0 %vm876_vm0, %v2082_v25  ;;  %2460 = vmatmul.f32.gmra.mxu3 %v2116_v17  ;;  %v12707_v25 = vld [vmem:[%s11727_s23 + $0x1f0] sm:$0xff] }
 0x2f8   : > { %3054 = vmatpush.msrb.mxu1 %v12707_v25  ;;  %v2102_v17 = vld [vmem:[#allocation2 + $0x750] sm:$0xff] }
 0x2fa   : > { %2374 = vmatmul.f32.gmra.mxu2 %v2090_v0  ;;  %v12710_v0 = vpop.f32.mrf.mxu1  ;;  %3055 = vmatpush.msrb.mxu1 %v12713_v48 }
 0x2fb   : > { %v2281_v56 = vadd.f32 %v12710_v0, %v12579_v39 }
 0x2fc   : > { %v12698_v44 = vpop.f32.mrf.mxu3 }
 0x2fd   : > { %v12682_v11 = vpop.f32.mrf.mxu2  ;;  %v12684_v53 = vpop.f32.mrf.mxu0  ;;  %15959 = vst [vmem:[#allocation71_spill] sm:$0xff] %v12698_v44 }
 0x2fe   : > { %15955 = vst [vmem:[#allocation67_spill] sm:$0xff] %v12682_v11 }
 0x2ff   : > { %9939 = vmatmul.msk.f32.gmra.mxu0 %vm876_vm0, %v2087_v47  ;;  %2463 = vmatmul.f32.gmra.mxu3 %v2121_v24 }
 0x302   : > { %2377 = vmatmul.f32.gmra.mxu2 %v2095_v26  ;;  %v12741_v6 = vpop.f32.mrf.mxu1 }
 0x303   : > { %v2284_v21 = vadd.f32 %v12741_v6, %v12587_v2  ;;  %v2717_v2 = vld [vmem:[#allocation2 + $0x918] sm:$0xff]  ;;  %v12823_v6 = vld [vmem:[%s11727_s23 + $0xf0] sm:$0xff] }
 0x304   : > { %v2044_v24 = vpop.f32.mrf.mxu3 }
 0x305   : > { %v12689_v14 = vpop.f32.mrf.mxu2  ;;  %v12691_v59 = vpop.f32.mrf.mxu0 }
 0x306   : > { %15957 = vst [vmem:[#allocation69_spill] sm:$0xff] %v12689_v14  ;;  %v2112_v14 = vld [vmem:[#allocation2 + $0x7a0] sm:$0xff] }
 0x307   : > { %9940 = vmatmul.msk.f32.gmra.mxu0 %vm876_vm0, %v2092_v19  ;;  %2466 = vmatmul.f32.gmra.mxu3 %v2126_v13  ;;  %v12721_v19 = vld [vmem:[%s11727_s23 + $0x1e0] sm:$0xff]  ;;  %v12734_v13 = vld [vmem:[%s11727_s23 + $0x1c8] sm:$0xff] }
 0x308   : > { %3056 = vmatpush.msrb.mxu1 %v12721_v19 }
 0x30a   : > { %2380 = vmatmul.f32.gmra.mxu2 %v2100_v52  ;;  %v2110_v52 = vld [vmem:[#allocation2 + $0x790] sm:$0xff]  ;;  %v12768_v11 = vpop.f32.mrf.mxu1 }
 0x30d   : > { %v12694_v32 = vpop.f32.mrf.mxu2  ;;  %v12696_v60 = vpop.f32.mrf.mxu0 }
 0x30e   : > { %15958 = vst [vmem:[#allocation70_spill] sm:$0xff] %v12694_v32  ;;  %v12757_v32 = vld [vmem:[%s11727_s23 + $0x1a8] sm:$0xff] }
 0x30f   : > { %9941 = vmatmul.msk.f32.gmra.mxu0 %vm876_vm0, %v2097_v62  ;;  %v12726_v62 = vld [vmem:[%s11727_s23 + $0x1d8] sm:$0xff]  ;;  %2469 = vmatmul.f32.gmra.mxu3 %v2131_v31  ;;  %v2422_v31 = vpop.f32.mrf.mxu3 }
 0x310   : > { %3057 = vmatpush.msrb.mxu1 %v12726_v62 }
 0x312   : > { %2383 = vmatmul.f32.gmra.mxu2 %v2105_v10  ;;  %v12730_v10 = vld [vmem:[%s11727_s23 + $0x1d0] sm:$0xff]  ;;  %v12792_v55 = vpop.f32.mrf.mxu1 }
 0x313   : > { %3058 = vmatpush.msrb.mxu1 %v12730_v10 }
 0x315   : > { %v12716_v47 = vpop.f32.mrf.mxu2  ;;  %v12718_v26 = vpop.f32.mrf.mxu0  ;;  %3059 = vmatpush.msrb.mxu1 %v12734_v13 }
 0x316   : > { %15960 = vst [vmem:[#allocation72_spill] sm:$0xff] %v12716_v47  ;;  %v12749_v47 = vld [vmem:[%s11727_s23 + $0x1b8] sm:$0xff] }
 0x317   : > { %9942 = vmatmul.msk.f32.gmra.mxu0 %vm876_vm0, %v2102_v17 }
 0x31a   : > { %2386 = vmatmul.f32.gmra.mxu2 %v2110_v52  ;;  %v12744_v52 = vld [vmem:[%s11727_s23 + $0x1c0] sm:$0xff] }
 0x31b   : > { %3060 = vmatpush.msrb.mxu1 %v12744_v52 }
 0x31d   : > { %v12737_v44 = vpop.f32.mrf.mxu2  ;;  %v12739_v17 = vpop.f32.mrf.mxu0  ;;  %3061 = vmatpush.msrb.mxu1 %v12749_v47 }
 0x31e   : > { %15961 = vst [vmem:[#allocation73_spill] sm:$0xff] %v12737_v44  ;;  %v2136_v44 = vld [vmem:[#allocation2 + $0x860] sm:$0xff] }
 0x31f   : > { %9943 = vmatmul.msk.f32.gmra.mxu0 %vm876_vm0, %v2107_v49  ;;  %3062 = vmatpush.msrb.mxu1 %v12753_v23 }
 0x320   : > { %2472 = vmatmul.f32.gmra.mxu3 %v2136_v44  ;;  %v12772_v44 = vld [vmem:[%s11727_s23 + $0x198] sm:$0xff] }
 0x321   : > { %3063 = vmatpush.msrb.mxu1 %v12757_v32 }
 0x322   : > { %2389 = vmatmul.f32.gmra.mxu2 %v2115_v50  ;;  %v2120_v50 = vld [vmem:[#allocation2 + $0x7e0] sm:$0xff] }
 0x323   : > { %3064 = vmatpush.msrb.mxu1 %v12765_v1 }
 0x325   : > { %v12760_v54 = vpop.f32.mrf.mxu2  ;;  %v12762_v49 = vpop.f32.mrf.mxu0  ;;  %3065 = vmatpush.msrb.mxu1 %v12772_v44 }
 0x326   : > { %15962 = vst [vmem:[#allocation74_spill] sm:$0xff] %v12760_v54  ;;  %v2425_v54 = vpop.f32.mrf.mxu3 }
 0x327   : > { %9944 = vmatmul.msk.f32.gmra.mxu0 %vm876_vm0, %v2112_v14  ;;  %3066 = vmatpush.msrb.mxu1 %v12776_v35  ;;  %v2117_v14 = vld [vmem:[#allocation2 + $0x7c8] sm:$0xff] }
 0x328   : > { %2927 = vmatmul.f32.vlgmr.msra.gmra.mxu3 %v2697_v40  ;;  %v2702_v40 = vld [vmem:[#allocation2 + $0x8a0] sm:$0xff] }
 0x329   : > { %3067 = vmatpush.msrb.mxu1 %v12780_v12 }
 0x32a   : > { %2392 = vmatmul.f32.gmra.mxu2 %v2120_v50  ;;  %v2125_v50 = vld [vmem:[#allocation2 + $0x808] sm:$0xff] }
 0x32b   : > { %3068 = vmatpush.msrb.mxu1 %v12788_v33 }
 0x32d   : > { %v12783_v28 = vpop.f32.mrf.mxu2  ;;  %v12785_v43 = vpop.f32.mrf.mxu0 }
 0x32e   : > { %15963 = vst [vmem:[#allocation75_spill] sm:$0xff] %v12783_v28  ;;  %v12794_v58 = vpop.f32.mrf.mxu3  ;;  %v2122_v28 = vld [vmem:[#allocation2 + $0x7f0] sm:$0xff] }
 0x32f   : > { %9945 = vmatmul.msk.f32.gmra.mxu0 %vm876_vm0, %v2117_v14  ;;  %v12801_v14 = vpop.f32.mrf.mxu1 }
 0x330   : > { %2930 = vmatmul.f32.gmra.mxu3 %v2702_v40  ;;  %v2127_v40 = vld [vmem:[#allocation2 + $0x818] sm:$0xff] }
 0x332   : > { %2395 = vmatmul.f32.gmra.mxu2 %v2125_v50 }
 0x335   : > { %v1916_v16 = vpop.f32.mrf.mxu2  ;;  %v12796_v36 = vpop.f32.mrf.mxu0 }
 0x336   : > { %v12798_v15 = vadd.f32 %v2044_v24, %v1916_v16  ;;  %v12807_v38 = vpop.f32.mrf.mxu3 }
 0x337   : > { %9946 = vmatmul.msk.f32.gmra.mxu0 %vm876_vm0, %v2122_v28  ;;  %v12812_v39 = vpop.f32.mrf.mxu1 }
 0x338   : > { %15964 = vst [vmem:[#allocation76_spill] sm:$0xff] %v12798_v15  ;;  %2933 = vmatmul.f32.gmra.mxu3 %v2707_v7  ;;  %v2132_v15 = vld [vmem:[#allocation2 + $0x840] sm:$0xff] }
 0x33a   : > { %2398 = vmatmul.f32.gmra.mxu2 %v2130_v63  ;;  %v2712_v63 = vld [vmem:[#allocation2 + $0x8f0] sm:$0xff] }
 0x33d   : > { %v12803_v37 = vpop.f32.mrf.mxu0  ;;  %v2351_v50 = vpop.f32.mrf.mxu2 }
 0x33e   : > { %v2352_v16 = vadd.f32 %v2351_v50, %v2281_v56 }
 0x33f   : > { %9947 = vmatmul.msk.f32.gmra.mxu0 %vm876_vm0, %v2127_v40 }
 0x340   : > { %2936 = vmatmul.f32.gmra.mxu3 %v2712_v63  ;;  %v2423_v7 = vadd.f32 %v2422_v31, %v2352_v16  ;;  %v12819_v31 = vld [vmem:[%s11727_s23 + $0xf8] sm:$0xff]  ;;  %v2137_v16 = vld [vmem:[#allocation2 + $0x868] sm:$0xff] }
 0x341   : > { %v12831_v63 = vld [vmem:[%s11727_s23 + $0xe8] sm:$0xff] }
 0x342   : > { %2401 = vmatmul.f32.gmra.mxu2 %v2135_v20  ;;  %v12816_v20 = vpop.f32.mrf.mxu3  ;;  %15965 = vst [vmem:[#allocation77_spill] sm:$0xff] %v12831_v63 }
 0x345   : > { %v2354_v28 = vpop.f32.mrf.mxu2  ;;  %v2493_v24 = vpop.f32.mrf.mxu0 }
 0x346   : > { %v2494_v0 = vadd.f32 %v2493_v24, %v2423_v7  ;;  %v2355_v56 = vadd.f32 %v2354_v28, %v2284_v21  ;;  %v12837_v28 = vld [vmem:[%s11727_s23 + $0x170] sm:$0xff]  ;;  %v12841_v24 = vld [vmem:[%s11727_s23 + $0xe0] sm:$0xff] }
 0x347   : > { %9948 = vmatmul.msk.f32.gmra.mxu0 %vm876_vm0, %v2132_v15  ;;  %v12827_v15 = vld [vmem:[%s11727_s23 + $0x178] sm:$0xff]  ;;  %15966 = vst [vmem:[#allocation78_spill] sm:$0xff] %v12841_v24 }
 0x348   : > { %9951 = vmatmul.msk.f32.vlgmr.msra.gmra.mxu1 %vm1789_vm2, %v2494_v0  ;;  %2939 = vmatmul.f32.gmra.mxu3 %v2717_v2  ;;  %v2426_v21 = vadd.f32 %v2425_v54, %v2355_v56  ;;  %v2701_v54 = vld [vmem:[#allocation2 + $0x898] sm:$0xff]  ;;  %v12844_v0 = vpop.f32.mrf.mxu1 }
 0x349   : > { %3559 = vmatpush.msra.mxu1 %v12819_v31 }
 0x34a   : > { %2856 = vmatmul.f32.vlgmr.msra.gmra.mxu2 %v2696_v27  ;;  %v2287_v27 = vadd.f32 %v12768_v11, %v12609_v41  ;;  %v12849_v41 = vld [vmem:[%s11727_s23 + $0x168] sm:$0xff]  ;;  %v12853_v11 = vld [vmem:[%s11727_s23 + $0xd8] sm:$0xff]  ;;  %v12856_v2 = vpop.f32.mrf.mxu3 }
 0x34b   : > { %3560 = vmatpush.msra.mxu1 %v12823_v6  ;;  %3630 = vmatpush.msra.mxu2 %v12827_v15  ;;  %15967 = vst [vmem:[#allocation79_spill] sm:$0xff] %v12853_v11 }
 0x34d   : > { %v2357_v50 = vpop.f32.mrf.mxu2  ;;  %v2496_v40 = vpop.f32.mrf.mxu0  ;;  %3561 = vmatpush.msra.mxu1 %v12831_v63  ;;  %3631 = vmatpush.msra.mxu2 %v12837_v28  ;;  %v12883_v63 = vld [vmem:[%s11727_s23 + $0xc0] sm:$0xff] }
 0x34e   : > { %v2497_v7 = vadd.f32 %v2496_v40, %v2426_v21  ;;  %v2358_v56 = vadd.f32 %v2357_v50, %v2287_v27  ;;  %v2722_v21 = vld [vmem:[#allocation2 + $0x940] sm:$0xff]  ;;  %15970 = vst [vmem:[#allocation82_spill] sm:$0xff] %v12883_v63 }
 0x34f   : > { %3562 = vmatpush.msra.mxu1 %v12841_v24  ;;  %9949 = vmatmul.msk.f32.gmra.mxu0 %vm876_vm0, %v2137_v16  ;;  %v12859_v50 = vld [vmem:[%s11727_s23 + $0x160] sm:$0xff]  ;;  %v12864_v16 = vld [vmem:[%s11727_s23 + $0xd0] sm:$0xff]  ;;  %v12874_v24 = vld [vmem:[%s11727_s23 + $0xc8] sm:$0xff] }
 0x350   : > { %9952 = vmatmul.msk.f32.gmra.mxu1 %vm1789_vm2, %v2497_v7  ;;  %3632 = vmatpush.msra.mxu2 %v12849_v41  ;;  %v2429_v40 = vadd.f32 %v12794_v58, %v2358_v56  ;;  %15968 = vst [vmem:[#allocation80_spill] sm:$0xff] %v12864_v16  ;;  %v2706_v58 = vld [vmem:[#allocation2 + $0x8c0] sm:$0xff]  ;;  %v12878_v56 = vld [vmem:[%s11727_s23 + $0x150] sm:$0xff] }
 0x351   : > { %3563 = vmatpush.msra.mxu1 %v12853_v11  ;;  %2942 = vmatmul.f32.gmra.mxu3 %v2722_v21  ;;  %v2290_v21 = vadd.f32 %v12792_v55, %v12630_v34  ;;  %15969 = vst [vmem:[#allocation81_spill] sm:$0xff] %v12874_v24  ;;  %v12887_v55 = vld [vmem:[%s11727_s23 + $0x148] sm:$0xff]  ;;  %v12890_v34 = vpop.f32.mrf.mxu1 }
 0x352   : > { %2859 = vmatmul.f32.gmra.mxu2 %v2701_v54  ;;  %v2698_v54 = vld [vmem:[#allocation2 + $0x880] sm:$0xff] }
 0x353   : > { %3633 = vmatpush.msra.mxu2 %v12859_v50  ;;  %3564 = vmatpush.msra.mxu1 %v12864_v16 }
 0x355   : > { %v2360_v27 = vpop.f32.mrf.mxu2  ;;  %v2499_v7 = vpop.f32.mrf.mxu0  ;;  %3634 = vmatpush.msra.mxu2 %v12868_v61  ;;  %3565 = vmatpush.msra.mxu1 %v12874_v24 }
 0x356   : > { %v2500_v11 = vadd.f32 %v2499_v7, %v2429_v40  ;;  %v2361_v16 = vadd.f32 %v2360_v27, %v2290_v21  ;;  %v2727_v40 = vld [vmem:[#allocation2 + $0x968] sm:$0xff]  ;;  %v12894_v27 = vld [vmem:[%s11727_s23 + $0xb8] sm:$0xff]  ;;  %v12898_v7 = vpop.f32.mrf.mxu3 }
 0x357   : > { %3635 = vmatpush.msra.mxu2 %v12878_v56  ;;  %2998 = vmatmul.f32.vlgmr.msrb.gmra.mxu0 %v2698_v54  ;;  %15971 = vst [vmem:[#allocation83_spill] sm:$0xff] %v12894_v27  ;;  %v12901_v54 = vld [vmem:[%s11727_s23 + $0x140] sm:$0xff] }
 0x358   : > { %9953 = vmatmul.msk.f32.gmra.mxu1 %vm1789_vm2, %v2500_v11  ;;  %3780 = vmatpush.msrb.mxu0 %v12582_v8  ;;  %v2432_v11 = vadd.f32 %v12807_v38, %v2361_v16  ;;  %v2293_v38 = vadd.f32 %v12801_v14, %v12641_v18  ;;  %v12926_v18 = vld [vmem:[%s11727_s23 + $0xa0] sm:$0xff]  ;;  %v12931_v14 = vld [vmem:[%s11727_s23 + $0x128] sm:$0xff] }
 0x359   : > { %3566 = vmatpush.msra.mxu1 %v12883_v63  ;;  %3636 = vmatpush.msra.mxu2 %v12887_v55  ;;  %v12917_v63 = vld [vmem:[%s11727_s23 + $0xa8] sm:$0xff]  ;;  %15974 = vst [vmem:[#allocation86_spill] sm:$0xff] %v12926_v18 }
 0x35a   : > { %2862 = vmatmul.f32.gmra.mxu2 %v2706_v58  ;;  %2945 = vmatmul.f32.gmra.mxu3 %v2727_v40  ;;  %v2703_v58 = vld [vmem:[#allocation2 + $0x8a8] sm:$0xff]  ;;  %v12906_v40 = vld [vmem:[%s11727_s23 + $0xb0] sm:$0xff]  ;;  %15973 = vst [vmem:[#allocation85_spill] sm:$0xff] %v12917_v63 }
 0x35b   : > { %3567 = vmatpush.msra.mxu1 %v12894_v27  ;;  %3637 = vmatpush.msra.mxu2 %v12901_v54  ;;  %15972 = vst [vmem:[#allocation84_spill] sm:$0xff] %v12906_v40  ;;  %v12912_v27 = vld [vmem:[%s11727_s23 + $0x138] sm:$0xff] }
 0x35c   : > { %3781 = vmatpush.msrb.mxu0 %v12590_v4  ;;  %v2711_v4 = vld [vmem:[#allocation2 + $0x8e8] sm:$0xff] }
 0x35d   : > { %v2363_v21 = vpop.f32.mrf.mxu2  ;;  %v2502_v8 = vpop.f32.mrf.mxu0  ;;  %3568 = vmatpush.msra.mxu1 %v12906_v40  ;;  %3638 = vmatpush.msra.mxu2 %v12912_v27  ;;  %v12922_v40 = vld [vmem:[%s11727_s23 + $0x130] sm:$0xff] }
 0x35e   : > { %v2503_v16 = vadd.f32 %v2502_v8, %v2432_v11  ;;  %3782 = vmatpush.msrb.mxu0 %v12596_v51  ;;  %v2364_v24 = vadd.f32 %v2363_v21, %v2293_v38  ;;  %v2732_v51 = vld [vmem:[#allocation2 + $0x990] sm:$0xff]  ;;  %v12934_v11 = vpop.f32.mrf.mxu1  ;;  %v12938_v8 = vld [vmem:[%s11727_s23 + $0x98] sm:$0xff] }
 0x35f   : > { %3569 = vmatpush.msra.mxu1 %v12917_v63  ;;  %3001 = vmatmul.f32.gmra.mxu0 %v2703_v58  ;;  %15975 = vst [vmem:[#allocation87_spill] sm:$0xff] %v12938_v8 }
 0x360   : > { %9954 = vmatmul.msk.f32.gmra.mxu1 %vm1789_vm2, %v2503_v16  ;;  %3639 = vmatpush.msra.mxu2 %v12922_v40  ;;  %v2435_v21 = vadd.f32 %v12816_v20, %v2364_v24  ;;  %v12943_v16 = vld [vmem:[%s11727_s23 + $0x120] sm:$0xff]  ;;  %v2443_v24 = vpop.f32.mrf.mxu3 }
 0x361   : > { %3570 = vmatpush.msra.mxu1 %v12926_v18  ;;  %3783 = vmatpush.msrb.mxu0 %v12600_v57  ;;  %v2708_v57 = vld [vmem:[#allocation2 + $0x8d0] sm:$0xff] }
 0x362   : > { %2865 = vmatmul.f32.gmra.mxu2 %v2711_v4  ;;  %2948 = vmatmul.f32.gmra.mxu3 %v2732_v51  ;;  %v2296_v4 = vadd.f32 %v12812_v39, %v12652_v29  ;;  %v12949_v51 = vld [vmem:[%s11727_s23 + $0x90] sm:$0xff]  ;;  %v12959_v29 = vld [vmem:[%s11727_s23 + $0x88] sm:$0xff] }
 0x363   : > { %3640 = vmatpush.msra.mxu2 %v12931_v14  ;;  %3571 = vmatpush.msra.mxu1 %v12938_v8  ;;  %15976 = vst [vmem:[#allocation88_spill] sm:$0xff] %v12949_v51  ;;  %v12954_v8 = vld [vmem:[%s11727_s23 + $0x118] sm:$0xff]  ;;  %v12963_v39 = vld [vmem:[%s11727_s23 + $0x110] sm:$0xff] }
 0x364   : > { %3784 = vmatpush.msrb.mxu0 %v12604_v46  ;;  %v2716_v46 = vld [vmem:[#allocation2 + $0x910] sm:$0xff]  ;;  %15977 = vst [vmem:[#allocation89_spill] sm:$0xff] %v12959_v29 }
 0x365   : > { %v2366_v58 = vpop.f32.mrf.mxu2  ;;  %v2505_v38 = vpop.f32.mrf.mxu0  ;;  %3641 = vmatpush.msra.mxu2 %v12943_v16  ;;  %3572 = vmatpush.msra.mxu1 %v12949_v51  ;;  %15978 = vst [vmem:[#allocation90_spill] sm:$0xff] %v12963_v39 }
 0x366   : > { %v2506_v20 = vadd.f32 %v2505_v38, %v2435_v21  ;;  %3785 = vmatpush.msrb.mxu0 %v12612_v9  ;;  %v2367_v18 = vadd.f32 %v2366_v58, %v2296_v4  ;;  %v2737_v9 = vld [vmem:[#allocation2 + $0x9b8] sm:$0xff]  ;;  %v12968_v21 = vld [vmem:[%s11727_s23 + $0x80] sm:$0xff]  ;;  %v12973_v38 = vld [vmem:[%s11727_s23 + $0x108] sm:$0xff] }
 0x367   : > { %3642 = vmatpush.msra.mxu2 %v12954_v8  ;;  %3004 = vmatmul.f32.gmra.mxu0 %v2708_v57  ;;  %15979 = vst [vmem:[#allocation91_spill] sm:$0xff] %v12968_v21 }
 0x368   : > { %9955 = vmatmul.msk.f32.gmra.mxu1 %vm1789_vm2, %v2506_v20  ;;  %3786 = vmatpush.msrb.mxu0 %v12616_v42  ;;  %v2438_v58 = vadd.f32 %v12856_v2, %v2367_v18  ;;  %15980 = vst [vmem:[#allocation92_spill] sm:$0xff] %v12973_v38  ;;  %v2713_v20 = vld [vmem:[#allocation2 + $0x8f8] sm:$0xff]  ;;  %v2307_v42 = vpop.f32.mrf.mxu1  ;;  %v2446_v18 = vpop.f32.mrf.mxu3 }
 0x369   : > { %3573 = vmatpush.msra.mxu1 %v12959_v29  ;;  %3643 = vmatpush.msra.mxu2 %v12963_v39  ;;  %v12980_v29 = vld [vmem:[%s11727_s23 + $0x100] sm:$0xff] }
 0x36a   : > { %2868 = vmatmul.f32.gmra.mxu2 %v2716_v46  ;;  %2951 = vmatmul.f32.gmra.mxu3 %v2737_v9  ;;  %v2299_v46 = vadd.f32 %v12844_v0, %v12661_v30  ;;  %15981 = vst [vmem:[#allocation93_spill] sm:$0xff] %v12980_v29  ;;  %v2718_v30 = vld [vmem:[#allocation2 + $0x920] sm:$0xff]  ;;  %v2302_v0 = vadd.f32 %v12890_v34, %v12670_v5  ;;  %v2731_v5 = vld [vmem:[#allocation2 + $0x988] sm:$0xff] }
 0x36b   : > { %3574 = vmatpush.msra.mxu1 %v12968_v21  ;;  %3644 = vmatpush.msra.mxu2 %v12973_v38  ;;  %v2721_v21 = vld [vmem:[#allocation2 + $0x938] sm:$0xff] }
 0x36c   : > { %3787 = vmatpush.msrb.mxu0 %v12623_v22  ;;  %v2742_v22 = vld [vmem:[#allocation2 + $0x9e0] sm:$0xff] }
 0x36d   : > { %v2369_v57 = vpop.f32.mrf.mxu2  ;;  %v2508_v4 = vpop.f32.mrf.mxu0  ;;  %3645 = vmatpush.msra.mxu2 %v12980_v29 }
 0x36e   : > { %v2509_v9 = vadd.f32 %v2508_v4, %v2438_v58  ;;  %v2370_v2 = vadd.f32 %v2369_v57, %v2299_v46  ;;  %v2726_v4 = vld [vmem:[#allocation2 + $0x960] sm:$0xff] }
 0x36f   : > { %3007 = vmatmul.f32.gmra.mxu0 %v2713_v20 }
 0x370   : > { %9956 = vmatmul.msk.f32.gmra.mxu1 %vm1789_vm2, %v2509_v9  ;;  %v2441_v51 = vadd.f32 %v12898_v7, %v2370_v2  ;;  %v2310_v29 = vpop.f32.mrf.mxu1  ;;  %v2449_v57 = vpop.f32.mrf.mxu3  ;;  %v2723_v9 = vld [vmem:[#allocation2 + $0x948] sm:$0xff]  ;;  %v2305_v2 = vadd.f32 %v12934_v11, %v12677_v3  ;;  %v2757_v11 = vld [vmem:[#allocation2 + $0xa58] sm:$0xff] }
 0x372   : > { %2871 = vmatmul.f32.gmra.mxu2 %v2721_v21  ;;  %2954 = vmatmul.f32.gmra.mxu3 %v2742_v22  ;;  %v2747_v21 = vld [vmem:[#allocation2 + $0xa08] sm:$0xff] }
 0x375   : > { %v2372_v63 = vpop.f32.mrf.mxu2  ;;  %v2511_v38 = vpop.f32.mrf.mxu0 }
 0x376   : > { %v2512_v58 = vadd.f32 %v2511_v38, %v2441_v51  ;;  %v2373_v39 = vadd.f32 %v2372_v63, %v2302_v0  ;;  %v2752_v51 = vld [vmem:[#allocation2 + $0xa30] sm:$0xff] }
 0x377   : > { %3010 = vmatmul.f32.gmra.mxu0 %v2718_v30 }
 0x378   : > { %9957 = vmatmul.msk.f32.gmra.mxu1 %vm1789_vm2, %v2512_v58  ;;  %v2444_v20 = vadd.f32 %v2443_v24, %v2373_v39  ;;  %v2313_v63 = vpop.f32.mrf.mxu1  ;;  %v2452_v30 = vpop.f32.mrf.mxu3  ;;  %v2728_v39 = vld [vmem:[#allocation2 + $0x970] sm:$0xff]  ;;  %v2308_v58 = vadd.f32 %v2307_v42, %v12684_v53  ;;  %v2762_v42 = vld [vmem:[#allocation2 + $0xa80] sm:$0xff] }
 0x37a   : > { %2874 = vmatmul.f32.gmra.mxu2 %v2726_v4  ;;  %2957 = vmatmul.f32.gmra.mxu3 %v2747_v21  ;;  %v2736_v21 = vld [vmem:[#allocation2 + $0x9b0] sm:$0xff] }
 0x37d   : > { %v2375_v46 = vpop.f32.mrf.mxu2  ;;  %v2514_v7 = vpop.f32.mrf.mxu0 }
 0x37e   : > { %v2515_v22 = vadd.f32 %v2514_v7, %v2444_v20  ;;  %v2376_v34 = vadd.f32 %v2375_v46, %v2305_v2  ;;  %v2311_v2 = vadd.f32 %v2310_v29, %v12691_v59 }
 0x37f   : > { %3013 = vmatmul.f32.gmra.mxu0 %v2723_v9 }
 0x380   : > { %9958 = vmatmul.msk.f32.gmra.mxu1 %vm1789_vm2, %v2515_v22  ;;  %v2447_v38 = vadd.f32 %v2446_v18, %v2376_v34  ;;  %v2316_v20 = vpop.f32.mrf.mxu1  ;;  %v2733_v18 = vld [vmem:[#allocation2 + $0x998] sm:$0xff] }
 0x381   : > { %v2741_v34 = vld [vmem:[#allocation2 + $0x9d8] sm:$0xff] }
 0x382   : > { %2877 = vmatmul.f32.gmra.mxu2 %v2731_v5  ;;  %2960 = vmatmul.f32.gmra.mxu3 %v2752_v51  ;;  %v2455_v5 = vpop.f32.mrf.mxu3 }
 0x385   : > { %v2378_v0 = vpop.f32.mrf.mxu2  ;;  %v2517_v24 = vpop.f32.mrf.mxu0 }
 0x386   : > { %v2518_v4 = vadd.f32 %v2517_v24, %v2447_v38  ;;  %v2379_v3 = vadd.f32 %v2378_v0, %v2308_v58  ;;  %v2738_v24 = vld [vmem:[#allocation2 + $0x9c0] sm:$0xff] }
 0x387   : > { %3016 = vmatmul.f32.gmra.mxu0 %v2728_v39 }
 0x388   : > { %9959 = vmatmul.msk.f32.gmra.mxu1 %vm1789_vm2, %v2518_v4  ;;  %v2450_v46 = vadd.f32 %v2449_v57, %v2379_v3  ;;  %v2314_v57 = vadd.f32 %v2313_v63, %v12696_v60  ;;  %v2319_v39 = vpop.f32.mrf.mxu1  ;;  %v2746_v4 = vld [vmem:[#allocation2 + $0xa00] sm:$0xff] }
 0x38a   : > { %2880 = vmatmul.f32.gmra.mxu2 %v2736_v21  ;;  %2963 = vmatmul.f32.gmra.mxu3 %v2757_v11  ;;  %v2458_v29 = vpop.f32.mrf.mxu3  ;;  %v2767_v21 = vld [vmem:[#allocation2 + $0xaa8] sm:$0xff] }
 0x38d   : > { %v2381_v7 = vpop.f32.mrf.mxu2  ;;  %v2520_v9 = vpop.f32.mrf.mxu0 }
 0x38e   : > { %v2521_v22 = vadd.f32 %v2520_v9, %v2450_v46  ;;  %v2382_v53 = vadd.f32 %v2381_v7, %v2311_v2  ;;  %v2317_v7 = vadd.f32 %v2316_v20, %v12718_v26 }
 0x38f   : > { %3019 = vmatmul.f32.gmra.mxu0 %v2733_v18  ;;  %v2751_v18 = vld [vmem:[#allocation2 + $0xa28] sm:$0xff] }
 0x390   : > { %9960 = vmatmul.msk.f32.gmra.mxu1 %vm1789_vm2, %v2521_v22  ;;  %v2453_v51 = vadd.f32 %v2452_v30, %v2382_v53  ;;  %v2743_v30 = vld [vmem:[#allocation2 + $0x9e8] sm:$0xff]  ;;  %v2322_v60 = vpop.f32.mrf.mxu1  ;;  %v2772_v22 = vld [vmem:[#allocation2 + $0xad0] sm:$0xff] }
 0x392   : > { %2883 = vmatmul.f32.gmra.mxu2 %v2741_v34  ;;  %2966 = vmatmul.f32.gmra.mxu3 %v2762_v42  ;;  %v2461_v2 = vpop.f32.mrf.mxu3 }
 0x395   : > { %v2384_v38 = vpop.f32.mrf.mxu2  ;;  %v2523_v0 = vpop.f32.mrf.mxu0 }
 0x396   : > { %v2524_v58 = vadd.f32 %v2523_v0, %v2453_v51  ;;  %v2385_v59 = vadd.f32 %v2384_v38, %v2314_v57  ;;  %v2320_v51 = vadd.f32 %v2319_v39, %v12739_v17  ;;  %v2756_v0 = vld [vmem:[#allocation2 + $0xa50] sm:$0xff]  ;;  %v2782_v39 = vld [vmem:[#allocation2 + $0xb20] sm:$0xff] }
 0x397   : > { %3022 = vmatmul.f32.gmra.mxu0 %v2738_v24  ;;  %v2777_v24 = vld [vmem:[#allocation2 + $0xaf8] sm:$0xff] }
 0x398   : > { %9961 = vmatmul.msk.f32.gmra.mxu1 %vm1789_vm2, %v2524_v58  ;;  %v2456_v3 = vadd.f32 %v2455_v5, %v2385_v59  ;;  %v2748_v5 = vld [vmem:[#allocation2 + $0xa10] sm:$0xff]  ;;  %v2325_v20 = vpop.f32.mrf.mxu1 }
 0x39a   : > { %2886 = vmatmul.f32.gmra.mxu2 %v2746_v4  ;;  %2969 = vmatmul.f32.gmra.mxu3 %v2767_v21  ;;  %v2464_v58 = vpop.f32.mrf.mxu3  ;;  %v2323_v21 = vadd.f32 %v2322_v60, %v12762_v49 }
 0x39d   : > { %v2387_v11 = vpop.f32.mrf.mxu2  ;;  %v2526_v46 = vpop.f32.mrf.mxu0 }
 0x39e   : > { %v2527_v9 = vadd.f32 %v2526_v46, %v2456_v3  ;;  %v2388_v63 = vadd.f32 %v2387_v11, %v2317_v7  ;;  %v2761_v11 = vld [vmem:[#allocation2 + $0xa78] sm:$0xff] }
 0x39f   : > { %3025 = vmatmul.f32.gmra.mxu0 %v2743_v30 }
 0x3a0   : > { %9962 = vmatmul.msk.f32.gmra.mxu1 %vm1789_vm2, %v2527_v9  ;;  %v2459_v34 = vadd.f32 %v2458_v29, %v2388_v63  ;;  %v2753_v29 = vld [vmem:[#allocation2 + $0xa38] sm:$0xff]  ;;  %v2328_v46 = vpop.f32.mrf.mxu1  ;;  %v2326_v63 = vadd.f32 %v2325_v20, %v12785_v43 }
 0x3a2   : > { %2889 = vmatmul.f32.gmra.mxu2 %v2751_v18  ;;  %2972 = vmatmul.f32.gmra.mxu3 %v2772_v22  ;;  %v2758_v18 = vld [vmem:[#allocation2 + $0xa60] sm:$0xff]  ;;  %v2467_v22 = vpop.f32.mrf.mxu3 }
 0x3a5   : > { %v2390_v53 = vpop.f32.mrf.mxu2  ;;  %v2529_v42 = vpop.f32.mrf.mxu0 }
 0x3a6   : > { %v2530_v38 = vadd.f32 %v2529_v42, %v2459_v34  ;;  %v2391_v26 = vadd.f32 %v2390_v53, %v2320_v51  ;;  %v2766_v34 = vld [vmem:[#allocation2 + $0xaa0] sm:$0xff]  ;;  %v2329_v51 = vadd.f32 %v2328_v46, %v12796_v36 }
 0x3a7   : > { %3028 = vmatmul.f32.gmra.mxu0 %v2748_v5  ;;  %v2763_v5 = vld [vmem:[#allocation2 + $0xa88] sm:$0xff] }
 0x3a8   : > { %9963 = vmatmul.msk.f32.gmra.mxu1 %vm1789_vm2, %v2530_v38  ;;  %v2462_v57 = vadd.f32 %v2461_v2, %v2391_v26  ;;  %v2331_v38 = vpop.f32.mrf.mxu1  ;;  %v2771_v26 = vld [vmem:[#allocation2 + $0xac8] sm:$0xff] }
 0x3aa   : > { %2892 = vmatmul.f32.gmra.mxu2 %v2756_v0  ;;  %2975 = vmatmul.f32.gmra.mxu3 %v2777_v24  ;;  %v2470_v43 = vpop.f32.mrf.mxu3 }
 0x3ad   : > { %v2393_v4 = vpop.f32.mrf.mxu2  ;;  %v2532_v59 = vpop.f32.mrf.mxu0 }
 0x3ae   : > { %v2533_v3 = vadd.f32 %v2532_v59, %v2462_v57  ;;  %v2394_v17 = vadd.f32 %v2393_v4, %v2323_v21  ;;  %v2768_v4 = vld [vmem:[#allocation2 + $0xab0] sm:$0xff]  ;;  %v2332_v59 = vadd.f32 %v2331_v38, %v12803_v37  ;;  %v2781_v37 = vld [vmem:[#allocation2 + $0xb18] sm:$0xff] }
 0x3af   : > { %3031 = vmatmul.f32.gmra.mxu0 %v2753_v29  ;;  %v2705_v38 = vld [vmem:[#allocation2 + $0x8b8] sm:$0xff] }
 0x3b0   : > { %9964 = vmatmul.msk.f32.gmra.mxu1 %vm1789_vm2, %v2533_v3  ;;  %v2465_v30 = vadd.f32 %v2464_v58, %v2394_v17  ;;  %v2776_v3 = vld [vmem:[#allocation2 + $0xaf0] sm:$0xff] }
 0x3b2   : > { %2895 = vmatmul.f32.gmra.mxu2 %v2761_v11  ;;  %2978 = vmatmul.f32.gmra.mxu3 %v2782_v39  ;;  %v2473_v11 = vpop.f32.mrf.mxu3 }
 0x3b5   : > { %v2396_v7 = vpop.f32.mrf.mxu2  ;;  %v2535_v9 = vpop.f32.mrf.mxu0 }
 0x3b6   : > { %v2536_v2 = vadd.f32 %v2535_v9, %v2465_v30  ;;  %v2397_v49 = vadd.f32 %v2396_v7, %v2326_v63  ;;  %v2773_v30 = vld [vmem:[#allocation2 + $0xad8] sm:$0xff]  ;;  %v2778_v63 = vld [vmem:[#allocation2 + $0xb00] sm:$0xff] }
 0x3b7   : > { %3034 = vmatmul.f32.gmra.mxu0 %v2758_v18 }
 0x3b8   : > { %9965 = vmatmul.msk.f32.gmra.mxu1 %vm1789_vm2, %v2536_v2  ;;  %v2468_v60 = vadd.f32 %v2467_v22, %v2397_v49  ;;  %v2699_v2 = vld [vmem:[#allocation2 + $0x888] sm:$0xff]  ;;  %v13022_v49 = vld [vmem:[%s11727_s23 + $0x78] sm:$0xff] }
 0x3ba   : > { %2898 = vmatmul.f32.gmra.mxu2 %v2766_v34  ;;  %v2700_v34 = vld [vmem:[#allocation2 + $0x890] sm:$0xff] }
 0x3bd   : > { %v2399_v53 = vpop.f32.mrf.mxu2  ;;  %v2538_v42 = vpop.f32.mrf.mxu0 }
 0x3be   : > { %v2539_v0 = vadd.f32 %v2538_v42, %v2468_v60  ;;  %v2400_v24 = vadd.f32 %v2399_v53, %v2329_v51  ;;  %v2783_v53 = vld [vmem:[#allocation2 + $0xb28] sm:$0xff]  ;;  %v2704_v42 = vld [vmem:[#allocation2 + $0x8b0] sm:$0xff] }
 0x3bf   : > { %3037 = vmatmul.f32.gmra.mxu0 %v2763_v5  ;;  %v13028_v5 = vld [vmem:[%s11727_s23 + $0x70] sm:$0xff] }
 0x3c0   : > { %9966 = vmatmul.msk.f32.gmra.mxu1 %vm1789_vm2, %v2539_v0  ;;  %v2471_v20 = vadd.f32 %v2470_v43, %v2400_v24  ;;  %v13034_v0 = vld [vmem:[%s11727_s23 + $0x68] sm:$0xff]  ;;  %v13043_v24 = vld [vmem:[%s11727_s23 + $0x58] sm:$0xff] }
 0x3c2   : > { %2901 = vmatmul.f32.gmra.mxu2 %v2771_v26  ;;  %v13038_v26 = vld [vmem:[%s11727_s23 + $0x60] sm:$0xff] }
 0x3c5   : > { %v2402_v57 = vpop.f32.mrf.mxu2  ;;  %v2541_v58 = vpop.f32.mrf.mxu0 }
 0x3c6   : > { %v2542_v29 = vadd.f32 %v2541_v58, %v2471_v20  ;;  %v13008_v21 = vpop.f32.mrf.mxu1  ;;  %v2403_v36 = vadd.f32 %v2402_v57, %v2332_v59  ;;  %v2709_v20 = vld [vmem:[#allocation2 + $0x8d8] sm:$0xff]  ;;  %v13049_v57 = vld [vmem:[%s11727_s23 + $0x50] sm:$0xff]  ;;  %v13055_v59 = vld [vmem:[%s11727_s23 + $0x48] sm:$0xff] }
 0x3c7   : > { %3040 = vmatmul.f32.gmra.mxu0 %v2768_v4  ;;  %v2710_v4 = vld [vmem:[#allocation2 + $0x8e0] sm:$0xff] }
 0x3c8   : > { %9967 = vmatmul.msk.f32.gmra.mxu1 %vm1789_vm2, %v2542_v29  ;;  %v2474_v17 = vadd.f32 %v2473_v11, %v2403_v36  ;;  %v13059_v29 = vld [vmem:[%s11727_s23 + $0x40] sm:$0xff] }
 0x3c9   : > { %v2714_v11 = vld [vmem:[#allocation2 + $0x900] sm:$0xff] }
 0x3ca   : > { %2904 = vmatmul.f32.gmra.mxu2 %v2776_v3  ;;  %v13064_v3 = vld [vmem:[%s11727_s23 + $0x38] sm:$0xff] }
 0x3cd   : > { %v2544_v39 = vpop.f32.mrf.mxu0  ;;  %v13011_v46 = vpop.f32.mrf.mxu2 }
 0x3ce   : > { %v2545_v7 = vadd.f32 %v2544_v39, %v2474_v17  ;;  %v13013_v9 = vpop.f32.mrf.mxu1  ;;  %v13070_v17 = vld [vmem:[%s11727_s23 + $0x30] sm:$0xff] }
 0x3cf   : > { %3043 = vmatmul.f32.gmra.mxu0 %v2773_v30  ;;  %15984 = vst [vmem:[#allocation96_spill] sm:$0xff] %v13070_v17  ;;  %v2715_v30 = vld [vmem:[#allocation2 + $0x908] sm:$0xff] }
 0x3d0   : > { %9968 = vmatmul.msk.f32.gmra.mxu1 %vm1789_vm2, %v2545_v7  ;;  %v13076_v7 = vld [vmem:[%s11727_s23 + $0x28] sm:$0xff] }
 0x3d1   : > { %15986 = vst [vmem:[#allocation98_spill] sm:$0xff] %v13076_v7 }
 0x3d2   : > { %2907 = vmatmul.f32.gmra.mxu2 %v2781_v37  ;;  %v13080_v37 = vld [vmem:[%s11727_s23 + $0x20] sm:$0xff] }
 0x3d3   : > { %15987 = vst [vmem:[#allocation99_spill] sm:$0xff] %v13080_v37 }
 0x3d5   : > { %v13016_v18 = vpop.f32.mrf.mxu2 }
 0x3d6   : > { %v13018_v22 = vpop.f32.mrf.mxu1 }
 0x3d7   : > { %3046 = vmatmul.f32.gmra.mxu0 %v2778_v63  ;;  %v13085_v63 = vld [vmem:[%s11727_s23 + $0x18] sm:$0xff] }
 0x3d8   : > { %3069 = vmatmul.f32.vlgmr.msrb.gmra.mxu1 %v2699_v2  ;;  %15988 = vst [vmem:[#allocation100_spill] sm:$0xff] %v13085_v63 }
 0x3da   : > { %9969 = vmatmul.msk.f32.vlgmr.msrb.gmra.mxu2 %vm876_vm0, %v2700_v34  ;;  %v2719_v34 = vld [vmem:[#allocation2 + $0x928] sm:$0xff] }
 0x3db   : > { %4136 = vmatpush.msrb.mxu2 %v13022_v49 }
 0x3dd   : > { %v13025_v60 = vpop.f32.mrf.mxu2  ;;  %4137 = vmatpush.msrb.mxu2 %v13028_v5 }
 0x3de   : > { %v13031_v51 = vpop.f32.mrf.mxu1 }
 0x3df   : > { %15982 = vst [vmem:[#allocation94_spill] sm:$0xff] %v13031_v51  ;;  %4138 = vmatpush.msrb.mxu2 %v13034_v0  ;;  %3049 = vmatmul.f32.gmra.mxu0 %v2783_v53  ;;  %v13091_v53 = vld [vmem:[%s11727_s23 + $0x10] sm:$0xff] }
 0x3e0   : > { %3072 = vmatmul.f32.gmra.mxu1 %v2704_v42  ;;  %15989 = vst [vmem:[#allocation101_spill] sm:$0xff] %v13091_v53 }
 0x3e1   : > { %4139 = vmatpush.msrb.mxu2 %v13038_v26 }
 0x3e2   : > { %9970 = vmatmul.msk.f32.gmra.mxu2 %vm876_vm0, %v2705_v38  ;;  %v2720_v38 = vld [vmem:[#allocation2 + $0x930] sm:$0xff] }
 0x3e3   : > { %4140 = vmatpush.msrb.mxu2 %v13043_v24 }
 0x3e5   : > { %v13046_v43 = vpop.f32.mrf.mxu2  ;;  %4141 = vmatpush.msrb.mxu2 %v13049_v57 }
 0x3e6   : > { %v13052_v58 = vpop.f32.mrf.mxu1 }
 0x3e7   : > { %15983 = vst [vmem:[#allocation95_spill] sm:$0xff] %v13052_v58  ;;  %4142 = vmatpush.msrb.mxu2 %v13055_v59  ;;  %v2725_v58 = vld [vmem:[#allocation2 + $0x958] sm:$0xff] }
 0x3e8   : > { %3075 = vmatmul.f32.gmra.mxu1 %v2709_v20  ;;  %v13097_v20 = vld [vmem:[%s11727_s23 + $0x8] sm:$0xff] }
 0x3e9   : > { %4143 = vmatpush.msrb.mxu2 %v13059_v29  ;;  %15991 = vst [vmem:[#allocation103_spill] sm:$0xff] %v13097_v20 }
 0x3ea   : > { %9971 = vmatmul.msk.f32.gmra.mxu2 %vm876_vm0, %v2710_v4  ;;  %v13101_v4 = vld [vmem:[%s11727_s23] sm:$0xff] }
 0x3eb   : > { %4144 = vmatpush.msrb.mxu2 %v13064_v3  ;;  %15992 = vst [vmem:[#allocation104_spill] sm:$0xff] %v13101_v4 }
 0x3ed   : > { %v13067_v36 = vpop.f32.mrf.mxu2  ;;  %4145 = vmatpush.msrb.mxu2 %v13070_v17  ;;  %v2750_v17 = vld [vmem:[#allocation2 + $0xa20] sm:$0xff] }
 0x3ee   : > { %v13073_v39 = vpop.f32.mrf.mxu1 }
 0x3ef   : > { %15985 = vst [vmem:[#allocation97_spill] sm:$0xff] %v13073_v39  ;;  %4146 = vmatpush.msrb.mxu2 %v13076_v7 }
 0x3f0   : > { %3078 = vmatmul.f32.gmra.mxu1 %v2714_v11 }
 0x3f1   : > { %4147 = vmatpush.msrb.mxu2 %v13080_v37 }
 0x3f2   : > { %9972 = vmatmul.msk.f32.gmra.mxu2 %vm876_vm0, %v2715_v30  ;;  %v2724_v30 = vld [vmem:[#allocation2 + $0x950] sm:$0xff] }
 0x3f3   : > { %4148 = vmatpush.msrb.mxu2 %v13085_v63  ;;  %v2735_v63 = vld [vmem:[#allocation2 + $0x9a8] sm:$0xff] }
 0x3f5   : > { %v13088_v2 = vpop.f32.mrf.mxu2  ;;  %4149 = vmatpush.msrb.mxu2 %v13091_v53  ;;  %v2729_v53 = vld [vmem:[#allocation2 + $0x978] sm:$0xff] }
 0x3f6   : > { %v13094_v42 = vpop.f32.mrf.mxu1 }
 0x3f7   : > { %15990 = vst [vmem:[#allocation102_spill] sm:$0xff] %v13094_v42  ;;  %4150 = vmatpush.msrb.mxu2 %v13097_v20 }
 0x3f8   : > { %3081 = vmatmul.f32.gmra.mxu1 %v2719_v34  ;;  %v2730_v34 = vld [vmem:[#allocation2 + $0x980] sm:$0xff] }
 0x3f9   : > { %4151 = vmatpush.msrb.mxu2 %v13101_v4 }
 0x3fa   : > { %9973 = vmatmul.msk.f32.gmra.mxu2 %vm876_vm0, %v2720_v38  ;;  %v2734_v38 = vld [vmem:[#allocation2 + $0x9a0] sm:$0xff] }
 0x3fd   : > { %v13105_v11 = vpop.f32.mrf.mxu2 }
 0x3fe   : > { %v13107_v39 = vpop.f32.mrf.mxu1 }
 0x3ff   : > { %15993 = vst [vmem:[#allocation105_spill] sm:$0xff] %v13107_v39  ;;  %v2739_v39 = vld [vmem:[#allocation2 + $0x9c8] sm:$0xff] }
 0x400   : > { %3084 = vmatmul.f32.gmra.mxu1 %v2724_v30  ;;  %v13120_v30 = vpop.f32.mrf.mxu0 }
 0x402   : > { %9974 = vmatmul.msk.f32.gmra.mxu2 %vm876_vm0, %v2725_v58 }
 0x405   : > { %v13110_v42 = vpop.f32.mrf.mxu2 }
 0x406   : > { %v13112_v20 = vpop.f32.mrf.mxu1 }
 0x407   : > { %15994 = vst [vmem:[#allocation106_spill] sm:$0xff] %v13112_v20  ;;  %v2740_v20 = vld [vmem:[#allocation2 + $0x9d0] sm:$0xff] }
 0x408   : > { %3087 = vmatmul.f32.gmra.mxu1 %v2729_v53  ;;  %v13129_v7 = vpop.f32.mrf.mxu0 }
 0x40a   : > { %9975 = vmatmul.msk.f32.gmra.mxu2 %vm876_vm0, %v2730_v34  ;;  %v2744_v34 = vld [vmem:[#allocation2 + $0x9f0] sm:$0xff] }
 0x40d   : > { %v13115_v4 = vpop.f32.mrf.mxu2 }
 0x40e   : > { %v13117_v51 = vpop.f32.mrf.mxu1 }
 0x40f   : > { %15995 = vst [vmem:[#allocation107_spill] sm:$0xff] %v13117_v51 }
 0x410   : > { %3090 = vmatmul.f32.gmra.mxu1 %v2734_v38  ;;  %v2745_v38 = vld [vmem:[#allocation2 + $0x9f8] sm:$0xff] }
 0x412   : > { %9976 = vmatmul.msk.f32.gmra.mxu2 %vm876_vm0, %v2735_v63  ;;  %v3196_v63 = vld [vmem:[#allocation10 + $0xc] sm:$0xf] }
 0x413   : > { %9987 = vmatpush.msk.msrb.mxu3 %vm1844_vm1, %v3196_v63 }
 0x415   : > { %v13122_v58 = vpop.f32.mrf.mxu2  ;;  %3701 = vmatpush.msra.mxu3 %v12703_v45 }
 0x416   : > { %v13124_v37 = vpop.f32.mrf.mxu1 }
 0x417   : > { %15996 = vst [vmem:[#allocation108_spill] sm:$0xff] %v13124_v37  ;;  %3702 = vmatpush.msra.mxu3 %v12707_v25  ;;  %v2754_v25 = vld [vmem:[#allocation2 + $0xa40] sm:$0xff] }
 0x418   : > { %3093 = vmatmul.f32.gmra.mxu1 %v2739_v39 }
 0x419   : > { %3703 = vmatpush.msra.mxu3 %v12713_v48  ;;  %v2755_v48 = vld [vmem:[#allocation2 + $0xa48] sm:$0xff] }
 0x41a   : > { %9977 = vmatmul.msk.f32.gmra.mxu2 %vm876_vm0, %v2740_v20  ;;  %v2749_v20 = vld [vmem:[#allocation2 + $0xa18] sm:$0xff] }
 0x41b   : > { %3704 = vmatpush.msra.mxu3 %v12721_v19 }
 0x41d   : > { %v13127_v53 = vpop.f32.mrf.mxu2  ;;  %3705 = vmatpush.msra.mxu3 %v12726_v62  ;;  %v2759_v62 = vld [vmem:[#allocation2 + $0xa68] sm:$0xff] }
 0x41e   : > { %v13131_v51 = vpop.f32.mrf.mxu1 }
 0x41f   : > { %15997 = vst [vmem:[#allocation109_spill] sm:$0xff] %v13131_v51  ;;  %v13142_v51 = vpop.f32.mrf.mxu0  ;;  %3706 = vmatpush.msra.mxu3 %v12730_v10 }
 0x420   : > { %3096 = vmatmul.f32.gmra.mxu1 %v2744_v34 }
 0x421   : > { %3707 = vmatpush.msra.mxu3 %v12734_v13  ;;  %v2760_v13 = vld [vmem:[#allocation2 + $0xa70] sm:$0xff] }
 0x422   : > { %9978 = vmatmul.msk.f32.gmra.mxu2 %vm876_vm0, %v2745_v38  ;;  %v2928_v38 = vpop.f32.mrf.mxu3 }
 0x423   : > { %3708 = vmatpush.msra.mxu3 %v12744_v52 }
 0x425   : > { %v13137_v39 = vpop.f32.mrf.mxu2  ;;  %3709 = vmatpush.msra.mxu3 %v12749_v47  ;;  %v2764_v47 = vld [vmem:[#allocation2 + $0xa90] sm:$0xff] }
 0x426   : > { %v13139_v37 = vpop.f32.mrf.mxu1 }
 0x427   : > { %v13154_v63 = vpop.f32.mrf.mxu0  ;;  %3710 = vmatpush.msra.mxu3 %v12753_v23 }
 0x428   : > { %3099 = vmatmul.f32.gmra.mxu1 %v2749_v20 }
 0x429   : > { %3711 = vmatpush.msra.mxu3 %v12757_v32  ;;  %v2765_v32 = vld [vmem:[#allocation2 + $0xa98] sm:$0xff] }
 0x42a   : > { %9979 = vmatmul.msk.f32.gmra.mxu2 %vm876_vm0, %v2750_v17  ;;  %v2931_v52 = vpop.f32.mrf.mxu3 }
 0x42b   : > { %3712 = vmatpush.msra.mxu3 %v12765_v1 }
 0x42d   : > { %v13148_v45 = vpop.f32.mrf.mxu2  ;;  %3713 = vmatpush.msra.mxu3 %v12772_v44 }
 0x42e   : > { %v13150_v34 = vpop.f32.mrf.mxu1 }
 0x42f   : > { %v13167_v17 = vpop.f32.mrf.mxu0  ;;  %3714 = vmatpush.msra.mxu3 %v12776_v35 }
 0x430   : > { %3102 = vmatmul.f32.gmra.mxu1 %v2754_v25  ;;  %v2769_v25 = vld [vmem:[#allocation2 + $0xab8] sm:$0xff] }
 0x431   : > { %3715 = vmatpush.msra.mxu3 %v12780_v12 }
 0x432   : > { %9980 = vmatmul.msk.f32.gmra.mxu2 %vm876_vm0, %v2755_v48  ;;  %v13177_v1 = vpop.f32.mrf.mxu3 }
 0x433   : > { %3716 = vmatpush.msra.mxu3 %v12788_v33  ;;  %v2774_v33 = vld [vmem:[#allocation2 + $0xae0] sm:$0xff] }
 0x435   : > { %v13159_v19 = vpop.f32.mrf.mxu2 }
 0x436   : > { %v13161_v10 = vpop.f32.mrf.mxu1 }
 0x437   : > { %v13181_v48 = vpop.f32.mrf.mxu0 }
 0x438   : > { %3105 = vmatmul.f32.gmra.mxu1 %v2759_v62  ;;  %v2770_v62 = vld [vmem:[#allocation2 + $0xac0] sm:$0xff] }
 0x43a   : > { %9981 = vmatmul.msk.f32.gmra.mxu2 %vm876_vm0, %v2760_v13  ;;  %v3344_v13 = vld [vmem:[#allocation2 + $0xb40] sm:$0xff] }
 0x43b   : > { %3504 = vmatmul.f32.vlgmr.msra.gmra.mxu0 %v3344_v13  ;;  %v2929_v13 = vadd.f32 %v2928_v38, %v13011_v46  ;;  %v2784_v46 = vld [vmem:[#allocation2 + $0xb30] sm:$0xff] }
 0x43c   : > { %4278 = vmatpush.msra.mxu0 %v12827_v15 }
 0x43d   : > { %v13170_v23 = vpop.f32.mrf.mxu2 }
 0x43e   : > { %v13172_v20 = vpop.f32.mrf.mxu1  ;;  %4279 = vmatpush.msra.mxu0 %v12837_v28  ;;  %v2779_v28 = vld [vmem:[#allocation2 + $0xb08] sm:$0xff] }
 0x43f   : > { %15998 = vst [vmem:[#allocation110_spill] sm:$0xff] %v13172_v20  ;;  %v13195_v20 = vpop.f32.mrf.mxu0 }
 0x440   : > { %3108 = vmatmul.f32.gmra.mxu1 %v2764_v47  ;;  %4280 = vmatpush.msra.mxu0 %v12849_v41 }
 0x442   : > { %9982 = vmatmul.msk.f32.gmra.mxu2 %vm876_vm0, %v2765_v32  ;;  %v13193_v32 = vpop.f32.mrf.mxu3  ;;  %4281 = vmatpush.msra.mxu0 %v12859_v50 }
 0x444   : > { %4282 = vmatpush.msra.mxu0 %v12868_v61  ;;  %v3000_v61 = vadd.f32 %v13120_v30, %v2929_v13  ;;  %v3359_v30 = vld [vmem:[#allocation2 + $0xbb8] sm:$0xff]  ;;  %v16001_v13 = vld [vmem:[#allocation90_spill] sm:$0xff] }
 0x445   : > { %v13179_v44 = vpop.f32.mrf.mxu2 }
 0x446   : > { %v13183_v35 = vpop.f32.mrf.mxu1  ;;  %4283 = vmatpush.msra.mxu0 %v12878_v56 }
 0x447   : > { %15999 = vst [vmem:[#allocation111_spill] sm:$0xff] %v13183_v35  ;;  %v2775_v35 = vld [vmem:[#allocation2 + $0xae8] sm:$0xff] }
 0x448   : > { %3111 = vmatmul.f32.gmra.mxu1 %v2769_v25  ;;  %v3349_v25 = vld [vmem:[#allocation2 + $0xb68] sm:$0xff]  ;;  %4284 = vmatpush.msra.mxu0 %v12887_v55 }
 0x449   : > { %3507 = vmatmul.f32.gmra.mxu0 %v3349_v25 }
 0x44a   : > { %9983 = vmatmul.msk.f32.gmra.mxu2 %vm876_vm0, %v2770_v62  ;;  %v2780_v62 = vld [vmem:[#allocation2 + $0xb10] sm:$0xff]  ;;  %4285 = vmatpush.msra.mxu0 %v12901_v54  ;;  %v13206_v50 = vpop.f32.mrf.mxu3  ;;  %v2785_v54 = vld [vmem:[#allocation2 + $0xb38] sm:$0xff] }
 0x44c   : > { %4286 = vmatpush.msra.mxu0 %v12912_v27 }
 0x44d   : > { %v13188_v12 = vpop.f32.mrf.mxu2 }
 0x44e   : > { %v13190_v47 = vpop.f32.mrf.mxu1  ;;  %4287 = vmatpush.msra.mxu0 %v12922_v40 }
 0x450   : > { %3114 = vmatmul.f32.gmra.mxu1 %v2774_v33  ;;  %v3354_v33 = vld [vmem:[#allocation2 + $0xb90] sm:$0xff]  ;;  %4288 = vmatpush.msra.mxu0 %v12931_v14 }
 0x451   : > { %3510 = vmatmul.f32.gmra.mxu0 %v3354_v33  ;;  %v3346_v33 = vld [vmem:[#allocation2 + $0xb50] sm:$0xff] }
 0x452   : > { %9984 = vmatmul.msk.f32.gmra.mxu2 %vm876_vm0, %v2775_v35  ;;  %v13209_v35 = vpop.f32.mrf.mxu0  ;;  %4289 = vmatpush.msra.mxu0 %v12943_v16  ;;  %v13221_v40 = vpop.f32.mrf.mxu3  ;;  %v16002_v16 = vld [vmem:[#allocation78_spill] sm:$0xff] }
 0x454   : > { %4290 = vmatpush.msra.mxu0 %v12954_v8  ;;  %v3364_v8 = vld [vmem:[#allocation2 + $0xbe0] sm:$0xff] }
 0x455   : > { %v13201_v15 = vpop.f32.mrf.mxu2 }
 0x456   : > { %v3070_v41 = vpop.f32.mrf.mxu1  ;;  %4291 = vmatpush.msra.mxu0 %v16001_v13  ;;  %v3369_v13 = vld [vmem:[#allocation2 + $0xc08] sm:$0xff] }
 0x457   : > { %v3071_v56 = vadd.f32 %v3070_v41, %v3000_v61  ;;  %v3345_v41 = vld [vmem:[#allocation2 + $0xb48] sm:$0xff] }
 0x458   : > { %3117 = vmatmul.f32.gmra.mxu1 %v2779_v28  ;;  %v2932_v28 = vadd.f32 %v2931_v52, %v13016_v18  ;;  %v16003_v61 = vld [vmem:[#allocation79_spill] sm:$0xff] }
 0x459   : > { %3513 = vmatmul.f32.gmra.mxu0 %v3359_v30  ;;  %v16007_v30 = vld [vmem:[#allocation81_spill] sm:$0xff] }
 0x45a   : > { %9985 = vmatmul.msk.f32.gmra.mxu2 %vm876_vm0, %v2780_v62  ;;  %v3003_v27 = vadd.f32 %v13129_v7, %v2932_v28  ;;  %v13224_v14 = vpop.f32.mrf.mxu0  ;;  %v16000_v62 = vld [vmem:[#allocation77_spill] sm:$0xff]  ;;  %v3350_v28 = vld [vmem:[#allocation2 + $0xb70] sm:$0xff] }
 0x45d   : > { %v3141_v55 = vpop.f32.mrf.mxu2 }
 0x45e   : > { %v3073_v38 = vpop.f32.mrf.mxu1  ;;  %v3142_v25 = vadd.f32 %v3141_v55, %v3071_v56  ;;  %v16004_v55 = vld [vmem:[#allocation92_spill] sm:$0xff] }
 0x45f   : > { %v3074_v18 = vadd.f32 %v3073_v38, %v3003_v27  ;;  %4292 = vmatpush.msra.mxu0 %v16004_v55  ;;  %v13238_v38 = vld [vmem:[%s11727_s23 + $0x238] sm:$0xff] }
 0x460   : > { %3120 = vmatmul.f32.gmra.mxu1 %v2784_v46  ;;  %9988 = vmatmul.msk.f32.vlgmr.msrb.gmra.mxu3 %vm1789_vm2, %v3142_v25  ;;  %v16005_v46 = vld [vmem:[#allocation80_spill] sm:$0xff]  ;;  %v13242_v25 = vpop.f32.mrf.mxu3 }
 0x461   : > { %4207 = vmatpush.msrb.mxu3 %v12819_v31  ;;  %3516 = vmatmul.f32.gmra.mxu0 %v3364_v8  ;;  %v13263_v8 = vld [vmem:[%s11727_s23 + $0x220] sm:$0xff]  ;;  %v13268_v55 = vld [vmem:[%s11727_s23 + $0x218] sm:$0xff] }
 0x462   : > { %9986 = vmatmul.msk.f32.gmra.mxu2 %vm876_vm0, %v2785_v54  ;;  %v13249_v27 = vpop.f32.mrf.mxu0 }
 0x463   : > { %4208 = vmatpush.msrb.mxu3 %v12823_v6  ;;  %v2935_v6 = vadd.f32 %v13177_v1, %v13025_v60  ;;  %v16006_v1 = vld [vmem:[#allocation93_spill] sm:$0xff] }
 0x464   : > { %4293 = vmatpush.msra.mxu0 %v16006_v1  ;;  %v3356_v1 = vld [vmem:[#allocation2 + $0xba0] sm:$0xff] }
 0x465   : > { %v3144_v52 = vpop.f32.mrf.mxu2  ;;  %4209 = vmatpush.msrb.mxu3 %v16000_v62  ;;  %v3006_v56 = vadd.f32 %v13142_v51, %v2935_v6  ;;  %v13246_v51 = vld [vmem:[%s11727_s23 + $0x230] sm:$0xff]  ;;  %v16008_v62 = vld [vmem:[#allocation82_spill] sm:$0xff] }
 0x466   : > { %v3076_v31 = vpop.f32.mrf.mxu1  ;;  %v3145_v7 = vadd.f32 %v3144_v52, %v3074_v18  ;;  %v16010_v6 = vld [vmem:[#allocation84_spill] sm:$0xff] }
 0x467   : > { %4210 = vmatpush.msrb.mxu3 %v16002_v16  ;;  %v3077_v60 = vadd.f32 %v3076_v31, %v3006_v56  ;;  %v13253_v31 = vld [vmem:[%s11727_s23 + $0x228] sm:$0xff] }
 0x468   : > { %9989 = vmatmul.msk.f32.gmra.mxu3 %vm1789_vm2, %v3145_v7  ;;  %3575 = vmatmul.f32.vlgmr.msra.gmra.mxu1 %v3345_v41  ;;  %v3351_v41 = vld [vmem:[#allocation2 + $0xb78] sm:$0xff]  ;;  %v2938_v7 = vadd.f32 %v13193_v32, %v13046_v43 }
 0x469   : > { %4211 = vmatpush.msrb.mxu3 %v16003_v61  ;;  %3519 = vmatmul.f32.gmra.mxu0 %v3369_v13  ;;  %v3355_v43 = vld [vmem:[#allocation2 + $0xb98] sm:$0xff]  ;;  %v13285_v13 = vld [vmem:[%s11727_s23 + $0x208] sm:$0xff] }
 0x46a   : > { %3646 = vmatmul.f32.vlgmr.msra.gmra.mxu2 %v3346_v33  ;;  %v16009_v33 = vld [vmem:[#allocation83_spill] sm:$0xff]  ;;  %v3009_v16 = vadd.f32 %v13154_v63, %v2938_v7  ;;  %v16011_v32 = vld [vmem:[#allocation85_spill] sm:$0xff]  ;;  %v2949_v63 = vpop.f32.mrf.mxu3  ;;  %v16014_v7 = vld [vmem:[#allocation88_spill] sm:$0xff] }
 0x46b   : > { %4212 = vmatpush.msrb.mxu3 %v16005_v46  ;;  %4428 = vmatpush.msra.mxu2 %v13238_v38 }
 0x46d   : > { %v3147_v54 = vpop.f32.mrf.mxu2  ;;  %4213 = vmatpush.msrb.mxu3 %v16007_v30  ;;  %4429 = vmatpush.msra.mxu2 %v13246_v51  ;;  %v2941_v30 = vadd.f32 %v13206_v50, %v13067_v36 }
 0x46e   : > { %v3079_v18 = vpop.f32.mrf.mxu1  ;;  %v3148_v52 = vadd.f32 %v3147_v54, %v3077_v60  ;;  %v16012_v54 = vld [vmem:[#allocation86_spill] sm:$0xff] }
 0x46f   : > { %4214 = vmatpush.msrb.mxu3 %v16008_v62  ;;  %4430 = vmatpush.msra.mxu2 %v13253_v31  ;;  %v3080_v61 = vadd.f32 %v3079_v18, %v3009_v16  ;;  %v13278_v18 = vpop.f32.mrf.mxu0  ;;  %v3012_v62 = vadd.f32 %v13167_v17, %v2941_v30  ;;  %v16015_v16 = vld [vmem:[#allocation89_spill] sm:$0xff]  ;;  %v16016_v17 = vld [vmem:[#allocation91_spill] sm:$0xff] }
 0x470   : > { %9990 = vmatmul.msk.f32.gmra.mxu3 %vm1789_vm2, %v3148_v52  ;;  %3578 = vmatmul.f32.gmra.mxu1 %v3350_v28  ;;  %v13273_v28 = vld [vmem:[%s11727_s23 + $0x210] sm:$0xff] }
 0x471   : > { %4215 = vmatpush.msrb.mxu3 %v16009_v33  ;;  %4431 = vmatpush.msra.mxu2 %v13263_v8  ;;  %v3374_v52 = vld [vmem:[#allocation2 + $0xc30] sm:$0xff]  ;;  %v3360_v33 = vld [vmem:[#allocation2 + $0xbc0] sm:$0xff] }
 0x472   : > { %3649 = vmatmul.f32.gmra.mxu2 %v3351_v41  ;;  %3522 = vmatmul.f32.gmra.mxu0 %v3374_v52  ;;  %v16013_v41 = vld [vmem:[#allocation87_spill] sm:$0xff] }
 0x473   : > { %4216 = vmatpush.msrb.mxu3 %v16010_v6  ;;  %4432 = vmatpush.msra.mxu2 %v13268_v55  ;;  %v13290_v6 = vld [vmem:[%s11727_s23 + $0x200] sm:$0xff] }
 0x475   : > { %v3150_v56 = vpop.f32.mrf.mxu2  ;;  %4217 = vmatpush.msrb.mxu3 %v16011_v32  ;;  %4433 = vmatpush.msra.mxu2 %v13273_v28  ;;  %v2944_v32 = vadd.f32 %v13221_v40, %v13088_v2  ;;  %v2947_v2 = vadd.f32 %v13242_v25, %v13105_v11  ;;  %v3384_v40 = vld [vmem:[#allocation2 + $0xc80] sm:$0xff]  ;;  %v3389_v11 = vld [vmem:[#allocation2 + $0xca8] sm:$0xff] }
 0x476   : > { %v3082_v46 = vpop.f32.mrf.mxu1  ;;  %v3151_v60 = vadd.f32 %v3150_v56, %v3080_v61 }
 0x477   : > { %4218 = vmatpush.msrb.mxu3 %v16012_v54  ;;  %4434 = vmatpush.msra.mxu2 %v13285_v13  ;;  %v3083_v36 = vadd.f32 %v3082_v46, %v3012_v62  ;;  %v3379_v46 = vld [vmem:[#allocation2 + $0xc58] sm:$0xff]  ;;  %v13298_v54 = vpop.f32.mrf.mxu0 }
 0x478   : > { %9991 = vmatmul.msk.f32.gmra.mxu3 %vm1789_vm2, %v3151_v60  ;;  %3581 = vmatmul.f32.gmra.mxu1 %v3355_v43  ;;  %v3361_v43 = vld [vmem:[#allocation2 + $0xbc8] sm:$0xff]  ;;  %v2952_v60 = vpop.f32.mrf.mxu3 }
 0x479   : > { %4219 = vmatpush.msrb.mxu3 %v16013_v41  ;;  %4435 = vmatpush.msra.mxu2 %v13290_v6  ;;  %v3365_v41 = vld [vmem:[#allocation2 + $0xbe8] sm:$0xff] }
 0x47a   : > { %3652 = vmatmul.f32.gmra.mxu2 %v3356_v1  ;;  %3525 = vmatmul.f32.gmra.mxu0 %v3379_v46  ;;  %v3015_v1 = vadd.f32 %v13181_v48, %v2944_v32  ;;  %v3371_v32 = vld [vmem:[#allocation2 + $0xc18] sm:$0xff]  ;;  %v2950_v46 = vadd.f32 %v2949_v63, %v13110_v42  ;;  %v3394_v42 = vld [vmem:[#allocation2 + $0xcd0] sm:$0xff] }
 0x47b   : > { %4220 = vmatpush.msrb.mxu3 %v16014_v7 }
 0x47c   : > { %v3021_v25 = vadd.f32 %v13209_v35, %v2950_v46 }
 0x47d   : > { %v3153_v50 = vpop.f32.mrf.mxu2  ;;  %4221 = vmatpush.msrb.mxu3 %v16015_v16 }
 0x47e   : > { %v3085_v61 = vpop.f32.mrf.mxu1  ;;  %v3154_v56 = vadd.f32 %v3153_v50, %v3083_v36  ;;  %v3366_v36 = vld [vmem:[#allocation2 + $0xbf0] sm:$0xff]  ;;  %v3018_v50 = vadd.f32 %v13195_v20, %v2947_v2  ;;  %v2953_v2 = vadd.f32 %v2952_v60, %v13115_v4  ;;  %v3399_v4 = vld [vmem:[#allocation2 + $0xcf8] sm:$0xff] }
 0x47f   : > { %4222 = vmatpush.msrb.mxu3 %v16016_v17  ;;  %v3086_v30 = vadd.f32 %v3085_v61, %v3015_v1 }
 0x480   : > { %9992 = vmatmul.msk.f32.gmra.mxu3 %vm1789_vm2, %v3154_v56  ;;  %3584 = vmatmul.f32.gmra.mxu1 %v3360_v33  ;;  %v2955_v48 = vpop.f32.mrf.mxu3  ;;  %v13304_v33 = vpop.f32.mrf.mxu0  ;;  %v3370_v56 = vld [vmem:[#allocation2 + $0xc10] sm:$0xff]  ;;  %v3024_v63 = vadd.f32 %v13224_v14, %v2953_v2 }
 0x481   : > { %v3390_v2 = vld [vmem:[#allocation2 + $0xcb0] sm:$0xff] }
 0x482   : > { %3655 = vmatmul.f32.gmra.mxu2 %v3361_v43  ;;  %3528 = vmatmul.f32.gmra.mxu0 %v3384_v40 }
 0x485   : > { %v3156_v52 = vpop.f32.mrf.mxu2 }
 0x486   : > { %v3088_v62 = vpop.f32.mrf.mxu1  ;;  %v3157_v7 = vadd.f32 %v3156_v52, %v3086_v30  ;;  %v3375_v52 = vld [vmem:[#allocation2 + $0xc38] sm:$0xff] }
 0x487   : > { %v3089_v16 = vadd.f32 %v3088_v62, %v3018_v50  ;;  %v3380_v50 = vld [vmem:[#allocation2 + $0xc60] sm:$0xff] }
 0x488   : > { %9993 = vmatmul.msk.f32.gmra.mxu3 %vm1789_vm2, %v3157_v7  ;;  %3587 = vmatmul.f32.gmra.mxu1 %v3365_v41  ;;  %v2958_v1 = vpop.f32.mrf.mxu3  ;;  %v13309_v41 = vpop.f32.mrf.mxu0 }
 0x48a   : > { %3658 = vmatmul.f32.gmra.mxu2 %v3366_v36  ;;  %3531 = vmatmul.f32.gmra.mxu0 %v3389_v11  ;;  %v3376_v36 = vld [vmem:[#allocation2 + $0xc40] sm:$0xff]  ;;  %v3385_v11 = vld [vmem:[#allocation2 + $0xc88] sm:$0xff] }
 0x48d   : > { %v3159_v61 = vpop.f32.mrf.mxu2 }
 0x48e   : > { %v3091_v43 = vpop.f32.mrf.mxu1  ;;  %v3160_v17 = vadd.f32 %v3159_v61, %v3089_v16 }
 0x48f   : > { %v3092_v20 = vadd.f32 %v3091_v43, %v3021_v25  ;;  %v3381_v43 = vld [vmem:[#allocation2 + $0xc68] sm:$0xff] }
 0x490   : > { %9994 = vmatmul.msk.f32.gmra.mxu3 %vm1789_vm2, %v3160_v17  ;;  %3590 = vmatmul.f32.gmra.mxu1 %v3370_v56  ;;  %v2961_v56 = vpop.f32.mrf.mxu3  ;;  %v2956_v17 = vadd.f32 %v2955_v48, %v13122_v58  ;;  %v3404_v58 = vld [vmem:[#allocation2 + $0xd20] sm:$0xff] }
 0x492   : > { %3661 = vmatmul.f32.gmra.mxu2 %v3371_v32  ;;  %3534 = vmatmul.f32.gmra.mxu0 %v3394_v42  ;;  %v13315_v32 = vpop.f32.mrf.mxu0  ;;  %v3027_v60 = vadd.f32 %v13249_v27, %v2956_v17 }
 0x495   : > { %v3162_v30 = vpop.f32.mrf.mxu2 }
 0x496   : > { %v3094_v62 = vpop.f32.mrf.mxu1  ;;  %v3163_v7 = vadd.f32 %v3162_v30, %v3092_v20  ;;  %v3386_v30 = vld [vmem:[#allocation2 + $0xc90] sm:$0xff] }
 0x497   : > { %v3095_v35 = vadd.f32 %v3094_v62, %v3024_v63 }
 0x498   : > { %9995 = vmatmul.msk.f32.gmra.mxu3 %vm1789_vm2, %v3163_v7  ;;  %3593 = vmatmul.f32.gmra.mxu1 %v3375_v52  ;;  %v2959_v52 = vadd.f32 %v2958_v1, %v13127_v53  ;;  %v2964_v48 = vpop.f32.mrf.mxu3  ;;  %v3409_v53 = vld [vmem:[#allocation2 + $0xd48] sm:$0xff] }
 0x49a   : > { %3664 = vmatmul.f32.gmra.mxu2 %v3376_v36  ;;  %3537 = vmatmul.f32.gmra.mxu0 %v3399_v4  ;;  %v3030_v62 = vadd.f32 %v13278_v18, %v2959_v52  ;;  %v13322_v7 = vpop.f32.mrf.mxu0 }
 0x49d   : > { %v3165_v40 = vpop.f32.mrf.mxu2 }
 0x49e   : > { %v3097_v16 = vpop.f32.mrf.mxu1  ;;  %v3166_v61 = vadd.f32 %v3165_v40, %v3095_v35  ;;  %v3391_v35 = vld [vmem:[#allocation2 + $0xcb8] sm:$0xff]  ;;  %v2962_v40 = vadd.f32 %v2961_v56, %v13137_v39  ;;  %v3414_v39 = vld [vmem:[#allocation2 + $0xd70] sm:$0xff] }
 0x49f   : > { %v3098_v14 = vadd.f32 %v3097_v16, %v3027_v60  ;;  %v3396_v60 = vld [vmem:[#allocation2 + $0xce0] sm:$0xff] }
 0x4a0   : > { %9996 = vmatmul.msk.f32.gmra.mxu3 %vm1789_vm2, %v3166_v61  ;;  %3596 = vmatmul.f32.gmra.mxu1 %v3380_v50  ;;  %v3033_v1 = vadd.f32 %v13298_v54, %v2962_v40  ;;  %v2967_v18 = vpop.f32.mrf.mxu3  ;;  %v3406_v40 = vld [vmem:[#allocation2 + $0xd30] sm:$0xff] }
 0x4a2   : > { %3667 = vmatmul.f32.gmra.mxu2 %v3381_v43  ;;  %3540 = vmatmul.f32.gmra.mxu0 %v3404_v58  ;;  %v13327_v50 = vpop.f32.mrf.mxu0  ;;  %v3395_v43 = vld [vmem:[#allocation2 + $0xcd8] sm:$0xff]  ;;  %v3401_v58 = vld [vmem:[#allocation2 + $0xd08] sm:$0xff] }
 0x4a5   : > { %v3168_v46 = vpop.f32.mrf.mxu2 }
 0x4a6   : > { %v3100_v25 = vpop.f32.mrf.mxu1  ;;  %v3169_v20 = vadd.f32 %v3168_v46, %v3098_v14  ;;  %v2965_v14 = vadd.f32 %v2964_v48, %v13148_v45  ;;  %v3419_v45 = vld [vmem:[#allocation2 + $0xd98] sm:$0xff] }
 0x4a7   : > { %v3101_v27 = vadd.f32 %v3100_v25, %v3030_v62  ;;  %v3400_v25 = vld [vmem:[#allocation2 + $0xd00] sm:$0xff]  ;;  %v2968_v62 = vadd.f32 %v2967_v18, %v13159_v19 }
 0x4a8   : > { %9997 = vmatmul.msk.f32.gmra.mxu3 %vm1789_vm2, %v3169_v20  ;;  %3599 = vmatmul.f32.gmra.mxu1 %v3385_v11  ;;  %v3036_v56 = vadd.f32 %v13304_v33, %v2965_v14  ;;  %v2970_v46 = vpop.f32.mrf.mxu3  ;;  %v3424_v19 = vld [vmem:[#allocation2 + $0xdc0] sm:$0xff] }
 0x4a9   : > { %v3039_v48 = vadd.f32 %v13309_v41, %v2968_v62 }
 0x4aa   : > { %3670 = vmatmul.f32.gmra.mxu2 %v3386_v30  ;;  %3543 = vmatmul.f32.gmra.mxu0 %v3409_v53  ;;  %v13332_v20 = vpop.f32.mrf.mxu0  ;;  %v2971_v53 = vadd.f32 %v2970_v46, %v13170_v23 }
 0x4ad   : > { %v3171_v36 = vpop.f32.mrf.mxu2 }
 0x4ae   : > { %v3103_v42 = vpop.f32.mrf.mxu1  ;;  %v3172_v63 = vadd.f32 %v3171_v36, %v3101_v27  ;;  %v3405_v36 = vld [vmem:[#allocation2 + $0xd28] sm:$0xff] }
 0x4af   : > { %v3104_v16 = vadd.f32 %v3103_v42, %v3033_v1  ;;  %v3042_v1 = vadd.f32 %v13315_v32, %v2971_v53 }
 0x4b0   : > { %9998 = vmatmul.msk.f32.gmra.mxu3 %vm1789_vm2, %v3172_v63  ;;  %3602 = vmatmul.f32.gmra.mxu1 %v3390_v2 }
 0x4b2   : > { %3673 = vmatmul.f32.gmra.mxu2 %v3391_v35  ;;  %3546 = vmatmul.f32.gmra.mxu0 %v3414_v39  ;;  %v2973_v35 = vpop.f32.mrf.mxu3 }
 0x4b3   : > { %v2974_v14 = vadd.f32 %v2973_v35, %v13179_v44  ;;  %v3348_v44 = vld [vmem:[#allocation2 + $0xb60] sm:$0xff] }
 0x4b5   : > { %v3174_v61 = vpop.f32.mrf.mxu2  ;;  %v3045_v39 = vadd.f32 %v13322_v7, %v2974_v14 }
 0x4b6   : > { %v3106_v17 = vpop.f32.mrf.mxu1  ;;  %v3175_v4 = vadd.f32 %v3174_v61, %v3104_v16  ;;  %v3410_v16 = vld [vmem:[#allocation2 + $0xd50] sm:$0xff] }
 0x4b7   : > { %v3107_v54 = vadd.f32 %v3106_v17, %v3036_v56 }
 0x4b8   : > { %9999 = vmatmul.msk.f32.gmra.mxu3 %vm1789_vm2, %v3175_v4  ;;  %3605 = vmatmul.f32.gmra.mxu1 %v3395_v43  ;;  %v13337_v63 = vpop.f32.mrf.mxu0  ;;  %v3411_v4 = vld [vmem:[#allocation2 + $0xd58] sm:$0xff] }
 0x4ba   : > { %3676 = vmatmul.f32.gmra.mxu2 %v3396_v60  ;;  %3549 = vmatmul.f32.gmra.mxu0 %v3419_v45  ;;  %v3429_v60 = vld [vmem:[#allocation2 + $0xde8] sm:$0xff]  ;;  %v2976_v23 = vpop.f32.mrf.mxu3 }
 0x4bd   : > { %v3177_v11 = vpop.f32.mrf.mxu2 }
 0x4be   : > { %v3109_v30 = vpop.f32.mrf.mxu1  ;;  %v3178_v52 = vadd.f32 %v3177_v11, %v3107_v54  ;;  %v3415_v54 = vld [vmem:[#allocation2 + $0xd78] sm:$0xff] }
 0x4bf   : > { %v3110_v33 = vadd.f32 %v3109_v30, %v3039_v48  ;;  %v3416_v30 = vld [vmem:[#allocation2 + $0xd80] sm:$0xff] }
 0x4c0   : > { %10000 = vmatmul.msk.f32.gmra.mxu3 %vm1789_vm2, %v3178_v52  ;;  %3608 = vmatmul.f32.gmra.mxu1 %v3400_v25  ;;  %v2977_v52 = vadd.f32 %v2976_v23, %v13188_v12  ;;  %v3420_v48 = vld [vmem:[#allocation2 + $0xda0] sm:$0xff]  ;;  %v3421_v12 = vld [vmem:[#allocation2 + $0xda8] sm:$0xff]  ;;  %v3431_v23 = vld [vmem:[#allocation2 + $0xdf8] sm:$0xff] }
 0x4c2   : > { %3679 = vmatmul.f32.gmra.mxu2 %v3401_v58  ;;  %3552 = vmatmul.f32.gmra.mxu0 %v3424_v19  ;;  %v3048_v58 = vadd.f32 %v13327_v50, %v2977_v52  ;;  %v2979_v7 = vpop.f32.mrf.mxu3  ;;  %v16028_v52 = vld [vmem:[#allocation99_spill] sm:$0xff] }
 0x4c3   : > { %v2980_v50 = vadd.f32 %v2979_v7, %v13201_v15 }
 0x4c5   : > { %v3180_v27 = vpop.f32.mrf.mxu2 }
 0x4c6   : > { %v3112_v2 = vpop.f32.mrf.mxu1  ;;  %v3181_v42 = vadd.f32 %v3180_v27, %v3110_v33  ;;  %v13342_v17 = vpop.f32.mrf.mxu0 }
 0x4c7   : > { %v3113_v41 = vadd.f32 %v3112_v2, %v3042_v1  ;;  %v16018_v2 = vld [vmem:[#allocation42_spill] sm:$0xff] }
 0x4c8   : > { %10001 = vmatmul.msk.f32.gmra.mxu3 %vm1789_vm2, %v3181_v42  ;;  %3611 = vmatmul.f32.gmra.mxu1 %v3405_v36  ;;  %v16017_v36 = vld [vmem:[#allocation49_spill] sm:$0xff]  ;;  %v3425_v1 = vld [vmem:[#allocation2 + $0xdc8] sm:$0xff] }
 0x4c9   : > { %v1994_v42 = vadd.f32 %v16018_v2, %v16017_v36  ;;  %v16035_v2 = vld [vmem:[#allocation103_spill] sm:$0xff] }
 0x4ca   : > { %3682 = vmatmul.f32.gmra.mxu2 %v3406_v40  ;;  %3555 = vmatmul.f32.gmra.mxu0 %v3429_v60  ;;  %v3051_v40 = vadd.f32 %v13332_v20, %v2980_v50  ;;  %v3347_v60 = vld [vmem:[#allocation2 + $0xb58] sm:$0xff] }
 0x4cd   : > { %v3183_v18 = vpop.f32.mrf.mxu2 }
 0x4ce   : > { %v3115_v61 = vpop.f32.mrf.mxu1  ;;  %v3184_v43 = vadd.f32 %v3183_v18, %v3113_v41  ;;  %v13347_v11 = vpop.f32.mrf.mxu0 }
 0x4cf   : > { %v3116_v32 = vadd.f32 %v3115_v61, %v3045_v39  ;;  %v16021_v61 = vld [vmem:[#allocation43_spill] sm:$0xff]  ;;  %v16023_v39 = vld [vmem:[#allocation52_spill] sm:$0xff] }
 0x4d0   : > { %10002 = vmatmul.msk.f32.gmra.mxu3 %vm1789_vm2, %v3184_v43  ;;  %3614 = vmatmul.f32.gmra.mxu1 %v3410_v16  ;;  %v3426_v16 = vld [vmem:[#allocation2 + $0xdd0] sm:$0xff] }
 0x4d2   : > { %3685 = vmatmul.f32.gmra.mxu2 %v3411_v4  ;;  %10006 = vmatmul.msk.f32.vlgmr.msrb.gmra.mxu0 %vm876_vm0, %v3348_v44  ;;  %v16029_v44 = vld [vmem:[#allocation54_spill] sm:$0xff] }
 0x4d3   : > { %4784 = vmatpush.msrb.mxu0 %v13022_v49  ;;  %v3353_v49 = vld [vmem:[#allocation2 + $0xb88] sm:$0xff] }
 0x4d5   : > { %v3186_v56 = vpop.f32.mrf.mxu2  ;;  %4785 = vmatpush.msrb.mxu0 %v13028_v5  ;;  %v2677_v5 = vadd.f32 %v13008_v21, %v1994_v42  ;;  %v16020_v21 = vld [vmem:[#allocation51_spill] sm:$0xff] }
 0x4d6   : > { %v3187_v46 = vadd.f32 %v3186_v56, %v3116_v32  ;;  %v3118_v25 = vpop.f32.mrf.mxu1  ;;  %v13355_v27 = vpop.f32.mrf.mxu0  ;;  %v1997_v20 = vadd.f32 %v16021_v61, %v16020_v21  ;;  %v16024_v32 = vld [vmem:[#allocation44_spill] sm:$0xff]  ;;  %v3357_v42 = vld [vmem:[#allocation2 + $0xba8] sm:$0xff] }
 0x4d7   : > { %v3119_v62 = vadd.f32 %v3118_v25, %v3048_v58  ;;  %4786 = vmatpush.msrb.mxu0 %v13034_v0  ;;  %v2000_v56 = vadd.f32 %v16024_v32, %v16023_v39  ;;  %v16027_v25 = vld [vmem:[#allocation98_spill] sm:$0xff]  ;;  %v16030_v58 = vld [vmem:[#allocation45_spill] sm:$0xff] }
 0x4d8   : > { %10003 = vmatmul.msk.f32.gmra.mxu3 %vm1789_vm2, %v3187_v46  ;;  %3617 = vmatmul.f32.gmra.mxu1 %v3415_v54  ;;  %v2678_v43 = vadd.f32 %v13013_v9, %v1997_v20  ;;  %v3363_v9 = vld [vmem:[#allocation2 + $0xbd8] sm:$0xff]  ;;  %v2003_v7 = vadd.f32 %v16030_v58, %v16029_v44  ;;  %v16041_v61 = vld [vmem:[#allocation58_spill] sm:$0xff]  ;;  %v16042_v20 = vld [vmem:[#allocation47_spill] sm:$0xff] }
 0x4d9   : > { %4787 = vmatpush.msrb.mxu0 %v13038_v26  ;;  %v3358_v26 = vld [vmem:[#allocation2 + $0xbb0] sm:$0xff]  ;;  %v3367_v39 = vld [vmem:[#allocation2 + $0xbf8] sm:$0xff]  ;;  %v3372_v44 = vld [vmem:[#allocation2 + $0xc20] sm:$0xff] }
 0x4da   : > { %3688 = vmatmul.f32.gmra.mxu2 %v3416_v30  ;;  %10007 = vmatmul.msk.f32.gmra.mxu0 %vm876_vm0, %v3353_v49  ;;  %v16025_v54 = vld [vmem:[#allocation96_spill] sm:$0xff] }
 0x4db   : > { %4788 = vmatpush.msrb.mxu0 %v13043_v24  ;;  %v16036_v49 = vld [vmem:[#allocation104_spill] sm:$0xff] }
 0x4dd   : > { %v3189_v45 = vpop.f32.mrf.mxu2  ;;  %4789 = vmatpush.msrb.mxu0 %v13049_v57  ;;  %v3430_v57 = vld [vmem:[#allocation2 + $0xdf0] sm:$0xff] }
 0x4de   : > { %v3190_v33 = vadd.f32 %v3189_v45, %v3119_v62  ;;  %v3121_v35 = vpop.f32.mrf.mxu1  ;;  %v13369_v18 = vpop.f32.mrf.mxu0  ;;  %v3368_v62 = vld [vmem:[#allocation2 + $0xc00] sm:$0xff]  ;;  %v16031_v45 = vld [vmem:[#allocation100_spill] sm:$0xff] }
 0x4df   : > { %v3122_v53 = vadd.f32 %v3121_v35, %v3051_v40  ;;  %4790 = vmatpush.msrb.mxu0 %v13055_v59  ;;  %v2679_v59 = vadd.f32 %v13018_v22, %v2000_v56  ;;  %v16032_v22 = vld [vmem:[#allocation94_spill] sm:$0xff]  ;;  %v16037_v35 = vld [vmem:[#allocation56_spill] sm:$0xff] }
 0x4e0   : > { %10004 = vmatmul.msk.f32.gmra.mxu3 %vm1789_vm2, %v3190_v33  ;;  %3620 = vmatmul.f32.gmra.mxu1 %v3420_v48  ;;  %v2680_v48 = vadd.f32 %v16032_v22, %v2003_v7  ;;  %v16033_v33 = vld [vmem:[#allocation101_spill] sm:$0xff]  ;;  %v16045_v56 = vld [vmem:[#allocation60_spill] sm:$0xff] }
 0x4e1   : > { %4791 = vmatpush.msrb.mxu0 %v13059_v29  ;;  %v16049_v7 = vld [vmem:[#allocation61_spill] sm:$0xff] }
 0x4e2   : > { %3691 = vmatmul.f32.gmra.mxu2 %v3421_v12  ;;  %10008 = vmatmul.msk.f32.gmra.mxu0 %vm876_vm0, %v3358_v26  ;;  %v2009_v26 = vadd.f32 %v16042_v20, %v16041_v61  ;;  %v3388_v22 = vld [vmem:[#allocation2 + $0xca0] sm:$0xff]  ;;  %v3382_v61 = vld [vmem:[#allocation2 + $0xc70] sm:$0xff] }
 0x4e3   : > { %v3271_v0 = vpop.f32.mrf.mxu3  ;;  %4792 = vmatpush.msrb.mxu0 %v13064_v3  ;;  %v3352_v3 = vld [vmem:[#allocation2 + $0xb80] sm:$0xff] }
 0x4e4   : > { %v13366_v19 = vadd.f32 %v3271_v0, %v2677_v5  ;;  %v16038_v5 = vld [vmem:[#allocation46_spill] sm:$0xff] }
 0x4e5   : > { %v3192_v15 = vpop.f32.mrf.mxu2  ;;  %4793 = vmatpush.msrb.mxu0 %v16025_v54  ;;  %v2006_v40 = vadd.f32 %v16038_v5, %v16037_v35  ;;  %v3373_v0 = vld [vmem:[#allocation2 + $0xc28] sm:$0xff]  ;;  %v3383_v54 = vld [vmem:[#allocation2 + $0xc78] sm:$0xff] }
 0x4e6   : > { %16019 = vst [vmem:[#allocation77_spill] sm:$0xff] %v13366_v19  ;;  %v3193_v41 = vadd.f32 %v3192_v15, %v3122_v53  ;;  %v13381_v14 = vpop.f32.mrf.mxu0  ;;  %v16039_v53 = vld [vmem:[#allocation95_spill] sm:$0xff]  ;;  %v16054_v5 = vld [vmem:[#allocation53_spill] sm:$0xff] }
 0x4e7   : > { %4794 = vmatpush.msrb.mxu0 %v16027_v25  ;;  %v2681_v15 = vadd.f32 %v16039_v53, %v2006_v40  ;;  %v16053_v35 = vld [vmem:[#allocation63_spill] sm:$0xff]  ;;  %v16055_v53 = vld [vmem:[#allocation106_spill] sm:$0xff] }
 0x4e8   : > { %10005 = vmatmul.msk.f32.gmra.mxu3 %vm1789_vm2, %v3193_v41  ;;  %3623 = vmatmul.f32.gmra.mxu1 %v3425_v1  ;;  %v2018_v40 = vadd.f32 %v16054_v5, %v16053_v35  ;;  %v16065_v35 = vld [vmem:[#allocation69_spill] sm:$0xff]  ;;  %v16066_v5 = vld [vmem:[#allocation59_spill] sm:$0xff] }
 0x4e9   : > { %4795 = vmatpush.msrb.mxu0 %v16028_v52  ;;  %v3417_v19 = vld [vmem:[#allocation2 + $0xd88] sm:$0xff] }
 0x4ea   : > { %3694 = vmatmul.f32.gmra.mxu2 %v3426_v16  ;;  %10009 = vmatmul.msk.f32.gmra.mxu0 %vm876_vm0, %v3363_v9  ;;  %v3362_v16 = vld [vmem:[#allocation2 + $0xbd0] sm:$0xff] }
 0x4eb   : > { %v3274_v24 = vpop.f32.mrf.mxu3  ;;  %4796 = vmatpush.msrb.mxu0 %v16031_v45  ;;  %v16046_v9 = vld [vmem:[#allocation48_spill] sm:$0xff] }
 0x4ec   : > { %v13378_v4 = vadd.f32 %v3274_v24, %v2678_v43  ;;  %v3378_v43 = vld [vmem:[#allocation2 + $0xc50] sm:$0xff]  ;;  %v16043_v24 = vld [vmem:[#allocation97_spill] sm:$0xff] }
 0x4ed   : > { %4797 = vmatpush.msrb.mxu0 %v16033_v33  ;;  %v13445_v20 = vpop.f32.mrf.mxu2 }
 0x4ee   : > { %16022 = vst [vmem:[#allocation90_spill] sm:$0xff] %v13378_v4 }
 0x4ef   : > { %v13392_v30 = vpop.f32.mrf.mxu0  ;;  %4798 = vmatpush.msrb.mxu0 %v16035_v2 }
 0x4f0   : > { %3626 = vmatmul.f32.gmra.mxu1 %v3430_v57  ;;  %3717 = vmatmul.f32.vlgmr.msra.gmra.mxu3 %v3347_v60  ;;  %v2682_v57 = vadd.f32 %v16043_v24, %v2009_v26  ;;  %v16058_v24 = vld [vmem:[#allocation55_spill] sm:$0xff] }
 0x4f1   : > { %4799 = vmatpush.msrb.mxu0 %v16036_v49 }
 0x4f2   : > { %3697 = vmatmul.f32.gmra.mxu2 %v3431_v23  ;;  %10010 = vmatmul.msk.f32.gmra.mxu0 %vm876_vm0, %v3368_v62  ;;  %v16050_v62 = vld [vmem:[#allocation50_spill] sm:$0xff] }
 0x4f3   : > { %v3277_v29 = vpop.f32.mrf.mxu3  ;;  %v2015_v45 = vadd.f32 %v16050_v62, %v16049_v7  ;;  %v3403_v62 = vld [vmem:[#allocation2 + $0xd18] sm:$0xff] }
 0x4f4   : > { %v13389_v46 = vadd.f32 %v3277_v29, %v2679_v59  ;;  %v2012_v59 = vadd.f32 %v16046_v9, %v16045_v56  ;;  %v16047_v29 = vld [vmem:[#allocation102_spill] sm:$0xff] }
 0x4f5   : > { %v13459_v7 = vpop.f32.mrf.mxu2 }
 0x4f6   : > { %16026 = vst [vmem:[#allocation78_spill] sm:$0xff] %v13389_v46  ;;  %v2683_v25 = vadd.f32 %v16047_v29, %v2012_v59 }
 0x4f7   : > { %v13404_v50 = vpop.f32.mrf.mxu0 }
 0x4f8   : > { %3720 = vmatmul.f32.gmra.mxu3 %v3352_v3 }
 0x4fa   : > { %10011 = vmatmul.msk.f32.gmra.mxu0 %vm876_vm0, %v3373_v0  ;;  %v3393_v0 = vld [vmem:[#allocation2 + $0xcc8] sm:$0xff] }
 0x4fb   : > { %v3280_v12 = vpop.f32.mrf.mxu3 }
 0x4fc   : > { %v13401_v36 = vadd.f32 %v3280_v12, %v2680_v48  ;;  %v16051_v48 = vld [vmem:[#allocation105_spill] sm:$0xff] }
 0x4fd   : > { %v2684_v33 = vadd.f32 %v16051_v48, %v2015_v45  ;;  %v16063_v45 = vld [vmem:[#allocation108_spill] sm:$0xff] }
 0x4fe   : > { %16034 = vst [vmem:[#allocation79_spill] sm:$0xff] %v13401_v36  ;;  %v16085_v36 = vld [vmem:[#allocation110_spill] sm:$0xff] }
 0x4ff   : > { %v13413_v21 = vpop.f32.mrf.mxu0 }
 0x500   : > { %3723 = vmatmul.f32.gmra.mxu3 %v3357_v42  ;;  %v3377_v42 = vld [vmem:[#allocation2 + $0xc48] sm:$0xff] }
 0x502   : > { %10012 = vmatmul.msk.f32.gmra.mxu0 %vm876_vm0, %v3378_v43  ;;  %v16057_v43 = vld [vmem:[#allocation65_spill] sm:$0xff] }
 0x503   : > { %v3283_v1 = vpop.f32.mrf.mxu3 }
 0x504   : > { %v13411_v41 = vadd.f32 %v3283_v1, %v2681_v15  ;;  %v2685_v15 = vadd.f32 %v16055_v53, %v2018_v40  ;;  %v2027_v40 = vadd.f32 %v16066_v5, %v16065_v35  ;;  %v3844_v53 = vld [vmem:[#allocation10 + $0x10] sm:$0xf] }
 0x505   : > { %10024 = vmatpush.msk.msrb.mxu1 %vm1844_vm1, %v3844_v53  ;;  %v13515_v53 = vld [vmem:[%s11727_s23 + $0x1c8] sm:$0xff] }
 0x506   : > { %16040 = vst [vmem:[#allocation92_spill] sm:$0xff] %v13411_v41  ;;  %v13586_v41 = vld [vmem:[%s11727_s23 + $0x170] sm:$0xff] }
 0x507   : > { %v13421_v32 = vpop.f32.mrf.mxu0  ;;  %16084 = vst [vmem:[#allocation51_spill] sm:$0xff] %v13586_v41 }
 0x508   : > { %3726 = vmatmul.f32.gmra.mxu3 %v3362_v16 }
 0x50a   : > { %10013 = vmatmul.msk.f32.gmra.mxu0 %vm876_vm0, %v3383_v54  ;;  %v3387_v54 = vld [vmem:[#allocation2 + $0xc98] sm:$0xff] }
 0x50b   : > { %v3286_v60 = vpop.f32.mrf.mxu3 }
 0x50c   : > { %v13419_v23 = vadd.f32 %v3286_v60, %v2682_v57  ;;  %v2021_v57 = vadd.f32 %v16058_v24, %v16057_v43  ;;  %v3398_v60 = vld [vmem:[#allocation2 + $0xcf0] sm:$0xff]  ;;  %v13475_v43 = vld [vmem:[%s11727_s23 + $0x1f8] sm:$0xff] }
 0x50d   : > { %4349 = vmatpush.msra.mxu1 %v13475_v43 }
 0x50e   : > { %16044 = vst [vmem:[#allocation80_spill] sm:$0xff] %v13419_v23  ;;  %v13581_v23 = vld [vmem:[%s11727_s23 + $0x180] sm:$0xff] }
 0x50f   : > { %v13429_v58 = vpop.f32.mrf.mxu0  ;;  %16083 = vst [vmem:[#allocation42_spill] sm:$0xff] %v13581_v23 }
 0x510   : > { %3729 = vmatmul.f32.gmra.mxu3 %v3367_v39  ;;  %v16059_v39 = vld [vmem:[#allocation107_spill] sm:$0xff] }
 0x511   : > { %v2686_v56 = vadd.f32 %v16059_v39, %v2021_v57  ;;  %v3397_v39 = vld [vmem:[#allocation2 + $0xce8] sm:$0xff] }
 0x512   : > { %10014 = vmatmul.msk.f32.gmra.mxu0 %vm876_vm0, %v3388_v22 }
 0x513   : > { %v3289_v3 = vpop.f32.mrf.mxu3 }
 0x514   : > { %v13427_v52 = vadd.f32 %v3289_v3, %v2683_v25  ;;  %v16061_v25 = vld [vmem:[#allocation67_spill] sm:$0xff]  ;;  %v16062_v3 = vld [vmem:[#allocation57_spill] sm:$0xff] }
 0x516   : > { %16048 = vst [vmem:[#allocation93_spill] sm:$0xff] %v13427_v52 }
 0x517   : > { %v13437_v49 = vpop.f32.mrf.mxu0 }
 0x518   : > { %3732 = vmatmul.f32.gmra.mxu3 %v3372_v44  ;;  %v2024_v44 = vadd.f32 %v16062_v3, %v16061_v25  ;;  %v16070_v25 = vld [vmem:[#allocation62_spill] sm:$0xff] }
 0x51a   : > { %10015 = vmatmul.msk.f32.gmra.mxu0 %vm876_vm0, %v3393_v0  ;;  %v2687_v22 = vadd.f32 %v16063_v45, %v2024_v44  ;;  %v3408_v0 = vld [vmem:[#allocation2 + $0xd40] sm:$0xff]  ;;  %v3413_v44 = vld [vmem:[#allocation2 + $0xd68] sm:$0xff] }
 0x51b   : > { %v3292_v12 = vpop.f32.mrf.mxu3 }
 0x51c   : > { %v13435_v2 = vadd.f32 %v3292_v12, %v2684_v33  ;;  %v3392_v12 = vld [vmem:[#allocation2 + $0xcc0] sm:$0xff] }
 0x51e   : > { %16052 = vst [vmem:[#allocation81_spill] sm:$0xff] %v13435_v2 }
 0x51f   : > { %v13447_v26 = vpop.f32.mrf.mxu0 }
 0x520   : > { %3735 = vmatmul.f32.gmra.mxu3 %v3377_v42 }
 0x522   : > { %10016 = vmatmul.msk.f32.gmra.mxu0 %vm876_vm0, %v3398_v60  ;;  %v13481_v60 = vld [vmem:[%s11727_s23 + $0x1f0] sm:$0xff] }
 0x523   : > { %v3295_v1 = vpop.f32.mrf.mxu3  ;;  %4350 = vmatpush.msra.mxu1 %v13481_v60 }
 0x524   : > { %v13443_v16 = vadd.f32 %v3295_v1, %v2685_v15  ;;  %v16067_v15 = vld [vmem:[#allocation109_spill] sm:$0xff] }
 0x525   : > { %v2688_v1 = vadd.f32 %v16067_v15, %v2027_v40  ;;  %v13509_v40 = vld [vmem:[%s11727_s23 + $0x1d0] sm:$0xff] }
 0x526   : > { %16056 = vst [vmem:[#allocation82_spill] sm:$0xff] %v13443_v16  ;;  %v16072_v15 = vld [vmem:[#allocation72_spill] sm:$0xff] }
 0x527   : > { %v13455_v29 = vpop.f32.mrf.mxu0 }
 0x528   : > { %3738 = vmatmul.f32.gmra.mxu3 %v3382_v61  ;;  %v13472_v61 = vpop.f32.mrf.mxu2 }
 0x52a   : > { %10017 = vmatmul.msk.f32.gmra.mxu0 %vm876_vm0, %v3403_v62  ;;  %v13493_v62 = vld [vmem:[%s11727_s23 + $0x1e0] sm:$0xff] }
 0x52b   : > { %v3298_v9 = vpop.f32.mrf.mxu3 }
 0x52c   : > { %v13453_v59 = vadd.f32 %v3298_v9, %v2686_v56  ;;  %v13487_v9 = vld [vmem:[%s11727_s23 + $0x1e8] sm:$0xff] }
 0x52d   : > { %4351 = vmatpush.msra.mxu1 %v13487_v9 }
 0x52e   : > { %16060 = vst [vmem:[#allocation83_spill] sm:$0xff] %v13453_v59 }
 0x52f   : > { %v13465_v42 = vpop.f32.mrf.mxu0  ;;  %4352 = vmatpush.msra.mxu1 %v13493_v62 }
 0x530   : > { %3741 = vmatmul.f32.gmra.mxu3 %v3387_v54  ;;  %v16069_v54 = vld [vmem:[#allocation70_spill] sm:$0xff]  ;;  %v13504_v35 = vpop.f32.mrf.mxu2 }
 0x531   : > { %v2030_v3 = vadd.f32 %v16070_v25, %v16069_v54  ;;  %v13521_v54 = vld [vmem:[%s11727_s23 + $0x1c0] sm:$0xff] }
 0x532   : > { %10018 = vmatmul.msk.f32.gmra.mxu0 %vm876_vm0, %v3408_v0  ;;  %v3402_v0 = vld [vmem:[#allocation2 + $0xd10] sm:$0xff] }
 0x533   : > { %v3301_v48 = vpop.f32.mrf.mxu3  ;;  %v2689_v45 = vadd.f32 %v13139_v37, %v2030_v3  ;;  %v13527_v3 = vld [vmem:[%s11727_s23 + $0x1b8] sm:$0xff] }
 0x534   : > { %v13463_v33 = vadd.f32 %v3301_v48, %v2687_v22  ;;  %v13499_v22 = vld [vmem:[%s11727_s23 + $0x1d8] sm:$0xff]  ;;  %v13502_v48 = vpop.f32.mrf.mxu1 }
 0x535   : > { %4353 = vmatpush.msra.mxu1 %v13499_v22 }
 0x536   : > { %16064 = vst [vmem:[#allocation84_spill] sm:$0xff] %v13463_v33  ;;  %v13555_v33 = vld [vmem:[%s11727_s23 + $0x198] sm:$0xff] }
 0x537   : > { %v13484_v56 = vpop.f32.mrf.mxu0  ;;  %4354 = vmatpush.msra.mxu1 %v13509_v40 }
 0x538   : > { %3744 = vmatmul.f32.gmra.mxu3 %v3392_v12 }
 0x539   : > { %4355 = vmatpush.msra.mxu1 %v13515_v53 }
 0x53a   : > { %10019 = vmatmul.msk.f32.gmra.mxu0 %vm876_vm0, %v3413_v44 }
 0x53b   : > { %v3304_v24 = vpop.f32.mrf.mxu3  ;;  %4356 = vmatpush.msra.mxu1 %v13521_v54 }
 0x53c   : > { %v13478_v57 = vadd.f32 %v3304_v24, %v2688_v1  ;;  %v16073_v1 = vld [vmem:[#allocation64_spill] sm:$0xff] }
 0x53d   : > { %v2033_v24 = vadd.f32 %v16073_v1, %v16072_v15  ;;  %4357 = vmatpush.msra.mxu1 %v13527_v3  ;;  %v3407_v15 = vld [vmem:[#allocation2 + $0xd38] sm:$0xff]  ;;  %v13538_v1 = vpop.f32.mrf.mxu2 }
 0x53e   : > { %16068 = vst [vmem:[#allocation85_spill] sm:$0xff] %v13478_v57 }
 0x53f   : > { %v13512_v37 = vpop.f32.mrf.mxu0  ;;  %v2690_v25 = vadd.f32 %v13150_v34, %v2033_v24  ;;  %v13543_v24 = vld [vmem:[%s11727_s23 + $0x1a8] sm:$0xff] }
 0x540   : > { %3747 = vmatmul.f32.gmra.mxu3 %v3397_v39  ;;  %v3418_v39 = vld [vmem:[#allocation2 + $0xd90] sm:$0xff] }
 0x542   : > { %10020 = vmatmul.msk.f32.gmra.mxu0 %vm876_vm0, %v3418_v39  ;;  %v16075_v39 = vld [vmem:[#allocation73_spill] sm:$0xff] }
 0x543   : > { %v3307_v12 = vpop.f32.mrf.mxu3 }
 0x544   : > { %v13506_v5 = vadd.f32 %v3307_v12, %v2689_v45  ;;  %v13533_v12 = vld [vmem:[%s11727_s23 + $0x1b0] sm:$0xff] }
 0x545   : > { %4358 = vmatpush.msra.mxu1 %v13533_v12  ;;  %v13578_v52 = vpop.f32.mrf.mxu2 }
 0x546   : > { %16071 = vst [vmem:[#allocation86_spill] sm:$0xff] %v13506_v5  ;;  %v13549_v5 = vld [vmem:[%s11727_s23 + $0x1a0] sm:$0xff] }
 0x547   : > { %v13540_v34 = vpop.f32.mrf.mxu0  ;;  %4359 = vmatpush.msra.mxu1 %v13543_v24 }
 0x548   : > { %3750 = vmatmul.f32.gmra.mxu3 %v3402_v0  ;;  %v13536_v0 = vpop.f32.mrf.mxu1 }
 0x549   : > { %4360 = vmatpush.msra.mxu1 %v13549_v5 }
 0x54b   : > { %v3310_v44 = vpop.f32.mrf.mxu3  ;;  %4361 = vmatpush.msra.mxu1 %v13555_v33 }
 0x54c   : > { %v13530_v45 = vadd.f32 %v3310_v44, %v2690_v25  ;;  %v16076_v25 = vld [vmem:[#allocation66_spill] sm:$0xff] }
 0x54d   : > { %v2036_v44 = vadd.f32 %v16076_v25, %v16075_v39  ;;  %v13561_v39 = vld [vmem:[%s11727_s23 + $0x190] sm:$0xff]  ;;  %v3412_v25 = vld [vmem:[#allocation2 + $0xd60] sm:$0xff] }
 0x54e   : > { %16074 = vst [vmem:[#allocation87_spill] sm:$0xff] %v13530_v45  ;;  %v3423_v45 = vld [vmem:[#allocation2 + $0xdb8] sm:$0xff]  ;;  %4362 = vmatpush.msra.mxu1 %v13561_v39 }
 0x54f   : > { %10021 = vmatmul.msk.f32.gmra.mxu0 %vm876_vm0, %v3423_v45  ;;  %v2691_v57 = vadd.f32 %v13161_v10, %v2036_v44  ;;  %16078 = vst [vmem:[#allocation89_spill] sm:$0xff] %v13561_v39  ;;  %v13564_v2 = vpop.f32.mrf.mxu0  ;;  %v13567_v45 = vld [vmem:[%s11727_s23 + $0x188] sm:$0xff]  ;;  %v13571_v10 = vld [vmem:[%s11727_s23 + $0x178] sm:$0xff] }
 0x550   : > { %3753 = vmatmul.f32.gmra.mxu3 %v3407_v15  ;;  %v3992_v15 = vld [vmem:[#allocation2 + $0xe10] sm:$0xff]  ;;  %16079 = vst [vmem:[#allocation91_spill] sm:$0xff] %v13567_v45  ;;  %4363 = vmatpush.msra.mxu1 %v13567_v45  ;;  %v13605_v45 = vld [vmem:[%s11727_s23 + $0x158] sm:$0xff]  ;;  %v13648_v39 = vld [vmem:[%s11727_s23 + $0x128] sm:$0xff] }
 0x551   : > { %4152 = vmatmul.f32.vlgmr.msrb.gmra.mxu2 %v3992_v15  ;;  %16080 = vst [vmem:[#allocation49_spill] sm:$0xff] %v13571_v10  ;;  %v16082_v44 = vld [vmem:[#allocation68_spill] sm:$0xff]  ;;  %v3428_v15 = vld [vmem:[#allocation2 + $0xde0] sm:$0xff] }
 0x552   : > { %4926 = vmatpush.msrb.mxu2 %v13571_v10  ;;  %4364 = vmatpush.msra.mxu1 %v13581_v23  ;;  %v13599_v23 = vld [vmem:[%s11727_s23 + $0x160] sm:$0xff]  ;;  %16091 = vst [vmem:[#allocation96_spill] sm:$0xff] %v13605_v45 }
 0x553   : > { %v3313_v59 = vpop.f32.mrf.mxu3  ;;  %16088 = vst [vmem:[#allocation44_spill] sm:$0xff] %v13599_v23 }
 0x554   : > { %v13558_v16 = vadd.f32 %v3313_v59, %v2691_v57  ;;  %v13574_v59 = vpop.f32.mrf.mxu1  ;;  %v16081_v57 = vld [vmem:[#allocation74_spill] sm:$0xff]  ;;  %4927 = vmatpush.msrb.mxu2 %v13586_v41 }
 0x556   : > { %16077 = vst [vmem:[#allocation88_spill] sm:$0xff] %v13558_v16  ;;  %v2039_v16 = vadd.f32 %v16082_v44, %v16081_v57  ;;  %v13591_v57 = vld [vmem:[%s11727_s23 + $0x168] sm:$0xff]  ;;  %v3997_v44 = vld [vmem:[#allocation2 + $0xe38] sm:$0xff] }
 0x557   : > { %10022 = vmatmul.msk.f32.gmra.mxu0 %vm876_vm0, %v3428_v15  ;;  %16086 = vst [vmem:[#allocation43_spill] sm:$0xff] %v13591_v57  ;;  %4928 = vmatpush.msrb.mxu2 %v13591_v57  ;;  %v13596_v10 = vpop.f32.mrf.mxu0  ;;  %v3433_v15 = vld [vmem:[#allocation2 + $0xe08] sm:$0xff]  ;;  %v13615_v57 = vld [vmem:[%s11727_s23 + $0x150] sm:$0xff] }
 0x558   : > { %3756 = vmatmul.f32.gmra.mxu3 %v3412_v25  ;;  %v2692_v46 = vadd.f32 %v16085_v36, %v2039_v16  ;;  %v16089_v36 = vld [vmem:[#allocation75_spill] sm:$0xff]  ;;  %16093 = vst [vmem:[#allocation98_spill] sm:$0xff] %v13615_v57 }
 0x559   : > { %4155 = vmatmul.f32.gmra.mxu2 %v3997_v44  ;;  %v16090_v16 = vld [vmem:[#allocation71_spill] sm:$0xff] }
 0x55a   : > { %4929 = vmatpush.msrb.mxu2 %v13599_v23  ;;  %v2042_v41 = vadd.f32 %v16090_v16, %v16089_v36  ;;  %v4002_v16 = vld [vmem:[#allocation2 + $0xe60] sm:$0xff]  ;;  %v13621_v23 = vld [vmem:[%s11727_s23 + $0x148] sm:$0xff] }
 0x55b   : > { %v3316_v4 = vpop.f32.mrf.mxu3  ;;  %16095 = vst [vmem:[#allocation54_spill] sm:$0xff] %v13621_v23 }
 0x55c   : > { %v13594_v25 = vadd.f32 %v3316_v4, %v2692_v46  ;;  %4930 = vmatpush.msrb.mxu2 %v13605_v45  ;;  %v13608_v4 = vpop.f32.mrf.mxu1  ;;  %v16092_v46 = vld [vmem:[#allocation111_spill] sm:$0xff] }
 0x55d   : > { %v2693_v44 = vadd.f32 %v16092_v46, %v2042_v41  ;;  %v3422_v45 = vld [vmem:[#allocation2 + $0xdb0] sm:$0xff]  ;;  %v13627_v41 = vld [vmem:[%s11727_s23 + $0x140] sm:$0xff] }
 0x55e   : > { %16087 = vst [vmem:[#allocation52_spill] sm:$0xff] %v13594_v25  ;;  %v13612_v25 = vpop.f32.mrf.mxu2  ;;  %4931 = vmatpush.msrb.mxu2 %v13615_v57  ;;  %v3994_v46 = vld [vmem:[#allocation2 + $0xe20] sm:$0xff]  ;;  %v13631_v57 = vld [vmem:[%s11727_s23 + $0x138] sm:$0xff] }
 0x55f   : > { %10023 = vmatmul.msk.f32.gmra.mxu0 %vm876_vm0, %v3433_v15  ;;  %v13624_v15 = vpop.f32.mrf.mxu0  ;;  %16096 = vst [vmem:[#allocation45_spill] sm:$0xff] %v13627_v41 }
 0x560   : > { %3759 = vmatmul.f32.gmra.mxu3 %v3417_v19  ;;  %4932 = vmatpush.msrb.mxu2 %v13621_v23  ;;  %16097 = vst [vmem:[#allocation100_spill] sm:$0xff] %v13631_v57 }
 0x561   : > { %4158 = vmatmul.f32.gmra.mxu2 %v4002_v16 }
 0x562   : > { %4933 = vmatpush.msrb.mxu2 %v13627_v41 }
 0x563   : > { %v3319_v36 = vpop.f32.mrf.mxu3 }
 0x564   : > { %v13618_v19 = vadd.f32 %v3319_v36, %v2693_v44  ;;  %4934 = vmatpush.msrb.mxu2 %v13631_v57  ;;  %v16098_v44 = vld [vmem:[#allocation76_spill] sm:$0xff]  ;;  %v13641_v16 = vpop.f32.mrf.mxu1  ;;  %v4007_v57 = vld [vmem:[#allocation2 + $0xe88] sm:$0xff] }
 0x565   : > { %v2694_v36 = vadd.f32 %v13190_v47, %v16098_v44  ;;  %v3427_v47 = vld [vmem:[#allocation2 + $0xdd8] sm:$0xff]  ;;  %v3999_v44 = vld [vmem:[#allocation2 + $0xe48] sm:$0xff] }
 0x566   : > { %16094 = vst [vmem:[#allocation99_spill] sm:$0xff] %v13618_v19  ;;  %v13637_v19 = vld [vmem:[%s11727_s23 + $0x130] sm:$0xff] }
 0x567   : > { %4294 = vmatmul.f32.vlgmr.msra.gmra.mxu0 %v3994_v46  ;;  %4935 = vmatpush.msrb.mxu2 %v13637_v19  ;;  %v13653_v46 = vld [vmem:[%s11727_s23 + $0x120] sm:$0xff] }
 0x568   : > { %3762 = vmatmul.f32.gmra.mxu3 %v3422_v45  ;;  %5076 = vmatpush.msra.mxu0 %v13238_v38  ;;  %v13643_v45 = vpop.f32.mrf.mxu2  ;;  %16100 = vst [vmem:[#allocation101_spill] sm:$0xff] %v13653_v46  ;;  %v13657_v38 = vpop.f32.mrf.mxu0 }
 0x569   : > { %4936 = vmatpush.msrb.mxu2 %v13648_v39 }
 0x56a   : > { %5077 = vmatpush.msra.mxu0 %v13246_v51  ;;  %4161 = vmatmul.f32.gmra.mxu2 %v4007_v57  ;;  %v13667_v57 = vld [vmem:[%s11727_s23 + $0x110] sm:$0xff] }
 0x56b   : > { %v3322_v41 = vpop.f32.mrf.mxu3  ;;  %4937 = vmatpush.msrb.mxu2 %v13653_v46  ;;  %v4012_v46 = vld [vmem:[#allocation2 + $0xeb0] sm:$0xff] }
 0x56c   : > { %v13645_v23 = vadd.f32 %v3322_v41, %v2694_v36  ;;  %5078 = vmatpush.msra.mxu0 %v13253_v31  ;;  %v3577_v41 = vadd.f32 %v13502_v48, %v13337_v63  ;;  %v13662_v36 = vld [vmem:[%s11727_s23 + $0x118] sm:$0xff]  ;;  %v13672_v63 = vld [vmem:[%s11727_s23 + $0x108] sm:$0xff]  ;;  %v13676_v48 = vpop.f32.mrf.mxu1 }
 0x56d   : > { %4938 = vmatpush.msrb.mxu2 %v13662_v36 }
 0x56e   : > { %16099 = vst [vmem:[#allocation94_spill] sm:$0xff] %v13645_v23  ;;  %v3648_v51 = vadd.f32 %v13445_v20, %v3577_v41  ;;  %5079 = vmatpush.msra.mxu0 %v13263_v8  ;;  %v13682_v8 = vld [vmem:[%s11727_s23 + $0x100] sm:$0xff] }
 0x56f   : > { %4297 = vmatmul.f32.gmra.mxu0 %v3999_v44  ;;  %4939 = vmatpush.msrb.mxu2 %v13667_v57  ;;  %v3580_v44 = vadd.f32 %v13536_v0, %v13342_v17  ;;  %v4017_v0 = vld [vmem:[#allocation2 + $0xed8] sm:$0xff] }
 0x570   : > { %3765 = vmatmul.f32.gmra.mxu3 %v3427_v47  ;;  %5080 = vmatpush.msra.mxu0 %v13268_v55  ;;  %v3432_v47 = vld [vmem:[#allocation2 + $0xe00] sm:$0xff]  ;;  %v13678_v20 = vpop.f32.mrf.mxu2  ;;  %v4004_v55 = vld [vmem:[#allocation2 + $0xe70] sm:$0xff] }
 0x571   : > { %4940 = vmatpush.msrb.mxu2 %v13672_v63 }
 0x572   : > { %4164 = vmatmul.f32.gmra.mxu2 %v4012_v46  ;;  %5081 = vmatpush.msra.mxu0 %v13273_v28  ;;  %v13689_v46 = vpop.f32.mrf.mxu0 }
 0x573   : > { %v3718_v31 = vpop.f32.mrf.mxu3  ;;  %4941 = vmatpush.msrb.mxu2 %v13682_v8 }
 0x574   : > { %v3719_v23 = vadd.f32 %v3718_v31, %v3648_v51  ;;  %v13692_v51 = vld [vmem:[%s11727_s23 + $0xf8] sm:$0xff]  ;;  %5082 = vmatpush.msra.mxu0 %v13285_v13  ;;  %v13707_v13 = vpop.f32.mrf.mxu1 }
 0x575   : > { %v3993_v31 = vld [vmem:[#allocation2 + $0xe18] sm:$0xff] }
 0x576   : > { %v3790_v41 = vadd.f32 %v13564_v2, %v3719_v23  ;;  %v3651_v23 = vadd.f32 %v13459_v7, %v3580_v44  ;;  %v13698_v2 = vld [vmem:[%s11727_s23 + $0xf0] sm:$0xff]  ;;  %5083 = vmatpush.msra.mxu0 %v13290_v6  ;;  %v3583_v44 = vadd.f32 %v13574_v59, %v13347_v11  ;;  %v4009_v6 = vld [vmem:[#allocation2 + $0xe98] sm:$0xff]  ;;  %v4022_v59 = vld [vmem:[#allocation2 + $0xf00] sm:$0xff] }
 0x577   : > { %4300 = vmatmul.f32.gmra.mxu0 %v4004_v55 }
 0x578   : > { %3768 = vmatmul.f32.gmra.mxu3 %v3432_v47  ;;  %10025 = vmatmul.msk.f32.vlgmr.msrb.gmra.mxu1 %vm1789_vm2, %v3790_v41  ;;  %v13703_v47 = vld [vmem:[%s11727_s23 + $0xe8] sm:$0xff]  ;;  %v13710_v41 = vld [vmem:[%s11727_s23 + $0xe0] sm:$0xff]  ;;  %v13715_v55 = vpop.f32.mrf.mxu2 }
 0x579   : > { %4855 = vmatpush.msrb.mxu1 %v13692_v51 }
 0x57a   : > { %4167 = vmatmul.f32.gmra.mxu2 %v4017_v0  ;;  %v13726_v0 = vld [vmem:[%s11727_s23 + $0xd0] sm:$0xff] }
 0x57b   : > { %v3721_v28 = vpop.f32.mrf.mxu3  ;;  %4856 = vmatpush.msrb.mxu1 %v13698_v2 }
 0x57c   : > { %v3722_v17 = vadd.f32 %v3721_v28, %v3651_v23  ;;  %v13719_v23 = vld [vmem:[%s11727_s23 + $0xd8] sm:$0xff] }
 0x57d   : > { %4857 = vmatpush.msrb.mxu1 %v13703_v47 }
 0x57e   : > { %v3793_v7 = vadd.f32 %v13596_v10, %v3722_v17  ;;  %v3654_v10 = vadd.f32 %v13472_v61, %v3583_v44  ;;  %v13723_v17 = vpop.f32.mrf.mxu0  ;;  %v13735_v61 = vld [vmem:[%s11727_s23 + $0xc0] sm:$0xff]  ;;  %v3586_v44 = vadd.f32 %v13608_v4, %v13355_v27  ;;  %v4027_v4 = vld [vmem:[#allocation2 + $0xf28] sm:$0xff] }
 0x57f   : > { %4858 = vmatpush.msrb.mxu1 %v13710_v41  ;;  %4303 = vmatmul.f32.gmra.mxu0 %v4009_v6  ;;  %16102 = vst [vmem:[#allocation104_spill] sm:$0xff] %v13735_v61 }
 0x580   : > { %10026 = vmatmul.msk.f32.gmra.mxu1 %vm1789_vm2, %v3793_v7  ;;  %4223 = vmatmul.f32.vlgmr.msrb.gmra.mxu3 %v3993_v31  ;;  %v3998_v31 = vld [vmem:[#allocation2 + $0xe40] sm:$0xff]  ;;  %v13730_v7 = vld [vmem:[%s11727_s23 + $0xc8] sm:$0xff] }
 0x581   : > { %4859 = vmatpush.msrb.mxu1 %v13719_v23  ;;  %16101 = vst [vmem:[#allocation103_spill] sm:$0xff] %v13730_v7 }
 0x582   : > { %4170 = vmatmul.f32.gmra.mxu2 %v4022_v59  ;;  %v13744_v59 = vld [vmem:[%s11727_s23 + $0xb8] sm:$0xff] }
 0x583   : > { %v3724_v28 = vpop.f32.mrf.mxu3  ;;  %4860 = vmatpush.msrb.mxu1 %v13726_v0  ;;  %16103 = vst [vmem:[#allocation56_spill] sm:$0xff] %v13744_v59 }
 0x584   : > { %v3725_v11 = vadd.f32 %v3724_v28, %v3654_v10  ;;  %v4014_v10 = vld [vmem:[#allocation2 + $0xec0] sm:$0xff]  ;;  %v13741_v28 = vpop.f32.mrf.mxu1 }
 0x585   : > { %4861 = vmatpush.msrb.mxu1 %v13730_v7  ;;  %v13751_v7 = vld [vmem:[%s11727_s23 + $0xb0] sm:$0xff] }
 0x586   : > { %v3796_v6 = vadd.f32 %v13624_v15, %v3725_v11  ;;  %v3657_v15 = vadd.f32 %v13504_v35, %v3586_v44  ;;  %v13748_v11 = vpop.f32.mrf.mxu2  ;;  %16104 = vst [vmem:[#allocation46_spill] sm:$0xff] %v13751_v7  ;;  %v13760_v44 = vld [vmem:[%s11727_s23 + $0xa0] sm:$0xff] }
 0x587   : > { %4862 = vmatpush.msrb.mxu1 %v13735_v61  ;;  %4306 = vmatmul.f32.gmra.mxu0 %v4014_v10  ;;  %v13755_v10 = vld [vmem:[%s11727_s23 + $0xa8] sm:$0xff]  ;;  %16106 = vst [vmem:[#allocation58_spill] sm:$0xff] %v13760_v44 }
 0x588   : > { %10027 = vmatmul.msk.f32.gmra.mxu1 %vm1789_vm2, %v3796_v6  ;;  %4226 = vmatmul.f32.gmra.mxu3 %v3998_v31  ;;  %v4003_v31 = vld [vmem:[#allocation2 + $0xe68] sm:$0xff]  ;;  %v3807_v6 = vpop.f32.mrf.mxu0  ;;  %16105 = vst [vmem:[#allocation95_spill] sm:$0xff] %v13755_v10 }
 0x589   : > { %4863 = vmatpush.msrb.mxu1 %v13744_v59 }
 0x58a   : > { %4173 = vmatmul.f32.gmra.mxu2 %v4027_v4 }
 0x58b   : > { %v3727_v61 = vpop.f32.mrf.mxu3  ;;  %4864 = vmatpush.msrb.mxu1 %v13751_v7  ;;  %v3589_v7 = vadd.f32 %v13641_v16, %v13369_v18 }
 0x58c   : > { %v3728_v27 = vadd.f32 %v3727_v61, %v3657_v15  ;;  %v4019_v61 = vld [vmem:[#allocation2 + $0xee8] sm:$0xff]  ;;  %v13767_v15 = vld [vmem:[%s11727_s23 + $0x98] sm:$0xff] }
 0x58d   : > { %4865 = vmatpush.msrb.mxu1 %v13755_v10  ;;  %16107 = vst [vmem:[#allocation47_spill] sm:$0xff] %v13767_v15  ;;  %v13772_v10 = vld [vmem:[%s11727_s23 + $0x90] sm:$0xff] }
 0x58e   : > { %v3799_v35 = vadd.f32 %v13657_v38, %v3728_v27  ;;  %v3660_v38 = vadd.f32 %v13538_v1, %v3589_v7  ;;  %v3600_v27 = vpop.f32.mrf.mxu1  ;;  %16108 = vst [vmem:[#allocation97_spill] sm:$0xff] %v13772_v10  ;;  %v13775_v18 = vpop.f32.mrf.mxu2  ;;  %v13783_v1 = vld [vmem:[%s11727_s23 + $0x80] sm:$0xff]  ;;  %v3592_v7 = vadd.f32 %v13676_v48, %v13381_v14  ;;  %v3595_v14 = vadd.f32 %v13707_v13, %v13392_v30  ;;  %v4029_v48 = vld [vmem:[#allocation2 + $0xf38] sm:$0xff] }
 0x58f   : > { %4866 = vmatpush.msrb.mxu1 %v13760_v44  ;;  %4309 = vmatmul.f32.gmra.mxu0 %v4019_v61  ;;  %v13778_v61 = vld [vmem:[%s11727_s23 + $0x88] sm:$0xff]  ;;  %16110 = vst [vmem:[#allocation48_spill] sm:$0xff] %v13783_v1  ;;  %v4034_v30 = vld [vmem:[#allocation2 + $0xf60] sm:$0xff] }
 0x590   : > { %10028 = vmatmul.msk.f32.gmra.mxu1 %vm1789_vm2, %v3799_v35  ;;  %4229 = vmatmul.f32.gmra.mxu3 %v4003_v31  ;;  %v4032_v35 = vld [vmem:[#allocation2 + $0xf50] sm:$0xff]  ;;  %16109 = vst [vmem:[#allocation60_spill] sm:$0xff] %v13778_v61  ;;  %v3810_v44 = vpop.f32.mrf.mxu0 }
 0x591   : > { %4867 = vmatpush.msrb.mxu1 %v13767_v15  ;;  %v4008_v31 = vld [vmem:[#allocation2 + $0xe90] sm:$0xff] }
 0x592   : > { %4176 = vmatmul.f32.gmra.mxu2 %v4032_v35 }
 0x593   : > { %v3730_v4 = vpop.f32.mrf.mxu3  ;;  %4868 = vmatpush.msrb.mxu1 %v13772_v10 }
 0x594   : > { %v3731_v16 = vadd.f32 %v3730_v4, %v3660_v38  ;;  %v4024_v38 = vld [vmem:[#allocation2 + $0xf10] sm:$0xff]  ;;  %v3663_v4 = vadd.f32 %v13578_v52, %v3592_v7  ;;  %v3666_v52 = vadd.f32 %v13612_v25, %v3595_v14  ;;  %v4047_v14 = vld [vmem:[#allocation2 + $0xfc8] sm:$0xff] }
 0x595   : > { %4869 = vmatpush.msrb.mxu1 %v13778_v61  ;;  %v4037_v61 = vld [vmem:[#allocation2 + $0xf78] sm:$0xff] }
 0x596   : > { %v3802_v15 = vadd.f32 %v13689_v46, %v3731_v16  ;;  %v3603_v59 = vpop.f32.mrf.mxu1  ;;  %v4013_v46 = vld [vmem:[#allocation2 + $0xeb8] sm:$0xff]  ;;  %v13790_v16 = vpop.f32.mrf.mxu2 }
 0x597   : > { %4870 = vmatpush.msrb.mxu1 %v13783_v1  ;;  %4312 = vmatmul.f32.gmra.mxu0 %v4024_v38  ;;  %v4042_v38 = vld [vmem:[#allocation2 + $0xfa0] sm:$0xff] }
 0x598   : > { %10029 = vmatmul.msk.f32.gmra.mxu1 %vm1789_vm2, %v3802_v15  ;;  %4232 = vmatmul.f32.gmra.mxu3 %v4008_v31  ;;  %v3813_v15 = vpop.f32.mrf.mxu0 }
 0x59a   : > { %4179 = vmatmul.f32.gmra.mxu2 %v4037_v61 }
 0x59b   : > { %v3733_v35 = vpop.f32.mrf.mxu3 }
 0x59c   : > { %v3734_v10 = vadd.f32 %v3733_v35, %v3663_v4  ;;  %v4018_v4 = vld [vmem:[#allocation2 + $0xee0] sm:$0xff] }
 0x59e   : > { %v3805_v1 = vadd.f32 %v13723_v17, %v3734_v10  ;;  %v3606_v35 = vpop.f32.mrf.mxu1  ;;  %v3598_v17 = vadd.f32 %v13741_v28, %v13404_v50  ;;  %v13799_v10 = vpop.f32.mrf.mxu2  ;;  %v4039_v50 = vld [vmem:[#allocation2 + $0xf88] sm:$0xff] }
 0x59f   : > { %4315 = vmatmul.f32.gmra.mxu0 %v4029_v48  ;;  %v4023_v48 = vld [vmem:[#allocation2 + $0xf08] sm:$0xff] }
 0x5a0   : > { %10030 = vmatmul.msk.f32.gmra.mxu1 %vm1789_vm2, %v3805_v1  ;;  %4235 = vmatmul.f32.gmra.mxu3 %v4013_v46  ;;  %v3669_v13 = vadd.f32 %v13643_v45, %v3598_v17  ;;  %v3816_v1 = vpop.f32.mrf.mxu0 }
 0x5a2   : > { %4182 = vmatmul.f32.gmra.mxu2 %v4042_v38 }
 0x5a3   : > { %v3736_v31 = vpop.f32.mrf.mxu3 }
 0x5a4   : > { %v3737_v7 = vadd.f32 %v3736_v31, %v3666_v52  ;;  %v3601_v52 = vadd.f32 %v3600_v27, %v13413_v21  ;;  %v4044_v21 = vld [vmem:[#allocation2 + $0xfb0] sm:$0xff] }
 0x5a6   : > { %v3808_v61 = vadd.f32 %v3807_v6, %v3737_v7  ;;  %v3609_v28 = vpop.f32.mrf.mxu1  ;;  %v3672_v31 = vadd.f32 %v13678_v20, %v3601_v52  ;;  %v13806_v7 = vpop.f32.mrf.mxu2 }
 0x5a7   : > { %4318 = vmatmul.f32.gmra.mxu0 %v4034_v30 }
 0x5a8   : > { %10031 = vmatmul.msk.f32.gmra.mxu1 %vm1789_vm2, %v3808_v61  ;;  %4238 = vmatmul.f32.gmra.mxu3 %v4018_v4  ;;  %v4052_v4 = vld [vmem:[#allocation2 + $0xff0] sm:$0xff]  ;;  %v3819_v17 = vpop.f32.mrf.mxu0 }
 0x5a9   : > { %v4028_v61 = vld [vmem:[#allocation2 + $0xf30] sm:$0xff] }
 0x5aa   : > { %4185 = vmatmul.f32.gmra.mxu2 %v4047_v14  ;;  %v4057_v14 = vld [vmem:[#allocation2 + $0x1018] sm:$0xff] }
 0x5ab   : > { %v3739_v25 = vpop.f32.mrf.mxu3 }
 0x5ac   : > { %v3740_v46 = vadd.f32 %v3739_v25, %v3669_v13 }
 0x5ae   : > { %v3811_v6 = vadd.f32 %v3810_v44, %v3740_v46  ;;  %v3604_v44 = vadd.f32 %v3603_v59, %v13421_v32  ;;  %v3612_v13 = vpop.f32.mrf.mxu1  ;;  %v13811_v25 = vpop.f32.mrf.mxu2  ;;  %v4049_v32 = vld [vmem:[#allocation2 + $0xfd8] sm:$0xff] }
 0x5af   : > { %4321 = vmatmul.f32.gmra.mxu0 %v4039_v50 }
 0x5b0   : > { %10032 = vmatmul.msk.f32.gmra.mxu1 %vm1789_vm2, %v3811_v6  ;;  %4241 = vmatmul.f32.gmra.mxu3 %v4023_v48  ;;  %v3675_v27 = vadd.f32 %v13715_v55, %v3604_v44  ;;  %v4033_v48 = vld [vmem:[#allocation2 + $0xf58] sm:$0xff]  ;;  %v3822_v52 = vpop.f32.mrf.mxu0 }
 0x5b2   : > { %4188 = vmatmul.f32.gmra.mxu2 %v4052_v4 }
 0x5b3   : > { %v3742_v45 = vpop.f32.mrf.mxu3 }
 0x5b4   : > { %v3743_v38 = vadd.f32 %v3742_v45, %v3672_v31  ;;  %v4062_v31 = vld [vmem:[#allocation2 + $0x1040] sm:$0xff] }
 0x5b6   : > { %v3814_v30 = vadd.f32 %v3813_v15, %v3743_v38  ;;  %v3607_v15 = vadd.f32 %v3606_v35, %v13429_v58  ;;  %v3615_v45 = vpop.f32.mrf.mxu1  ;;  %v4038_v38 = vld [vmem:[#allocation2 + $0xf80] sm:$0xff]  ;;  %v13816_v4 = vpop.f32.mrf.mxu2 }
 0x5b7   : > { %4324 = vmatmul.f32.gmra.mxu0 %v4044_v21  ;;  %v4054_v58 = vld [vmem:[#allocation2 + $0x1000] sm:$0xff]  ;;  %v4067_v21 = vld [vmem:[#allocation2 + $0x1068] sm:$0xff] }
 0x5b8   : > { %10033 = vmatmul.msk.f32.gmra.mxu1 %vm1789_vm2, %v3814_v30  ;;  %4244 = vmatmul.f32.gmra.mxu3 %v4028_v61  ;;  %v3678_v59 = vadd.f32 %v13748_v11, %v3607_v15  ;;  %v3825_v35 = vpop.f32.mrf.mxu0  ;;  %v4072_v15 = vld [vmem:[#allocation2 + $0x1090] sm:$0xff] }
 0x5ba   : > { %4191 = vmatmul.f32.gmra.mxu2 %v4057_v14  ;;  %v3613_v14 = vadd.f32 %v3612_v13, %v13447_v26  ;;  %v4064_v13 = vld [vmem:[#allocation2 + $0x1050] sm:$0xff] }
 0x5bb   : > { %v3745_v20 = vpop.f32.mrf.mxu3 }
 0x5bc   : > { %v3746_v46 = vadd.f32 %v3745_v20, %v3675_v27  ;;  %v4043_v27 = vld [vmem:[#allocation2 + $0xfa8] sm:$0xff] }
 0x5be   : > { %v3817_v6 = vadd.f32 %v3816_v1, %v3746_v46  ;;  %v3610_v1 = vadd.f32 %v3609_v28, %v13437_v49  ;;  %v3618_v46 = vpop.f32.mrf.mxu1  ;;  %v4059_v49 = vld [vmem:[#allocation2 + $0x1028] sm:$0xff]  ;;  %v3684_v28 = vadd.f32 %v13790_v16, %v3613_v14 }
 0x5bf   : > { %4327 = vmatmul.f32.gmra.mxu0 %v4049_v32  ;;  %v4048_v32 = vld [vmem:[#allocation2 + $0xfd0] sm:$0xff] }
 0x5c0   : > { %10034 = vmatmul.msk.f32.gmra.mxu1 %vm1789_vm2, %v3817_v6  ;;  %4247 = vmatmul.f32.gmra.mxu3 %v4033_v48  ;;  %v3681_v30 = vadd.f32 %v13775_v18, %v3610_v1  ;;  %v3828_v18 = vpop.f32.mrf.mxu0 }
 0x5c2   : > { %4194 = vmatmul.f32.gmra.mxu2 %v4062_v31 }
 0x5c3   : > { %v3748_v55 = vpop.f32.mrf.mxu3 }
 0x5c4   : > { %v3749_v50 = vadd.f32 %v3748_v55, %v3678_v59 }
 0x5c6   : > { %v3820_v61 = vadd.f32 %v3819_v17, %v3749_v50  ;;  %v13822_v17 = vpop.f32.mrf.mxu2  ;;  %v3621_v55 = vpop.f32.mrf.mxu1 }
 0x5c7   : > { %4330 = vmatmul.f32.gmra.mxu0 %v4054_v58  ;;  %v3622_v14 = vadd.f32 %v3621_v55, %v13484_v56  ;;  %v13856_v55 = vld [vmem:[%s11727_s23 + $0x60] sm:$0xff] }
 0x5c8   : > { %10035 = vmatmul.msk.f32.gmra.mxu1 %vm1789_vm2, %v3820_v61  ;;  %4250 = vmatmul.f32.gmra.mxu3 %v4038_v38  ;;  %v4077_v38 = vld [vmem:[#allocation2 + $0x10b8] sm:$0xff]  ;;  %v3831_v1 = vpop.f32.mrf.mxu0 }
 0x5c9   : > { %v4053_v61 = vld [vmem:[#allocation2 + $0xff8] sm:$0xff] }
 0x5ca   : > { %4197 = vmatmul.f32.gmra.mxu2 %v4067_v21  ;;  %v3996_v21 = vld [vmem:[#allocation2 + $0xe30] sm:$0xff] }
 0x5cb   : > { %v3751_v11 = vpop.f32.mrf.mxu3 }
 0x5cc   : > { %v3752_v44 = vadd.f32 %v3751_v11, %v3681_v30 }
 0x5ce   : > { %v3823_v20 = vadd.f32 %v3822_v52, %v3752_v44  ;;  %v3616_v52 = vadd.f32 %v3615_v45, %v13455_v29  ;;  %v3619_v29 = vadd.f32 %v3618_v46, %v13465_v42  ;;  %v13838_v42 = vld [vmem:[%s11727_s23 + $0x78] sm:$0xff] }
 0x5cf   : > { %4333 = vmatmul.f32.gmra.mxu0 %v4059_v49  ;;  %v4074_v49 = vld [vmem:[#allocation2 + $0x10a0] sm:$0xff] }
 0x5d0   : > { %10036 = vmatmul.msk.f32.gmra.mxu1 %vm1789_vm2, %v3823_v20  ;;  %4253 = vmatmul.f32.gmra.mxu3 %v4043_v27  ;;  %v3687_v50 = vadd.f32 %v13799_v10, %v3616_v52  ;;  %v3690_v30 = vadd.f32 %v13806_v7, %v3619_v29  ;;  %v3624_v10 = vpop.f32.mrf.mxu1  ;;  %v4058_v27 = vld [vmem:[#allocation2 + $0x1020] sm:$0xff]  ;;  %v3834_v46 = vpop.f32.mrf.mxu0 }
 0x5d2   : > { %4200 = vmatmul.f32.gmra.mxu2 %v4072_v15  ;;  %v4001_v15 = vld [vmem:[#allocation2 + $0xe58] sm:$0xff] }
 0x5d3   : > { %v3754_v48 = vpop.f32.mrf.mxu3 }
 0x5d4   : > { %v3755_v6 = vadd.f32 %v3754_v48, %v3684_v28  ;;  %v13828_v26 = vpop.f32.mrf.mxu2  ;;  %v13846_v28 = vld [vmem:[%s11727_s23 + $0x70] sm:$0xff]  ;;  %v3693_v48 = vadd.f32 %v13811_v25, %v3622_v14  ;;  %v3625_v25 = vadd.f32 %v3624_v10, %v13512_v37  ;;  %v13876_v10 = vld [vmem:[%s11727_s23 + $0x48] sm:$0xff] }
 0x5d5   : > { %v4011_v14 = vld [vmem:[#allocation2 + $0xea8] sm:$0xff] }
 0x5d6   : > { %v3826_v59 = vadd.f32 %v3825_v35, %v3755_v6  ;;  %v4069_v35 = vld [vmem:[#allocation2 + $0x1078] sm:$0xff]  ;;  %v13851_v6 = vld [vmem:[%s11727_s23 + $0x68] sm:$0xff] }
 0x5d7   : > { %4336 = vmatmul.f32.gmra.mxu0 %v4064_v13  ;;  %v4079_v13 = vld [vmem:[#allocation2 + $0x10c8] sm:$0xff] }
 0x5d8   : > { %10037 = vmatmul.msk.f32.gmra.mxu1 %vm1789_vm2, %v3826_v59  ;;  %4256 = vmatmul.f32.gmra.mxu3 %v4048_v32  ;;  %v3627_v32 = vpop.f32.mrf.mxu1  ;;  %v4063_v59 = vld [vmem:[#allocation2 + $0x1048] sm:$0xff] }
 0x5da   : > { %4203 = vmatmul.f32.gmra.mxu2 %v4077_v38  ;;  %v3696_v38 = vadd.f32 %v13816_v4, %v3625_v25  ;;  %v3628_v4 = vadd.f32 %v3627_v32, %v13540_v34  ;;  %v13907_v32 = vld [vmem:[%s11727_s23 + $0x20] sm:$0xff]  ;;  %v3995_v25 = vld [vmem:[#allocation2 + $0xe28] sm:$0xff] }
 0x5db   : > { %v3757_v16 = vpop.f32.mrf.mxu3  ;;  %16115 = vst [vmem:[#allocation63_spill] sm:$0xff] %v13907_v32 }
 0x5dc   : > { %v3758_v31 = vadd.f32 %v3757_v16, %v3687_v50  ;;  %v13833_v45 = vpop.f32.mrf.mxu2  ;;  %v3837_v16 = vpop.f32.mrf.mxu0 }
 0x5de   : > { %v3829_v58 = vadd.f32 %v3828_v18, %v3758_v31  ;;  %v13864_v31 = vld [vmem:[%s11727_s23 + $0x58] sm:$0xff] }
 0x5df   : > { %4339 = vmatmul.f32.gmra.mxu0 %v4069_v35  ;;  %v4068_v35 = vld [vmem:[#allocation2 + $0x1070] sm:$0xff] }
 0x5e0   : > { %10038 = vmatmul.msk.f32.gmra.mxu1 %vm1789_vm2, %v3829_v58  ;;  %4259 = vmatmul.f32.gmra.mxu3 %v4053_v61  ;;  %v4006_v58 = vld [vmem:[#allocation2 + $0xe80] sm:$0xff] }
 0x5e2   : > { %10043 = vmatmul.msk.f32.vlgmr.msra.gmra.mxu2 %vm876_vm0, %v3996_v21  ;;  %v3699_v21 = vadd.f32 %v13822_v17, %v3628_v4  ;;  %v13931_v4 = vld [vmem:[%s11727_s23] sm:$0xff] }
 0x5e3   : > { %v3760_v11 = vpop.f32.mrf.mxu3  ;;  %5432 = vmatpush.msra.mxu2 %v13838_v42  ;;  %16121 = vst [vmem:[#allocation67_spill] sm:$0xff] %v13931_v4 }
 0x5e4   : > { %v3761_v44 = vadd.f32 %v3760_v11, %v3690_v30  ;;  %v13843_v7 = vpop.f32.mrf.mxu2 }
 0x5e5   : > { %5433 = vmatpush.msra.mxu2 %v13846_v28 }
 0x5e6   : > { %v3832_v20 = vadd.f32 %v3831_v1, %v3761_v44  ;;  %v13869_v1 = vld [vmem:[%s11727_s23 + $0x50] sm:$0xff]  ;;  %v13884_v44 = vld [vmem:[%s11727_s23 + $0x40] sm:$0xff] }
 0x5e7   : > { %4342 = vmatmul.f32.gmra.mxu0 %v4074_v49  ;;  %5434 = vmatpush.msra.mxu2 %v13851_v6 }
 0x5e8   : > { %10039 = vmatmul.msk.f32.gmra.mxu1 %vm1789_vm2, %v3832_v20  ;;  %4262 = vmatmul.f32.gmra.mxu3 %v4058_v27  ;;  %v3840_v20 = vpop.f32.mrf.mxu0 }
 0x5e9   : > { %5435 = vmatpush.msra.mxu2 %v13856_v55 }
 0x5ea   : > { %10044 = vmatmul.msk.f32.gmra.mxu2 %vm876_vm0, %v4001_v15  ;;  %v13903_v15 = vld [vmem:[%s11727_s23 + $0x28] sm:$0xff] }
 0x5eb   : > { %v3763_v18 = vpop.f32.mrf.mxu3  ;;  %5436 = vmatpush.msra.mxu2 %v13864_v31  ;;  %16114 = vst [vmem:[#allocation105_spill] sm:$0xff] %v13903_v15 }
 0x5ec   : > { %v3764_v56 = vadd.f32 %v3763_v18, %v3693_v48  ;;  %v4073_v48 = vld [vmem:[#allocation2 + $0x1098] sm:$0xff] }
 0x5ed   : > { %v13861_v50 = vpop.f32.mrf.mxu2  ;;  %5437 = vmatpush.msra.mxu2 %v13869_v1 }
 0x5ee   : > { %v3835_v52 = vadd.f32 %v3834_v46, %v3764_v56  ;;  %v13889_v46 = vld [vmem:[%s11727_s23 + $0x38] sm:$0xff]  ;;  %v13896_v56 = vld [vmem:[%s11727_s23 + $0x30] sm:$0xff] }
 0x5ef   : > { %4345 = vmatmul.f32.gmra.mxu0 %v4079_v13  ;;  %5438 = vmatpush.msra.mxu2 %v13876_v10  ;;  %16111 = vst [vmem:[#allocation102_spill] sm:$0xff] %v13889_v46  ;;  %v4078_v13 = vld [vmem:[#allocation2 + $0x10c0] sm:$0xff] }
 0x5f0   : > { %10040 = vmatmul.msk.f32.gmra.mxu1 %vm1789_vm2, %v3835_v52  ;;  %4265 = vmatmul.f32.gmra.mxu3 %v4063_v59  ;;  %16113 = vst [vmem:[#allocation50_spill] sm:$0xff] %v13896_v56  ;;  %v4016_v59 = vld [vmem:[#allocation2 + $0xed0] sm:$0xff] }
 0x5f1   : > { %5439 = vmatpush.msra.mxu2 %v13884_v44 }
 0x5f2   : > { %10045 = vmatmul.msk.f32.gmra.mxu2 %vm876_vm0, %v4006_v58  ;;  %v4021_v58 = vld [vmem:[#allocation2 + $0xef8] sm:$0xff] }
 0x5f3   : > { %v3766_v61 = vpop.f32.mrf.mxu3  ;;  %5440 = vmatpush.msra.mxu2 %v13889_v46 }
 0x5f4   : > { %v3767_v37 = vadd.f32 %v3766_v61, %v3696_v38  ;;  %v13920_v61 = vld [vmem:[%s11727_s23 + $0x10] sm:$0xff] }
 0x5f5   : > { %v13872_v29 = vpop.f32.mrf.mxu1  ;;  %v13881_v11 = vpop.f32.mrf.mxu2  ;;  %5441 = vmatpush.msra.mxu2 %v13896_v56  ;;  %16118 = vst [vmem:[#allocation65_spill] sm:$0xff] %v13920_v61  ;;  %v14060_v56 = vld [vmem:[%s11727_s23 + $0x220] sm:$0xff] }
 0x5f6   : > { %v3838_v30 = vadd.f32 %v3837_v16, %v3767_v37  ;;  %v13914_v16 = vld [vmem:[%s11727_s23 + $0x18] sm:$0xff]  ;;  %v13924_v37 = vld [vmem:[%s11727_s23 + $0x8] sm:$0xff]  ;;  %16148 = vst [vmem:[#allocation76_spill] sm:$0xff] %v14060_v56 }
 0x5f7   : > { %5442 = vmatpush.msra.mxu2 %v13903_v15  ;;  %16117 = vst [vmem:[#allocation106_spill] sm:$0xff] %v13914_v16  ;;  %v4070_v15 = vld [vmem:[#allocation2 + $0x1080] sm:$0xff] }
 0x5f8   : > { %10041 = vmatmul.msk.f32.gmra.mxu1 %vm1789_vm2, %v3838_v30  ;;  %4268 = vmatmul.f32.gmra.mxu3 %v4068_v35  ;;  %16119 = vst [vmem:[#allocation55_spill] sm:$0xff] %v13924_v37  ;;  %v4000_v30 = vld [vmem:[#allocation2 + $0xe50] sm:$0xff] }
 0x5f9   : > { %5443 = vmatpush.msra.mxu2 %v13907_v32  ;;  %v16143_v32 = vld [vmem:[#allocation44_spill] sm:$0xff] }
 0x5fa   : > { %10046 = vmatmul.msk.f32.gmra.mxu2 %vm876_vm0, %v4011_v14 }
 0x5fb   : > { %v3769_v27 = vpop.f32.mrf.mxu3  ;;  %5444 = vmatpush.msra.mxu2 %v13914_v16  ;;  %v4061_v16 = vld [vmem:[#allocation2 + $0x1038] sm:$0xff] }
 0x5fc   : > { %v3770_v34 = vadd.f32 %v3769_v27, %v3699_v21  ;;  %v4026_v27 = vld [vmem:[#allocation2 + $0xf20] sm:$0xff] }
 0x5fd   : > { %v13892_v49 = vpop.f32.mrf.mxu1  ;;  %v13900_v17 = vpop.f32.mrf.mxu2  ;;  %5445 = vmatpush.msra.mxu2 %v13920_v61 }
 0x5fe   : > { %16112 = vst [vmem:[#allocation61_spill] sm:$0xff] %v13892_v49  ;;  %v3841_v18 = vadd.f32 %v3840_v20, %v3770_v34  ;;  %v4005_v34 = vld [vmem:[#allocation2 + $0xe78] sm:$0xff] }
 0x5ff   : > { %5446 = vmatpush.msra.mxu2 %v13924_v37  ;;  %v4030_v37 = vld [vmem:[#allocation2 + $0xf40] sm:$0xff] }
 0x600   : > { %10042 = vmatmul.msk.f32.gmra.mxu1 %vm1789_vm2, %v3841_v18  ;;  %4271 = vmatmul.f32.gmra.mxu3 %v4073_v48  ;;  %v4031_v48 = vld [vmem:[#allocation2 + $0xf48] sm:$0xff] }
 0x601   : > { %5447 = vmatpush.msra.mxu2 %v13931_v4  ;;  %v4025_v4 = vld [vmem:[#allocation2 + $0xf18] sm:$0xff] }
 0x602   : > { %10047 = vmatmul.msk.f32.gmra.mxu2 %vm876_vm0, %v4016_v59  ;;  %v4010_v59 = vld [vmem:[#allocation2 + $0xea0] sm:$0xff] }
 0x605   : > { %v13910_v52 = vpop.f32.mrf.mxu1  ;;  %v13917_v38 = vpop.f32.mrf.mxu2 }
 0x606   : > { %16116 = vst [vmem:[#allocation53_spill] sm:$0xff] %v13910_v52 }
 0x608   : > { %4274 = vmatmul.f32.gmra.mxu3 %v4078_v13  ;;  %4365 = vmatmul.f32.vlgmr.msra.gmra.mxu1 %v3995_v25  ;;  %v4036_v25 = vld [vmem:[#allocation2 + $0xf70] sm:$0xff] }
 0x60a   : > { %10048 = vmatmul.msk.f32.gmra.mxu2 %vm876_vm0, %v4021_v58 }
 0x60d   : > { %v13927_v35 = vpop.f32.mrf.mxu1  ;;  %v13934_v21 = vpop.f32.mrf.mxu2 }
 0x60e   : > { %16120 = vst [vmem:[#allocation107_spill] sm:$0xff] %v13927_v35  ;;  %v4020_v35 = vld [vmem:[#allocation2 + $0xef0] sm:$0xff] }
 0x610   : > { %4368 = vmatmul.f32.gmra.mxu1 %v4000_v30  ;;  %v4015_v30 = vld [vmem:[#allocation2 + $0xec8] sm:$0xff] }
 0x612   : > { %10049 = vmatmul.msk.f32.gmra.mxu2 %vm876_vm0, %v4026_v27 }
 0x615   : > { %v13936_v20 = vpop.f32.mrf.mxu1  ;;  %v13939_v14 = vpop.f32.mrf.mxu2 }
 0x616   : > { %16122 = vst [vmem:[#allocation57_spill] sm:$0xff] %v13936_v20 }
 0x618   : > { %4371 = vmatmul.f32.gmra.mxu1 %v4005_v34  ;;  %v4041_v34 = vld [vmem:[#allocation2 + $0xf98] sm:$0xff] }
 0x61a   : > { %10050 = vmatmul.msk.f32.gmra.mxu2 %vm876_vm0, %v4031_v48 }
 0x61d   : > { %v13941_v18 = vpop.f32.mrf.mxu1  ;;  %v13944_v13 = vpop.f32.mrf.mxu2 }
 0x61e   : > { %16123 = vst [vmem:[#allocation108_spill] sm:$0xff] %v13941_v18 }
 0x620   : > { %4374 = vmatmul.f32.gmra.mxu1 %v4010_v59  ;;  %v4046_v59 = vld [vmem:[#allocation2 + $0xfc0] sm:$0xff] }
 0x622   : > { %10051 = vmatmul.msk.f32.gmra.mxu2 %vm876_vm0, %v4036_v25 }
 0x625   : > { %v13946_v58 = vpop.f32.mrf.mxu1  ;;  %v13949_v27 = vpop.f32.mrf.mxu2 }
 0x626   : > { %16124 = vst [vmem:[#allocation69_spill] sm:$0xff] %v13946_v58 }
 0x628   : > { %4377 = vmatmul.f32.gmra.mxu1 %v4015_v30  ;;  %v4051_v30 = vld [vmem:[#allocation2 + $0xfe8] sm:$0xff] }
 0x62a   : > { %10052 = vmatmul.msk.f32.gmra.mxu2 %vm876_vm0, %v4041_v34  ;;  %v4056_v34 = vld [vmem:[#allocation2 + $0x1010] sm:$0xff] }
 0x62d   : > { %v13951_v20 = vpop.f32.mrf.mxu1  ;;  %v13954_v48 = vpop.f32.mrf.mxu2 }
 0x62e   : > { %16125 = vst [vmem:[#allocation59_spill] sm:$0xff] %v13951_v20  ;;  %v13964_v20 = vpop.f32.mrf.mxu0 }
 0x630   : > { %4380 = vmatmul.f32.gmra.mxu1 %v4020_v35 }
 0x632   : > { %10053 = vmatmul.msk.f32.gmra.mxu2 %vm876_vm0, %v4046_v59 }
 0x635   : > { %v13956_v18 = vpop.f32.mrf.mxu1  ;;  %v13959_v25 = vpop.f32.mrf.mxu2 }
 0x636   : > { %16126 = vst [vmem:[#allocation109_spill] sm:$0xff] %v13956_v18  ;;  %v4035_v18 = vld [vmem:[#allocation2 + $0xf68] sm:$0xff] }
 0x638   : > { %4383 = vmatmul.f32.gmra.mxu1 %v4025_v4  ;;  %v13971_v4 = vpop.f32.mrf.mxu0 }
 0x63a   : > { %10054 = vmatmul.msk.f32.gmra.mxu2 %vm876_vm0, %v4051_v30  ;;  %v4040_v30 = vld [vmem:[#allocation2 + $0xf90] sm:$0xff] }
 0x63d   : > { %v13961_v58 = vpop.f32.mrf.mxu1  ;;  %v13966_v35 = vpop.f32.mrf.mxu2 }
 0x63e   : > { %16127 = vst [vmem:[#allocation70_spill] sm:$0xff] %v13961_v58  ;;  %v4492_v58 = vld [vmem:[#allocation10 + $0x14] sm:$0xf] }
 0x63f   : > { %10061 = vmatpush.msk.msra.mxu3 %vm1844_vm1, %v4492_v58  ;;  %v4050_v58 = vld [vmem:[#allocation2 + $0xfe0] sm:$0xff] }
 0x640   : > { %4386 = vmatmul.f32.gmra.mxu1 %v4030_v37 }
 0x641   : > { %4997 = vmatpush.msrb.mxu3 %v13475_v43 }
 0x642   : > { %10055 = vmatmul.msk.f32.gmra.mxu2 %vm876_vm0, %v4056_v34  ;;  %v13983_v34 = vpop.f32.mrf.mxu0 }
 0x643   : > { %4998 = vmatpush.msrb.mxu3 %v13481_v60  ;;  %v13995_v60 = vpop.f32.mrf.mxu3 }
 0x645   : > { %v13968_v61 = vpop.f32.mrf.mxu1  ;;  %v13973_v59 = vpop.f32.mrf.mxu2  ;;  %4999 = vmatpush.msrb.mxu3 %v13487_v9 }
 0x646   : > { %16128 = vst [vmem:[#allocation62_spill] sm:$0xff] %v13968_v61  ;;  %v4045_v61 = vld [vmem:[#allocation2 + $0xfb8] sm:$0xff] }
 0x647   : > { %5000 = vmatpush.msrb.mxu3 %v13493_v62 }
 0x648   : > { %4389 = vmatmul.f32.gmra.mxu1 %v4035_v18  ;;  %v4066_v18 = vld [vmem:[#allocation2 + $0x1060] sm:$0xff] }
 0x649   : > { %5001 = vmatpush.msrb.mxu3 %v13499_v22 }
 0x64a   : > { %10056 = vmatmul.msk.f32.gmra.mxu2 %vm876_vm0, %v4061_v16  ;;  %v13997_v9 = vpop.f32.mrf.mxu0  ;;  %v4071_v16 = vld [vmem:[#allocation2 + $0x1088] sm:$0xff] }
 0x64b   : > { %5002 = vmatpush.msrb.mxu3 %v13509_v40  ;;  %v4076_v40 = vld [vmem:[#allocation2 + $0x10b0] sm:$0xff] }
 0x64d   : > { %v13975_v52 = vpop.f32.mrf.mxu1  ;;  %v13980_v37 = vpop.f32.mrf.mxu2  ;;  %5003 = vmatpush.msrb.mxu3 %v13515_v53 }
 0x64e   : > { %16129 = vst [vmem:[#allocation72_spill] sm:$0xff] %v13975_v52  ;;  %v14009_v53 = vpop.f32.mrf.mxu3 }
 0x64f   : > { %5004 = vmatpush.msrb.mxu3 %v13521_v54 }
 0x650   : > { %4392 = vmatmul.f32.gmra.mxu1 %v4040_v30 }
 0x651   : > { %5005 = vmatpush.msrb.mxu3 %v13527_v3 }
 0x652   : > { %10057 = vmatmul.msk.f32.gmra.mxu2 %vm876_vm0, %v4066_v18  ;;  %v14014_v30 = vpop.f32.mrf.mxu0  ;;  %v4081_v18 = vld [vmem:[#allocation2 + $0x10d8] sm:$0xff] }
 0x653   : > { %5006 = vmatpush.msrb.mxu3 %v13533_v12  ;;  %v16133_v12 = vld [vmem:[#allocation89_spill] sm:$0xff] }
 0x655   : > { %v13987_v52 = vpop.f32.mrf.mxu1  ;;  %v13991_v43 = vpop.f32.mrf.mxu2  ;;  %5007 = vmatpush.msrb.mxu3 %v13543_v24  ;;  %v16134_v24 = vld [vmem:[#allocation91_spill] sm:$0xff] }
 0x656   : > { %16130 = vst [vmem:[#allocation64_spill] sm:$0xff] %v13987_v52  ;;  %v16141_v52 = vld [vmem:[#allocation43_spill] sm:$0xff] }
 0x657   : > { %5008 = vmatpush.msrb.mxu3 %v13549_v5  ;;  %v16135_v5 = vld [vmem:[#allocation42_spill] sm:$0xff] }
 0x658   : > { %4395 = vmatmul.f32.gmra.mxu1 %v4045_v61  ;;  %v4055_v61 = vld [vmem:[#allocation2 + $0x1008] sm:$0xff] }
 0x659   : > { %5009 = vmatpush.msrb.mxu3 %v13555_v33 }
 0x65a   : > { %10058 = vmatmul.msk.f32.gmra.mxu2 %vm876_vm0, %v4071_v16 }
 0x65b   : > { %5010 = vmatpush.msrb.mxu3 %v16133_v12  ;;  %v4642_v12 = vld [vmem:[#allocation2 + $0x10f0] sm:$0xff] }
 0x65d   : > { %v14000_v62 = vpop.f32.mrf.mxu1  ;;  %v14004_v22 = vpop.f32.mrf.mxu2  ;;  %5011 = vmatpush.msrb.mxu3 %v16134_v24  ;;  %v16137_v24 = vld [vmem:[#allocation49_spill] sm:$0xff] }
 0x65e   : > { %16131 = vst [vmem:[#allocation73_spill] sm:$0xff] %v14000_v62  ;;  %v4065_v62 = vld [vmem:[#allocation2 + $0x1058] sm:$0xff] }
 0x65f   : > { %5012 = vmatpush.msrb.mxu3 %v16135_v5 }
 0x660   : > { %4398 = vmatmul.f32.gmra.mxu1 %v4050_v58  ;;  %v4060_v58 = vld [vmem:[#allocation2 + $0x1030] sm:$0xff] }
 0x662   : > { %10059 = vmatmul.msk.f32.gmra.mxu2 %vm876_vm0, %v4076_v40  ;;  %v14025_v40 = vpop.f32.mrf.mxu3 }
 0x665   : > { %v14011_v54 = vpop.f32.mrf.mxu1  ;;  %v14017_v3 = vpop.f32.mrf.mxu2 }
 0x666   : > { %16132 = vst [vmem:[#allocation66_spill] sm:$0xff] %v14011_v54  ;;  %v14027_v54 = vpop.f32.mrf.mxu0 }
 0x668   : > { %4401 = vmatmul.f32.gmra.mxu1 %v4055_v61  ;;  %v4640_v61 = vld [vmem:[#allocation2 + $0x10e0] sm:$0xff] }
 0x669   : > { %4800 = vmatmul.f32.vlgmr.msrb.gmra.mxu0 %v4640_v61 }
 0x66a   : > { %10060 = vmatmul.msk.f32.gmra.mxu2 %vm876_vm0, %v4081_v18  ;;  %5574 = vmatpush.msrb.mxu0 %v16137_v24  ;;  %v14036_v18 = vld [vmem:[%s11727_s23 + $0x238] sm:$0xff]  ;;  %v14042_v61 = vpop.f32.mrf.mxu3  ;;  %v14045_v24 = vld [vmem:[%s11727_s23 + $0x230] sm:$0xff] }
 0x66b   : > { %16140 = vst [vmem:[#allocation110_spill] sm:$0xff] %v14036_v18 }
 0x66c   : > { %16142 = vst [vmem:[#allocation75_spill] sm:$0xff] %v14045_v24 }
 0x66d   : > { %v14022_v16 = vpop.f32.mrf.mxu1  ;;  %v14029_v33 = vpop.f32.mrf.mxu2 }
 0x66e   : > { %16136 = vst [vmem:[#allocation74_spill] sm:$0xff] %v14022_v16  ;;  %v16139_v16 = vld [vmem:[#allocation51_spill] sm:$0xff] }
 0x66f   : > { %5575 = vmatpush.msrb.mxu0 %v16139_v16  ;;  %v4647_v16 = vld [vmem:[#allocation2 + $0x1118] sm:$0xff] }
 0x670   : > { %4404 = vmatmul.f32.gmra.mxu1 %v4060_v58 }
 0x671   : > { %5576 = vmatpush.msrb.mxu0 %v16141_v52  ;;  %v16145_v52 = vld [vmem:[#allocation96_spill] sm:$0xff] }
 0x672   : > { %4942 = vmatmul.f32.vlgmr.msrb.gmra.mxu2 %v4642_v12  ;;  %v4645_v12 = vld [vmem:[#allocation2 + $0x1108] sm:$0xff]  ;;  %v14073_v46 = vpop.f32.mrf.mxu3 }
 0x673   : > { %5724 = vmatpush.msrb.mxu2 %v14036_v18  ;;  %5577 = vmatpush.msrb.mxu0 %v16143_v32  ;;  %v4225_v32 = vadd.f32 %v13995_v60, %v13828_v26  ;;  %v16153_v60 = vld [vmem:[#allocation100_spill] sm:$0xff] }
 0x674   : > { %4803 = vmatmul.f32.gmra.mxu0 %v4645_v12 }
 0x675   : > { %v14032_v5 = vpop.f32.mrf.mxu1  ;;  %v14039_v58 = vpop.f32.mrf.mxu2  ;;  %5725 = vmatpush.msrb.mxu2 %v14045_v24  ;;  %5578 = vmatpush.msrb.mxu0 %v16145_v52  ;;  %v16147_v24 = vld [vmem:[#allocation98_spill] sm:$0xff]  ;;  %v14069_v52 = vld [vmem:[%s11727_s23 + $0x218] sm:$0xff]  ;;  %v4296_v26 = vadd.f32 %v13964_v20, %v4225_v32 }
 0x676   : > { %16138 = vst [vmem:[#allocation68_spill] sm:$0xff] %v14032_v5  ;;  %v14048_v5 = vpop.f32.mrf.mxu0  ;;  %v14093_v20 = vld [vmem:[%s11727_s23 + $0x200] sm:$0xff]  ;;  %v4657_v32 = vld [vmem:[#allocation2 + $0x1168] sm:$0xff] }
 0x677   : > { %5579 = vmatpush.msrb.mxu0 %v16147_v24  ;;  %16150 = vst [vmem:[#allocation89_spill] sm:$0xff] %v14069_v52  ;;  %v16151_v24 = vld [vmem:[#allocation45_spill] sm:$0xff] }
 0x678   : > { %4407 = vmatmul.f32.gmra.mxu1 %v4065_v62  ;;  %v14052_v62 = vld [vmem:[%s11727_s23 + $0x228] sm:$0xff] }
 0x679   : > { %16144 = vst [vmem:[#allocation71_spill] sm:$0xff] %v14052_v62  ;;  %5726 = vmatpush.msrb.mxu2 %v14052_v62  ;;  %v16149_v62 = vld [vmem:[#allocation54_spill] sm:$0xff] }
 0x67a   : > { %4945 = vmatmul.f32.gmra.mxu2 %v4647_v16  ;;  %5580 = vmatpush.msrb.mxu0 %v16149_v62  ;;  %v4650_v16 = vld [vmem:[#allocation2 + $0x1130] sm:$0xff] }
 0x67b   : > { %5727 = vmatpush.msrb.mxu2 %v14060_v56  ;;  %v14076_v56 = vld [vmem:[%s11727_s23 + $0x210] sm:$0xff] }
 0x67c   : > { %5581 = vmatpush.msrb.mxu0 %v16151_v24  ;;  %16152 = vst [vmem:[#allocation91_spill] sm:$0xff] %v14076_v56  ;;  %v14085_v24 = vld [vmem:[%s11727_s23 + $0x208] sm:$0xff] }
 0x67d   : > { %v14056_v18 = vpop.f32.mrf.mxu1  ;;  %v14065_v12 = vpop.f32.mrf.mxu2  ;;  %5728 = vmatpush.msrb.mxu2 %v14069_v52  ;;  %4806 = vmatmul.f32.gmra.mxu0 %v4650_v16  ;;  %v4075_v52 = vld [vmem:[#allocation2 + $0x10a8] sm:$0xff]  ;;  %v4228_v16 = vadd.f32 %v14009_v53, %v13833_v45  ;;  %v4080_v53 = vld [vmem:[#allocation2 + $0x10d0] sm:$0xff] }
 0x67e   : > { %16146 = vst [vmem:[#allocation111_spill] sm:$0xff] %v14056_v18  ;;  %v4652_v18 = vld [vmem:[#allocation2 + $0x1140] sm:$0xff]  ;;  %5582 = vmatpush.msrb.mxu0 %v16153_v60 }
 0x67f   : > { %5729 = vmatpush.msrb.mxu2 %v14076_v56  ;;  %v4299_v45 = vadd.f32 %v13971_v4, %v4228_v16 }
 0x680   : > { %4410 = vmatmul.f32.gmra.mxu1 %v4070_v15  ;;  %v14080_v15 = vpop.f32.mrf.mxu0  ;;  %5583 = vmatpush.msrb.mxu0 %v13637_v19  ;;  %v4655_v19 = vld [vmem:[#allocation2 + $0x1158] sm:$0xff] }
 0x681   : > { %5730 = vmatpush.msrb.mxu2 %v14085_v24 }
 0x682   : > { %4948 = vmatmul.f32.gmra.mxu2 %v4652_v18  ;;  %5584 = vmatpush.msrb.mxu0 %v13648_v39  ;;  %v14103_v39 = vpop.f32.mrf.mxu3 }
 0x683   : > { %5731 = vmatpush.msrb.mxu2 %v14093_v20 }
 0x685   : > { %v4366_v62 = vpop.f32.mrf.mxu1  ;;  %v14097_v18 = vpop.f32.mrf.mxu2  ;;  %4809 = vmatmul.f32.gmra.mxu0 %v4655_v19 }
 0x686   : > { %v4367_v49 = vadd.f32 %v4366_v62, %v4296_v26  ;;  %v16154_v26 = vld [vmem:[#allocation101_spill] sm:$0xff] }
 0x687   : > { %5585 = vmatpush.msrb.mxu0 %v16154_v26  ;;  %v4667_v62 = vld [vmem:[#allocation2 + $0x11b8] sm:$0xff] }
 0x688   : > { %v4438_v56 = vadd.f32 %v14017_v3, %v4367_v49  ;;  %4413 = vmatmul.f32.gmra.mxu1 %v4075_v52  ;;  %v4234_v52 = vadd.f32 %v14042_v61, %v13861_v50  ;;  %v16158_v50 = vld [vmem:[#allocation46_spill] sm:$0xff] }
 0x689   : > { %5586 = vmatpush.msrb.mxu0 %v13662_v36  ;;  %v4660_v36 = vld [vmem:[#allocation2 + $0x1180] sm:$0xff] }
 0x68a   : > { %10062 = vmatmul.msk.f32.vlgmr.msra.gmra.mxu3 %vm1789_vm2, %v4438_v56  ;;  %4951 = vmatmul.f32.gmra.mxu2 %v4657_v32  ;;  %v14106_v56 = vpop.f32.mrf.mxu0  ;;  %v4305_v16 = vadd.f32 %v13997_v9, %v4234_v52  ;;  %v4646_v32 = vld [vmem:[#allocation2 + $0x1110] sm:$0xff] }
 0x68b   : > { %5503 = vmatpush.msra.mxu3 %v13692_v51  ;;  %5587 = vmatpush.msrb.mxu0 %v13667_v57  ;;  %v4231_v51 = vadd.f32 %v14025_v40, %v13843_v7  ;;  %v4641_v40 = vld [vmem:[#allocation2 + $0x10e8] sm:$0xff]  ;;  %v4670_v9 = vld [vmem:[#allocation2 + $0x11d0] sm:$0xff] }
 0x68c   : > { %v16164_v52 = vld [vmem:[#allocation48_spill] sm:$0xff] }
 0x68d   : > { %v4369_v49 = vpop.f32.mrf.mxu1  ;;  %5504 = vmatpush.msra.mxu3 %v13698_v2  ;;  %5588 = vmatpush.msrb.mxu0 %v13672_v63  ;;  %v4662_v2 = vld [vmem:[#allocation2 + $0x1190] sm:$0xff]  ;;  %v4302_v57 = vadd.f32 %v13983_v34, %v4231_v51  ;;  %v4665_v34 = vld [vmem:[#allocation2 + $0x11a8] sm:$0xff] }
 0x68e   : > { %v4370_v3 = vadd.f32 %v4369_v49, %v4299_v45  ;;  %4812 = vmatmul.f32.gmra.mxu0 %v4660_v36  ;;  %v4237_v45 = vadd.f32 %v14073_v46, %v13881_v11  ;;  %v16161_v36 = vld [vmem:[#allocation47_spill] sm:$0xff]  ;;  %v16162_v11 = vld [vmem:[#allocation97_spill] sm:$0xff] }
 0x68f   : > { %5505 = vmatpush.msra.mxu3 %v13703_v47  ;;  %5589 = vmatpush.msrb.mxu0 %v13682_v8  ;;  %v4452_v47 = vpop.f32.mrf.mxu2 }
 0x690   : > { %v4441_v4 = vadd.f32 %v14029_v33, %v4370_v3  ;;  %4416 = vmatmul.f32.gmra.mxu1 %v4080_v53  ;;  %v4242_v33 = vpop.f32.mrf.mxu3  ;;  %v16160_v3 = vld [vmem:[#allocation58_spill] sm:$0xff] }
 0x691   : > { %5506 = vmatpush.msra.mxu3 %v13710_v41  ;;  %v16155_v41 = vld [vmem:[#allocation103_spill] sm:$0xff] }
 0x692   : > { %10063 = vmatmul.msk.f32.gmra.mxu3 %vm1789_vm2, %v4441_v4  ;;  %4954 = vmatmul.f32.gmra.mxu2 %v4662_v2  ;;  %v14123_v60 = vpop.f32.mrf.mxu0  ;;  %v4672_v4 = vld [vmem:[#allocation2 + $0x11e0] sm:$0xff]  ;;  %v4308_v2 = vadd.f32 %v14014_v30, %v4237_v45  ;;  %v4675_v30 = vld [vmem:[#allocation2 + $0x11f8] sm:$0xff]  ;;  %v4661_v45 = vld [vmem:[#allocation2 + $0x1188] sm:$0xff] }
 0x693   : > { %5507 = vmatpush.msra.mxu3 %v13719_v23  ;;  %v16156_v23 = vld [vmem:[#allocation104_spill] sm:$0xff] }
 0x695   : > { %v4372_v7 = vpop.f32.mrf.mxu1  ;;  %5508 = vmatpush.msra.mxu3 %v13726_v0  ;;  %v16157_v0 = vld [vmem:[#allocation56_spill] sm:$0xff] }
 0x696   : > { %v4373_v63 = vadd.f32 %v4372_v7, %v4302_v57  ;;  %4815 = vmatmul.f32.gmra.mxu0 %v4665_v34  ;;  %v4651_v7 = vld [vmem:[#allocation2 + $0x1138] sm:$0xff] }
 0x697   : > { %5509 = vmatpush.msra.mxu3 %v16155_v41  ;;  %v4455_v26 = vpop.f32.mrf.mxu2 }
 0x698   : > { %v4444_v8 = vadd.f32 %v14039_v58, %v4373_v63  ;;  %4871 = vmatmul.f32.vlgmr.msrb.gmra.mxu1 %v4641_v40  ;;  %v16159_v58 = vld [vmem:[#allocation95_spill] sm:$0xff]  ;;  %v4245_v53 = vpop.f32.mrf.mxu3  ;;  %v4240_v40 = vadd.f32 %v14103_v39, %v13900_v17 }
 0x699   : > { %5510 = vmatpush.msra.mxu3 %v16156_v23 }
 0x69a   : > { %10064 = vmatmul.msk.f32.gmra.mxu3 %vm1789_vm2, %v4444_v8  ;;  %4957 = vmatmul.f32.gmra.mxu2 %v4667_v62  ;;  %v14136_v51 = vpop.f32.mrf.mxu0  ;;  %v4677_v8 = vld [vmem:[#allocation2 + $0x1208] sm:$0xff]  ;;  %v4311_v34 = vadd.f32 %v14027_v54, %v4240_v40  ;;  %v4671_v40 = vld [vmem:[#allocation2 + $0x11d8] sm:$0xff] }
 0x69b   : > { %5511 = vmatpush.msra.mxu3 %v16157_v0 }
 0x69d   : > { %v4375_v19 = vpop.f32.mrf.mxu1  ;;  %5512 = vmatpush.msra.mxu3 %v16158_v50  ;;  %v4682_v50 = vld [vmem:[#allocation2 + $0x1230] sm:$0xff] }
 0x69e   : > { %v4376_v61 = vadd.f32 %v4375_v19, %v4305_v16  ;;  %4818 = vmatmul.f32.gmra.mxu0 %v4670_v9  ;;  %v4656_v16 = vld [vmem:[#allocation2 + $0x1160] sm:$0xff]  ;;  %v4246_v9 = vadd.f32 %v4245_v53, %v13934_v21 }
 0x69f   : > { %5513 = vmatpush.msra.mxu3 %v16159_v58  ;;  %v4458_v41 = vpop.f32.mrf.mxu2  ;;  %v4692_v53 = vld [vmem:[#allocation2 + $0x1280] sm:$0xff] }
 0x6a0   : > { %v4447_v49 = vadd.f32 %v14065_v12, %v4376_v61  ;;  %4874 = vmatmul.f32.gmra.mxu1 %v4646_v32  ;;  %v16163_v12 = vld [vmem:[#allocation60_spill] sm:$0xff]  ;;  %v4248_v23 = vpop.f32.mrf.mxu3  ;;  %v4680_v32 = vld [vmem:[#allocation2 + $0x1220] sm:$0xff] }
 0x6a1   : > { %5514 = vmatpush.msra.mxu3 %v16160_v3 }
 0x6a2   : > { %10065 = vmatmul.msk.f32.gmra.mxu3 %vm1789_vm2, %v4447_v49  ;;  %4960 = vmatmul.f32.gmra.mxu2 %v4672_v4  ;;  %v14149_v62 = vpop.f32.mrf.mxu0  ;;  %v4317_v4 = vadd.f32 %v14080_v15, %v4246_v9 }
 0x6a3   : > { %5515 = vmatpush.msra.mxu3 %v16161_v36 }
 0x6a5   : > { %v4378_v57 = vpop.f32.mrf.mxu1  ;;  %5516 = vmatpush.msra.mxu3 %v16162_v11  ;;  %v4249_v11 = vadd.f32 %v4248_v23, %v13939_v14 }
 0x6a6   : > { %v4379_v46 = vadd.f32 %v4378_v57, %v4308_v2  ;;  %4821 = vmatmul.f32.gmra.mxu0 %v4675_v30  ;;  %v4666_v2 = vld [vmem:[#allocation2 + $0x11b0] sm:$0xff] }
 0x6a7   : > { %5517 = vmatpush.msra.mxu3 %v16163_v12  ;;  %v4461_v19 = vpop.f32.mrf.mxu2  ;;  %v4320_v12 = vadd.f32 %v14106_v56, %v4249_v11  ;;  %v4712_v11 = vld [vmem:[#allocation2 + $0x1320] sm:$0xff] }
 0x6a8   : > { %v4450_v63 = vadd.f32 %v14097_v18, %v4379_v46  ;;  %4877 = vmatmul.f32.gmra.mxu1 %v4651_v7  ;;  %v4243_v18 = vadd.f32 %v4242_v33, %v13917_v38  ;;  %v4251_v58 = vpop.f32.mrf.mxu3  ;;  %v4687_v33 = vld [vmem:[#allocation2 + $0x1258] sm:$0xff] }
 0x6a9   : > { %5518 = vmatpush.msra.mxu3 %v16164_v52  ;;  %v4252_v30 = vadd.f32 %v4251_v58, %v13944_v13 }
 0x6aa   : > { %10066 = vmatmul.msk.f32.gmra.mxu3 %vm1789_vm2, %v4450_v63  ;;  %4963 = vmatmul.f32.gmra.mxu2 %v4677_v8  ;;  %v4314_v61 = vadd.f32 %v14048_v5, %v4243_v18  ;;  %v14154_v49 = vpop.f32.mrf.mxu0 }
 0x6ad   : > { %v4381_v0 = vpop.f32.mrf.mxu1 }
 0x6ae   : > { %v4382_v17 = vadd.f32 %v4381_v0, %v4311_v34  ;;  %4824 = vmatmul.f32.gmra.mxu0 %v4680_v32  ;;  %v4697_v34 = vld [vmem:[#allocation2 + $0x12a8] sm:$0xff]  ;;  %v4323_v0 = vadd.f32 %v14123_v60, %v4252_v30  ;;  %v4702_v32 = vld [vmem:[#allocation2 + $0x12d0] sm:$0xff] }
 0x6af   : > { %v4464_v36 = vpop.f32.mrf.mxu2  ;;  %v4717_v30 = vld [vmem:[#allocation2 + $0x1348] sm:$0xff] }
 0x6b0   : > { %v4453_v39 = vadd.f32 %v4452_v47, %v4382_v17  ;;  %4880 = vmatmul.f32.gmra.mxu1 %v4656_v16  ;;  %v4685_v47 = vld [vmem:[#allocation2 + $0x1248] sm:$0xff]  ;;  %v4254_v7 = vpop.f32.mrf.mxu3  ;;  %v4676_v16 = vld [vmem:[#allocation2 + $0x1200] sm:$0xff] }
 0x6b1   : > { %v4255_v18 = vadd.f32 %v4254_v7, %v13949_v27  ;;  %v4710_v7 = vld [vmem:[#allocation2 + $0x1310] sm:$0xff] }
 0x6b2   : > { %10067 = vmatmul.msk.f32.gmra.mxu3 %vm1789_vm2, %v4453_v39  ;;  %4966 = vmatmul.f32.gmra.mxu2 %v4682_v50  ;;  %v14160_v46 = vpop.f32.mrf.mxu0 }
 0x6b5   : > { %v4384_v54 = vpop.f32.mrf.mxu1 }
 0x6b6   : > { %v4385_v3 = vadd.f32 %v4384_v54, %v4314_v61  ;;  %4827 = vmatmul.f32.gmra.mxu0 %v4685_v47  ;;  %v4326_v61 = vadd.f32 %v14136_v51, %v4255_v18  ;;  %v4681_v54 = vld [vmem:[#allocation2 + $0x1228] sm:$0xff]  ;;  %v4707_v47 = vld [vmem:[#allocation2 + $0x12f8] sm:$0xff]  ;;  %v4722_v18 = vld [vmem:[#allocation2 + $0x1370] sm:$0xff] }
 0x6b7   : > { %v4467_v52 = vpop.f32.mrf.mxu2 }
 0x6b8   : > { %v4456_v38 = vadd.f32 %v4455_v26, %v4385_v3  ;;  %4883 = vmatmul.f32.gmra.mxu1 %v4661_v45  ;;  %v4690_v26 = vld [vmem:[#allocation2 + $0x1270] sm:$0xff]  ;;  %v4257_v14 = vpop.f32.mrf.mxu3 }
 0x6b9   : > { %v4258_v3 = vadd.f32 %v4257_v14, %v13954_v48  ;;  %v4696_v14 = vld [vmem:[#allocation2 + $0x12a0] sm:$0xff] }
 0x6ba   : > { %10068 = vmatmul.msk.f32.gmra.mxu3 %vm1789_vm2, %v4456_v38  ;;  %4969 = vmatmul.f32.gmra.mxu2 %v4687_v33  ;;  %v14165_v23 = vpop.f32.mrf.mxu0  ;;  %v4705_v38 = vld [vmem:[#allocation2 + $0x12e8] sm:$0xff] }
 0x6bb   : > { %v4329_v33 = vadd.f32 %v14149_v62, %v4258_v3 }
 0x6bd   : > { %v4387_v5 = vpop.f32.mrf.mxu1 }
 0x6be   : > { %v4388_v57 = vadd.f32 %v4387_v5, %v4317_v4  ;;  %4830 = vmatmul.f32.gmra.mxu0 %v4690_v26 }
 0x6bf   : > { %v4470_v13 = vpop.f32.mrf.mxu2 }
 0x6c0   : > { %v4459_v21 = vadd.f32 %v4458_v41, %v4388_v57  ;;  %4886 = vmatmul.f32.gmra.mxu1 %v4666_v2  ;;  %v4695_v41 = vld [vmem:[#allocation2 + $0x1298] sm:$0xff]  ;;  %v4260_v50 = vpop.f32.mrf.mxu3 }
 0x6c1   : > { %v4261_v57 = vadd.f32 %v4260_v50, %v13959_v25 }
 0x6c2   : > { %10069 = vmatmul.msk.f32.gmra.mxu3 %vm1789_vm2, %v4459_v21  ;;  %4972 = vmatmul.f32.gmra.mxu2 %v4692_v53  ;;  %v14172_v58 = vpop.f32.mrf.mxu0  ;;  %v4691_v53 = vld [vmem:[#allocation2 + $0x1278] sm:$0xff] }
 0x6c3   : > { %v4332_v21 = vadd.f32 %v14154_v49, %v4261_v57 }
 0x6c5   : > { %v4390_v15 = vpop.f32.mrf.mxu1 }
 0x6c6   : > { %v4391_v63 = vadd.f32 %v4390_v15, %v4320_v12  ;;  %4833 = vmatmul.f32.gmra.mxu0 %v4695_v41 }
 0x6c7   : > { %v4473_v9 = vpop.f32.mrf.mxu2 }
 0x6c8   : > { %v4462_v8 = vadd.f32 %v4461_v19, %v4391_v63  ;;  %4889 = vmatmul.f32.gmra.mxu1 %v4671_v40  ;;  %v4700_v19 = vld [vmem:[#allocation2 + $0x12c0] sm:$0xff]  ;;  %v4263_v4 = vpop.f32.mrf.mxu3 }
 0x6c9   : > { %v4264_v40 = vadd.f32 %v4263_v4, %v13966_v35  ;;  %v4644_v4 = vld [vmem:[#allocation2 + $0x1100] sm:$0xff] }
 0x6ca   : > { %10070 = vmatmul.msk.f32.gmra.mxu3 %vm1789_vm2, %v4462_v8  ;;  %4975 = vmatmul.f32.gmra.mxu2 %v4697_v34  ;;  %v14177_v5 = vpop.f32.mrf.mxu0 }
 0x6cb   : > { %v4335_v8 = vadd.f32 %v14160_v46, %v4264_v40 }
 0x6cd   : > { %v4393_v56 = vpop.f32.mrf.mxu1 }
 0x6ce   : > { %v4394_v17 = vadd.f32 %v4393_v56, %v4323_v0  ;;  %4836 = vmatmul.f32.gmra.mxu0 %v4700_v19 }
 0x6cf   : > { %v4476_v26 = vpop.f32.mrf.mxu2 }
 0x6d0   : > { %v4465_v39 = vadd.f32 %v4464_v36, %v4394_v17  ;;  %4892 = vmatmul.f32.gmra.mxu1 %v4676_v16  ;;  %v4686_v36 = vld [vmem:[#allocation2 + $0x1250] sm:$0xff]  ;;  %v4266_v15 = vpop.f32.mrf.mxu3  ;;  %v4720_v17 = vld [vmem:[#allocation2 + $0x1360] sm:$0xff] }
 0x6d1   : > { %v4267_v0 = vadd.f32 %v4266_v15, %v13973_v59  ;;  %v16168_v15 = vld [vmem:[#allocation61_spill] sm:$0xff] }
 0x6d2   : > { %10071 = vmatmul.msk.f32.gmra.mxu3 %vm1789_vm2, %v4465_v39  ;;  %4978 = vmatmul.f32.gmra.mxu2 %v4702_v32  ;;  %v14183_v63 = vpop.f32.mrf.mxu0 }
 0x6d3   : > { %v4338_v39 = vadd.f32 %v14165_v23, %v4267_v0 }
 0x6d5   : > { %v4396_v60 = vpop.f32.mrf.mxu1 }
 0x6d6   : > { %v4397_v45 = vadd.f32 %v4396_v60, %v4326_v61  ;;  %4839 = vmatmul.f32.gmra.mxu0 %v4705_v38  ;;  %v4725_v60 = vld [vmem:[#allocation2 + $0x1388] sm:$0xff] }
 0x6d7   : > { %v4479_v34 = vpop.f32.mrf.mxu2 }
 0x6d8   : > { %v4468_v27 = vadd.f32 %v4467_v52, %v4397_v45  ;;  %4895 = vmatmul.f32.gmra.mxu1 %v4681_v54  ;;  %v4715_v52 = vld [vmem:[#allocation2 + $0x1338] sm:$0xff]  ;;  %v4269_v16 = vpop.f32.mrf.mxu3 }
 0x6d9   : > { %v4270_v32 = vadd.f32 %v4269_v16, %v13980_v37  ;;  %v4727_v54 = vld [vmem:[#allocation2 + $0x1398] sm:$0xff] }
 0x6da   : > { %10072 = vmatmul.msk.f32.gmra.mxu3 %vm1789_vm2, %v4468_v27  ;;  %4981 = vmatmul.f32.gmra.mxu2 %v4707_v47  ;;  %v4706_v27 = vld [vmem:[#allocation2 + $0x12f0] sm:$0xff] }
 0x6db   : > { %v4341_v3 = vadd.f32 %v14172_v58, %v4270_v32  ;;  %v4664_v32 = vld [vmem:[#allocation2 + $0x11a0] sm:$0xff] }
 0x6dd   : > { %v4399_v51 = vpop.f32.mrf.mxu1 }
 0x6de   : > { %v4400_v2 = vadd.f32 %v4399_v51, %v4329_v33  ;;  %4842 = vmatmul.f32.gmra.mxu0 %v4710_v7 }
 0x6df   : > { %v4482_v59 = vpop.f32.mrf.mxu2 }
 0x6e0   : > { %v4471_v48 = vadd.f32 %v4470_v13, %v4400_v2  ;;  %4898 = vmatmul.f32.gmra.mxu1 %v4686_v36  ;;  %v4701_v13 = vld [vmem:[#allocation2 + $0x12c8] sm:$0xff]  ;;  %v4272_v45 = vpop.f32.mrf.mxu3  ;;  %v4711_v2 = vld [vmem:[#allocation2 + $0x1318] sm:$0xff] }
 0x6e1   : > { %v4273_v38 = vadd.f32 %v4272_v45, %v13991_v43 }
 0x6e2   : > { %10073 = vmatmul.msk.f32.gmra.mxu3 %vm1789_vm2, %v4471_v48  ;;  %4984 = vmatmul.f32.gmra.mxu2 %v4712_v11  ;;  %v4649_v11 = vld [vmem:[#allocation2 + $0x1128] sm:$0xff] }
 0x6e3   : > { %v4344_v51 = vadd.f32 %v14177_v5, %v4273_v38  ;;  %v16184_v38 = vld [vmem:[#allocation92_spill] sm:$0xff] }
 0x6e5   : > { %v4402_v62 = vpop.f32.mrf.mxu1 }
 0x6e6   : > { %v4403_v12 = vadd.f32 %v4402_v62, %v4332_v21  ;;  %4845 = vmatmul.f32.gmra.mxu0 %v4715_v52  ;;  %v14188_v35 = vpop.f32.mrf.mxu0  ;;  %v4716_v62 = vld [vmem:[#allocation2 + $0x1340] sm:$0xff] }
 0x6e7   : > { %v4485_v33 = vpop.f32.mrf.mxu2 }
 0x6e8   : > { %v4474_v25 = vadd.f32 %v4473_v9, %v4403_v12  ;;  %4901 = vmatmul.f32.gmra.mxu1 %v4691_v53  ;;  %v4275_v58 = vpop.f32.mrf.mxu3 }
 0x6e9   : > { %v4276_v43 = vadd.f32 %v4275_v58, %v14004_v22  ;;  %v4658_v58 = vld [vmem:[#allocation2 + $0x1170] sm:$0xff] }
 0x6ea   : > { %10074 = vmatmul.msk.f32.gmra.mxu3 %vm1789_vm2, %v4474_v25  ;;  %4987 = vmatmul.f32.gmra.mxu2 %v4717_v30  ;;  %v16171_v30 = vld [vmem:[#allocation50_spill] sm:$0xff] }
 0x6ed   : > { %v4405_v49 = vpop.f32.mrf.mxu1 }
 0x6ee   : > { %v4406_v41 = vadd.f32 %v4405_v49, %v4335_v8  ;;  %4848 = vmatmul.f32.gmra.mxu0 %v4720_v17  ;;  %v4643_v8 = vld [vmem:[#allocation2 + $0x10f8] sm:$0xff]  ;;  %v4726_v17 = vld [vmem:[#allocation2 + $0x1390] sm:$0xff] }
 0x6ef   : > { %v4488_v21 = vpop.f32.mrf.mxu2  ;;  %v16172_v49 = vld [vmem:[#allocation105_spill] sm:$0xff] }
 0x6f0   : > { %v4477_v56 = vadd.f32 %v4476_v26, %v4406_v41  ;;  %4904 = vmatmul.f32.gmra.mxu1 %v4696_v14  ;;  %v16173_v14 = vld [vmem:[#allocation63_spill] sm:$0xff]  ;;  %v16174_v41 = vld [vmem:[#allocation78_spill] sm:$0xff] }
 0x6f1   : > { %v14193_v61 = vpop.f32.mrf.mxu0 }
 0x6f2   : > { %10075 = vmatmul.msk.f32.gmra.mxu3 %vm1789_vm2, %v4477_v56  ;;  %4990 = vmatmul.f32.gmra.mxu2 %v4722_v18  ;;  %v16176_v56 = vld [vmem:[#allocation106_spill] sm:$0xff] }
 0x6f5   : > { %v4408_v46 = vpop.f32.mrf.mxu1 }
 0x6f6   : > { %v4409_v19 = vadd.f32 %v4408_v46, %v4338_v39  ;;  %4851 = vmatmul.f32.gmra.mxu0 %v4725_v60  ;;  %v16178_v39 = vld [vmem:[#allocation65_spill] sm:$0xff]  ;;  %v16182_v60 = vld [vmem:[#allocation107_spill] sm:$0xff] }
 0x6f7   : > { %v4648_v46 = vld [vmem:[#allocation2 + $0x1120] sm:$0xff] }
 0x6f8   : > { %v4480_v50 = vadd.f32 %v4479_v34, %v4409_v19  ;;  %4907 = vmatmul.f32.gmra.mxu1 %v4701_v13  ;;  %v16175_v34 = vld [vmem:[#allocation53_spill] sm:$0xff]  ;;  %v16179_v19 = vld [vmem:[#allocation55_spill] sm:$0xff] }
 0x6f9   : > { %v3975_v0 = vadd.f32 %v16175_v34, %v16174_v41  ;;  %v16197_v41 = vld [vmem:[#allocation109_spill] sm:$0xff] }
 0x6fa   : > { %10076 = vmatmul.msk.f32.gmra.mxu3 %vm1789_vm2, %v4480_v50  ;;  %4993 = vmatmul.f32.gmra.mxu2 %v4727_v54  ;;  %v14198_v47 = vpop.f32.mrf.mxu0  ;;  %v16180_v50 = vld [vmem:[#allocation67_spill] sm:$0xff] }
 0x6fd   : > { %v4411_v23 = vpop.f32.mrf.mxu1 }
 0x6fe   : > { %v4412_v9 = vadd.f32 %v4411_v23, %v4341_v3  ;;  %10080 = vmatmul.msk.f32.vlgmr.msra.gmra.mxu0 %vm876_vm0, %v4644_v4  ;;  %v4653_v23 = vld [vmem:[#allocation2 + $0x1148] sm:$0xff] }
 0x6ff   : > { %6080 = vmatpush.msra.mxu0 %v13838_v42  ;;  %v16165_v42 = vld [vmem:[#allocation77_spill] sm:$0xff] }
 0x700   : > { %v4483_v37 = vadd.f32 %v4482_v59, %v4412_v9  ;;  %4910 = vmatmul.f32.gmra.mxu1 %v4706_v27  ;;  %v3973_v5 = vadd.f32 %v13872_v29, %v16165_v42  ;;  %v4654_v29 = vld [vmem:[#allocation2 + $0x1150] sm:$0xff]  ;;  %v4669_v9 = vld [vmem:[#allocation2 + $0x11c8] sm:$0xff] }
 0x701   : > { %6081 = vmatpush.msra.mxu0 %v13846_v28  ;;  %v4347_v28 = vadd.f32 %v14183_v63, %v4276_v43  ;;  %v16169_v63 = vld [vmem:[#allocation102_spill] sm:$0xff]  ;;  %v16181_v59 = vld [vmem:[#allocation79_spill] sm:$0xff]  ;;  %v16188_v43 = vld [vmem:[#allocation108_spill] sm:$0xff] }
 0x702   : > { %10077 = vmatmul.msk.f32.gmra.mxu3 %vm1789_vm2, %v4483_v37  ;;  %v14206_v7 = vpop.f32.mrf.mxu0  ;;  %v3976_v54 = vadd.f32 %v16182_v60, %v16181_v59  ;;  %v16185_v37 = vld [vmem:[#allocation57_spill] sm:$0xff] }
 0x703   : > { %6082 = vmatpush.msra.mxu0 %v13851_v6 }
 0x705   : > { %v4414_v36 = vpop.f32.mrf.mxu1  ;;  %6083 = vmatpush.msra.mxu0 %v13856_v55 }
 0x706   : > { %v4415_v57 = vadd.f32 %v4414_v36, %v4344_v51  ;;  %10081 = vmatmul.msk.f32.gmra.mxu0 %vm876_vm0, %v4649_v11 }
 0x707   : > { %6084 = vmatpush.msra.mxu0 %v13864_v31  ;;  %v16167_v31 = vld [vmem:[#allocation90_spill] sm:$0xff] }
 0x708   : > { %v4486_v48 = vadd.f32 %v4485_v33, %v4415_v57  ;;  %4913 = vmatmul.f32.gmra.mxu1 %v4711_v2  ;;  %v3974_v40 = vadd.f32 %v16168_v15, %v16167_v31  ;;  %v3977_v33 = vadd.f32 %v16185_v37, %v16184_v38  ;;  %v4674_v2 = vld [vmem:[#allocation2 + $0x11f0] sm:$0xff]  ;;  %v4684_v15 = vld [vmem:[#allocation2 + $0x1240] sm:$0xff] }
 0x709   : > { %6085 = vmatpush.msra.mxu0 %v13869_v1  ;;  %v4721_v1 = vld [vmem:[#allocation2 + $0x1368] sm:$0xff]  ;;  %v16187_v57 = vld [vmem:[#allocation80_spill] sm:$0xff] }
 0x70a   : > { %10078 = vmatmul.msk.f32.gmra.mxu3 %vm1789_vm2, %v4486_v48  ;;  %v3978_v48 = vadd.f32 %v16188_v43, %v16187_v57  ;;  %v16202_v38 = vld [vmem:[#allocation84_spill] sm:$0xff]  ;;  %v16203_v37 = vld [vmem:[#allocation62_spill] sm:$0xff] }
 0x70b   : > { %v14219_v55 = vpop.f32.mrf.mxu0  ;;  %6086 = vmatpush.msra.mxu0 %v13876_v10  ;;  %v4704_v43 = vld [vmem:[#allocation2 + $0x12e0] sm:$0xff] }
 0x70d   : > { %v4417_v22 = vpop.f32.mrf.mxu1  ;;  %v4567_v26 = vpop.f32.mrf.mxu3  ;;  %6087 = vmatpush.msra.mxu0 %v13884_v44  ;;  %v4659_v44 = vld [vmem:[#allocation2 + $0x1178] sm:$0xff] }
 0x70e   : > { %v4418_v53 = vadd.f32 %v4417_v22, %v4347_v28  ;;  %v14216_v6 = vadd.f32 %v4567_v26, %v3973_v5  ;;  %10082 = vmatmul.msk.f32.gmra.mxu0 %vm876_vm0, %v4654_v29  ;;  %v4663_v5 = vld [vmem:[#allocation2 + $0x1198] sm:$0xff]  ;;  %v4668_v29 = vld [vmem:[#allocation2 + $0x11c0] sm:$0xff] }
 0x70f   : > { %6088 = vmatpush.msra.mxu0 %v16169_v63  ;;  %v16190_v22 = vld [vmem:[#allocation93_spill] sm:$0xff]  ;;  %v16194_v63 = vld [vmem:[#allocation59_spill] sm:$0xff] }
 0x710   : > { %16166 = vst [vmem:[#allocation42_spill] sm:$0xff] %v14216_v6  ;;  %v4489_v12 = vadd.f32 %v4488_v21, %v4418_v53  ;;  %4916 = vmatmul.f32.gmra.mxu1 %v4716_v62  ;;  %v4679_v21 = vld [vmem:[#allocation2 + $0x1218] sm:$0xff]  ;;  %v4728_v6 = vld [vmem:[#allocation2 + $0x13a0] sm:$0xff] }
 0x711   : > { %6089 = vmatpush.msra.mxu0 %v16171_v30  ;;  %v16191_v26 = vld [vmem:[#allocation69_spill] sm:$0xff] }
 0x712   : > { %10079 = vmatmul.msk.f32.gmra.mxu3 %vm1789_vm2, %v4489_v12  ;;  %v3979_v62 = vadd.f32 %v16191_v26, %v16190_v22  ;;  %v14313_v26 = vld [vmem:[%s11727_s23 + $0x1f8] sm:$0xff] }
 0x713   : > { %v14231_v10 = vpop.f32.mrf.mxu0  ;;  %6090 = vmatpush.msra.mxu0 %v16172_v49 }
 0x715   : > { %v4570_v25 = vpop.f32.mrf.mxu3  ;;  %6091 = vmatpush.msra.mxu0 %v16173_v14  ;;  %v16196_v14 = vld [vmem:[#allocation82_spill] sm:$0xff] }
 0x716   : > { %v14228_v52 = vadd.f32 %v4570_v25, %v3974_v40  ;;  %10083 = vmatmul.msk.f32.gmra.mxu0 %vm876_vm0, %v4659_v44  ;;  %v16193_v40 = vld [vmem:[#allocation81_spill] sm:$0xff]  ;;  %v4689_v44 = vld [vmem:[#allocation2 + $0x1268] sm:$0xff]  ;;  %v3981_v34 = vadd.f32 %v16197_v41, %v16196_v14 }
 0x717   : > { %6092 = vmatpush.msra.mxu0 %v16176_v56  ;;  %v3980_v25 = vadd.f32 %v16194_v63, %v16193_v40  ;;  %v14325_v63 = vld [vmem:[%s11727_s23 + $0x1e8] sm:$0xff]  ;;  %v14336_v41 = vld [vmem:[%s11727_s23 + $0x1d8] sm:$0xff] }
 0x718   : > { %16170 = vst [vmem:[#allocation49_spill] sm:$0xff] %v14228_v52  ;;  %4919 = vmatmul.f32.gmra.mxu1 %v4721_v1  ;;  %v10892_v52 = vld [vmem:[%s11727_s23 + $0x128] sm:$0xff] }
 0x719   : > { %6093 = vmatpush.msra.mxu0 %v16178_v39 }
 0x71a   : > { %5013 = vmatmul.f32.vlgmr.msrb.gmra.mxu3 %v4643_v8  ;;  %v4673_v8 = vld [vmem:[#allocation2 + $0x11e8] sm:$0xff] }
 0x71b   : > { %v14242_v13 = vpop.f32.mrf.mxu0  ;;  %6094 = vmatpush.msra.mxu0 %v16179_v19  ;;  %v16199_v19 = vld [vmem:[#allocation83_spill] sm:$0xff] }
 0x71d   : > { %v4573_v16 = vpop.f32.mrf.mxu3  ;;  %6095 = vmatpush.msra.mxu0 %v16180_v50 }
 0x71e   : > { %v14239_v18 = vadd.f32 %v4573_v16, %v3975_v0  ;;  %10084 = vmatmul.msk.f32.gmra.mxu0 %vm876_vm0, %v4664_v32  ;;  %v4678_v16 = vld [vmem:[#allocation2 + $0x1210] sm:$0xff]  ;;  %v16200_v32 = vld [vmem:[#allocation70_spill] sm:$0xff] }
 0x71f   : > { %v3982_v50 = vadd.f32 %v16200_v32, %v16199_v19  ;;  %v14346_v19 = vld [vmem:[%s11727_s23 + $0x1d0] sm:$0xff] }
 0x720   : > { %16177 = vst [vmem:[#allocation51_spill] sm:$0xff] %v14239_v18  ;;  %4922 = vmatmul.f32.gmra.mxu1 %v4726_v17  ;;  %v14286_v17 = vpop.f32.mrf.mxu2  ;;  %v4698_v32 = vld [vmem:[#allocation2 + $0x12b0] sm:$0xff] }
 0x722   : > { %5016 = vmatmul.f32.gmra.mxu3 %v4648_v46  ;;  %v4694_v46 = vld [vmem:[#allocation2 + $0x1290] sm:$0xff] }
 0x723   : > { %v14251_v27 = vpop.f32.mrf.mxu0 }
 0x725   : > { %v4576_v45 = vpop.f32.mrf.mxu3 }
 0x726   : > { %v14249_v3 = vadd.f32 %v4576_v45, %v3976_v54  ;;  %10085 = vmatmul.msk.f32.gmra.mxu0 %vm876_vm0, %v4669_v9  ;;  %v4683_v54 = vld [vmem:[#allocation2 + $0x1238] sm:$0xff] }
 0x727   : > { %v4699_v9 = vld [vmem:[#allocation2 + $0x12b8] sm:$0xff] }
 0x728   : > { %16183 = vst [vmem:[#allocation43_spill] sm:$0xff] %v14249_v3  ;;  %v16224_v3 = vld [vmem:[#allocation111_spill] sm:$0xff] }
 0x72a   : > { %5019 = vmatmul.f32.gmra.mxu3 %v4653_v23  ;;  %v14297_v23 = vpop.f32.mrf.mxu2 }
 0x72b   : > { %v14258_v36 = vpop.f32.mrf.mxu0 }
 0x72d   : > { %v4579_v4 = vpop.f32.mrf.mxu3 }
 0x72e   : > { %v14256_v51 = vadd.f32 %v4579_v4, %v3977_v33  ;;  %10086 = vmatmul.msk.f32.gmra.mxu0 %vm876_vm0, %v4674_v2  ;;  %v3983_v33 = vadd.f32 %v16203_v37, %v16202_v38  ;;  %v4688_v2 = vld [vmem:[#allocation2 + $0x1260] sm:$0xff]  ;;  %v16211_v38 = vld [vmem:[#allocation87_spill] sm:$0xff] }
 0x72f   : > { %v16212_v37 = vld [vmem:[#allocation73_spill] sm:$0xff] }
 0x730   : > { %16186 = vst [vmem:[#allocation44_spill] sm:$0xff] %v14256_v51 }
 0x732   : > { %5022 = vmatmul.f32.gmra.mxu3 %v4658_v58  ;;  %v14310_v22 = vpop.f32.mrf.mxu2 }
 0x733   : > { %v14265_v28 = vpop.f32.mrf.mxu0 }
 0x735   : > { %v4582_v11 = vpop.f32.mrf.mxu3 }
 0x736   : > { %v14263_v42 = vadd.f32 %v4582_v11, %v3978_v48  ;;  %10087 = vmatmul.msk.f32.gmra.mxu0 %vm876_vm0, %v4679_v21  ;;  %v5140_v48 = vld [vmem:[#allocation10 + $0x18] sm:$0xf]  ;;  %v16205_v11 = vld [vmem:[#allocation85_spill] sm:$0xff] }
 0x737   : > { %10098 = vmatpush.msk.msra.mxu1 %vm1844_vm1, %v5140_v48  ;;  %v14369_v48 = vld [vmem:[%s11727_s23 + $0x1b0] sm:$0xff] }
 0x738   : > { %16189 = vst [vmem:[#allocation96_spill] sm:$0xff] %v14263_v42 }
 0x739   : > { %5645 = vmatpush.msrb.mxu1 %v14313_v26 }
 0x73a   : > { %5025 = vmatmul.f32.gmra.mxu3 %v4663_v5  ;;  %v16206_v5 = vld [vmem:[#allocation72_spill] sm:$0xff] }
 0x73b   : > { %v14272_v31 = vpop.f32.mrf.mxu0  ;;  %v3984_v21 = vadd.f32 %v16206_v5, %v16205_v11  ;;  %v4703_v5 = vld [vmem:[#allocation2 + $0x12d8] sm:$0xff] }
 0x73d   : > { %v4585_v53 = vpop.f32.mrf.mxu3 }
 0x73e   : > { %v14270_v12 = vadd.f32 %v4585_v53, %v3979_v62  ;;  %10088 = vmatmul.msk.f32.gmra.mxu0 %vm876_vm0, %v4684_v15  ;;  %v4693_v15 = vld [vmem:[#allocation2 + $0x1288] sm:$0xff] }
 0x740   : > { %16192 = vst [vmem:[#allocation98_spill] sm:$0xff] %v14270_v12  ;;  %v4729_v12 = vld [vmem:[#allocation2 + $0x13a8] sm:$0xff] }
 0x742   : > { %5028 = vmatmul.f32.gmra.mxu3 %v4668_v29  ;;  %v14319_v29 = vld [vmem:[%s11727_s23 + $0x1f0] sm:$0xff] }
 0x743   : > { %v14279_v49 = vpop.f32.mrf.mxu0  ;;  %5646 = vmatpush.msrb.mxu1 %v14319_v29 }
 0x745   : > { %v4588_v1 = vpop.f32.mrf.mxu3  ;;  %5647 = vmatpush.msrb.mxu1 %v14325_v63 }
 0x746   : > { %v14277_v30 = vadd.f32 %v4588_v1, %v3980_v25  ;;  %10089 = vmatmul.msk.f32.gmra.mxu0 %vm876_vm0, %v4689_v44  ;;  %v4709_v25 = vld [vmem:[#allocation2 + $0x1308] sm:$0xff]  ;;  %v14329_v1 = vld [vmem:[%s11727_s23 + $0x1e0] sm:$0xff]  ;;  %v16209_v44 = vld [vmem:[#allocation64_spill] sm:$0xff] }
 0x747   : > { %5648 = vmatpush.msrb.mxu1 %v14329_v1 }
 0x748   : > { %16195 = vst [vmem:[#allocation54_spill] sm:$0xff] %v14277_v30 }
 0x749   : > { %5649 = vmatpush.msrb.mxu1 %v14336_v41 }
 0x74a   : > { %5031 = vmatmul.f32.gmra.mxu3 %v4673_v8  ;;  %v16208_v8 = vld [vmem:[#allocation86_spill] sm:$0xff] }
 0x74b   : > { %v14288_v39 = vpop.f32.mrf.mxu0  ;;  %v3985_v14 = vadd.f32 %v16209_v44, %v16208_v8  ;;  %5650 = vmatpush.msrb.mxu1 %v14346_v19  ;;  %v14383_v8 = vld [vmem:[%s11727_s23 + $0x1a0] sm:$0xff]  ;;  %v16214_v44 = vld [vmem:[#allocation88_spill] sm:$0xff] }
 0x74d   : > { %v4591_v0 = vpop.f32.mrf.mxu3 }
 0x74e   : > { %v14284_v56 = vadd.f32 %v4591_v0, %v3981_v34  ;;  %10090 = vmatmul.msk.f32.gmra.mxu0 %vm876_vm0, %v4694_v46  ;;  %v14339_v34 = vpop.f32.mrf.mxu1 }
 0x750   : > { %16198 = vst [vmem:[#allocation45_spill] sm:$0xff] %v14284_v56  ;;  %v4713_v56 = vld [vmem:[#allocation2 + $0x1328] sm:$0xff] }
 0x752   : > { %5034 = vmatmul.f32.gmra.mxu3 %v4678_v16  ;;  %v14341_v16 = vpop.f32.mrf.mxu2 }
 0x753   : > { %v14295_v45 = vpop.f32.mrf.mxu0 }
 0x755   : > { %v4594_v59 = vpop.f32.mrf.mxu3 }
 0x756   : > { %v14293_v60 = vadd.f32 %v4594_v59, %v3982_v50  ;;  %10091 = vmatmul.msk.f32.gmra.mxu0 %vm876_vm0, %v4699_v9  ;;  %v14352_v59 = vld [vmem:[%s11727_s23 + $0x1c8] sm:$0xff]  ;;  %v14356_v9 = vld [vmem:[%s11727_s23 + $0x1c0] sm:$0xff]  ;;  %v14372_v11 = vpop.f32.mrf.mxu1 }
 0x757   : > { %5651 = vmatpush.msrb.mxu1 %v14352_v59 }
 0x758   : > { %16201 = vst [vmem:[#allocation100_spill] sm:$0xff] %v14293_v60 }
 0x759   : > { %5652 = vmatpush.msrb.mxu1 %v14356_v9 }
 0x75a   : > { %5037 = vmatmul.f32.gmra.mxu3 %v4683_v54  ;;  %v4714_v54 = vld [vmem:[#allocation2 + $0x1330] sm:$0xff] }
 0x75b   : > { %v14304_v57 = vpop.f32.mrf.mxu0 }
 0x75d   : > { %v4597_v4 = vpop.f32.mrf.mxu3 }
 0x75e   : > { %v14302_v58 = vadd.f32 %v4597_v4, %v3983_v33  ;;  %10092 = vmatmul.msk.f32.gmra.mxu0 %vm876_vm0, %v4704_v43  ;;  %v3986_v33 = vadd.f32 %v16212_v37, %v16211_v38  ;;  %v14363_v4 = vld [vmem:[%s11727_s23 + $0x1b8] sm:$0xff]  ;;  %v5288_v37 = vld [vmem:[#allocation2 + $0x13b0] sm:$0xff] }
 0x75f   : > { %5653 = vmatpush.msrb.mxu1 %v14363_v4  ;;  %5448 = vmatmul.f32.vlgmr.msra.gmra.mxu2 %v5288_v37  ;;  %v10883_v37 = vld [vmem:[%s11727_s23 + $0x170] sm:$0xff] }
 0x760   : > { %16204 = vst [vmem:[#allocation101_spill] sm:$0xff] %v14302_v58  ;;  %v10884_v58 = vld [vmem:[%s11727_s23 + $0x168] sm:$0xff] }
 0x761   : > { %5654 = vmatpush.msrb.mxu1 %v14369_v48 }
 0x762   : > { %5040 = vmatmul.f32.gmra.mxu3 %v4688_v2 }
 0x763   : > { %v14322_v40 = vpop.f32.mrf.mxu0 }
 0x765   : > { %v4600_v62 = vpop.f32.mrf.mxu3 }
 0x766   : > { %v14316_v53 = vadd.f32 %v4600_v62, %v3984_v21  ;;  %10093 = vmatmul.msk.f32.gmra.mxu0 %vm876_vm0, %v4709_v25  ;;  %v14374_v21 = vpop.f32.mrf.mxu2  ;;  %v4719_v25 = vld [vmem:[#allocation2 + $0x1358] sm:$0xff] }
 0x768   : > { %16207 = vst [vmem:[#allocation103_spill] sm:$0xff] %v14316_v53 }
 0x76a   : > { %5043 = vmatmul.f32.gmra.mxu3 %v4693_v15  ;;  %v14379_v15 = vld [vmem:[%s11727_s23 + $0x1a8] sm:$0xff] }
 0x76b   : > { %v14349_v50 = vpop.f32.mrf.mxu0  ;;  %5655 = vmatpush.msrb.mxu1 %v14379_v15 }
 0x76d   : > { %v4603_v0 = vpop.f32.mrf.mxu3  ;;  %5656 = vmatpush.msrb.mxu1 %v14383_v8 }
 0x76e   : > { %v14343_v46 = vadd.f32 %v4603_v0, %v3985_v14  ;;  %10094 = vmatmul.msk.f32.gmra.mxu0 %vm876_vm0, %v4714_v54  ;;  %v16215_v14 = vld [vmem:[#allocation66_spill] sm:$0xff] }
 0x76f   : > { %v3987_v0 = vadd.f32 %v16215_v14, %v16214_v44  ;;  %v10881_v44 = vld [vmem:[%s11727_s23 + $0x178] sm:$0xff]  ;;  %v14406_v14 = vpop.f32.mrf.mxu1 }
 0x770   : > { %16210 = vst [vmem:[#allocation104_spill] sm:$0xff] %v14343_v46  ;;  %6222 = vmatpush.msra.mxu2 %v10881_v44  ;;  %v16218_v46 = vld [vmem:[#allocation74_spill] sm:$0xff] }
 0x772   : > { %5046 = vmatmul.f32.gmra.mxu3 %v4698_v32  ;;  %v14390_v32 = vld [vmem:[%s11727_s23 + $0x198] sm:$0xff]  ;;  %6223 = vmatpush.msra.mxu2 %v10883_v37 }
 0x773   : > { %v14376_v62 = vpop.f32.mrf.mxu0  ;;  %5657 = vmatpush.msrb.mxu1 %v14390_v32  ;;  %v10886_v37 = vld [vmem:[%s11727_s23 + $0x158] sm:$0xff] }
 0x774   : > { %6224 = vmatpush.msra.mxu2 %v10884_v58  ;;  %v16220_v58 = vld [vmem:[#allocation99_spill] sm:$0xff] }
 0x775   : > { %v4606_v2 = vpop.f32.mrf.mxu3 }
 0x776   : > { %v14366_v43 = vadd.f32 %v4606_v2, %v3986_v33  ;;  %10095 = vmatmul.msk.f32.gmra.mxu0 %vm876_vm0, %v4719_v25  ;;  %v14396_v33 = vld [vmem:[%s11727_s23 + $0x190] sm:$0xff]  ;;  %v4708_v2 = vld [vmem:[#allocation2 + $0x1300] sm:$0xff]  ;;  %v14402_v25 = vld [vmem:[%s11727_s23 + $0x188] sm:$0xff] }
 0x777   : > { %5658 = vmatpush.msrb.mxu1 %v14396_v33 }
 0x778   : > { %16213 = vst [vmem:[#allocation56_spill] sm:$0xff] %v14366_v43  ;;  %v16217_v43 = vld [vmem:[#allocation52_spill] sm:$0xff] }
 0x779   : > { %5659 = vmatpush.msrb.mxu1 %v14402_v25  ;;  %v3988_v53 = vadd.f32 %v16218_v46, %v16217_v43  ;;  %v14425_v46 = vpop.f32.mrf.mxu1 }
 0x77a   : > { %5049 = vmatmul.f32.gmra.mxu3 %v4703_v5 }
 0x77b   : > { %v14399_v5 = vpop.f32.mrf.mxu0 }
 0x77d   : > { %v4609_v54 = vpop.f32.mrf.mxu3 }
 0x77e   : > { %v14393_v38 = vadd.f32 %v4609_v54, %v3987_v0  ;;  %v14408_v0 = vpop.f32.mrf.mxu2  ;;  %v4724_v54 = vld [vmem:[#allocation2 + $0x1380] sm:$0xff] }
 0x77f   : > { %10096 = vmatmul.msk.f32.gmra.mxu0 %vm876_vm0, %v4724_v54  ;;  %v10885_v54 = vld [vmem:[%s11727_s23 + $0x160] sm:$0xff] }
 0x780   : > { %16216 = vst [vmem:[#allocation46_spill] sm:$0xff] %v14393_v38  ;;  %v14411_v38 = vld [vmem:[%s11727_s23 + $0x180] sm:$0xff]  ;;  %6225 = vmatpush.msra.mxu2 %v10885_v54  ;;  %v10888_v54 = vld [vmem:[%s11727_s23 + $0x148] sm:$0xff] }
 0x781   : > { %5660 = vmatpush.msrb.mxu1 %v14411_v38 }
 0x782   : > { %5052 = vmatmul.f32.gmra.mxu3 %v4708_v2  ;;  %v5293_v2 = vld [vmem:[#allocation2 + $0x13d8] sm:$0xff]  ;;  %6226 = vmatpush.msra.mxu2 %v10886_v37  ;;  %v4718_v37 = vld [vmem:[#allocation2 + $0x1350] sm:$0xff] }
 0x783   : > { %5451 = vmatmul.f32.gmra.mxu2 %v5293_v2  ;;  %v14421_v30 = vpop.f32.mrf.mxu0  ;;  %v10887_v2 = vld [vmem:[%s11727_s23 + $0x150] sm:$0xff] }
 0x784   : > { %6227 = vmatpush.msra.mxu2 %v10887_v2  ;;  %v16223_v2 = vld [vmem:[#allocation94_spill] sm:$0xff] }
 0x785   : > { %v4612_v44 = vpop.f32.mrf.mxu3 }
 0x786   : > { %v14419_v60 = vadd.f32 %v4612_v44, %v3988_v53  ;;  %v16221_v53 = vld [vmem:[#allocation68_spill] sm:$0xff]  ;;  %v14430_v44 = vpop.f32.mrf.mxu2  ;;  %6228 = vmatpush.msra.mxu2 %v10888_v54  ;;  %v14444_v54 = vpop.f32.mrf.mxu1 }
 0x787   : > { %10097 = vmatmul.msk.f32.gmra.mxu0 %vm876_vm0, %v4729_v12  ;;  %v3989_v43 = vadd.f32 %v16221_v53, %v16220_v58  ;;  %v10889_v12 = vld [vmem:[%s11727_s23 + $0x140] sm:$0xff]  ;;  %v10890_v53 = vld [vmem:[%s11727_s23 + $0x138] sm:$0xff] }
 0x788   : > { %16219 = vst [vmem:[#allocation95_spill] sm:$0xff] %v14419_v60  ;;  %6229 = vmatpush.msra.mxu2 %v10889_v12  ;;  %v5290_v58 = vld [vmem:[#allocation2 + $0x13c0] sm:$0xff] }
 0x78a   : > { %5055 = vmatmul.f32.gmra.mxu3 %v4713_v56  ;;  %v5298_v56 = vld [vmem:[#allocation2 + $0x1400] sm:$0xff]  ;;  %6230 = vmatpush.msra.mxu2 %v10890_v53  ;;  %v4723_v53 = vld [vmem:[#allocation2 + $0x1378] sm:$0xff] }
 0x78b   : > { %5454 = vmatmul.f32.gmra.mxu2 %v5298_v56  ;;  %v14436_v51 = vpop.f32.mrf.mxu0 }
 0x78d   : > { %v4615_v60 = vpop.f32.mrf.mxu3 }
 0x78e   : > { %v14433_v42 = vadd.f32 %v4615_v60, %v3989_v43  ;;  %v3990_v60 = vadd.f32 %v16224_v3, %v16223_v2  ;;  %v10891_v43 = vld [vmem:[%s11727_s23 + $0x130] sm:$0xff]  ;;  %v14446_v18 = vpop.f32.mrf.mxu2  ;;  %v4873_v3 = vadd.f32 %v14339_v34, %v14188_v35 }
 0x78f   : > { %5590 = vmatmul.f32.vlgmr.msrb.gmra.mxu0 %v5290_v58  ;;  %6231 = vmatpush.msra.mxu2 %v10891_v43  ;;  %v16227_v58 = vld [vmem:[#allocation75_spill] sm:$0xff] }
 0x790   : > { %16222 = vst [vmem:[#allocation58_spill] sm:$0xff] %v14433_v42  ;;  %v16225_v42 = vld [vmem:[#allocation110_spill] sm:$0xff]  ;;  %v16228_v2 = vld [vmem:[#allocation71_spill] sm:$0xff] }
 0x791   : > { %6372 = vmatpush.msrb.mxu0 %v16225_v42  ;;  %6232 = vmatpush.msra.mxu2 %v10892_v52  ;;  %v10893_v42 = vld [vmem:[%s11727_s23 + $0x120] sm:$0xff]  ;;  %v4944_v52 = vadd.f32 %v14286_v17, %v4873_v3  ;;  %v4876_v17 = vadd.f32 %v14372_v11, %v14193_v61 }
 0x792   : > { %5058 = vmatmul.f32.gmra.mxu3 %v4718_v37  ;;  %v5303_v37 = vld [vmem:[#allocation2 + $0x1428] sm:$0xff] }
 0x793   : > { %6373 = vmatpush.msrb.mxu0 %v16227_v58  ;;  %5457 = vmatmul.f32.gmra.mxu2 %v5303_v37  ;;  %v14456_v43 = vpop.f32.mrf.mxu0  ;;  %v10895_v58 = vld [vmem:[%s11727_s23 + $0x110] sm:$0xff]  ;;  %v4947_v61 = vadd.f32 %v14297_v23, %v4876_v17 }
 0x794   : > { %6233 = vmatpush.msra.mxu2 %v10893_v42  ;;  %v16229_v37 = vld [vmem:[#allocation76_spill] sm:$0xff]  ;;  %v10896_v42 = vld [vmem:[%s11727_s23 + $0x108] sm:$0xff] }
 0x795   : > { %v4618_v56 = vpop.f32.mrf.mxu3  ;;  %6374 = vmatpush.msrb.mxu0 %v16228_v2  ;;  %v16230_v2 = vld [vmem:[#allocation89_spill] sm:$0xff] }
 0x796   : > { %v14448_v12 = vadd.f32 %v4618_v56, %v3990_v60  ;;  %v5295_v60 = vld [vmem:[#allocation2 + $0x13e8] sm:$0xff]  ;;  %v10894_v56 = vld [vmem:[%s11727_s23 + $0x118] sm:$0xff]  ;;  %v14468_v3 = vpop.f32.mrf.mxu2 }
 0x797   : > { %6234 = vmatpush.msra.mxu2 %v10894_v56  ;;  %5593 = vmatmul.f32.gmra.mxu0 %v5295_v60  ;;  %v10897_v56 = vld [vmem:[%s11727_s23 + $0x100] sm:$0xff] }
 0x798   : > { %16226 = vst [vmem:[#allocation47_spill] sm:$0xff] %v14448_v12  ;;  %6375 = vmatpush.msrb.mxu0 %v16229_v37  ;;  %v5308_v12 = vld [vmem:[#allocation2 + $0x1450] sm:$0xff] }
 0x799   : > { %6235 = vmatpush.msra.mxu2 %v10895_v58  ;;  %v5300_v58 = vld [vmem:[#allocation2 + $0x1410] sm:$0xff] }
 0x79a   : > { %5061 = vmatmul.f32.gmra.mxu3 %v4723_v53  ;;  %6376 = vmatpush.msrb.mxu0 %v16230_v2  ;;  %v14464_v53 = vpop.f32.mrf.mxu1  ;;  %v4879_v2 = vadd.f32 %v14406_v14, %v14198_v47 }
 0x79b   : > { %6236 = vmatpush.msra.mxu2 %v10896_v42  ;;  %v14474_v37 = vpop.f32.mrf.mxu0  ;;  %v10900_v42 = vld [vmem:[%s11727_s23 + $0xe8] sm:$0xff] }
 0x79c   : > { %5460 = vmatmul.f32.gmra.mxu2 %v5308_v12  ;;  %v10898_v12 = vld [vmem:[%s11727_s23 + $0xf8] sm:$0xff] }
 0x79d   : > { %v5014_v35 = vpop.f32.mrf.mxu3  ;;  %6237 = vmatpush.msra.mxu2 %v10897_v56  ;;  %v10902_v56 = vld [vmem:[%s11727_s23 + $0xd8] sm:$0xff] }
 0x79e   : > { %v5015_v34 = vadd.f32 %v5014_v35, %v4944_v52  ;;  %v16231_v52 = vld [vmem:[#allocation91_spill] sm:$0xff] }
 0x79f   : > { %6377 = vmatpush.msrb.mxu0 %v16231_v52  ;;  %v4950_v52 = vadd.f32 %v14310_v22, %v4879_v2  ;;  %v5310_v22 = vld [vmem:[#allocation2 + $0x1460] sm:$0xff] }
 0x7a0   : > { %v5086_v60 = vadd.f32 %v14399_v5, %v5015_v34  ;;  %5596 = vmatmul.f32.gmra.mxu0 %v5300_v58  ;;  %v10899_v5 = vld [vmem:[%s11727_s23 + $0xf0] sm:$0xff]  ;;  %v5313_v34 = vld [vmem:[#allocation2 + $0x1478] sm:$0xff] }
 0x7a1   : > { %6378 = vmatpush.msrb.mxu0 %v14085_v24  ;;  %v10901_v24 = vld [vmem:[%s11727_s23 + $0xe0] sm:$0xff] }
 0x7a2   : > { %5064 = vmatmul.f32.gmra.mxu3 %v4728_v6  ;;  %10099 = vmatmul.msk.f32.vlgmr.msra.gmra.mxu1 %vm1789_vm2, %v5086_v60  ;;  %v5289_v6 = vld [vmem:[#allocation2 + $0x13b8] sm:$0xff]  ;;  %v14485_v17 = vpop.f32.mrf.mxu1  ;;  %v14488_v60 = vpop.f32.mrf.mxu2 }
 0x7a3   : > { %6151 = vmatpush.msra.mxu1 %v10898_v12  ;;  %6379 = vmatpush.msrb.mxu0 %v14093_v20  ;;  %v5305_v20 = vld [vmem:[#allocation2 + $0x1438] sm:$0xff]  ;;  %v14493_v14 = vpop.f32.mrf.mxu0  ;;  %v5318_v12 = vld [vmem:[#allocation2 + $0x14a0] sm:$0xff] }
 0x7a4   : > { %5463 = vmatmul.f32.gmra.mxu2 %v5313_v34  ;;  %v10905_v34 = vld [vmem:[%s11727_s23 + $0xc0] sm:$0xff] }
 0x7a5   : > { %v5017_v11 = vpop.f32.mrf.mxu3  ;;  %6152 = vmatpush.msra.mxu1 %v10899_v5  ;;  %v4882_v5 = vadd.f32 %v14425_v46, %v14206_v7  ;;  %v10907_v46 = vld [vmem:[%s11727_s23 + $0xb0] sm:$0xff] }
 0x7a6   : > { %v5018_v35 = vadd.f32 %v5017_v11, %v4947_v61  ;;  %v5294_v61 = vld [vmem:[#allocation2 + $0x13e0] sm:$0xff]  ;;  %v10904_v11 = vld [vmem:[%s11727_s23 + $0xc8] sm:$0xff] }
 0x7a7   : > { %6153 = vmatpush.msra.mxu1 %v10900_v42  ;;  %v10906_v42 = vld [vmem:[%s11727_s23 + $0xb8] sm:$0xff]  ;;  %v4953_v2 = vadd.f32 %v14341_v16, %v4882_v5  ;;  %v10909_v16 = vld [vmem:[%s11727_s23 + $0xa0] sm:$0xff] }
 0x7a8   : > { %v5089_v23 = vadd.f32 %v14421_v30, %v5018_v35  ;;  %5599 = vmatmul.f32.gmra.mxu0 %v5305_v20  ;;  %v10903_v30 = vld [vmem:[%s11727_s23 + $0xd0] sm:$0xff]  ;;  %v5299_v20 = vld [vmem:[#allocation2 + $0x1408] sm:$0xff] }
 0x7a9   : > { %6154 = vmatpush.msra.mxu1 %v10901_v24  ;;  %v5323_v24 = vld [vmem:[#allocation2 + $0x14c8] sm:$0xff] }
 0x7aa   : > { %10100 = vmatmul.msk.f32.gmra.mxu1 %vm1789_vm2, %v5089_v23  ;;  %5519 = vmatmul.f32.vlgmr.msra.gmra.mxu3 %v5289_v6  ;;  %v14502_v6 = vpop.f32.mrf.mxu1  ;;  %v14506_v23 = vpop.f32.mrf.mxu2 }
 0x7ab   : > { %6155 = vmatpush.msra.mxu1 %v10902_v56  ;;  %v5103_v56 = vpop.f32.mrf.mxu0 }
 0x7ac   : > { %5466 = vmatmul.f32.gmra.mxu2 %v5318_v12  ;;  %v10910_v12 = vld [vmem:[%s11727_s23 + $0x98] sm:$0xff] }
 0x7ad   : > { %v5020_v47 = vpop.f32.mrf.mxu3  ;;  %6156 = vmatpush.msra.mxu1 %v10903_v30 }
 0x7ae   : > { %v5021_v58 = vadd.f32 %v5020_v47, %v4950_v52  ;;  %v10908_v52 = vld [vmem:[%s11727_s23 + $0xa8] sm:$0xff]  ;;  %v4885_v47 = vadd.f32 %v14444_v54, %v14219_v55 }
 0x7af   : > { %6157 = vmatpush.msra.mxu1 %v10904_v11 }
 0x7b0   : > { %v5092_v35 = vadd.f32 %v14436_v51, %v5021_v58  ;;  %5602 = vmatmul.f32.gmra.mxu0 %v5310_v22  ;;  %v5315_v58 = vld [vmem:[#allocation2 + $0x1488] sm:$0xff] }
 0x7b1   : > { %6158 = vmatpush.msra.mxu1 %v10905_v34  ;;  %v5304_v34 = vld [vmem:[#allocation2 + $0x1430] sm:$0xff]  ;;  %v10912_v22 = vld [vmem:[%s11727_s23 + $0x88] sm:$0xff] }
 0x7b2   : > { %10101 = vmatmul.msk.f32.gmra.mxu1 %vm1789_vm2, %v5092_v35  ;;  %5522 = vmatmul.f32.gmra.mxu3 %v5294_v61  ;;  %v4956_v61 = vadd.f32 %v14374_v21, %v4885_v47  ;;  %v4896_v11 = vpop.f32.mrf.mxu1  ;;  %v10911_v35 = vld [vmem:[%s11727_s23 + $0x90] sm:$0xff]  ;;  %v14518_v55 = vpop.f32.mrf.mxu2 }
 0x7b3   : > { %6159 = vmatpush.msra.mxu1 %v10906_v42  ;;  %v4888_v42 = vadd.f32 %v14464_v53, %v14231_v10  ;;  %v5320_v21 = vld [vmem:[#allocation2 + $0x14b0] sm:$0xff]  ;;  %v4891_v10 = vadd.f32 %v14485_v17, %v14242_v13  ;;  %v4894_v13 = vadd.f32 %v14502_v6, %v14251_v27  ;;  %v5335_v6 = vld [vmem:[#allocation2 + $0x1528] sm:$0xff] }
 0x7b4   : > { %5469 = vmatmul.f32.gmra.mxu2 %v5323_v24 }
 0x7b5   : > { %v5023_v7 = vpop.f32.mrf.mxu3  ;;  %6160 = vmatpush.msra.mxu1 %v10907_v46  ;;  %v10913_v46 = vld [vmem:[%s11727_s23 + $0x80] sm:$0xff] }
 0x7b6   : > { %v5024_v51 = vadd.f32 %v5023_v7, %v4953_v2  ;;  %v5106_v7 = vpop.f32.mrf.mxu0 }
 0x7b7   : > { %6161 = vmatpush.msra.mxu1 %v10908_v52  ;;  %v5333_v52 = vld [vmem:[#allocation2 + $0x1518] sm:$0xff] }
 0x7b8   : > { %v5095_v30 = vadd.f32 %v14456_v43, %v5024_v51  ;;  %5605 = vmatmul.f32.gmra.mxu0 %v5315_v58  ;;  %v5328_v43 = vld [vmem:[#allocation2 + $0x14f0] sm:$0xff]  ;;  %v4959_v51 = vadd.f32 %v14408_v0, %v4888_v42  ;;  %v4962_v0 = vadd.f32 %v14430_v44, %v4891_v10 }
 0x7b9   : > { %6162 = vmatpush.msra.mxu1 %v10909_v16  ;;  %v5325_v16 = vld [vmem:[#allocation2 + $0x14d8] sm:$0xff] }
 0x7ba   : > { %10102 = vmatmul.msk.f32.gmra.mxu1 %vm1789_vm2, %v5095_v30  ;;  %5525 = vmatmul.f32.gmra.mxu3 %v5299_v20  ;;  %v4899_v47 = vpop.f32.mrf.mxu1  ;;  %v5309_v30 = vld [vmem:[#allocation2 + $0x1458] sm:$0xff]  ;;  %v14529_v53 = vpop.f32.mrf.mxu2 }
 0x7bb   : > { %6163 = vmatpush.msra.mxu1 %v10910_v12 }
 0x7bc   : > { %5472 = vmatmul.f32.gmra.mxu2 %v5328_v43 }
 0x7bd   : > { %v5026_v5 = vpop.f32.mrf.mxu3  ;;  %6164 = vmatpush.msra.mxu1 %v10911_v35  ;;  %v5314_v35 = vld [vmem:[#allocation2 + $0x1480] sm:$0xff] }
 0x7be   : > { %v5027_v54 = vadd.f32 %v5026_v5, %v4956_v61  ;;  %v5109_v58 = vpop.f32.mrf.mxu0  ;;  %v5338_v5 = vld [vmem:[#allocation2 + $0x1540] sm:$0xff] }
 0x7bf   : > { %6165 = vmatpush.msra.mxu1 %v10912_v22 }
 0x7c0   : > { %v5098_v2 = vadd.f32 %v14474_v37, %v5027_v54  ;;  %5608 = vmatmul.f32.gmra.mxu0 %v5320_v21  ;;  %v4897_v21 = vadd.f32 %v4896_v11, %v14258_v36  ;;  %v5340_v11 = vld [vmem:[#allocation2 + $0x1550] sm:$0xff] }
 0x7c1   : > { %6166 = vmatpush.msra.mxu1 %v10913_v46  ;;  %v5319_v46 = vld [vmem:[#allocation2 + $0x14a8] sm:$0xff] }
 0x7c2   : > { %10103 = vmatmul.msk.f32.gmra.mxu1 %vm1789_vm2, %v5098_v2  ;;  %5528 = vmatmul.f32.gmra.mxu3 %v5304_v34  ;;  %v4902_v54 = vpop.f32.mrf.mxu1  ;;  %v14536_v43 = vpop.f32.mrf.mxu2  ;;  %v4965_v34 = vadd.f32 %v14446_v18, %v4894_v13  ;;  %v5343_v2 = vld [vmem:[#allocation2 + $0x1568] sm:$0xff] }
 0x7c4   : > { %5475 = vmatmul.f32.gmra.mxu2 %v5333_v52  ;;  %v5348_v52 = vld [vmem:[#allocation2 + $0x1590] sm:$0xff] }
 0x7c5   : > { %v5029_v24 = vpop.f32.mrf.mxu3 }
 0x7c6   : > { %v5030_v20 = vadd.f32 %v5029_v24, %v4959_v51  ;;  %v5112_v22 = vpop.f32.mrf.mxu0  ;;  %v4968_v51 = vadd.f32 %v14468_v3, %v4897_v21 }
 0x7c8   : > { %v5101_v37 = vadd.f32 %v14493_v14, %v5030_v20  ;;  %5611 = vmatmul.f32.gmra.mxu0 %v5325_v16  ;;  %v5330_v14 = vld [vmem:[#allocation2 + $0x1500] sm:$0xff] }
 0x7ca   : > { %10104 = vmatmul.msk.f32.gmra.mxu1 %vm1789_vm2, %v5101_v37  ;;  %5531 = vmatmul.f32.gmra.mxu3 %v5309_v30  ;;  %v14543_v24 = vpop.f32.mrf.mxu2  ;;  %v5324_v30 = vld [vmem:[#allocation2 + $0x14d0] sm:$0xff]  ;;  %v4900_v37 = vadd.f32 %v4899_v47, %v14265_v28  ;;  %v5345_v47 = vld [vmem:[#allocation2 + $0x1578] sm:$0xff] }
 0x7cc   : > { %5478 = vmatmul.f32.gmra.mxu2 %v5338_v5  ;;  %v5329_v5 = vld [vmem:[#allocation2 + $0x14f8] sm:$0xff] }
 0x7cd   : > { %v5032_v12 = vpop.f32.mrf.mxu3 }
 0x7ce   : > { %v5033_v61 = vadd.f32 %v5032_v12, %v4962_v0  ;;  %v5115_v10 = vpop.f32.mrf.mxu0 }
 0x7d0   : > { %v5104_v17 = vadd.f32 %v5103_v56, %v5033_v61  ;;  %5614 = vmatmul.f32.gmra.mxu0 %v5330_v14  ;;  %v4905_v56 = vpop.f32.mrf.mxu1  ;;  %v5353_v61 = vld [vmem:[#allocation2 + $0x15b8] sm:$0xff]  ;;  %v5358_v14 = vld [vmem:[#allocation2 + $0x15e0] sm:$0xff] }
 0x7d2   : > { %10105 = vmatmul.msk.f32.gmra.mxu1 %vm1789_vm2, %v5104_v17  ;;  %5534 = vmatmul.f32.gmra.mxu3 %v5314_v35  ;;  %v14548_v0 = vpop.f32.mrf.mxu2  ;;  %v4903_v35 = vadd.f32 %v4902_v54, %v14272_v31  ;;  %v5350_v54 = vld [vmem:[#allocation2 + $0x15a0] sm:$0xff] }
 0x7d4   : > { %5481 = vmatmul.f32.gmra.mxu2 %v5343_v2 }
 0x7d5   : > { %v5035_v44 = vpop.f32.mrf.mxu3 }
 0x7d6   : > { %v5036_v42 = vadd.f32 %v5035_v44, %v4965_v34  ;;  %v5118_v28 = vpop.f32.mrf.mxu0  ;;  %v5334_v44 = vld [vmem:[#allocation2 + $0x1520] sm:$0xff] }
 0x7d8   : > { %v5107_v27 = vadd.f32 %v5106_v7, %v5036_v42  ;;  %5617 = vmatmul.f32.gmra.mxu0 %v5335_v6  ;;  %v4971_v7 = vadd.f32 %v14488_v60, %v4900_v37  ;;  %v4908_v16 = vpop.f32.mrf.mxu1  ;;  %v4906_v42 = vadd.f32 %v4905_v56, %v14279_v49  ;;  %v5339_v6 = vld [vmem:[#allocation2 + $0x1548] sm:$0xff]  ;;  %v5368_v37 = vld [vmem:[#allocation2 + $0x1630] sm:$0xff] }
 0x7da   : > { %10106 = vmatmul.msk.f32.gmra.mxu1 %vm1789_vm2, %v5107_v27  ;;  %5537 = vmatmul.f32.gmra.mxu3 %v5319_v46  ;;  %v14554_v2 = vpop.f32.mrf.mxu2  ;;  %v4977_v46 = vadd.f32 %v14518_v55, %v4906_v42  ;;  %v5363_v27 = vld [vmem:[#allocation2 + $0x1608] sm:$0xff] }
 0x7dc   : > { %5484 = vmatmul.f32.gmra.mxu2 %v5348_v52 }
 0x7dd   : > { %v5038_v18 = vpop.f32.mrf.mxu3 }
 0x7de   : > { %v5039_v20 = vadd.f32 %v5038_v18, %v4968_v51  ;;  %v4909_v51 = vadd.f32 %v4908_v16, %v14288_v39  ;;  %v5360_v16 = vld [vmem:[#allocation2 + $0x15f0] sm:$0xff] }
 0x7e0   : > { %v5110_v36 = vadd.f32 %v5109_v58, %v5039_v20  ;;  %5620 = vmatmul.f32.gmra.mxu0 %v5340_v11  ;;  %v4974_v58 = vadd.f32 %v14506_v23, %v4903_v35  ;;  %v4911_v34 = vpop.f32.mrf.mxu1  ;;  %v5355_v20 = vld [vmem:[#allocation2 + $0x15c8] sm:$0xff]  ;;  %v4980_v52 = vadd.f32 %v14529_v53, %v4909_v51  ;;  %v5349_v35 = vld [vmem:[#allocation2 + $0x1598] sm:$0xff] }
 0x7e1   : > { %v4912_v11 = vadd.f32 %v4911_v34, %v14295_v45  ;;  %v5292_v34 = vld [vmem:[#allocation2 + $0x13d0] sm:$0xff] }
 0x7e2   : > { %10107 = vmatmul.msk.f32.gmra.mxu1 %vm1789_vm2, %v5110_v36  ;;  %5540 = vmatmul.f32.gmra.mxu3 %v5324_v30  ;;  %v14559_v56 = vpop.f32.mrf.mxu2  ;;  %v5344_v36 = vld [vmem:[#allocation2 + $0x1570] sm:$0xff] }
 0x7e4   : > { %5487 = vmatmul.f32.gmra.mxu2 %v5353_v61 }
 0x7e5   : > { %v5041_v3 = vpop.f32.mrf.mxu3 }
 0x7e6   : > { %v5042_v12 = vadd.f32 %v5041_v3, %v4971_v7 }
 0x7e8   : > { %v5113_v13 = vadd.f32 %v5112_v22, %v5042_v12  ;;  %5623 = vmatmul.f32.gmra.mxu0 %v5345_v47  ;;  %v5121_v22 = vpop.f32.mrf.mxu0  ;;  %v4914_v49 = vpop.f32.mrf.mxu1  ;;  %v4983_v12 = vadd.f32 %v14536_v43, %v4912_v11 }
 0x7ea   : > { %10108 = vmatmul.msk.f32.gmra.mxu1 %vm1789_vm2, %v5113_v13  ;;  %5543 = vmatmul.f32.gmra.mxu3 %v5329_v5  ;;  %v14565_v7 = vpop.f32.mrf.mxu2  ;;  %v5373_v5 = vld [vmem:[#allocation2 + $0x1658] sm:$0xff] }
 0x7ec   : > { %5490 = vmatmul.f32.gmra.mxu2 %v5358_v14 }
 0x7ed   : > { %v5044_v60 = vpop.f32.mrf.mxu3 }
 0x7ee   : > { %v5045_v17 = vadd.f32 %v5044_v60, %v4974_v58  ;;  %v5365_v58 = vld [vmem:[#allocation2 + $0x1618] sm:$0xff] }
 0x7f0   : > { %v5116_v31 = vadd.f32 %v5115_v10, %v5045_v17  ;;  %5626 = vmatmul.f32.gmra.mxu0 %v5350_v54  ;;  %v5124_v55 = vpop.f32.mrf.mxu0  ;;  %v4917_v3 = vpop.f32.mrf.mxu1 }
 0x7f1   : > { %v4918_v42 = vadd.f32 %v4917_v3, %v14322_v40 }
 0x7f2   : > { %10109 = vmatmul.msk.f32.gmra.mxu1 %vm1789_vm2, %v5116_v31  ;;  %5546 = vmatmul.f32.gmra.mxu3 %v5334_v44  ;;  %v5354_v44 = vld [vmem:[#allocation2 + $0x15c0] sm:$0xff] }
 0x7f4   : > { %5493 = vmatmul.f32.gmra.mxu2 %v5363_v27 }
 0x7f5   : > { %v5047_v23 = vpop.f32.mrf.mxu3 }
 0x7f6   : > { %v5048_v21 = vadd.f32 %v5047_v23, %v4977_v46 }
 0x7f8   : > { %v5119_v18 = vadd.f32 %v5118_v28, %v5048_v21  ;;  %5629 = vmatmul.f32.gmra.mxu0 %v5355_v20  ;;  %v5127_v13 = vpop.f32.mrf.mxu0  ;;  %v4915_v28 = vadd.f32 %v4914_v49, %v14304_v57  ;;  %v4920_v17 = vpop.f32.mrf.mxu1  ;;  %v5297_v21 = vld [vmem:[#allocation2 + $0x13f8] sm:$0xff] }
 0x7f9   : > { %v4921_v40 = vadd.f32 %v4920_v17, %v14349_v50  ;;  %v5296_v17 = vld [vmem:[#allocation2 + $0x13f0] sm:$0xff] }
 0x7fa   : > { %10110 = vmatmul.msk.f32.gmra.mxu1 %vm1789_vm2, %v5119_v18  ;;  %5549 = vmatmul.f32.gmra.mxu3 %v5339_v6  ;;  %v4986_v60 = vadd.f32 %v14543_v24, %v4915_v28  ;;  %v4989_v24 = vadd.f32 %v14548_v0, %v4918_v42  ;;  %v5359_v6 = vld [vmem:[#allocation2 + $0x15e8] sm:$0xff]  ;;  %v5374_v28 = vld [vmem:[#allocation2 + $0x1660] sm:$0xff] }
 0x7fb   : > { %v5375_v18 = vld [vmem:[#allocation2 + $0x1668] sm:$0xff]  ;;  %v4992_v0 = vadd.f32 %v14554_v2, %v4921_v40 }
 0x7fc   : > { %5496 = vmatmul.f32.gmra.mxu2 %v5368_v37  ;;  %v5364_v37 = vld [vmem:[#allocation2 + $0x1610] sm:$0xff] }
 0x7fd   : > { %v5050_v30 = vpop.f32.mrf.mxu3 }
 0x7fe   : > { %v5051_v10 = vadd.f32 %v5050_v30, %v4980_v52 }
 0x800   : > { %v5122_v39 = vadd.f32 %v5121_v22, %v5051_v10  ;;  %5632 = vmatmul.f32.gmra.mxu0 %v5360_v16  ;;  %v5130_v31 = vpop.f32.mrf.mxu0  ;;  %v5370_v22 = vld [vmem:[#allocation2 + $0x1640] sm:$0xff]  ;;  %v4923_v27 = vpop.f32.mrf.mxu1 }
 0x801   : > { %v4924_v50 = vadd.f32 %v4923_v27, %v14376_v62 }
 0x802   : > { %10111 = vmatmul.msk.f32.gmra.mxu1 %vm1789_vm2, %v5122_v39  ;;  %5552 = vmatmul.f32.gmra.mxu3 %v5344_v36 }
 0x803   : > { %v4995_v39 = vadd.f32 %v14559_v56, %v4924_v50  ;;  %v5291_v56 = vld [vmem:[#allocation2 + $0x13c8] sm:$0xff]  ;;  %v5326_v50 = vld [vmem:[#allocation2 + $0x14e0] sm:$0xff] }
 0x804   : > { %5499 = vmatmul.f32.gmra.mxu2 %v5373_v5 }
 0x805   : > { %v5053_v53 = vpop.f32.mrf.mxu3 }
 0x806   : > { %v5054_v61 = vadd.f32 %v5053_v53, %v4983_v12  ;;  %v14570_v47 = vpop.f32.mrf.mxu2  ;;  %v5307_v12 = vld [vmem:[#allocation2 + $0x1448] sm:$0xff] }
 0x808   : > { %v5125_v45 = vadd.f32 %v5124_v55, %v5054_v61  ;;  %5635 = vmatmul.f32.gmra.mxu0 %v5365_v58  ;;  %v5133_v20 = vpop.f32.mrf.mxu0  ;;  %v5302_v55 = vld [vmem:[#allocation2 + $0x1420] sm:$0xff]  ;;  %v5369_v61 = vld [vmem:[#allocation2 + $0x1638] sm:$0xff] }
 0x809   : > { %v5317_v58 = vld [vmem:[#allocation2 + $0x1498] sm:$0xff] }
 0x80a   : > { %10112 = vmatmul.msk.f32.gmra.mxu1 %vm1789_vm2, %v5125_v45  ;;  %5555 = vmatmul.f32.gmra.mxu3 %v5349_v35  ;;  %v5312_v35 = vld [vmem:[#allocation2 + $0x1470] sm:$0xff] }
 0x80c   : > { %10117 = vmatmul.msk.f32.vlgmr.msrb.gmra.mxu2 %vm876_vm0, %v5292_v34 }
 0x80d   : > { %v5056_v43 = vpop.f32.mrf.mxu3 }
 0x80e   : > { %v5057_v14 = vadd.f32 %v5056_v43, %v4986_v60  ;;  %v14576_v54 = vpop.f32.mrf.mxu2 }
 0x810   : > { %v5128_v57 = vadd.f32 %v5127_v13, %v5057_v14  ;;  %5638 = vmatmul.f32.gmra.mxu0 %v5370_v22  ;;  %v5136_v2 = vpop.f32.mrf.mxu0  ;;  %v5322_v14 = vld [vmem:[#allocation2 + $0x14c0] sm:$0xff] }
 0x811   : > { %v5306_v22 = vld [vmem:[#allocation2 + $0x1440] sm:$0xff] }
 0x812   : > { %10113 = vmatmul.msk.f32.gmra.mxu1 %vm1789_vm2, %v5128_v57  ;;  %5558 = vmatmul.f32.gmra.mxu3 %v5354_v44  ;;  %v5301_v44 = vld [vmem:[#allocation2 + $0x1418] sm:$0xff]  ;;  %v5327_v57 = vld [vmem:[#allocation2 + $0x14e8] sm:$0xff] }
 0x814   : > { %10118 = vmatmul.msk.f32.gmra.mxu2 %vm876_vm0, %v5297_v21  ;;  %v5311_v21 = vld [vmem:[#allocation2 + $0x1468] sm:$0xff] }
 0x815   : > { %v5059_v46 = vpop.f32.mrf.mxu3 }
 0x816   : > { %v5060_v23 = vadd.f32 %v5059_v46, %v4989_v24  ;;  %v14582_v49 = vpop.f32.mrf.mxu2  ;;  %v5332_v46 = vld [vmem:[#allocation2 + $0x1510] sm:$0xff] }
 0x818   : > { %v5131_v51 = vadd.f32 %v5130_v31, %v5060_v23  ;;  %5641 = vmatmul.f32.gmra.mxu0 %v5375_v18 }
 0x81a   : > { %10114 = vmatmul.msk.f32.gmra.mxu1 %vm1789_vm2, %v5131_v51  ;;  %5561 = vmatmul.f32.gmra.mxu3 %v5359_v6  ;;  %v5337_v6 = vld [vmem:[#allocation2 + $0x1538] sm:$0xff]  ;;  %v5316_v51 = vld [vmem:[#allocation2 + $0x1490] sm:$0xff] }
 0x81c   : > { %10119 = vmatmul.msk.f32.gmra.mxu2 %vm876_vm0, %v5302_v55  ;;  %v5347_v55 = vld [vmem:[#allocation2 + $0x1588] sm:$0xff] }
 0x81d   : > { %v5062_v52 = vpop.f32.mrf.mxu3 }
 0x81e   : > { %v5063_v30 = vadd.f32 %v5062_v52, %v4992_v0  ;;  %v5321_v52 = vld [vmem:[#allocation2 + $0x14b8] sm:$0xff] }
 0x81f   : > { %v14585_v10 = vpop.f32.mrf.mxu1  ;;  %v14590_v11 = vpop.f32.mrf.mxu2 }
 0x820   : > { %v5134_v36 = vadd.f32 %v5133_v20, %v5063_v30  ;;  %v5342_v20 = vld [vmem:[#allocation2 + $0x1560] sm:$0xff] }
 0x822   : > { %10115 = vmatmul.msk.f32.gmra.mxu1 %vm1789_vm2, %v5134_v36  ;;  %5564 = vmatmul.f32.gmra.mxu3 %v5364_v37  ;;  %v14637_v36 = vpop.f32.mrf.mxu0 }
 0x824   : > { %10120 = vmatmul.msk.f32.gmra.mxu2 %vm876_vm0, %v5307_v12 }
 0x825   : > { %v5065_v16 = vpop.f32.mrf.mxu3 }
 0x826   : > { %v5066_v3 = vadd.f32 %v5065_v16, %v4995_v39  ;;  %v5352_v16 = vld [vmem:[#allocation2 + $0x15b0] sm:$0xff] }
 0x827   : > { %v14593_v53 = vpop.f32.mrf.mxu1  ;;  %v14597_v62 = vpop.f32.mrf.mxu2 }
 0x828   : > { %v5137_v5 = vadd.f32 %v5136_v2, %v5066_v3  ;;  %v5331_v3 = vld [vmem:[#allocation2 + $0x1508] sm:$0xff] }
 0x82a   : > { %10116 = vmatmul.msk.f32.gmra.mxu1 %vm1789_vm2, %v5137_v5  ;;  %5567 = vmatmul.f32.gmra.mxu3 %v5369_v61  ;;  %v14644_v12 = vpop.f32.mrf.mxu0  ;;  %v5788_v5 = vld [vmem:[#allocation10 + $0x1c] sm:$0xf] }
 0x82b   : > { %10135 = vmatpush.msk.msrb.mxu3 %vm1844_vm1, %v5788_v5  ;;  %v5943_v5 = vld [vmem:[#allocation2 + $0x16b8] sm:$0xff] }
 0x82c   : > { %10121 = vmatmul.msk.f32.gmra.mxu2 %vm876_vm0, %v5312_v35  ;;  %v5357_v35 = vld [vmem:[#allocation2 + $0x15d8] sm:$0xff] }
 0x82d   : > { %6293 = vmatpush.msra.mxu3 %v14313_v26 }
 0x82f   : > { %v14599_v13 = vpop.f32.mrf.mxu1  ;;  %v14602_v45 = vpop.f32.mrf.mxu2  ;;  %6294 = vmatpush.msra.mxu3 %v14319_v29 }
 0x830   : > { %v5520_v29 = vpop.f32.mrf.mxu3 }
 0x831   : > { %6295 = vmatpush.msra.mxu3 %v14325_v63  ;;  %v5367_v63 = vld [vmem:[#allocation2 + $0x1628] sm:$0xff] }
 0x832   : > { %5570 = vmatmul.f32.gmra.mxu3 %v5374_v28  ;;  %5661 = vmatmul.f32.vlgmr.msrb.gmra.mxu1 %v5291_v56  ;;  %v5336_v56 = vld [vmem:[#allocation2 + $0x1530] sm:$0xff] }
 0x833   : > { %6296 = vmatpush.msra.mxu3 %v14329_v1 }
 0x834   : > { %10122 = vmatmul.msk.f32.gmra.mxu2 %vm876_vm0, %v5317_v58 }
 0x835   : > { %6297 = vmatpush.msra.mxu3 %v14336_v41 }
 0x837   : > { %v14604_v60 = vpop.f32.mrf.mxu1  ;;  %v14607_v43 = vpop.f32.mrf.mxu2  ;;  %6298 = vmatpush.msra.mxu3 %v14346_v19  ;;  %v5372_v19 = vld [vmem:[#allocation2 + $0x1650] sm:$0xff] }
 0x839   : > { %6299 = vmatpush.msra.mxu3 %v14352_v59  ;;  %v5523_v59 = vpop.f32.mrf.mxu3 }
 0x83a   : > { %5664 = vmatmul.f32.gmra.mxu1 %v5296_v17  ;;  %v14656_v17 = vpop.f32.mrf.mxu0 }
 0x83b   : > { %6300 = vmatpush.msra.mxu3 %v14356_v9  ;;  %v5351_v9 = vld [vmem:[#allocation2 + $0x15a8] sm:$0xff] }
 0x83c   : > { %10123 = vmatmul.msk.f32.gmra.mxu2 %vm876_vm0, %v5322_v14  ;;  %v5362_v14 = vld [vmem:[#allocation2 + $0x1600] sm:$0xff] }
 0x83d   : > { %6301 = vmatpush.msra.mxu3 %v14363_v4 }
 0x83f   : > { %v14609_v34 = vpop.f32.mrf.mxu1  ;;  %v14612_v42 = vpop.f32.mrf.mxu2  ;;  %6302 = vmatpush.msra.mxu3 %v14369_v48  ;;  %v5377_v48 = vld [vmem:[#allocation2 + $0x1678] sm:$0xff] }
 0x841   : > { %6303 = vmatpush.msra.mxu3 %v14379_v15 }
 0x842   : > { %5667 = vmatmul.f32.gmra.mxu1 %v5301_v44 }
 0x843   : > { %6304 = vmatpush.msra.mxu3 %v14383_v8  ;;  %v5356_v8 = vld [vmem:[#allocation2 + $0x15d0] sm:$0xff] }
 0x844   : > { %10124 = vmatmul.msk.f32.gmra.mxu2 %vm876_vm0, %v5327_v57  ;;  %v5341_v57 = vld [vmem:[#allocation2 + $0x1558] sm:$0xff] }
 0x845   : > { %6305 = vmatpush.msra.mxu3 %v14390_v32  ;;  %v5936_v32 = vld [vmem:[#allocation2 + $0x1680] sm:$0xff] }
 0x846   : > { %6096 = vmatmul.f32.vlgmr.msra.gmra.mxu0 %v5936_v32  ;;  %v5371_v32 = vld [vmem:[#allocation2 + $0x1648] sm:$0xff] }
 0x847   : > { %v14614_v31 = vpop.f32.mrf.mxu1  ;;  %v14617_v24 = vpop.f32.mrf.mxu2  ;;  %6306 = vmatpush.msra.mxu3 %v14396_v33  ;;  %v5361_v33 = vld [vmem:[#allocation2 + $0x15f8] sm:$0xff] }
 0x849   : > { %6307 = vmatpush.msra.mxu3 %v14402_v25 }
 0x84a   : > { %5670 = vmatmul.f32.gmra.mxu1 %v5306_v22  ;;  %v14668_v22 = vpop.f32.mrf.mxu0 }
 0x84b   : > { %6308 = vmatpush.msra.mxu3 %v14411_v38 }
 0x84c   : > { %10125 = vmatmul.msk.f32.gmra.mxu2 %vm876_vm0, %v5332_v46  ;;  %v5346_v46 = vld [vmem:[#allocation2 + $0x1580] sm:$0xff] }
 0x84f   : > { %v14619_v23 = vpop.f32.mrf.mxu1  ;;  %v14622_v27 = vpop.f32.mrf.mxu2 }
 0x852   : > { %5673 = vmatmul.f32.gmra.mxu1 %v5311_v21 }
 0x854   : > { %10126 = vmatmul.msk.f32.gmra.mxu2 %vm876_vm0, %v5337_v6  ;;  %v14683_v6 = vpop.f32.mrf.mxu0 }
 0x857   : > { %v14624_v40 = vpop.f32.mrf.mxu1  ;;  %v14627_v18 = vpop.f32.mrf.mxu2 }
 0x85a   : > { %5676 = vmatmul.f32.gmra.mxu1 %v5316_v51  ;;  %v5526_v51 = vpop.f32.mrf.mxu3 }
 0x85c   : > { %10127 = vmatmul.msk.f32.gmra.mxu2 %vm876_vm0, %v5342_v20  ;;  %v14692_v20 = vpop.f32.mrf.mxu0 }
 0x85f   : > { %v14629_v0 = vpop.f32.mrf.mxu1  ;;  %v14632_v30 = vpop.f32.mrf.mxu2 }
 0x862   : > { %5679 = vmatmul.f32.gmra.mxu1 %v5321_v52  ;;  %v5529_v38 = vpop.f32.mrf.mxu3 }
 0x864   : > { %10128 = vmatmul.msk.f32.gmra.mxu2 %vm876_vm0, %v5347_v55  ;;  %v5938_v55 = vld [vmem:[#allocation2 + $0x1690] sm:$0xff] }
 0x867   : > { %v14634_v37 = vpop.f32.mrf.mxu1  ;;  %v14639_v39 = vpop.f32.mrf.mxu2 }
 0x86a   : > { %5682 = vmatmul.f32.gmra.mxu1 %v5326_v50 }
 0x86c   : > { %10129 = vmatmul.msk.f32.gmra.mxu2 %vm876_vm0, %v5352_v16  ;;  %v14696_v16 = vpop.f32.mrf.mxu0 }
 0x86f   : > { %v14641_v2 = vpop.f32.mrf.mxu1  ;;  %v14646_v61 = vpop.f32.mrf.mxu2 }
 0x872   : > { %5685 = vmatmul.f32.gmra.mxu1 %v5331_v3  ;;  %v5941_v3 = vld [vmem:[#allocation2 + $0x16a8] sm:$0xff] }
 0x873   : > { %6099 = vmatmul.f32.gmra.mxu0 %v5941_v3 }
 0x874   : > { %10130 = vmatmul.msk.f32.gmra.mxu2 %vm876_vm0, %v5357_v35 }
 0x877   : > { %v14648_v28 = vpop.f32.mrf.mxu1  ;;  %v14653_v58 = vpop.f32.mrf.mxu2 }
 0x87a   : > { %5688 = vmatmul.f32.gmra.mxu1 %v5336_v56  ;;  %v5366_v56 = vld [vmem:[#allocation2 + $0x1620] sm:$0xff] }
 0x87c   : > { %10131 = vmatmul.msk.f32.gmra.mxu2 %vm876_vm0, %v5362_v14  ;;  %v5521_v14 = vadd.f32 %v5520_v29, %v14565_v7  ;;  %v5951_v29 = vld [vmem:[#allocation2 + $0x16f8] sm:$0xff] }
 0x87f   : > { %v14660_v44 = vpop.f32.mrf.mxu1  ;;  %v14664_v26 = vpop.f32.mrf.mxu2 }
 0x882   : > { %5691 = vmatmul.f32.gmra.mxu1 %v5341_v57 }
 0x884   : > { %10132 = vmatmul.msk.f32.gmra.mxu2 %vm876_vm0, %v5367_v63  ;;  %v5946_v63 = vld [vmem:[#allocation2 + $0x16d0] sm:$0xff] }
 0x885   : > { %6102 = vmatmul.f32.gmra.mxu0 %v5946_v63 }
 0x887   : > { %v14671_v1 = vpop.f32.mrf.mxu1  ;;  %v14675_v41 = vpop.f32.mrf.mxu2 }
 0x88a   : > { %5694 = vmatmul.f32.gmra.mxu1 %v5346_v46  ;;  %v5948_v46 = vld [vmem:[#allocation2 + $0x16e0] sm:$0xff] }
 0x88c   : > { %10133 = vmatmul.msk.f32.gmra.mxu2 %vm876_vm0, %v5372_v19  ;;  %v5532_v19 = vpop.f32.mrf.mxu3 }
 0x88d   : > { %6105 = vmatmul.f32.gmra.mxu0 %v5951_v29  ;;  %v5530_v29 = vadd.f32 %v5529_v38, %v14582_v49 }
 0x88f   : > { %v14680_v21 = vpop.f32.mrf.mxu1  ;;  %v5733_v4 = vpop.f32.mrf.mxu2 }
 0x892   : > { %5697 = vmatmul.f32.gmra.mxu1 %v5351_v9  ;;  %v5592_v9 = vadd.f32 %v14637_v36, %v5521_v14  ;;  %v5376_v14 = vld [vmem:[#allocation2 + $0x1670] sm:$0xff] }
 0x894   : > { %10134 = vmatmul.msk.f32.gmra.mxu2 %vm876_vm0, %v5377_v48  ;;  %v14702_v48 = vpop.f32.mrf.mxu0  ;;  %v5535_v63 = vpop.f32.mrf.mxu3 }
 0x897   : > { %v14689_v15 = vpop.f32.mrf.mxu1  ;;  %v5736_v52 = vpop.f32.mrf.mxu2 }
 0x898   : > { %16232 = vst [vmem:[#allocation97_spill] sm:$0xff] %v14689_v15 }
 0x89a   : > { %5700 = vmatmul.f32.gmra.mxu1 %v5356_v8 }
 0x89c   : > { %6238 = vmatmul.f32.vlgmr.msra.gmra.mxu2 %v5938_v55 }
 0x89f   : > { %v14694_v50 = vpop.f32.mrf.mxu1  ;;  %v5739_v25 = vpop.f32.mrf.mxu2 }
 0x8a0   : > { %16233 = vst [vmem:[#allocation60_spill] sm:$0xff] %v14694_v50 }
 0x8a2   : > { %5703 = vmatmul.f32.gmra.mxu1 %v5361_v33  ;;  %v5524_v33 = vadd.f32 %v5523_v59, %v14570_v47  ;;  %v5956_v59 = vld [vmem:[#allocation2 + $0x1720] sm:$0xff] }
 0x8a3   : > { %6108 = vmatmul.f32.gmra.mxu0 %v5956_v59  ;;  %v5968_v59 = vld [vmem:[#allocation2 + $0x1780] sm:$0xff] }
 0x8a4   : > { %6241 = vmatmul.f32.gmra.mxu2 %v5943_v5  ;;  %v5953_v5 = vld [vmem:[#allocation2 + $0x1708] sm:$0xff] }
 0x8a7   : > { %v14698_v35 = vpop.f32.mrf.mxu1  ;;  %v5742_v57 = vpop.f32.mrf.mxu2 }
 0x8a8   : > { %16234 = vst [vmem:[#allocation48_spill] sm:$0xff] %v14698_v35  ;;  %v14707_v35 = vpop.f32.mrf.mxu0 }
 0x8aa   : > { %5706 = vmatmul.f32.gmra.mxu1 %v5366_v56  ;;  %v5595_v56 = vadd.f32 %v14644_v12, %v5524_v33 }
 0x8ac   : > { %6244 = vmatmul.f32.gmra.mxu2 %v5948_v46 }
 0x8af   : > { %v5662_v8 = vpop.f32.mrf.mxu1  ;;  %v5745_v7 = vpop.f32.mrf.mxu2 }
 0x8b0   : > { %v5663_v55 = vadd.f32 %v5662_v8, %v5592_v9  ;;  %v5527_v9 = vadd.f32 %v5526_v51, %v14576_v54  ;;  %v5961_v51 = vld [vmem:[#allocation2 + $0x1748] sm:$0xff] }
 0x8b1   : > { %6111 = vmatmul.f32.gmra.mxu0 %v5961_v51 }
 0x8b2   : > { %v5734_v3 = vadd.f32 %v5733_v4, %v5663_v55  ;;  %5709 = vmatmul.f32.gmra.mxu1 %v5371_v32  ;;  %v5958_v4 = vld [vmem:[#allocation2 + $0x1730] sm:$0xff]  ;;  %v5598_v8 = vadd.f32 %v14656_v17, %v5527_v9  ;;  %v5937_v55 = vld [vmem:[#allocation2 + $0x1688] sm:$0xff]  ;;  %v5533_v9 = vadd.f32 %v5532_v19, %v14590_v11 }
 0x8b3   : > { %v5973_v19 = vld [vmem:[#allocation2 + $0x17a8] sm:$0xff] }
 0x8b4   : > { %10136 = vmatmul.msk.f32.vlgmr.msrb.gmra.mxu3 %vm1789_vm2, %v5734_v3  ;;  %6247 = vmatmul.f32.gmra.mxu2 %v5953_v5  ;;  %v5538_v3 = vpop.f32.mrf.mxu3  ;;  %v14713_v5 = vpop.f32.mrf.mxu0 }
 0x8b7   : > { %v5665_v36 = vpop.f32.mrf.mxu1  ;;  %v5748_v32 = vpop.f32.mrf.mxu2 }
 0x8b8   : > { %v5666_v46 = vadd.f32 %v5665_v36, %v5595_v56  ;;  %v5601_v56 = vadd.f32 %v14668_v22, %v5530_v29  ;;  %v5942_v36 = vld [vmem:[#allocation2 + $0x16b0] sm:$0xff] }
 0x8ba   : > { %v5737_v47 = vadd.f32 %v5736_v52, %v5666_v46  ;;  %5712 = vmatmul.f32.gmra.mxu1 %v5376_v14  ;;  %v5963_v52 = vld [vmem:[#allocation2 + $0x1758] sm:$0xff] }
 0x8bc   : > { %10137 = vmatmul.msk.f32.gmra.mxu3 %vm1789_vm2, %v5737_v47  ;;  %6250 = vmatmul.f32.gmra.mxu2 %v5958_v4  ;;  %v5541_v49 = vpop.f32.mrf.mxu3  ;;  %v14718_v38 = vpop.f32.mrf.mxu0  ;;  %v5604_v4 = vadd.f32 %v14683_v6, %v5533_v9 }
 0x8bf   : > { %v5668_v12 = vpop.f32.mrf.mxu1  ;;  %v5751_v46 = vpop.f32.mrf.mxu2 }
 0x8c0   : > { %v5669_v33 = vadd.f32 %v5668_v12, %v5598_v8  ;;  %v5947_v8 = vld [vmem:[#allocation2 + $0x16d8] sm:$0xff] }
 0x8c2   : > { %v5740_v54 = vadd.f32 %v5739_v25, %v5669_v33  ;;  %6167 = vmatmul.f32.vlgmr.msra.gmra.mxu1 %v5937_v55  ;;  %v5966_v25 = vld [vmem:[#allocation2 + $0x1770] sm:$0xff]  ;;  %v5536_v55 = vadd.f32 %v5535_v63, %v14597_v62  ;;  %v5976_v63 = vld [vmem:[#allocation2 + $0x17c0] sm:$0xff] }
 0x8c3   : > { %6114 = vmatmul.f32.gmra.mxu0 %v5966_v25 }
 0x8c4   : > { %10138 = vmatmul.msk.f32.gmra.mxu3 %vm1789_vm2, %v5740_v54  ;;  %6253 = vmatmul.f32.gmra.mxu2 %v5963_v52  ;;  %v5544_v29 = vpop.f32.mrf.mxu3  ;;  %v5607_v54 = vadd.f32 %v14692_v20, %v5536_v55  ;;  %v14725_v51 = vpop.f32.mrf.mxu0  ;;  %v5952_v52 = vld [vmem:[#allocation2 + $0x1700] sm:$0xff] }
 0x8c7   : > { %v5671_v17 = vpop.f32.mrf.mxu1  ;;  %v5754_v11 = vpop.f32.mrf.mxu2 }
 0x8c8   : > { %v5672_v14 = vadd.f32 %v5671_v17, %v5601_v56  ;;  %v5539_v17 = vadd.f32 %v5538_v3, %v14602_v45  ;;  %v5983_v3 = vld [vmem:[#allocation2 + $0x17f8] sm:$0xff] }
 0x8ca   : > { %v5743_v47 = vadd.f32 %v5742_v57, %v5672_v14  ;;  %6170 = vmatmul.f32.gmra.mxu1 %v5942_v36  ;;  %v5971_v57 = vld [vmem:[#allocation2 + $0x1798] sm:$0xff]  ;;  %v5978_v36 = vld [vmem:[#allocation2 + $0x17d0] sm:$0xff]  ;;  %v5610_v14 = vadd.f32 %v14696_v16, %v5539_v17 }
 0x8cb   : > { %6117 = vmatmul.f32.gmra.mxu0 %v5971_v57  ;;  %v5545_v57 = vadd.f32 %v5544_v29, %v14612_v42 }
 0x8cc   : > { %10139 = vmatmul.msk.f32.gmra.mxu3 %vm1789_vm2, %v5743_v47  ;;  %6256 = vmatmul.f32.gmra.mxu2 %v5968_v59  ;;  %v5547_v9 = vpop.f32.mrf.mxu3  ;;  %v5957_v47 = vld [vmem:[#allocation2 + $0x1728] sm:$0xff]  ;;  %v14730_v25 = vpop.f32.mrf.mxu0 }
 0x8cd   : > { %v5548_v17 = vadd.f32 %v5547_v9, %v14617_v24  ;;  %v5998_v9 = vld [vmem:[#allocation2 + $0x1870] sm:$0xff] }
 0x8cf   : > { %v5674_v22 = vpop.f32.mrf.mxu1 }
 0x8d0   : > { %v5675_v12 = vadd.f32 %v5674_v22, %v5604_v4  ;;  %v5542_v4 = vadd.f32 %v5541_v49, %v14607_v43  ;;  %v5988_v49 = vld [vmem:[#allocation2 + $0x1820] sm:$0xff] }
 0x8d2   : > { %v5746_v33 = vadd.f32 %v5745_v7, %v5675_v12  ;;  %6173 = vmatmul.f32.gmra.mxu1 %v5947_v8  ;;  %v5757_v7 = vpop.f32.mrf.mxu2  ;;  %v5613_v22 = vadd.f32 %v14702_v48, %v5542_v4  ;;  %v5962_v12 = vld [vmem:[#allocation2 + $0x1750] sm:$0xff] }
 0x8d3   : > { %6120 = vmatmul.f32.gmra.mxu0 %v5976_v63  ;;  %v5993_v63 = vld [vmem:[#allocation2 + $0x1848] sm:$0xff] }
 0x8d4   : > { %10140 = vmatmul.msk.f32.gmra.mxu3 %vm1789_vm2, %v5746_v33  ;;  %6259 = vmatmul.f32.gmra.mxu2 %v5973_v19  ;;  %v5550_v33 = vpop.f32.mrf.mxu3  ;;  %v14736_v19 = vpop.f32.mrf.mxu0 }
 0x8d7   : > { %v5677_v6 = vpop.f32.mrf.mxu1 }
 0x8d8   : > { %v5678_v56 = vadd.f32 %v5677_v6, %v5607_v54  ;;  %v5616_v54 = vadd.f32 %v14707_v35, %v5545_v57  ;;  %v5967_v6 = vld [vmem:[#allocation2 + $0x1778] sm:$0xff] }
 0x8da   : > { %v5749_v62 = vadd.f32 %v5748_v32, %v5678_v56  ;;  %6176 = vmatmul.f32.gmra.mxu1 %v5952_v52  ;;  %v5981_v32 = vld [vmem:[#allocation2 + $0x17e8] sm:$0xff]  ;;  %v5760_v8 = vpop.f32.mrf.mxu2 }
 0x8db   : > { %6123 = vmatmul.f32.gmra.mxu0 %v5981_v32 }
 0x8dc   : > { %10141 = vmatmul.msk.f32.gmra.mxu3 %vm1789_vm2, %v5749_v62  ;;  %6262 = vmatmul.f32.gmra.mxu2 %v5978_v36  ;;  %v5553_v42 = vpop.f32.mrf.mxu3  ;;  %v14741_v29 = vpop.f32.mrf.mxu0  ;;  %v5619_v36 = vadd.f32 %v14713_v5, %v5548_v17  ;;  %v5987_v17 = vld [vmem:[#allocation2 + $0x1818] sm:$0xff] }
 0x8df   : > { %v5680_v20 = vpop.f32.mrf.mxu1 }
 0x8e0   : > { %v5681_v59 = vadd.f32 %v5680_v20, %v5610_v14  ;;  %v5972_v14 = vld [vmem:[#allocation2 + $0x17a0] sm:$0xff] }
 0x8e2   : > { %v5752_v45 = vadd.f32 %v5751_v46, %v5681_v59  ;;  %6179 = vmatmul.f32.gmra.mxu1 %v5957_v47  ;;  %v5986_v46 = vld [vmem:[#allocation2 + $0x1810] sm:$0xff]  ;;  %v5763_v56 = vpop.f32.mrf.mxu2  ;;  %v5551_v47 = vadd.f32 %v5550_v33, %v14622_v27 }
 0x8e3   : > { %6126 = vmatmul.f32.gmra.mxu0 %v5986_v46 }
 0x8e4   : > { %10142 = vmatmul.msk.f32.gmra.mxu3 %vm1789_vm2, %v5752_v45  ;;  %6265 = vmatmul.f32.gmra.mxu2 %v5983_v3  ;;  %v5556_v4 = vpop.f32.mrf.mxu3  ;;  %v5622_v45 = vadd.f32 %v14718_v38, %v5551_v47  ;;  %v14748_v32 = vpop.f32.mrf.mxu0  ;;  %v5977_v3 = vld [vmem:[#allocation2 + $0x17c8] sm:$0xff] }
 0x8e7   : > { %v5683_v16 = vpop.f32.mrf.mxu1 }
 0x8e8   : > { %v5684_v55 = vadd.f32 %v5683_v16, %v5613_v22  ;;  %v5554_v16 = vadd.f32 %v5553_v42, %v14627_v18 }
 0x8ea   : > { %v5755_v43 = vadd.f32 %v5754_v11, %v5684_v55  ;;  %6182 = vmatmul.f32.gmra.mxu1 %v5962_v12  ;;  %v5991_v11 = vld [vmem:[#allocation2 + $0x1838] sm:$0xff]  ;;  %v5766_v24 = vpop.f32.mrf.mxu2  ;;  %v6001_v12 = vld [vmem:[#allocation2 + $0x1888] sm:$0xff]  ;;  %v5625_v33 = vadd.f32 %v14725_v51, %v5554_v16 }
 0x8eb   : > { %6129 = vmatmul.f32.gmra.mxu0 %v5991_v11  ;;  %v6003_v55 = vld [vmem:[#allocation2 + $0x1898] sm:$0xff] }
 0x8ec   : > { %10143 = vmatmul.msk.f32.gmra.mxu3 %vm1789_vm2, %v5755_v43  ;;  %6268 = vmatmul.f32.gmra.mxu2 %v5988_v49  ;;  %v5559_v57 = vpop.f32.mrf.mxu3  ;;  %v5982_v43 = vld [vmem:[#allocation2 + $0x17f0] sm:$0xff]  ;;  %v14753_v46 = vpop.f32.mrf.mxu0 }
 0x8ed   : > { %v5560_v11 = vadd.f32 %v5559_v57, %v14639_v39 }
 0x8ef   : > { %v5686_v48 = vpop.f32.mrf.mxu1 }
 0x8f0   : > { %v5687_v52 = vadd.f32 %v5686_v48, %v5616_v54  ;;  %v5557_v54 = vadd.f32 %v5556_v4, %v14632_v30  ;;  %v6006_v48 = vld [vmem:[#allocation2 + $0x18b0] sm:$0xff]  ;;  %v6016_v4 = vld [vmem:[#allocation2 + $0x1900] sm:$0xff] }
 0x8f2   : > { %v5758_v62 = vadd.f32 %v5757_v7, %v5687_v52  ;;  %6185 = vmatmul.f32.gmra.mxu1 %v5967_v6  ;;  %v5996_v7 = vld [vmem:[#allocation2 + $0x1860] sm:$0xff]  ;;  %v5628_v52 = vadd.f32 %v14730_v25, %v5557_v54 }
 0x8f3   : > { %6132 = vmatmul.f32.gmra.mxu0 %v5996_v7  ;;  %v6008_v6 = vld [vmem:[#allocation2 + $0x18c0] sm:$0xff] }
 0x8f4   : > { %10144 = vmatmul.msk.f32.gmra.mxu3 %vm1789_vm2, %v5758_v62  ;;  %6271 = vmatmul.f32.gmra.mxu2 %v5993_v63  ;;  %v5562_v42 = vpop.f32.mrf.mxu3  ;;  %v14759_v63 = vpop.f32.mrf.mxu0 }
 0x8f7   : > { %v5689_v35 = vpop.f32.mrf.mxu1 }
 0x8f8   : > { %v5690_v20 = vadd.f32 %v5689_v35, %v5619_v36  ;;  %v6011_v36 = vld [vmem:[#allocation2 + $0x18d8] sm:$0xff]  ;;  %v6013_v35 = vld [vmem:[#allocation2 + $0x18e8] sm:$0xff] }
 0x8fa   : > { %v5761_v59 = vadd.f32 %v5760_v8, %v5690_v20  ;;  %6188 = vmatmul.f32.gmra.mxu1 %v5972_v14  ;;  %v5769_v8 = vpop.f32.mrf.mxu2  ;;  %v5631_v14 = vadd.f32 %v14736_v19, %v5560_v11  ;;  %v5992_v20 = vld [vmem:[#allocation2 + $0x1840] sm:$0xff] }
 0x8fb   : > { %6135 = vmatmul.f32.gmra.mxu0 %v6001_v12  ;;  %v6021_v12 = vld [vmem:[#allocation2 + $0x1928] sm:$0xff] }
 0x8fc   : > { %10145 = vmatmul.msk.f32.gmra.mxu3 %vm1789_vm2, %v5761_v59  ;;  %6274 = vmatmul.f32.gmra.mxu2 %v5998_v9  ;;  %v14764_v39 = vpop.f32.mrf.mxu0  ;;  %v5565_v9 = vpop.f32.mrf.mxu3  ;;  %v16235_v11 = vld [vmem:[#allocation42_spill] sm:$0xff] }
 0x8fd   : > { %v5566_v16 = vadd.f32 %v5565_v9, %v14653_v58  ;;  %v6017_v9 = vld [vmem:[#allocation2 + $0x1908] sm:$0xff] }
 0x8ff   : > { %v5692_v5 = vpop.f32.mrf.mxu1  ;;  %v5637_v57 = vadd.f32 %v14748_v32, %v5566_v16 }
 0x900   : > { %v5693_v22 = vadd.f32 %v5692_v5, %v5622_v45  ;;  %v6018_v45 = vld [vmem:[#allocation2 + $0x1910] sm:$0xff] }
 0x902   : > { %v5764_v27 = vadd.f32 %v5763_v56, %v5693_v22  ;;  %6191 = vmatmul.f32.gmra.mxu1 %v5977_v3  ;;  %v5772_v56 = vpop.f32.mrf.mxu2  ;;  %v5997_v3 = vld [vmem:[#allocation2 + $0x1868] sm:$0xff] }
 0x903   : > { %6138 = vmatmul.f32.gmra.mxu0 %v6006_v48  ;;  %v5940_v48 = vld [vmem:[#allocation2 + $0x16a0] sm:$0xff] }
 0x904   : > { %10146 = vmatmul.msk.f32.gmra.mxu3 %vm1789_vm2, %v5764_v27  ;;  %6277 = vmatmul.f32.gmra.mxu2 %v6003_v55  ;;  %v6023_v55 = vld [vmem:[#allocation2 + $0x1938] sm:$0xff] }
 0x907   : > { %v5695_v38 = vpop.f32.mrf.mxu1 }
 0x908   : > { %v5696_v49 = vadd.f32 %v5695_v38, %v5625_v33  ;;  %v5568_v33 = vpop.f32.mrf.mxu3  ;;  %v6002_v38 = vld [vmem:[#allocation2 + $0x1890] sm:$0xff] }
 0x90a   : > { %v5767_v18 = vadd.f32 %v5766_v24, %v5696_v49  ;;  %6194 = vmatmul.f32.gmra.mxu1 %v5982_v43  ;;  %v5775_v59 = vpop.f32.mrf.mxu2  ;;  %v5563_v24 = vadd.f32 %v5562_v42, %v14646_v61  ;;  %v5569_v49 = vadd.f32 %v5568_v33, %v14664_v26  ;;  %v5945_v42 = vld [vmem:[#allocation2 + $0x16c8] sm:$0xff] }
 0x90b   : > { %6141 = vmatmul.f32.gmra.mxu0 %v6011_v36  ;;  %v16238_v33 = vld [vmem:[#allocation43_spill] sm:$0xff] }
 0x90c   : > { %10147 = vmatmul.msk.f32.gmra.mxu3 %vm1789_vm2, %v5767_v18  ;;  %6280 = vmatmul.f32.gmra.mxu2 %v6008_v6  ;;  %v5634_v5 = vadd.f32 %v14741_v29, %v5563_v24  ;;  %v5640_v6 = vadd.f32 %v14753_v46, %v5569_v49  ;;  %v5950_v24 = vld [vmem:[#allocation2 + $0x16f0] sm:$0xff]  ;;  %v5965_v49 = vld [vmem:[#allocation2 + $0x1768] sm:$0xff] }
 0x90f   : > { %v5698_v51 = vpop.f32.mrf.mxu1 }
 0x910   : > { %v5699_v62 = vadd.f32 %v5698_v51, %v5628_v52  ;;  %v5571_v52 = vpop.f32.mrf.mxu3 }
 0x912   : > { %v5770_v30 = vadd.f32 %v5769_v8, %v5699_v62  ;;  %6197 = vmatmul.f32.gmra.mxu1 %v5987_v17  ;;  %v5778_v61 = vpop.f32.mrf.mxu2  ;;  %v14769_v8 = vpop.f32.mrf.mxu0  ;;  %v5572_v17 = vadd.f32 %v5571_v52, %v14675_v41  ;;  %v5954_v52 = vld [vmem:[#allocation2 + $0x1710] sm:$0xff] }
 0x913   : > { %6144 = vmatmul.f32.gmra.mxu0 %v6016_v4 }
 0x914   : > { %10148 = vmatmul.msk.f32.gmra.mxu3 %vm1789_vm2, %v5770_v30  ;;  %6283 = vmatmul.f32.gmra.mxu2 %v6013_v35  ;;  %v5269_v30 = vadd.f32 %v14585_v10, %v16235_v11  ;;  %v5643_v46 = vadd.f32 %v14759_v63, %v5572_v17 }
 0x917   : > { %v5701_v25 = vpop.f32.mrf.mxu1 }
 0x918   : > { %v5702_v47 = vadd.f32 %v5701_v25, %v5631_v14  ;;  %v6012_v25 = vld [vmem:[#allocation2 + $0x18e0] sm:$0xff] }
 0x91a   : > { %v5773_v7 = vadd.f32 %v5772_v56, %v5702_v47  ;;  %6200 = vmatmul.f32.gmra.mxu1 %v5992_v20  ;;  %v14774_v54 = vpop.f32.mrf.mxu0  ;;  %v5781_v18 = vpop.f32.mrf.mxu2  ;;  %v6007_v56 = vld [vmem:[#allocation2 + $0x18b8] sm:$0xff] }
 0x91b   : > { %6147 = vmatmul.f32.gmra.mxu0 %v6021_v12 }
 0x91c   : > { %10149 = vmatmul.msk.f32.gmra.mxu3 %vm1789_vm2, %v5773_v7  ;;  %6286 = vmatmul.f32.gmra.mxu2 %v6018_v45  ;;  %v16236_v7 = vld [vmem:[#allocation49_spill] sm:$0xff] }
 0x91d   : > { %v5270_v10 = vadd.f32 %v14593_v53, %v16236_v7  ;;  %v5939_v45 = vld [vmem:[#allocation2 + $0x1698] sm:$0xff]  ;;  %v5944_v53 = vld [vmem:[#allocation2 + $0x16c0] sm:$0xff] }
 0x91f   : > { %v5704_v19 = vpop.f32.mrf.mxu1 }
 0x920   : > { %v5705_v22 = vadd.f32 %v5704_v19, %v5634_v5  ;;  %v5955_v19 = vld [vmem:[#allocation2 + $0x1718] sm:$0xff] }
 0x922   : > { %v5776_v27 = vadd.f32 %v5775_v59, %v5705_v22  ;;  %6203 = vmatmul.f32.gmra.mxu1 %v5997_v3  ;;  %v14780_v26 = vpop.f32.mrf.mxu0  ;;  %v5784_v36 = vpop.f32.mrf.mxu2  ;;  %v16237_v3 = vld [vmem:[#allocation51_spill] sm:$0xff] }
 0x923   : > { %10154 = vmatmul.msk.f32.vlgmr.msrb.gmra.mxu0 %vm876_vm0, %v5940_v48  ;;  %v5271_v22 = vadd.f32 %v14599_v13, %v16237_v3 }
 0x924   : > { %10150 = vmatmul.msk.f32.gmra.mxu3 %vm1789_vm2, %v5776_v27  ;;  %6289 = vmatmul.f32.gmra.mxu2 %v6023_v55  ;;  %v6022_v27 = vld [vmem:[#allocation2 + $0x1930] sm:$0xff]  ;;  %v5960_v55 = vld [vmem:[#allocation2 + $0x1740] sm:$0xff] }
 0x927   : > { %v5707_v29 = vpop.f32.mrf.mxu1 }
 0x928   : > { %v5708_v43 = vadd.f32 %v5707_v29, %v5637_v57  ;;  %v5272_v57 = vadd.f32 %v14604_v60, %v16238_v33  ;;  %v5970_v60 = vld [vmem:[#allocation2 + $0x1790] sm:$0xff] }
 0x92a   : > { %v5779_v58 = vadd.f32 %v5778_v61, %v5708_v43  ;;  %6206 = vmatmul.f32.gmra.mxu1 %v6002_v38  ;;  %v14789_v59 = vpop.f32.mrf.mxu0  ;;  %v5949_v43 = vld [vmem:[#allocation2 + $0x16e8] sm:$0xff] }
 0x92b   : > { %10155 = vmatmul.msk.f32.gmra.mxu0 %vm876_vm0, %v5945_v42  ;;  %v5959_v42 = vld [vmem:[#allocation2 + $0x1738] sm:$0xff] }
 0x92c   : > { %10151 = vmatmul.msk.f32.gmra.mxu3 %vm1789_vm2, %v5779_v58  ;;  %v16239_v58 = vld [vmem:[#allocation44_spill] sm:$0xff] }
 0x92f   : > { %v5710_v32 = vpop.f32.mrf.mxu1 }
 0x930   : > { %v5711_v51 = vadd.f32 %v5710_v32, %v5640_v6 }
 0x932   : > { %v5782_v62 = vadd.f32 %v5781_v18, %v5711_v51  ;;  %6209 = vmatmul.f32.gmra.mxu1 %v6007_v56  ;;  %v14797_v5 = vpop.f32.mrf.mxu0  ;;  %v5273_v18 = vadd.f32 %v14609_v34, %v16239_v58  ;;  %v16240_v56 = vld [vmem:[#allocation96_spill] sm:$0xff] }
 0x933   : > { %10156 = vmatmul.msk.f32.gmra.mxu0 %vm876_vm0, %v5950_v24  ;;  %v5274_v51 = vadd.f32 %v14614_v31, %v16240_v56  ;;  %v5975_v34 = vld [vmem:[#allocation2 + $0x17b8] sm:$0xff]  ;;  %v5980_v31 = vld [vmem:[#allocation2 + $0x17e0] sm:$0xff]  ;;  %v16246_v56 = vld [vmem:[#allocation103_spill] sm:$0xff] }
 0x934   : > { %10152 = vmatmul.msk.f32.gmra.mxu3 %vm1789_vm2, %v5782_v62 }
 0x937   : > { %v5713_v35 = vpop.f32.mrf.mxu1  ;;  %v5863_v14 = vpop.f32.mrf.mxu3 }
 0x938   : > { %v5714_v20 = vadd.f32 %v5713_v35, %v5643_v46  ;;  %v14787_v41 = vadd.f32 %v5863_v14, %v5269_v30  ;;  %v16241_v30 = vld [vmem:[#allocation98_spill] sm:$0xff] }
 0x939   : > { %v5275_v46 = vadd.f32 %v14619_v23, %v16241_v30  ;;  %v5964_v14 = vld [vmem:[#allocation2 + $0x1760] sm:$0xff]  ;;  %v5985_v23 = vld [vmem:[#allocation2 + $0x1808] sm:$0xff] }
 0x93a   : > { %v5785_v47 = vadd.f32 %v5784_v36, %v5714_v20  ;;  %6212 = vmatmul.f32.gmra.mxu1 %v6012_v25  ;;  %v16242_v20 = vld [vmem:[#allocation54_spill] sm:$0xff] }
 0x93b   : > { %10157 = vmatmul.msk.f32.gmra.mxu0 %vm876_vm0, %v5955_v19  ;;  %v6005_v30 = vld [vmem:[#allocation2 + $0x18a8] sm:$0xff] }
 0x93c   : > { %10153 = vmatmul.msk.f32.gmra.mxu3 %vm1789_vm2, %v5785_v47  ;;  %v5276_v47 = vadd.f32 %v14624_v40, %v16242_v20  ;;  %v5990_v40 = vld [vmem:[#allocation2 + $0x1830] sm:$0xff] }
 0x93d   : > { %v6010_v20 = vld [vmem:[#allocation2 + $0x18d0] sm:$0xff] }
 0x93f   : > { %v5866_v63 = vpop.f32.mrf.mxu3 }
 0x940   : > { %v14795_v4 = vadd.f32 %v5866_v63, %v5270_v10  ;;  %v14804_v12 = vpop.f32.mrf.mxu0  ;;  %v5969_v10 = vld [vmem:[#allocation2 + $0x1788] sm:$0xff] }
 0x942   : > { %6215 = vmatmul.f32.gmra.mxu1 %v6017_v9  ;;  %v16243_v9 = vld [vmem:[#allocation45_spill] sm:$0xff] }
 0x943   : > { %10158 = vmatmul.msk.f32.gmra.mxu0 %vm876_vm0, %v5960_v55 }
 0x944   : > { %6309 = vmatmul.f32.vlgmr.msra.gmra.mxu3 %v5939_v45  ;;  %v5277_v45 = vadd.f32 %v14629_v0, %v16243_v9  ;;  %v5995_v0 = vld [vmem:[#allocation2 + $0x1858] sm:$0xff] }
 0x945   : > { %v6015_v9 = vld [vmem:[#allocation2 + $0x18f8] sm:$0xff] }
 0x947   : > { %v5869_v16 = vpop.f32.mrf.mxu3 }
 0x948   : > { %v14802_v61 = vadd.f32 %v5869_v16, %v5271_v22  ;;  %v14811_v13 = vpop.f32.mrf.mxu0  ;;  %v5974_v22 = vld [vmem:[#allocation2 + $0x17b0] sm:$0xff] }
 0x94a   : > { %6218 = vmatmul.f32.gmra.mxu1 %v6022_v27  ;;  %v16244_v27 = vld [vmem:[#allocation100_spill] sm:$0xff] }
 0x94b   : > { %10159 = vmatmul.msk.f32.gmra.mxu0 %vm876_vm0, %v5965_v49 }
 0x94c   : > { %6312 = vmatmul.f32.gmra.mxu3 %v5944_v53  ;;  %v5278_v53 = vadd.f32 %v14634_v37, %v16244_v27  ;;  %v6000_v37 = vld [vmem:[#allocation2 + $0x1880] sm:$0xff] }
 0x94f   : > { %v5872_v29 = vpop.f32.mrf.mxu3 }
 0x950   : > { %v14809_v38 = vadd.f32 %v5872_v29, %v5272_v57  ;;  %v14818_v32 = vpop.f32.mrf.mxu0  ;;  %v5979_v57 = vld [vmem:[#allocation2 + $0x17d8] sm:$0xff] }
 0x953   : > { %10160 = vmatmul.msk.f32.gmra.mxu0 %vm876_vm0, %v5970_v60  ;;  %v6436_v60 = vld [vmem:[#allocation10 + $0x20] sm:$0xf] }
 0x954   : > { %6315 = vmatmul.f32.gmra.mxu3 %v5949_v43  ;;  %v16245_v43 = vld [vmem:[#allocation101_spill] sm:$0xff]  ;;  %10172 = vmatpush.msk.msrb.mxu1 %vm1844_vm1, %v6436_v60 }
 0x955   : > { %v5279_v49 = vadd.f32 %v14641_v2, %v16245_v43  ;;  %v5989_v2 = vld [vmem:[#allocation2 + $0x1828] sm:$0xff] }
 0x956   : > { %v6025_v43 = vld [vmem:[#allocation2 + $0x1948] sm:$0xff] }
 0x957   : > { %v5875_v48 = vpop.f32.mrf.mxu3 }
 0x958   : > { %v14816_v6 = vadd.f32 %v5875_v48, %v5273_v18  ;;  %v14825_v11 = vpop.f32.mrf.mxu0  ;;  %v5984_v48 = vld [vmem:[#allocation2 + $0x1800] sm:$0xff] }
 0x95b   : > { %10161 = vmatmul.msk.f32.gmra.mxu0 %vm876_vm0, %v5975_v34 }
 0x95c   : > { %6318 = vmatmul.f32.gmra.mxu3 %v5954_v52 }
 0x95f   : > { %v5878_v17 = vpop.f32.mrf.mxu3 }
 0x960   : > { %v14823_v62 = vadd.f32 %v5878_v17, %v5274_v51  ;;  %v14832_v25 = vpop.f32.mrf.mxu0  ;;  %v5280_v51 = vadd.f32 %v14648_v28, %v16246_v56 }
 0x963   : > { %10162 = vmatmul.msk.f32.gmra.mxu0 %vm876_vm0, %v5980_v31 }
 0x964   : > { %6321 = vmatmul.f32.gmra.mxu3 %v5959_v42 }
 0x967   : > { %v5881_v36 = vpop.f32.mrf.mxu3 }
 0x968   : > { %v14830_v35 = vadd.f32 %v5881_v36, %v5275_v46  ;;  %v14839_v63 = vpop.f32.mrf.mxu0  ;;  %v6168_v46 = vpop.f32.mrf.mxu1 }
 0x96b   : > { %10163 = vmatmul.msk.f32.gmra.mxu0 %vm876_vm0, %v5985_v23 }
 0x96c   : > { %6324 = vmatmul.f32.gmra.mxu3 %v5964_v14  ;;  %v5994_v14 = vld [vmem:[#allocation2 + $0x1850] sm:$0xff] }
 0x96f   : > { %v5884_v24 = vpop.f32.mrf.mxu3 }
 0x970   : > { %v14837_v7 = vadd.f32 %v5884_v24, %v5276_v47  ;;  %v14846_v16 = vpop.f32.mrf.mxu0  ;;  %v6239_v47 = vpop.f32.mrf.mxu2 }
 0x971   : > { %v6171_v24 = vpop.f32.mrf.mxu1 }
 0x973   : > { %10164 = vmatmul.msk.f32.gmra.mxu0 %vm876_vm0, %v5990_v40 }
 0x974   : > { %6327 = vmatmul.f32.gmra.mxu3 %v5969_v10  ;;  %v5999_v10 = vld [vmem:[#allocation2 + $0x1878] sm:$0xff] }
 0x977   : > { %v5887_v19 = vpop.f32.mrf.mxu3 }
 0x978   : > { %v14844_v3 = vadd.f32 %v5887_v19, %v5277_v45  ;;  %v14853_v29 = vpop.f32.mrf.mxu0  ;;  %v6004_v19 = vld [vmem:[#allocation2 + $0x18a0] sm:$0xff] }
 0x979   : > { %v6174_v27 = vpop.f32.mrf.mxu1 }
 0x97b   : > { %10165 = vmatmul.msk.f32.gmra.mxu0 %vm876_vm0, %v5995_v0 }
 0x97c   : > { %6330 = vmatmul.f32.gmra.mxu3 %v5974_v22  ;;  %v6242_v22 = vpop.f32.mrf.mxu2 }
 0x97f   : > { %v5890_v55 = vpop.f32.mrf.mxu3 }
 0x980   : > { %v14851_v33 = vadd.f32 %v5890_v55, %v5278_v53  ;;  %v14860_v52 = vpop.f32.mrf.mxu0  ;;  %v6020_v53 = vld [vmem:[#allocation2 + $0x1920] sm:$0xff] }
 0x983   : > { %10166 = vmatmul.msk.f32.gmra.mxu0 %vm876_vm0, %v6000_v37  ;;  %v6014_v37 = vld [vmem:[#allocation2 + $0x18f0] sm:$0xff] }
 0x984   : > { %6333 = vmatmul.f32.gmra.mxu3 %v5979_v57  ;;  %v6009_v57 = vld [vmem:[#allocation2 + $0x18c8] sm:$0xff] }
 0x987   : > { %v5893_v58 = vpop.f32.mrf.mxu3 }
 0x988   : > { %v14858_v18 = vadd.f32 %v5893_v58, %v5279_v49  ;;  %v14868_v34 = vpop.f32.mrf.mxu0  ;;  %v6245_v49 = vpop.f32.mrf.mxu2 }
 0x989   : > { %v6177_v58 = vpop.f32.mrf.mxu1 }
 0x98b   : > { %10167 = vmatmul.msk.f32.gmra.mxu0 %vm876_vm0, %v6005_v30  ;;  %v6169_v30 = vadd.f32 %v6168_v46, %v14764_v39  ;;  %v6175_v39 = vadd.f32 %v6174_v27, %v14774_v54 }
 0x98c   : > { %6336 = vmatmul.f32.gmra.mxu3 %v5984_v48 }
 0x98f   : > { %v5896_v17 = vpop.f32.mrf.mxu3 }
 0x990   : > { %v14866_v42 = vadd.f32 %v5896_v17, %v5280_v51  ;;  %v14873_v31 = vpop.f32.mrf.mxu0  ;;  %v6248_v56 = vpop.f32.mrf.mxu2 }
 0x991   : > { %v6180_v51 = vpop.f32.mrf.mxu1 }
 0x992   : > { %v6181_v27 = vadd.f32 %v6180_v51, %v14789_v59 }
 0x993   : > { %10168 = vmatmul.msk.f32.gmra.mxu0 %vm876_vm0, %v6010_v20  ;;  %v6240_v20 = vadd.f32 %v6239_v47, %v6169_v30  ;;  %v6246_v30 = vadd.f32 %v6245_v49, %v6175_v39 }
 0x994   : > { %6339 = vmatmul.f32.gmra.mxu3 %v5989_v2  ;;  %v6019_v2 = vld [vmem:[#allocation2 + $0x1918] sm:$0xff] }
 0x997   : > { %v14871_v36 = vpop.f32.mrf.mxu3 }
 0x998   : > { %v14878_v23 = vpop.f32.mrf.mxu0 }
 0x99b   : > { %10169 = vmatmul.msk.f32.gmra.mxu0 %vm876_vm0, %v6015_v9  ;;  %v6251_v9 = vpop.f32.mrf.mxu2 }
 0x99c   : > { %6342 = vmatmul.f32.gmra.mxu3 %v5994_v14 }
 0x99f   : > { %v14876_v28 = vpop.f32.mrf.mxu3 }
 0x9a0   : > { %v6381_v40 = vpop.f32.mrf.mxu0 }
 0x9a3   : > { %10170 = vmatmul.msk.f32.gmra.mxu0 %vm876_vm0, %v6020_v53  ;;  %v6183_v53 = vpop.f32.mrf.mxu1  ;;  %v6254_v46 = vpop.f32.mrf.mxu2 }
 0x9a4   : > { %6345 = vmatmul.f32.gmra.mxu3 %v5999_v10 }
 0x9a7   : > { %v14881_v45 = vpop.f32.mrf.mxu3 }
 0x9a8   : > { %v6384_v0 = vpop.f32.mrf.mxu0 }
 0x9ab   : > { %10171 = vmatmul.msk.f32.gmra.mxu0 %vm876_vm0, %v6025_v43  ;;  %v6172_v43 = vadd.f32 %v6171_v24, %v14769_v8  ;;  %v6186_v47 = vpop.f32.mrf.mxu1  ;;  %v6178_v8 = vadd.f32 %v6177_v58, %v14780_v26 }
 0x9ac   : > { %6348 = vmatmul.f32.gmra.mxu3 %v6004_v19  ;;  %v6187_v59 = vadd.f32 %v6186_v47, %v14804_v12 }
 0x9ad   : > { %v6243_v50 = vadd.f32 %v6242_v22, %v6172_v43 }
 0x9af   : > { %v14884_v55 = vpop.f32.mrf.mxu3 }
 0x9b0   : > { %16247 = vst [vmem:[#allocation77_spill] sm:$0xff] %v14884_v55  ;;  %v6387_v60 = vpop.f32.mrf.mxu0 }
 0x9b3   : > { %v6189_v22 = vpop.f32.mrf.mxu1 }
 0x9b4   : > { %6351 = vmatmul.f32.gmra.mxu3 %v6009_v57  ;;  %v6024_v57 = vld [vmem:[#allocation2 + $0x1940] sm:$0xff] }
 0x9b7   : > { %v14887_v48 = vpop.f32.mrf.mxu3 }
 0x9b8   : > { %16248 = vst [vmem:[#allocation90_spill] sm:$0xff] %v14887_v48  ;;  %v6390_v14 = vpop.f32.mrf.mxu0 }
 0x9bc   : > { %6354 = vmatmul.f32.gmra.mxu3 %v6014_v37 }
 0x9bf   : > { %v14889_v17 = vpop.f32.mrf.mxu3 }
 0x9c0   : > { %16249 = vst [vmem:[#allocation61_spill] sm:$0xff] %v14889_v17  ;;  %v6393_v37 = vpop.f32.mrf.mxu0 }
 0x9c4   : > { %6357 = vmatmul.f32.gmra.mxu3 %v6019_v2 }
 0x9c7   : > { %v6310_v10 = vpop.f32.mrf.mxu3 }
 0x9c8   : > { %v6311_v19 = vadd.f32 %v6310_v10, %v6240_v20  ;;  %v6396_v10 = vpop.f32.mrf.mxu0 }
 0x9ca   : > { %v6382_v48 = vadd.f32 %v6381_v40, %v6311_v19  ;;  %v6257_v40 = vpop.f32.mrf.mxu2  ;;  %v6192_v19 = vpop.f32.mrf.mxu1 }
 0x9cb   : > { %v6193_v12 = vadd.f32 %v6192_v19, %v14818_v32 }
 0x9cc   : > { %6360 = vmatmul.f32.gmra.mxu3 %v6024_v57  ;;  %10173 = vmatmul.msk.f32.vlgmr.msrb.gmra.mxu1 %vm1789_vm2, %v6382_v48  ;;  %v6249_v48 = vadd.f32 %v6248_v56, %v6178_v8 }
 0x9cf   : > { %v6313_v17 = vpop.f32.mrf.mxu3 }
 0x9d0   : > { %v6314_v55 = vadd.f32 %v6313_v17, %v6243_v50  ;;  %v6399_v54 = vpop.f32.mrf.mxu0 }
 0x9d2   : > { %v6385_v2 = vadd.f32 %v6384_v0, %v6314_v55  ;;  %v6252_v0 = vadd.f32 %v6251_v9, %v6181_v27  ;;  %v6260_v49 = vpop.f32.mrf.mxu2  ;;  %v6258_v9 = vadd.f32 %v6257_v40, %v6187_v59 }
 0x9d4   : > { %10174 = vmatmul.msk.f32.gmra.mxu1 %vm1789_vm2, %v6385_v2 }
 0x9d7   : > { %v6316_v20 = vpop.f32.mrf.mxu3 }
 0x9d8   : > { %v6317_v15 = vadd.f32 %v6316_v20, %v6246_v30  ;;  %v6402_v58 = vpop.f32.mrf.mxu0  ;;  %v6195_v30 = vpop.f32.mrf.mxu1 }
 0x9da   : > { %v6388_v24 = vadd.f32 %v6387_v60, %v6317_v15  ;;  %v6184_v15 = vadd.f32 %v6183_v53, %v14797_v5  ;;  %v6263_v39 = vpop.f32.mrf.mxu2  ;;  %v6190_v5 = vadd.f32 %v6189_v22, %v14811_v13  ;;  %v6196_v22 = vadd.f32 %v6195_v30, %v14825_v11 }
 0x9db   : > { %v6264_v27 = vadd.f32 %v6263_v39, %v6193_v12 }
 0x9dc   : > { %10175 = vmatmul.msk.f32.gmra.mxu1 %vm1789_vm2, %v6388_v24  ;;  %v6255_v60 = vadd.f32 %v6254_v46, %v6184_v15  ;;  %v6261_v46 = vadd.f32 %v6260_v49, %v6190_v5 }
 0x9df   : > { %v6319_v50 = vpop.f32.mrf.mxu3 }
 0x9e0   : > { %v6320_v17 = vadd.f32 %v6319_v50, %v6249_v48  ;;  %v6198_v24 = vpop.f32.mrf.mxu1 }
 0x9e1   : > { %v6199_v32 = vadd.f32 %v6198_v24, %v14832_v25 }
 0x9e2   : > { %v6391_v55 = vadd.f32 %v6390_v14, %v6320_v17  ;;  %v6405_v14 = vpop.f32.mrf.mxu0  ;;  %v6266_v53 = vpop.f32.mrf.mxu2 }
 0x9e3   : > { %v6267_v49 = vadd.f32 %v6266_v53, %v6196_v22 }
 0x9e4   : > { %10176 = vmatmul.msk.f32.gmra.mxu1 %vm1789_vm2, %v6391_v55 }
 0x9e7   : > { %v6322_v57 = vpop.f32.mrf.mxu3 }
 0x9e8   : > { %v6323_v43 = vadd.f32 %v6322_v57, %v6252_v0  ;;  %v6201_v40 = vpop.f32.mrf.mxu1 }
 0x9e9   : > { %v6202_v11 = vadd.f32 %v6201_v40, %v14839_v63 }
 0x9ea   : > { %v6394_v26 = vadd.f32 %v6393_v37, %v6323_v43  ;;  %v6408_v50 = vpop.f32.mrf.mxu0 }
 0x9ec   : > { %10177 = vmatmul.msk.f32.gmra.mxu1 %vm1789_vm2, %v6394_v26 }
 0x9ef   : > { %v6325_v56 = vpop.f32.mrf.mxu3 }
 0x9f0   : > { %v6326_v2 = vadd.f32 %v6325_v56, %v6255_v60  ;;  %v6204_v43 = vpop.f32.mrf.mxu1 }
 0x9f1   : > { %v6205_v25 = vadd.f32 %v6204_v43, %v14846_v16 }
 0x9f2   : > { %v6397_v51 = vadd.f32 %v6396_v10, %v6326_v2  ;;  %v6269_v10 = vpop.f32.mrf.mxu2  ;;  %v6411_v13 = vpop.f32.mrf.mxu0 }
 0x9f3   : > { %v6270_v60 = vadd.f32 %v6269_v10, %v6199_v32 }
 0x9f4   : > { %10178 = vmatmul.msk.f32.gmra.mxu1 %vm1789_vm2, %v6397_v51 }
 0x9f7   : > { %v6328_v20 = vpop.f32.mrf.mxu3 }
 0x9f8   : > { %v6329_v8 = vadd.f32 %v6328_v20, %v6258_v9  ;;  %v6207_v59 = vpop.f32.mrf.mxu1 }
 0x9f9   : > { %v6208_v63 = vadd.f32 %v6207_v59, %v14853_v29 }
 0x9fa   : > { %v6400_v37 = vadd.f32 %v6399_v54, %v6329_v8  ;;  %v6272_v57 = vpop.f32.mrf.mxu2 }
 0x9fc   : > { %10179 = vmatmul.msk.f32.gmra.mxu1 %vm1789_vm2, %v6400_v37 }
 0x9ff   : > { %v6331_v48 = vpop.f32.mrf.mxu3 }
 0xa00   : > { %v6332_v17 = vadd.f32 %v6331_v48, %v6261_v46  ;;  %v6210_v53 = vpop.f32.mrf.mxu1 }
 0xa02   : > { %v6403_v47 = vadd.f32 %v6402_v58, %v6332_v17  ;;  %v6414_v58 = vpop.f32.mrf.mxu0  ;;  %v6275_v39 = vpop.f32.mrf.mxu2 }
 0xa03   : > { %v6276_v37 = vadd.f32 %v6275_v39, %v6205_v25 }
 0xa04   : > { %10180 = vmatmul.msk.f32.gmra.mxu1 %vm1789_vm2, %v6403_v47 }
 0xa07   : > { %v6334_v55 = vpop.f32.mrf.mxu3 }
 0xa08   : > { %v6335_v0 = vadd.f32 %v6334_v55, %v6264_v27  ;;  %v6213_v12 = vpop.f32.mrf.mxu1  ;;  %v6211_v27 = vadd.f32 %v6210_v53, %v14860_v52 }
 0xa09   : > { %v6214_v29 = vadd.f32 %v6213_v12, %v14868_v34 }
 0xa0a   : > { %v6406_v54 = vadd.f32 %v6405_v14, %v6335_v0  ;;  %v6417_v51 = vpop.f32.mrf.mxu0  ;;  %v6273_v14 = vadd.f32 %v6272_v57, %v6202_v11  ;;  %v6278_v8 = vpop.f32.mrf.mxu2 }
 0xa0b   : > { %v6279_v47 = vadd.f32 %v6278_v8, %v6208_v63 }
 0xa0c   : > { %10181 = vmatmul.msk.f32.gmra.mxu1 %vm1789_vm2, %v6406_v54 }
 0xa0f   : > { %v6337_v15 = vpop.f32.mrf.mxu3 }
 0xa10   : > { %v6338_v26 = vadd.f32 %v6337_v15, %v6267_v49  ;;  %v6216_v22 = vpop.f32.mrf.mxu1 }
 0xa11   : > { %v6217_v52 = vadd.f32 %v6216_v22, %v14873_v31 }
 0xa12   : > { %v6409_v19 = vadd.f32 %v6408_v50, %v6338_v26  ;;  %v6420_v46 = vpop.f32.mrf.mxu0  ;;  %v6281_v17 = vpop.f32.mrf.mxu2 }
 0xa13   : > { %v6282_v0 = vadd.f32 %v6281_v17, %v6211_v27 }
 0xa14   : > { %10182 = vmatmul.msk.f32.gmra.mxu1 %vm1789_vm2, %v6409_v19 }
 0xa17   : > { %v6340_v56 = vpop.f32.mrf.mxu3 }
 0xa18   : > { %v6341_v2 = vadd.f32 %v6340_v56, %v6270_v60 }
 0xa1a   : > { %v6412_v30 = vadd.f32 %v6411_v13, %v6341_v2  ;;  %v6423_v16 = vpop.f32.mrf.mxu0  ;;  %v6284_v13 = vpop.f32.mrf.mxu2 }
 0xa1b   : > { %v6285_v15 = vadd.f32 %v6284_v13, %v6214_v29 }
 0xa1c   : > { %10183 = vmatmul.msk.f32.gmra.mxu1 %vm1789_vm2, %v6412_v30 }
 0xa1f   : > { %v6343_v9 = vpop.f32.mrf.mxu3 }
 0xa20   : > { %v6344_v20 = vadd.f32 %v6343_v9, %v6273_v14 }
 0xa22   : > { %v6415_v5 = vadd.f32 %v6414_v58, %v6344_v20  ;;  %v6426_v43 = vpop.f32.mrf.mxu0  ;;  %v6287_v19 = vpop.f32.mrf.mxu2 }
 0xa23   : > { %v6219_v58 = vpop.f32.mrf.mxu1  ;;  %v6288_v39 = vadd.f32 %v6287_v19, %v6217_v52 }
 0xa24   : > { %10184 = vmatmul.msk.f32.gmra.mxu1 %vm1789_vm2, %v6415_v5  ;;  %v6220_v34 = vadd.f32 %v6219_v58, %v14878_v23 }
 0xa27   : > { %v6346_v24 = vpop.f32.mrf.mxu3 }
 0xa28   : > { %v6347_v48 = vadd.f32 %v6346_v24, %v6276_v37 }
 0xa2a   : > { %v6418_v50 = vadd.f32 %v6417_v51, %v6347_v48  ;;  %v6429_v56 = vpop.f32.mrf.mxu0  ;;  %v6290_v51 = vpop.f32.mrf.mxu2  ;;  %v14929_v48 = vld [vmem:[#allocation16] ss:$0 sm:$0xff] }
 0xa2b   : > { %v6291_v14 = vadd.f32 %v6290_v51, %v6220_v34 }
 0xa2c   : > { %10185 = vmatmul.msk.f32.gmra.mxu1 %vm1789_vm2, %v6418_v50 }
 0xa2f   : > { %v6349_v10 = vpop.f32.mrf.mxu3 }
 0xa30   : > { %v6350_v40 = vadd.f32 %v6349_v10, %v6279_v47 }
 0xa32   : > { %v6421_v55 = vadd.f32 %v6420_v46, %v6350_v40  ;;  %v6432_v20 = vpop.f32.mrf.mxu0 }
 0xa34   : > { %10186 = vmatmul.msk.f32.gmra.mxu1 %vm1789_vm2, %v6421_v55 }
 0xa37   : > { %v6352_v54 = vpop.f32.mrf.mxu3 }
 0xa38   : > { %v6353_v49 = vadd.f32 %v6352_v54, %v6282_v0 }
 0xa3a   : > { %v6424_v57 = vadd.f32 %v6423_v16, %v6353_v49 }
 0xa3c   : > { %10187 = vmatmul.msk.f32.gmra.mxu1 %vm1789_vm2, %v6424_v57 }
 0xa3f   : > { %v6355_v26 = vpop.f32.mrf.mxu3 }
 0xa40   : > { %v6356_v32 = vadd.f32 %v6355_v26, %v6285_v15 }
 0xa42   : > { %v6427_v60 = vadd.f32 %v6426_v43, %v6356_v32 }
 0xa44   : > { %10188 = vmatmul.msk.f32.gmra.mxu1 %vm1789_vm2, %v6427_v60 }
 0xa47   : > { %v6358_v2 = vpop.f32.mrf.mxu3 }
 0xa48   : > { %v6359_v59 = vadd.f32 %v6358_v2, %v6288_v39 }
 0xa49   : > { %v6511_v11 = vpop.f32.mrf.mxu1 }
 0xa4a   : > { %v6430_v30 = vadd.f32 %v6429_v56, %v6359_v59  ;;  %v6565_v23 = vadd.f32 %v6511_v11, %v14787_v41 }
 0xa4c   : > { %10189 = vmatmul.msk.f32.gmra.mxu1 %vm1789_vm2, %v6430_v30  ;;  %v6587_v47 = vadd.f32 %v14929_v48, %v6565_v23 }
 0xa4e   : > { %v6623_v41 = vmin.f32 %v6587_v47, 0.0  ;;  %vm6605_vm4 = vcmp.gt.f32.partialorder %v6587_v47, 0.0 }
 0xa4f   : > { %v6361_v9 = vpop.f32.mrf.mxu3 }
 0xa50   : > { %v6362_v25 = vadd.f32 %v6361_v9, %v6291_v14  ;;  %v6641_v22 = vmul.f32 1.442695, %v6623_v41 }
 0xa51   : > { %v6514_v8 = vpop.f32.mrf.mxu1 }
 0xa52   : > { %v6433_v31 = vadd.f32 %v6432_v20, %v6362_v25  ;;  %v6566_v46 = vadd.f32 %v6514_v8, %v14795_v4 }
 0xa54   : > { %10190 = vmatmul.msk.f32.gmra.mxu1 %vm1789_vm2, %v6433_v31  ;;  %v6588_v17 = vadd.f32 %v14929_v48, %v6566_v46 }
 0xa56   : > { %v6624_v40 = vmin.f32 %v6588_v17, 0.0  ;;  %vm6606_vm3 = vcmp.gt.f32.partialorder %v6588_v17, 0.0 }
 0xa58   : > { %v6643_v0 = vmul.f32 1.442695, %v6624_v40 }
 0xa59   : > { %v6517_v5 = vpop.f32.mrf.mxu1 }
 0xa5a   : > { %v6567_v50 = vadd.f32 %v6517_v5, %v14802_v61  ;;  %10582 = vpow2.f32 %v6643_v0 }
 0xa5b   : > { %10584 = vpow2.f32 %v6641_v22 }
 0xa5c   : > { %v6589_v10 = vadd.f32 %v14929_v48, %v6567_v50 }
 0xa5e   : > { %v6625_v55 = vmin.f32 %v6589_v10, 0.0  ;;  %vm6607_vm5 = vcmp.gt.f32.partialorder %v6589_v10, 0.0 }
 0xa60   : > { %v6645_v49 = vmul.f32 1.442695, %v6625_v55  ;;  %v10583_v58 = vpop.eup %10582 }
 0xa61   : > { %v6520_v53 = vpop.f32.mrf.mxu1  ;;  %v10585_v60 = vpop.eup %10584  ;;  %v10192_v2 = vadd.f32 -1.0, %v10583_v58 }
 0xa62   : > { %v6568_v12 = vadd.f32 %v6520_v53, %v14809_v38  ;;  %10586 = vpow2.f32 %v6645_v49  ;;  %v10191_v30 = vadd.f32 -1.0, %v10585_v60 }
 0xa63   : > { %v14966_v20 = vsel %vm6606_vm3, %v6588_v17, %v10192_v2 }
 0xa64   : > { %v14937_v16 = vadd.f32 %v14929_v48, %v6568_v12  ;;  %v14971_v53 = vsel %vm6605_vm4, %v6587_v47, %v10191_v30  ;;  %v6715_v41 = vsel %vm6713_vm7, %v14966_v20, 0.0 }
 0xa65   : > { %v6763_v50 = vmul.f32 %v14971_v53, %v14971_v53 }
 0xa66   : > { %v6626_v13 = vmin.f32 %v14937_v16, 0.0  ;;  %vm6608_vm6 = vcmp.gt.f32.partialorder %v14937_v16, 0.0 }
 0xa67   : > { %v6781_v22 = vsel %vm6713_vm7, %v6763_v50, 0.0 }
 0xa68   : > { %v10587_v39 = vpop.eup %10586 }
 0xa69   : > { %v6523_v37 = vpop.f32.mrf.mxu1  ;;  %v10193_v9 = vadd.f32 -1.0, %v10587_v39 }
 0xa6a   : > { %v6569_v4 = vadd.f32 %v6523_v37, %v14816_v6  ;;  %v6647_v6 = vmul.f32 1.442695, %v6626_v13 }
 0xa6b   : > { %v14976_v46 = vsel %vm6607_vm5, %v6589_v10, %v10193_v9 }
 0xa6c   : > { %v14943_v38 = vadd.f32 %v14929_v48, %v6569_v4  ;;  %10588 = vpow2.f32 %v6647_v6  ;;  %v6765_v40 = vmul.f32 %v14976_v46, %v14976_v46  ;;  %v6717_v6 = vsel %vm6713_vm7, %v14976_v46, 0.0 }
 0xa6e   : > { %v6627_v57 = vmin.f32 %v14943_v38, 0.0  ;;  %vm6609_vm8 = vcmp.gt.f32.partialorder %v14943_v38, 0.0 }
 0xa70   : > { %v6649_v32 = vmul.f32 1.442695, %v6627_v57  ;;  %v6784_v57 = vsel %vm6713_vm7, %v6765_v40, 0.0 }
 0xa71   : > { %v6526_v24 = vpop.f32.mrf.mxu1 }
 0xa72   : > { %v6570_v61 = vadd.f32 %v6526_v24, %v14823_v62  ;;  %10590 = vpow2.f32 %v6649_v32  ;;  %v10589_v34 = vpop.eup %10588 }
 0xa73   : > { %v10194_v31 = vadd.f32 -1.0, %v10589_v34 }
 0xa74   : > { %v14947_v29 = vadd.f32 %v14929_v48, %v6570_v61  ;;  %v16250_v61 = vld [vmem:[#allocation104_spill] sm:$0xff] }
 0xa75   : > { %v14982_v17 = vsel %vm6608_vm6, %v14937_v16, %v10194_v31  ;;  %v5281_v13 = vadd.f32 %v14660_v44, %v16250_v61 }
 0xa76   : > { %v6766_v16 = vmul.f32 %v14982_v17, %v14982_v17  ;;  %v6719_v44 = vsel %vm6713_vm7, %v14982_v17, 0.0  ;;  %vm6610_vm9 = vcmp.gt.f32.partialorder %v14947_v29, 0.0 }
 0xa78   : > { %v10591_v5 = vpop.eup %10590 }
 0xa79   : > { %v6529_v63 = vpop.f32.mrf.mxu1  ;;  %v10195_v12 = vadd.f32 -1.0, %v10591_v5 }
 0xa7a   : > { %v6571_v54 = vadd.f32 %v6529_v63, %v14830_v35  ;;  %v6628_v35 = vmin.f32 %v14947_v29, 0.0 }
 0xa7c   : > { %v14952_v62 = vadd.f32 %v14929_v48, %v6571_v54  ;;  %v6651_v56 = vmul.f32 1.442695, %v6628_v35  ;;  %v15002_v54 = vsel %vm6609_vm8, %v14943_v38, %v10195_v12  ;;  %v6786_v38 = vsel %vm6713_vm7, %v6766_v16, 0.0 }
 0xa7d   : > { %v6767_v58 = vmul.f32 %v15002_v54, %v15002_v54 }
 0xa7e   : > { %v6629_v52 = vmin.f32 %v14952_v62, 0.0  ;;  %10592 = vpow2.f32 %v6651_v56  ;;  %vm6611_vm10 = vcmp.gt.f32.partialorder %v14952_v62, 0.0 }
 0xa80   : > { %v6653_v59 = vmul.f32 1.442695, %v6629_v52 }
 0xa81   : > { %v6532_v27 = vpop.f32.mrf.mxu1 }
 0xa82   : > { %v6572_v43 = vadd.f32 %v6532_v27, %v14837_v7  ;;  %10594 = vpow2.f32 %v6653_v59 }
 0xa84   : > { %v14957_v19 = vadd.f32 %v14929_v48, %v6572_v43  ;;  %v10593_v63 = vpop.eup %10592 }
 0xa85   : > { %v10196_v55 = vadd.f32 -1.0, %v10593_v63 }
 0xa86   : > { %vm6612_vm11 = vcmp.gt.f32.partialorder %v14957_v19, 0.0 }
 0xa87   : > { %v15015_v52 = vsel %vm6610_vm9, %v14947_v29, %v10196_v55 }
 0xa88   : > { %v10595_v4 = vpop.eup %10594  ;;  %v6723_v31 = vsel %vm6713_vm7, %v15015_v52, 0.0 }
 0xa89   : > { %v6535_v15 = vpop.f32.mrf.mxu1  ;;  %v10197_v43 = vadd.f32 -1.0, %v10595_v4 }
 0xa8a   : > { %v6573_v26 = vadd.f32 %v6535_v15, %v14844_v3  ;;  %v6630_v3 = vmin.f32 %v14957_v19, 0.0 }
 0xa8b   : > { %v15021_v34 = vsel %vm6611_vm10, %v14952_v62, %v10197_v43  ;;  %v16251_v43 = vld [vmem:[#allocation56_spill] sm:$0xff] }
 0xa8c   : > { %v14961_v7 = vadd.f32 %v14929_v48, %v6573_v26  ;;  %v6655_v25 = vmul.f32 1.442695, %v6630_v3 }
 0xa8e   : > { %v6631_v51 = vmin.f32 %v14961_v7, 0.0  ;;  %10596 = vpow2.f32 %v6655_v25  ;;  %v6788_v25 = vsel %vm6713_vm7, %v6767_v58, 0.0  ;;  %vm6613_vm12 = vcmp.gt.f32.partialorder %v14961_v7, 0.0 }
 0xa90   : > { %v6657_v37 = vmul.f32 1.442695, %v6631_v51 }
 0xa91   : > { %v6538_v11 = vpop.f32.mrf.mxu1 }
 0xa92   : > { %v6574_v14 = vadd.f32 %v6538_v11, %v14851_v33  ;;  %v6764_v33 = vmul.f32 %v14966_v20, %v14966_v20  ;;  %10598 = vpow2.f32 %v6657_v37  ;;  %v6721_v11 = vsel %vm6713_vm7, %v15002_v54, 0.0 }
 0xa93   : > { %v6769_v37 = vmul.f32 %v15021_v34, %v15021_v34 }
 0xa94   : > { %v14969_v8 = vadd.f32 %v14929_v48, %v6574_v14  ;;  %v6782_v27 = vsel %vm6713_vm7, %v6764_v33, 0.0  ;;  %v10597_v49 = vpop.eup %10596  ;;  %v6768_v14 = vmul.f32 %v15015_v52, %v15015_v52  ;;  %v5929_v33 = vadd.f32 %v14871_v36, %v5281_v13 }
 0xa95   : > { %v6783_v35 = vadd.f32 %v6782_v27, %v6781_v22  ;;  %v10198_v2 = vadd.f32 -1.0, %v10597_v49  ;;  %v6792_v4 = vsel %vm6713_vm7, %v6769_v37, 0.0 }
 0xa96   : > { %v6632_v24 = vmin.f32 %v14969_v8, 0.0  ;;  %v6790_v12 = vsel %vm6713_vm7, %v6768_v14, 0.0  ;;  %vm6614_vm13 = vcmp.gt.f32.partialorder %v14969_v8, 0.0 }
 0xa97   : > { %v6785_v39 = vadd.f32 %v6784_v57, %v6783_v35 }
 0xa98   : > { %v6659_v23 = vmul.f32 1.442695, %v6632_v24  ;;  %v10599_v32 = vpop.eup %10598 }
 0xa99   : > { %v6541_v47 = vpop.f32.mrf.mxu1  ;;  %v6787_v29 = vadd.f32 %v6786_v38, %v6785_v39  ;;  %v10199_v9 = vadd.f32 -1.0, %v10599_v32 }
 0xa9a   : > { %v6575_v10 = vadd.f32 %v6541_v47, %v14858_v18  ;;  %10600 = vpow2.f32 %v6659_v23  ;;  %v6714_v18 = vsel %vm6713_vm7, %v14971_v53, 0.0 }
 0xa9b   : > { %v6716_v26 = vadd.f32 %v6715_v41, %v6714_v18  ;;  %v6789_v63 = vadd.f32 %v6788_v25, %v6787_v29  ;;  %v15040_v47 = vsel %vm6613_vm12, %v14961_v7, %v10199_v9  ;;  %vm6882_vm12 = vcmask 130048  }
 0xa9c   : > { %v14994_v0 = vadd.f32 %v14929_v48, %v6575_v10  ;;  %v6725_v10 = vsel %vm6713_vm7, %v15021_v34, 0.0  ;;  %v6771_v55 = vmul.f32 %v15040_v47, %v15040_v47 }
 0xa9d   : > { %v6718_v56 = vadd.f32 %v6717_v6, %v6716_v26  ;;  %v6791_v13 = vadd.f32 %v6790_v12, %v6789_v63 }
 0xa9e   : > { %v6633_v15 = vmin.f32 %v14994_v0, 0.0  ;;  %vm6615_vm14 = vcmp.gt.f32.partialorder %v14994_v0, 0.0 }
 0xa9f   : > { %v6720_v51 = vadd.f32 %v6719_v44, %v6718_v56  ;;  %v6793_v26 = vadd.f32 %v6792_v4, %v6791_v13  ;;  %v6796_v44 = vsel %vm6713_vm7, %v6771_v55, 0.0  ;;  %v16253_v13 = vld [vmem:[#allocation95_spill] sm:$0xff] }
 0xaa0   : > { %v6661_v60 = vmul.f32 1.442695, %v6633_v15  ;;  %v10601_v59 = vpop.eup %10600  ;;  %v5282_v15 = vadd.f32 %v14671_v1, %v16251_v43 }
 0xaa1   : > { %v6544_v3 = vpop.f32.mrf.mxu1  ;;  %v6722_v62 = vadd.f32 %v6721_v11, %v6720_v51  ;;  %v10200_v24 = vadd.f32 -1.0, %v10601_v59 }
 0xaa2   : > { %10602 = vpow2.f32 %v6661_v60  ;;  %v6576_v30 = vadd.f32 %v6544_v3, %v14866_v42  ;;  %v15034_v42 = vsel %vm6612_vm11, %v14957_v19, %v10198_v2  ;;  %v5930_v39 = vadd.f32 %v14876_v28, %v5282_v15  ;;  %v16255_v15 = vld [vmem:[#allocation77_spill] sm:$0xff] }
 0xaa3   : > { %v6724_v50 = vadd.f32 %v6723_v31, %v6722_v62  ;;  %v6770_v19 = vmul.f32 %v15034_v42, %v15034_v42  ;;  %v6727_v41 = vsel %vm6713_vm7, %v15034_v42, 0.0  ;;  %v15051_v27 = vsel %vm6614_vm13, %v14969_v8, %v10200_v24 }
 0xaa4   : > { %v6598_v5 = vadd.f32 %v14929_v48, %v6576_v30  ;;  %v6729_v8 = vsel %vm6713_vm7, %v15040_v47, 0.0  ;;  %v6772_v6 = vmul.f32 %v15051_v27, %v15051_v27 }
 0xaa5   : > { %v6726_v18 = vadd.f32 %v6725_v10, %v6724_v50  ;;  %v6794_v49 = vsel %vm6713_vm7, %v6770_v19, 0.0 }
 0xaa6   : > { %v6634_v23 = vmin.f32 %v6598_v5, 0.0  ;;  %v6795_v58 = vadd.f32 %v6794_v49, %v6793_v26  ;;  %v6798_v2 = vsel %vm6713_vm7, %v6772_v6, 0.0  ;;  %vm6616_vm15 = vcmp.gt.f32.partialorder %v6598_v5, 0.0 }
 0xaa7   : > { %v6728_v35 = vadd.f32 %v6727_v41, %v6726_v18  ;;  %v16254_v18 = vld [vmem:[#allocation97_spill] sm:$0xff] }
 0xaa8   : > { %v10603_v40 = vpop.eup %10602  ;;  %v6663_v36 = vmul.f32 1.442695, %v6634_v23  ;;  %v6797_v59 = vadd.f32 %v6796_v44, %v6795_v58  ;;  %v16252_v23 = vld [vmem:[#allocation46_spill] sm:$0xff] }
 0xaa9   : > { %v10201_v7 = vadd.f32 -1.0, %v10603_v40  ;;  %v6547_v16 = vpop.f32.mrf.mxu1  ;;  %v6730_v60 = vadd.f32 %v6729_v8, %v6728_v35  ;;  %v5283_v63 = vadd.f32 %v14680_v21, %v16252_v23 }
 0xaaa   : > { %10604 = vpow2.f32 %v6663_v36  ;;  %v6577_v61 = vadd.f32 %v6547_v16, %v5929_v33  ;;  %v6799_v9 = vadd.f32 %v6798_v2, %v6797_v59  ;;  %v16257_v2 = vld [vmem:[#allocation60_spill] sm:$0xff] }
 0xaab   : > { %v15057_v22 = vsel %vm6615_vm14, %v14994_v0, %v10201_v7  ;;  %v6731_v0 = vsel %vm6713_vm7, %v15051_v27, 0.0 }
 0xaac   : > { %v6599_v57 = vadd.f32 %v14929_v48, %v6577_v61  ;;  %v6773_v32 = vmul.f32 %v15057_v22, %v15057_v22  ;;  %v6733_v1 = vsel %vm6713_vm7, %v15057_v22, 0.0  ;;  %v6732_v11 = vadd.f32 %v6731_v0, %v6730_v60 }
 0xaae   : > { %v6635_v38 = vmin.f32 %v6599_v57, 0.0  ;;  %v6800_v29 = vsel %vm6713_vm7, %v6773_v32, 0.0  ;;  %v6734_v25 = vadd.f32 %v6733_v1, %v6732_v11  ;;  %vm6617_vm0 = vcmp.gt.f32.partialorder %v6599_v57, 0.0 }
 0xaaf   : > { %v6801_v24 = vadd.f32 %v6800_v29, %v6799_v9 }
 0xab0   : > { %v10605_v56 = vpop.eup %10604  ;;  %v6665_v3 = vmul.f32 1.442695, %v6635_v38 }
 0xab1   : > { %v10202_v30 = vadd.f32 -1.0, %v10605_v56  ;;  %v6550_v51 = vpop.f32.mrf.mxu1 }
 0xab2   : > { %10606 = vpow2.f32 %v6665_v3  ;;  %v6578_v14 = vadd.f32 %v6550_v51, %v5930_v39  ;;  %v16256_v39 = vld [vmem:[#allocation58_spill] sm:$0xff] }
 0xab3   : > { %v15077_v31 = vsel %vm6616_vm15, %v6598_v5, %v10202_v30  ;;  %v5931_v5 = vadd.f32 %v14881_v45, %v5283_v63  ;;  %v5284_v45 = vadd.f32 %v16254_v18, %v16253_v13  ;;  %v5285_v1 = vadd.f32 %v16257_v2, %v16256_v39  ;;  %v16258_v51 = vld [vmem:[#allocation90_spill] sm:$0xff]  ;;  %v16259_v63 = vld [vmem:[#allocation47_spill] sm:$0xff] }
 0xab4   : > { %v6735_v28 = vsel %vm6713_vm7, %v15077_v31, 0.0  ;;  %v6774_v62 = vmul.f32 %v15077_v31, %v15077_v31  ;;  %v6600_v37 = vadd.f32 %v14929_v48, %v6578_v14 }
 0xab5   : > { %v6736_v33 = vadd.f32 %v6735_v28, %v6734_v25  ;;  %v5933_v29 = vadd.f32 %v16258_v51, %v5285_v1 }
 0xab6   : > { %v6802_v50 = vsel %vm6713_vm7, %v6774_v62, 0.0  ;;  %v6636_v12 = vmin.f32 %v6600_v37, 0.0  ;;  %vm6618_vm2 = vcmp.gt.f32.partialorder %v6600_v37, 0.0 }
 0xab7   : > { %v6803_v40 = vadd.f32 %v6802_v50, %v6801_v24  ;;  %v16260_v50 = vld [vmem:[#allocation48_spill] sm:$0xff] }
 0xab8   : > { %v10607_v10 = vpop.eup %10606  ;;  %v6667_v19 = vmul.f32 1.442695, %v6636_v12  ;;  %v5286_v12 = vadd.f32 %v16260_v50, %v16259_v63 }
 0xab9   : > { %v10203_v36 = vadd.f32 -1.0, %v10607_v10  ;;  %v6553_v4 = vpop.f32.mrf.mxu1 }
 0xaba   : > { %10608 = vpow2.f32 %v6667_v19  ;;  %v6579_v41 = vadd.f32 %v6553_v4, %v5931_v5 }
 0xabb   : > { %v15088_v7 = vsel %vm6617_vm0, %v6599_v57, %v10203_v36  ;;  %v5932_v57 = vadd.f32 %v16255_v15, %v5284_v45  ;;  %v16261_v36 = vld [vmem:[#allocation61_spill] sm:$0xff]  ;;  %v11452_v15 = vmov 144.0  }
 0xabc   : > { %v6737_v16 = vsel %vm6713_vm7, %v15088_v7, 0.0  ;;  %v6775_v21 = vmul.f32 %v15088_v7, %v15088_v7  ;;  %v6601_v55 = vadd.f32 %v14929_v48, %v6579_v41  ;;  %v5934_v4 = vadd.f32 %v16261_v36, %v5286_v12  ;;  %v7247_v12 = vld [vmem:[#allocation11 + $0x48] sm:$0xff] }
 0xabd   : > { %v6738_v61 = vadd.f32 %v6737_v16, %v6736_v33 }
 0xabe   : > { %v6804_v49 = vsel %vm6713_vm7, %v6775_v21, 0.0  ;;  %v6637_v8 = vmin.f32 %v6601_v55, 0.0  ;;  %vm6619_vm3 = vcmp.gt.f32.partialorder %v6601_v55, 0.0 }
 0xabf   : > { %v6805_v6 = vadd.f32 %v6804_v49, %v6803_v40 }
 0xac0   : > { %v10609_v43 = vpop.eup %10608  ;;  %v6669_v26 = vmul.f32 1.442695, %v6637_v8 }
 0xac1   : > { %v10204_v35 = vadd.f32 -1.0, %v10609_v43  ;;  %v6556_v44 = vpop.f32.mrf.mxu1 }
 0xac2   : > { %10610 = vpow2.f32 %v6669_v26  ;;  %v6580_v0 = vadd.f32 %v6556_v44, %v5932_v57 }
 0xac3   : > { %v15099_v32 = vsel %vm6618_vm2, %v6600_v37, %v10204_v35  ;;  %vm8230_vm2 = vcmask 257024  }
 0xac4   : > { %v6739_v38 = vsel %vm6713_vm7, %v15099_v32, 0.0  ;;  %v6776_v58 = vmul.f32 %v15099_v32, %v15099_v32  ;;  %v6602_v60 = vadd.f32 %v14929_v48, %v6580_v0 }
 0xac5   : > { %v6740_v56 = vadd.f32 %v6739_v38, %v6738_v61 }
 0xac6   : > { %v6806_v3 = vsel %vm6713_vm7, %v6776_v58, 0.0  ;;  %v6638_v59 = vmin.f32 %v6602_v60, 0.0  ;;  %vm6620_vm4 = vcmp.gt.f32.partialorder %v6602_v60, 0.0 }
 0xac7   : > { %v6807_v11 = vadd.f32 %v6806_v3, %v6805_v6 }
 0xac8   : > { %v10611_v30 = vpop.eup %10610  ;;  %v6671_v14 = vmul.f32 1.442695, %v6638_v59 }
 0xac9   : > { %v10205_v9 = vadd.f32 -1.0, %v10611_v30  ;;  %v6559_v25 = vpop.f32.mrf.mxu1 }
 0xaca   : > { %10612 = vpow2.f32 %v6671_v14  ;;  %v6581_v28 = vadd.f32 %v6559_v25, %v5933_v29 }
 0xacb   : > { %v15110_v62 = vsel %vm6619_vm3, %v6601_v55, %v10205_v9 }
 0xacc   : > { %v6741_v37 = vsel %vm6713_vm7, %v15110_v62, 0.0  ;;  %v6777_v24 = vmul.f32 %v15110_v62, %v15110_v62  ;;  %v6603_v33 = vadd.f32 %v14929_v48, %v6581_v28  ;;  %v7249_v28 = vld [vmem:[#allocation11 + $0x58] sm:$0xff] }
 0xacd   : > { %v6742_v23 = vadd.f32 %v6741_v37, %v6740_v56  ;;  %7277 = vmatpush.msra.mxu0 %v7249_v28 }
 0xace   : > { %v6808_v40 = vsel %vm6713_vm7, %v6777_v24, 0.0  ;;  %v6639_v10 = vmin.f32 %v6603_v33, 0.0  ;;  %vm6621_vm5 = vcmp.gt.f32.partialorder %v6603_v33, 0.0 }
 0xacf   : > { %v6809_v5 = vadd.f32 %v6808_v40, %v6807_v11 }
 0xad0   : > { %v10613_v19 = vpop.eup %10612  ;;  %v6673_v41 = vmul.f32 1.442695, %v6639_v10 }
 0xad1   : > { %v10206_v16 = vadd.f32 -1.0, %v10613_v19  ;;  %v6562_v21 = vpop.f32.mrf.mxu1 }
 0xad2   : > { %10614 = vpow2.f32 %v6673_v41  ;;  %v6582_v55 = vadd.f32 %v6562_v21, %v5934_v4 }
 0xad3   : > { %v15121_v61 = vsel %vm6620_vm4, %v6602_v60, %v10206_v16  ;;  %10616 = vrcp.f32 %v11452_v15 }
 0xad4   : > { %v6743_v13 = vsel %vm6713_vm7, %v15121_v61, 0.0  ;;  %v6778_v18 = vmul.f32 %v15121_v61, %v15121_v61  ;;  %v6604_v45 = vadd.f32 %v14929_v48, %v6582_v55 }
 0xad5   : > { %v6744_v49 = vadd.f32 %v6743_v13, %v6742_v23 }
 0xad6   : > { %v6810_v8 = vsel %vm6713_vm7, %v6778_v18, 0.0  ;;  %v6640_v6 = vmin.f32 %v6604_v45, 0.0  ;;  %vm6622_vm6 = vcmp.gt.f32.partialorder %v6604_v45, 0.0 }
 0xad7   : > { %v6811_v43 = vadd.f32 %v6810_v8, %v6809_v5  ;;  %v7246_v5 = vld [vmem:[#allocation11 + $0x40] sm:$0xff] }
 0xad8   : > { %v10615_v57 = vpop.eup %10614  ;;  %v6675_v26 = vmul.f32 1.442695, %v6640_v6 }
 0xad9   : > { %v10207_v35 = vadd.f32 -1.0, %v10615_v57  ;;  %v10617_v38 = vpop.eup %10616 }
 0xada   : > { %10618 = vpow2.f32 %v6675_v26  ;;  %v6756_v2 = vmul.f32 144.0, %v10617_v38  ;;  %vm6760_vm8 = vweird.f32 %v10617_v38 }
 0xadb   : > { %v15129_v44 = vsel %vm6621_vm5, %v6603_v33, %v10207_v35  ;;  %v7248_v33 = vld [vmem:[#allocation11 + $0x50] sm:$0xff] }
 0xadc   : > { %v6745_v0 = vsel %vm6713_vm7, %v15129_v44, 0.0  ;;  %v6779_v48 = vmul.f32 %v15129_v44, %v15129_v44  ;;  %v6757_v11 = vsub.f32 1.0, %v6756_v2  ;;  %7278 = vmatpush.msra.mxu0 %v7248_v33  ;;  %v6964_v33 = vld [vmem:[#allocation11 + $0x10] sm:$0xff] }
 0xadd   : > { %v6746_v58 = vadd.f32 %v6745_v0, %v6744_v49 }
 0xade   : > { %v6812_v60 = vsel %vm6713_vm7, %v6779_v48, 0.0  ;;  %v6758_v25 = vmul.f32 %v10617_v38, %v6757_v11  ;;  %7279 = vmatpush.msra.mxu0 %v7247_v12  ;;  %v6877_v12 = vld [vmem:[#allocation5 + $0x28] sm:$0xff] }
 0xadf   : > { %v6813_v56 = vadd.f32 %v6812_v60, %v6811_v43 }
 0xae0   : > { %v10619_v39 = vpop.eup %10618  ;;  %v6759_v50 = vadd.f32 %v10617_v38, %v6758_v25  ;;  %7280 = vmatpush.msra.mxu0 %v7246_v5  ;;  %v7303_v5 = vld [vmem:[#allocation5 + $0xf0] sm:$0xff] }
 0xae1   : > { %v10208_v1 = vadd.f32 -1.0, %v10619_v39 }
 0xae2   : > { %v6761_v4 = vsel %vm6760_vm8, %v10617_v38, %v6759_v50  ;;  %v6962_v50 = vld [vmem:[#allocation11] sm:$0xff] }
 0xae3   : > { %v15136_v3 = vsel %vm6622_vm6, %v6604_v45, %v10208_v1 }
 0xae4   : > { %v6747_v59 = vsel %vm6713_vm7, %v15136_v3, 0.0  ;;  %v6780_v30 = vmul.f32 %v15136_v3, %v15136_v3 }
 0xae5   : > { %v6748_v51 = vadd.f32 %v6747_v59, %v6746_v58 }
 0xae6   : > { %v6814_v29 = vsel %vm6713_vm7, %v6780_v30, 0.0  ;;  %v6873_v30 = vld [vmem:[#allocation5 + $0x8] sm:$0xff] }
 0xae7   : > { %v6749_v14 = vrot.slane %v6748_v51, 4  ;;  %v6815_v9 = vadd.f32 %v6814_v29, %v6813_v56 }
 0xae9   : > { %v6750_v37 = vadd.f32 %v6749_v14, %v6748_v51  ;;  %v6816_v24 = vrot.slane %v6815_v9, 4 }
 0xaeb   : > { %v6751_v23 = vrot.slane %v6750_v37, 2  ;;  %v6817_v63 = vadd.f32 %v6816_v24, %v6815_v9  ;;  %v6965_v24 = vld [vmem:[#allocation11 + $0x18] sm:$0xff] }
 0xaed   : > { %v6752_v40 = vadd.f32 %v6751_v23, %v6750_v37  ;;  %v6818_v10 = vrot.slane %v6817_v63, 2  ;;  %v6875_v23 = vld [vmem:[#allocation5 + $0x18] sm:$0xff] }
 0xaef   : > { %v6753_v19 = vrot.slane %v6752_v40, 1  ;;  %v6819_v36 = vadd.f32 %v6818_v10, %v6817_v63  ;;  %v6963_v63 = vld [vmem:[#allocation11 + $0x8] sm:$0xff]  ;;  %v6872_v10 = vld [vmem:[#allocation5] sm:$0xff] }
 0xaf1   : > { %v6754_v41 = vadd.f32 %v6753_v19, %v6752_v40  ;;  %v6820_v16 = vrot.slane %v6819_v36, 1  ;;  %v6879_v40 = vld [vmem:[#allocation5 + $0x38] sm:$0xff]  ;;  %v6881_v19 = vld [vmem:[#allocation5 + $0x48] sm:$0xf] }
 0xaf3   : > { %v15143_v21 = vmul.f32 %v6761_v4, %v6754_v41  ;;  %v6821_v55 = vadd.f32 %v6820_v16, %v6819_v36  ;;  %v7690_v36 = vld [vmem:[#allocation11 + $0xb8] sm:$0xff]  ;;  %v6874_v41 = vld [vmem:[#allocation5 + $0x10] sm:$0xff] }
 0xaf4   : > { %v7305_v16 = vld [vmem:[#allocation5 + $0x100] sm:$0xff] }
 0xaf5   : > { %v6822_v13 = vmul.f32 %v6821_v55, %v6761_v4  ;;  %v6823_v18 = vmul.f32 %v15143_v21, %v15143_v21  ;;  %v6842_v45 = vsub.f32 %v15136_v3, %v15143_v21  ;;  %v6840_v49 = vsub.f32 %v15121_v61, %v15143_v21  ;;  %v7689_v4 = vld [vmem:[#allocation11 + $0xb0] sm:$0xff] }
 0xaf6   : > { %v6839_v8 = vsub.f32 %v15110_v62, %v15143_v21  ;;  %v6841_v6 = vsub.f32 %v15129_v44, %v15143_v21  ;;  %v6838_v43 = vsub.f32 %v15099_v32, %v15143_v21  ;;  %v6837_v15 = vsub.f32 %v15088_v7, %v15143_v21  ;;  %v6968_v55 = vld [vmem:[#allocation5 + $0x58] sm:$0xff] }
 0xaf7   : > { %v6824_v57 = vsub.f32 %v6822_v13, %v6823_v18  ;;  %v6836_v26 = vsub.f32 %v15077_v31, %v15143_v21  ;;  %v6835_v35 = vsub.f32 %v15057_v22, %v15143_v21  ;;  %v6834_v32 = vsub.f32 %v15051_v27, %v15143_v21  ;;  %v7687_v13 = vld [vmem:[#allocation11 + $0xa0] sm:$0xff]  ;;  %v6876_v18 = vld [vmem:[#allocation5 + $0x20] sm:$0xff] }
 0xaf8   : > { %v6833_v7 = vsub.f32 %v15040_v47, %v15143_v21  ;;  %v6832_v31 = vsub.f32 %v15034_v42, %v15143_v21  ;;  %v6831_v22 = vsub.f32 %v15021_v34, %v15143_v21  ;;  %v6830_v60 = vsub.f32 %v15015_v52, %v15143_v21 }
 0xaf9   : > { %v6843_v61 = vadd.f32 1e-05, %v6824_v57  ;;  %v6829_v56 = vsub.f32 %v15002_v54, %v15143_v21  ;;  %v6828_v27 = vsub.f32 %v14982_v17, %v15143_v21  ;;  %v6827_v47 = vsub.f32 %v14976_v46, %v15143_v21  ;;  %v7311_v57 = vld [vmem:[#allocation5 + $0x130] sm:$0xf] }
 0xafa   : > { %v6826_v42 = vsub.f32 %v14966_v20, %v15143_v21  ;;  %v6825_v2 = vsub.f32 %v14971_v53, %v15143_v21  ;;  %v7688_v21 = vld [vmem:[#allocation11 + $0xa8] sm:$0xff] }
 0xafb   : > { %10620 = vrsqrt.f32 %v6843_v61  ;;  %vm6850_vm10 = vweird.f32 %v6843_v61 }
 0xb01   : > { %v10621_v0 = vpop.eup %10620 }
 0xb02   : > { %v6845_v62 = vmul.f32 %v10621_v0, %v6843_v61  ;;  %vm6851_vm9 = vweird.f32 %v10621_v0  ;;  %v6974_v61 = vld [vmem:[#allocation5 + $0x88] sm:$0xff] }
 0xb03   : > { %vm6852_vm11 = vmor %vm6850_vm10, %vm6851_vm9  ;;  %vm8293_vm9 = vcmask 293888   ;;  %vm8920_vm10 = vcmask 253952  }
 0xb04   : > { %v6846_v48 = vmul.f32 %v10621_v0, %v6845_v62  ;;  %v7057_v62 = vld [vmem:[#allocation11 + $0x20] sm:$0xff] }
 0xb06   : > { %v6847_v38 = vmul.f32 0.5, %v6846_v48  ;;  %v6967_v48 = vld [vmem:[#allocation5 + $0x50] sm:$0xff] }
 0xb08   : > { %v6848_v44 = vsub.f32 1.5, %v6847_v38  ;;  %v7451_v38 = vld [vmem:[#allocation5 + $0x148] sm:$0xff] }
 0xb0a   : > { %v6849_v58 = vmul.f32 %v10621_v0, %v6848_v44  ;;  %v6976_v44 = vld [vmem:[#allocation5 + $0x98] sm:$0xf] }
 0xb0c   : > { %v6853_v39 = vsel %vm6852_vm11, %v10621_v0, %v6849_v58  ;;  %v7058_v0 = vld [vmem:[#allocation11 + $0x28] sm:$0xff] }
 0xb0d   : > { %v15183_v34 = vmul.f32 %v6853_v39, %v6842_v45  ;;  %v15185_v1 = vmul.f32 %v6853_v39, %v6840_v49  ;;  %v15187_v52 = vmul.f32 %v6853_v39, %v6839_v8  ;;  %v15189_v54 = vmul.f32 %v6853_v39, %v6841_v6  ;;  %v7307_v45 = vld [vmem:[#allocation5 + $0x110] sm:$0xff]  ;;  %v6970_v49 = vld [vmem:[#allocation5 + $0x68] sm:$0xff]  ;;  %v7309_v6 = vld [vmem:[#allocation5 + $0x120] sm:$0xff] }
 0xb0e   : > { %v15191_v3 = vmul.f32 %v6853_v39, %v6838_v43  ;;  %v15193_v17 = vmul.f32 %v6853_v39, %v6837_v15  ;;  %v15195_v59 = vmul.f32 %v6853_v39, %v6836_v26  ;;  %v15197_v46 = vmul.f32 %v6853_v39, %v6835_v35  ;;  %v6878_v8 = vld [vmem:[#allocation5 + $0x30] sm:$0xff]  ;;  %v6972_v43 = vld [vmem:[#allocation5 + $0x78] sm:$0xff]  ;;  %v6880_v15 = vld [vmem:[#allocation5 + $0x40] sm:$0xf] }
 0xb0f   : > { %6898 = vmatpush.msrb.mxu2 %v15185_v1  ;;  %6944 = vmatpush.msrb.mxu3 %v15183_v34  ;;  %v15201_v20 = vmul.f32 %v6853_v39, %v6834_v32  ;;  %v15203_v53 = vmul.f32 %v6853_v39, %v6833_v7  ;;  %v15205_v11 = vmul.f32 %v6853_v39, %v6832_v31  ;;  %v7060_v26 = vld [vmem:[#allocation11 + $0x38] sm:$0xff]  ;;  %v7059_v35 = vld [vmem:[#allocation11 + $0x30] sm:$0xff]  ;;  %v6971_v58 = vld [vmem:[#allocation5 + $0x70] sm:$0xff] }
 0xb10   : > { %7328 = vmatpush.msra.mxu1 %v15185_v1  ;;  %7475 = vmatpush.msrb.mxu0 %v15185_v1  ;;  %v15209_v51 = vmul.f32 %v6853_v39, %v6831_v22  ;;  %v15211_v29 = vmul.f32 %v6853_v39, %v6830_v60  ;;  %v15213_v14 = vmul.f32 %v6853_v39, %v6829_v56  ;;  %v6969_v32 = vld [vmem:[#allocation5 + $0x60] sm:$0xff]  ;;  %v6975_v31 = vld [vmem:[#allocation5 + $0x90] sm:$0xf] }
 0xb11   : > { %6899 = vmatpush.msrb.mxu2 %v15187_v52  ;;  %6945 = vmatpush.msrb.mxu3 %v15189_v54  ;;  %v15217_v9 = vmul.f32 %v6853_v39, %v6828_v27  ;;  %v15219_v25 = vmul.f32 %v6853_v39, %v6827_v47  ;;  %v15221_v28 = vmul.f32 %v6853_v39, %v6826_v42  ;;  %v6973_v7 = vld [vmem:[#allocation5 + $0x80] sm:$0xff]  ;;  %v7395_v42 = vld [vmem:[#allocation11 + $0x70] sm:$0xff] }
 0xb12   : > { %7329 = vmatpush.msra.mxu1 %v15187_v52  ;;  %7476 = vmatpush.msrb.mxu0 %v15187_v52  ;;  %v15225_v37 = vmul.f32 %v6853_v39, %v6825_v2  ;;  %v7396_v47 = vld [vmem:[#allocation11 + $0x78] sm:$0xff] }
 0xb13   : > { %10209 = vmatmul.msk.f32.vlgmr.msrb.gmra.mxu3 %vm6882_vm12, %v6873_v30  ;;  %6900 = vmatpush.msrb.mxu2 %v15191_v3 }
 0xb14   : > { %7038 = vmatpush.msra.mxu3 %v15183_v34  ;;  %7330 = vmatpush.msra.mxu1 %v15191_v3 }
 0xb15   : > { %7477 = vmatpush.msrb.mxu0 %v15191_v3  ;;  %6901 = vmatpush.msrb.mxu2 %v15193_v17 }
 0xb16   : > { %7039 = vmatpush.msra.mxu3 %v15189_v54  ;;  %7331 = vmatpush.msra.mxu1 %v15193_v17 }
 0xb17   : > { %7478 = vmatpush.msrb.mxu0 %v15193_v17  ;;  %6902 = vmatpush.msrb.mxu2 %v15195_v59 }
 0xb18   : > { %7332 = vmatpush.msra.mxu1 %v15195_v59  ;;  %7135 = vmatpush.msrb.mxu3 %v6965_v24  ;;  %v7394_v24 = vld [vmem:[#allocation11 + $0x68] sm:$0xff] }
 0xb19   : > { %7479 = vmatpush.msrb.mxu0 %v15195_v59  ;;  %6903 = vmatpush.msrb.mxu2 %v15197_v46 }
 0xb1a   : > { %7333 = vmatpush.msra.mxu1 %v15197_v46  ;;  %7136 = vmatpush.msrb.mxu3 %v6964_v33  ;;  %v7393_v33 = vld [vmem:[#allocation11 + $0x60] sm:$0xff] }
 0xb1b   : > { %7480 = vmatpush.msrb.mxu0 %v15197_v46  ;;  %10210 = vmatmul.msk.f32.gmra.mxu3 %vm6882_vm12, %v6875_v23 }
 0xb1c   : > { %6904 = vmatpush.msrb.mxu2 %v15201_v20  ;;  %7334 = vmatpush.msra.mxu1 %v15201_v20 }
 0xb1d   : > { %7481 = vmatpush.msrb.mxu0 %v15201_v20  ;;  %7137 = vmatpush.msrb.mxu3 %v6963_v63 }
 0xb1e   : > { %6905 = vmatpush.msrb.mxu2 %v15203_v53  ;;  %7335 = vmatpush.msra.mxu1 %v15203_v53 }
 0xb1f   : > { %7482 = vmatpush.msrb.mxu0 %v15203_v53  ;;  %7138 = vmatpush.msrb.mxu3 %v6962_v50 }
 0xb20   : > { %6906 = vmatpush.msrb.mxu2 %v15205_v11  ;;  %7336 = vmatpush.msra.mxu1 %v15205_v11 }
 0xb21   : > { %7483 = vmatpush.msrb.mxu0 %v15205_v11 }
 0xb22   : > { %6907 = vmatpush.msrb.mxu2 %v15209_v51  ;;  %7337 = vmatpush.msra.mxu1 %v15209_v51 }
 0xb23   : > { %7484 = vmatpush.msrb.mxu0 %v15209_v51  ;;  %10211 = vmatmul.msk.f32.gmra.mxu3 %vm6882_vm12, %v6877_v12 }
 0xb24   : > { %6908 = vmatpush.msrb.mxu2 %v15211_v29  ;;  %7338 = vmatpush.msra.mxu1 %v15211_v29 }
 0xb25   : > { %7485 = vmatpush.msrb.mxu0 %v15211_v29 }
 0xb26   : > { %6909 = vmatpush.msrb.mxu2 %v15213_v14  ;;  %7339 = vmatpush.msra.mxu1 %v15213_v14 }
 0xb27   : > { %7486 = vmatpush.msrb.mxu0 %v15213_v14 }
 0xb28   : > { %6910 = vmatpush.msrb.mxu2 %v15217_v9  ;;  %7340 = vmatpush.msra.mxu1 %v15217_v9 }
 0xb29   : > { %7487 = vmatpush.msrb.mxu0 %v15217_v9 }
 0xb2a   : > { %6911 = vmatpush.msrb.mxu2 %v15219_v25  ;;  %7341 = vmatpush.msra.mxu1 %v15219_v25 }
 0xb2b   : > { %7488 = vmatpush.msrb.mxu0 %v15219_v25  ;;  %10212 = vmatmul.msk.f32.gmra.mxu3 %vm6882_vm12, %v6879_v40 }
 0xb2c   : > { %6912 = vmatpush.msrb.mxu2 %v15221_v28  ;;  %7342 = vmatpush.msra.mxu1 %v15221_v28 }
 0xb2d   : > { %7489 = vmatpush.msrb.mxu0 %v15221_v28 }
 0xb2e   : > { %6913 = vmatpush.msrb.mxu2 %v15225_v37  ;;  %7343 = vmatpush.msra.mxu1 %v15225_v37 }
 0xb2f   : > { %7490 = vmatpush.msrb.mxu0 %v15225_v37  ;;  %6914 = vmatmul.f32.vlgmr.msrb.gmra.mxu2 %v6872_v10 }
 0xb30   : > { %6992 = vmatpush.msra.mxu2 %v15185_v1  ;;  %7344 = vmatmul.f32.vlgmr.msra.gmra.mxu1 %v7303_v5 }
 0xb31   : > { %7521 = vmatpush.msrb.mxu1 %v15183_v34 }
 0xb32   : > { %6993 = vmatpush.msra.mxu2 %v15187_v52 }
 0xb33   : > { %7522 = vmatpush.msrb.mxu1 %v15189_v54  ;;  %10213 = vmatmul.msk.f32.gmra.mxu3 %vm6882_vm12, %v6881_v19 }
 0xb34   : > { %6994 = vmatpush.msra.mxu2 %v15191_v3 }
 0xb35   : > { %7718 = vmatpush.msra.mxu1 %v7690_v36 }
 0xb36   : > { %6995 = vmatpush.msra.mxu2 %v15193_v17 }
 0xb37   : > { %7719 = vmatpush.msra.mxu1 %v7689_v4  ;;  %6917 = vmatmul.f32.gmra.mxu2 %v6874_v41  ;;  %v7157_v41 = vld [vmem:[#allocation5 + $0xa8] sm:$0xff] }
 0xb38   : > { %6996 = vmatpush.msra.mxu2 %v15195_v59  ;;  %7347 = vmatmul.f32.gmra.mxu1 %v7305_v16 }
 0xb39   : > { %7720 = vmatpush.msra.mxu1 %v7688_v21 }
 0xb3a   : > { %6997 = vmatpush.msra.mxu2 %v15197_v46 }
 0xb3b   : > { %10214 = vmatmul.msk.f32.vlgmr.msra.gmra.mxu3 %vm6882_vm12, %v6968_v55  ;;  %7721 = vmatpush.msra.mxu1 %v7687_v13 }
 0xb3c   : > { %6998 = vmatpush.msra.mxu2 %v15201_v20  ;;  %7227 = vmatpush.msra.mxu3 %v15183_v34 }
 0xb3e   : > { %6999 = vmatpush.msra.mxu2 %v15203_v53  ;;  %7228 = vmatpush.msra.mxu3 %v15189_v54 }
 0xb3f   : > { %6920 = vmatmul.f32.gmra.mxu2 %v6876_v18 }
 0xb40   : > { %7000 = vmatpush.msra.mxu2 %v15205_v11  ;;  %7350 = vmatmul.f32.gmra.mxu1 %v7307_v45 }
 0xb42   : > { %7001 = vmatpush.msra.mxu2 %v15209_v51 }
 0xb43   : > { %10215 = vmatmul.msk.f32.gmra.mxu3 %vm6882_vm12, %v6970_v49 }
 0xb44   : > { %7002 = vmatpush.msra.mxu2 %v15211_v29 }
 0xb46   : > { %7003 = vmatpush.msra.mxu2 %v15213_v14 }
 0xb47   : > { %6923 = vmatmul.f32.gmra.mxu2 %v6878_v8  ;;  %v7159_v8 = vld [vmem:[#allocation5 + $0xb8] sm:$0xff] }
 0xb48   : > { %7004 = vmatpush.msra.mxu2 %v15217_v9  ;;  %7353 = vmatmul.f32.gmra.mxu1 %v7309_v6 }
 0xb4a   : > { %7005 = vmatpush.msra.mxu2 %v15219_v25 }
 0xb4b   : > { %10216 = vmatmul.msk.f32.gmra.mxu3 %vm6882_vm12, %v6972_v43 }
 0xb4c   : > { %7006 = vmatpush.msra.mxu2 %v15221_v28 }
 0xb4e   : > { %7007 = vmatpush.msra.mxu2 %v15225_v37 }
 0xb4f   : > { %6926 = vmatmul.f32.gmra.mxu2 %v6880_v15 }
 0xb50   : > { %7356 = vmatmul.f32.gmra.mxu1 %v7311_v57  ;;  %7088 = vmatpush.msrb.mxu2 %v7060_v26  ;;  %v7161_v57 = vld [vmem:[#allocation5 + $0xc8] sm:$0xff] }
 0xb52   : > { %7089 = vmatpush.msrb.mxu2 %v7059_v35 }
 0xb53   : > { %10217 = vmatmul.msk.f32.gmra.mxu3 %vm6882_vm12, %v6974_v61 }
 0xb54   : > { %7090 = vmatpush.msrb.mxu2 %v7058_v0  ;;  %v7163_v0 = vld [vmem:[#allocation5 + $0xd8] sm:$0xff] }
 0xb56   : > { %7091 = vmatpush.msrb.mxu2 %v7057_v62  ;;  %v7156_v62 = vld [vmem:[#allocation5 + $0xa0] sm:$0xff] }
 0xb57   : > { %7008 = vmatmul.f32.vlgmr.msra.gmra.mxu2 %v6967_v48  ;;  %v7165_v48 = vld [vmem:[#allocation5 + $0xe8] sm:$0xf] }
 0xb58   : > { %7181 = vmatpush.msra.mxu2 %v15185_v1  ;;  %10249 = vmatmul.msk.f32.vlgmr.msrb.gmra.mxu1 %vm6882_vm12, %v7451_v38  ;;  %v7543_v38 = vld [vmem:[#allocation11 + $0x98] sm:$0xff] }
 0xb59   : > { %7916 = vmatpush.msrb.mxu1 %v15185_v1 }
 0xb5a   : > { %7182 = vmatpush.msra.mxu2 %v15187_v52 }
 0xb5b   : > { %7917 = vmatpush.msrb.mxu1 %v15187_v52  ;;  %10218 = vmatmul.msk.f32.gmra.mxu3 %vm6882_vm12, %v6976_v44  ;;  %v7542_v44 = vld [vmem:[#allocation11 + $0x90] sm:$0xff] }
 0xb5c   : > { %7183 = vmatpush.msra.mxu2 %v15191_v3 }
 0xb5d   : > { %7918 = vmatpush.msrb.mxu1 %v15191_v3 }
 0xb5e   : > { %7184 = vmatpush.msra.mxu2 %v15193_v17 }
 0xb5f   : > { %7919 = vmatpush.msrb.mxu1 %v15193_v17  ;;  %7011 = vmatmul.f32.gmra.mxu2 %v6969_v32  ;;  %v7541_v32 = vld [vmem:[#allocation11 + $0x88] sm:$0xff] }
 0xb60   : > { %7185 = vmatpush.msra.mxu2 %v15195_v59 }
 0xb61   : > { %7920 = vmatpush.msrb.mxu1 %v15195_v59 }
 0xb62   : > { %7186 = vmatpush.msra.mxu2 %v15197_v46 }
 0xb63   : > { %7921 = vmatpush.msrb.mxu1 %v15197_v46 }
 0xb64   : > { %7187 = vmatpush.msra.mxu2 %v15201_v20 }
 0xb65   : > { %7922 = vmatpush.msrb.mxu1 %v15201_v20 }
 0xb66   : > { %7188 = vmatpush.msra.mxu2 %v15203_v53 }
 0xb67   : > { %7923 = vmatpush.msrb.mxu1 %v15203_v53  ;;  %7014 = vmatmul.f32.gmra.mxu2 %v6971_v58  ;;  %v7540_v58 = vld [vmem:[#allocation11 + $0x80] sm:$0xff] }
 0xb68   : > { %7189 = vmatpush.msra.mxu2 %v15205_v11 }
 0xb69   : > { %7924 = vmatpush.msrb.mxu1 %v15205_v11 }
 0xb6a   : > { %7190 = vmatpush.msra.mxu2 %v15209_v51 }
 0xb6b   : > { %7925 = vmatpush.msrb.mxu1 %v15209_v51 }
 0xb6c   : > { %7191 = vmatpush.msra.mxu2 %v15211_v29 }
 0xb6d   : > { %7926 = vmatpush.msrb.mxu1 %v15211_v29 }
 0xb6e   : > { %7192 = vmatpush.msra.mxu2 %v15213_v14 }
 0xb6f   : > { %7927 = vmatpush.msrb.mxu1 %v15213_v14  ;;  %7017 = vmatmul.f32.gmra.mxu2 %v6973_v7  ;;  %v7158_v7 = vld [vmem:[#allocation5 + $0xb0] sm:$0xff] }
 0xb70   : > { %7193 = vmatpush.msra.mxu2 %v15217_v9 }
 0xb71   : > { %7928 = vmatpush.msrb.mxu1 %v15217_v9 }
 0xb72   : > { %7194 = vmatpush.msra.mxu2 %v15219_v25 }
 0xb73   : > { %7929 = vmatpush.msrb.mxu1 %v15219_v25 }
 0xb74   : > { %7195 = vmatpush.msra.mxu2 %v15221_v28 }
 0xb75   : > { %7930 = vmatpush.msrb.mxu1 %v15221_v28 }
 0xb76   : > { %7196 = vmatpush.msra.mxu2 %v15225_v37 }
 0xb77   : > { %7931 = vmatpush.msrb.mxu1 %v15225_v37  ;;  %7020 = vmatmul.f32.gmra.mxu2 %v6975_v31  ;;  %v7160_v31 = vld [vmem:[#allocation5 + $0xc0] sm:$0xff] }
 0xb96   : > { %v6947_v22 = vpop.f32.mrf.mxu3 }
 0xb9e   : > { %v6950_v60 = vpop.f32.mrf.mxu3 }
 0xba6   : > { %v6953_v27 = vpop.f32.mrf.mxu3 }
 0xbae   : > { %v6956_v23 = vpop.f32.mrf.mxu3 }
 0xbb2   : > { %v6915_v56 = vpop.f32.mrf.mxu2 }
 0xbb3   : > { %v6948_v39 = vadd.f32 %v6947_v22, %v6915_v56  ;;  %v7162_v22 = vld [vmem:[#allocation5 + $0xd0] sm:$0xff]  ;;  %v7304_v56 = vld [vmem:[#allocation5 + $0xf8] sm:$0xff] }
 0xbb5   : > { %10224 = vmatmul.msk.f32.vlgmr.msrb.gmra.mxu3 %vm6713_vm7, %v6948_v39  ;;  %v7308_v39 = vld [vmem:[#allocation5 + $0x118] sm:$0xff] }
 0xbb6   : > { %7424 = vmatpush.msrb.mxu3 %v7396_v47  ;;  %v6959_v12 = vpop.f32.mrf.mxu3  ;;  %v7310_v47 = vld [vmem:[#allocation5 + $0x128] sm:$0xff] }
 0xbb8   : > { %7425 = vmatpush.msrb.mxu3 %v7395_v42  ;;  %v7312_v42 = vld [vmem:[#allocation5 + $0x138] sm:$0xf] }
 0xbba   : > { %v6918_v2 = vpop.f32.mrf.mxu2  ;;  %7426 = vmatpush.msrb.mxu3 %v7394_v24 }
 0xbbb   : > { %v6951_v30 = vadd.f32 %v6950_v60, %v6918_v2  ;;  %v7164_v60 = vld [vmem:[#allocation5 + $0xe0] sm:$0xf] }
 0xbbc   : > { %7427 = vmatpush.msrb.mxu3 %v7393_v33 }
 0xbbd   : > { %10225 = vmatmul.msk.f32.gmra.mxu3 %vm6713_vm7, %v6951_v30 }
 0xbbe   : > { %v7041_v5 = vpop.f32.mrf.mxu3 }
 0xbc2   : > { %v6921_v63 = vpop.f32.mrf.mxu2 }
 0xbc3   : > { %v6954_v50 = vadd.f32 %v6953_v27, %v6921_v63  ;;  %v7306_v27 = vld [vmem:[#allocation5 + $0x108] sm:$0xff] }
 0xbc5   : > { %10226 = vmatmul.msk.f32.gmra.mxu3 %vm6713_vm7, %v6954_v50 }
 0xbc6   : > { %v7044_v16 = vpop.f32.mrf.mxu3 }
 0xbca   : > { %v6924_v40 = vpop.f32.mrf.mxu2 }
 0xbcb   : > { %v6957_v10 = vadd.f32 %v6956_v23, %v6924_v40 }
 0xbcd   : > { %10227 = vmatmul.msk.f32.gmra.mxu3 %vm6713_vm7, %v6957_v10 }
 0xbce   : > { %v7047_v18 = vpop.f32.mrf.mxu3 }
 0xbd2   : > { %v6927_v19 = vpop.f32.mrf.mxu2 }
 0xbd3   : > { %v6960_v36 = vadd.f32 %v6959_v12, %v6927_v19 }
 0xbd5   : > { %10228 = vmatmul.msk.f32.gmra.mxu3 %vm6713_vm7, %v6960_v36 }
 0xbd6   : > { %v7050_v6 = vpop.f32.mrf.mxu3 }
 0xbda   : > { %v7009_v4 = vpop.f32.mrf.mxu2 }
 0xbdb   : > { %v7042_v21 = vadd.f32 %v7041_v5, %v7009_v4 }
 0xbdd   : > { %10219 = vmatmul.msk.f32.vlgmr.msrb.gmra.mxu2 %vm6713_vm7, %v7042_v21  ;;  %10229 = vmatmul.msk.f32.vlgmr.msra.gmra.mxu3 %vm6882_vm12, %v7157_v41 }
 0xbde   : > { %7374 = vmatpush.msrb.mxu2 %v15183_v34  ;;  %7622 = vmatpush.msra.mxu3 %v15185_v1  ;;  %v7053_v26 = vpop.f32.mrf.mxu3 }
 0xbe0   : > { %7375 = vmatpush.msrb.mxu2 %v15189_v54  ;;  %7623 = vmatpush.msra.mxu3 %v15187_v52 }
 0xbe2   : > { %7624 = vmatpush.msra.mxu3 %v15191_v3  ;;  %v7012_v55 = vpop.f32.mrf.mxu2 }
 0xbe3   : > { %v7045_v13 = vadd.f32 %v7044_v16, %v7012_v55 }
 0xbe4   : > { %7625 = vmatpush.msra.mxu3 %v15193_v17 }
 0xbe5   : > { %10220 = vmatmul.msk.f32.gmra.mxu2 %vm6713_vm7, %v7045_v13  ;;  %10230 = vmatmul.msk.f32.gmra.mxu3 %vm6882_vm12, %v7159_v8 }
 0xbe6   : > { %7626 = vmatpush.msra.mxu3 %v15195_v59 }
 0xbe8   : > { %7627 = vmatpush.msra.mxu3 %v15197_v46 }
 0xbea   : > { %7628 = vmatpush.msra.mxu3 %v15201_v20  ;;  %v7015_v45 = vpop.f32.mrf.mxu2 }
 0xbeb   : > { %v7048_v49 = vadd.f32 %v7047_v18, %v7015_v45  ;;  %v7453_v18 = vld [vmem:[#allocation5 + $0x158] sm:$0xff] }
 0xbec   : > { %7629 = vmatpush.msra.mxu3 %v15203_v53  ;;  %10250 = vmatmul.msk.f32.gmra.mxu1 %vm6882_vm12, %v7453_v18  ;;  %v7599_v18 = vld [vmem:[#allocation5 + $0x1a0] sm:$0xff] }
 0xbed   : > { %10221 = vmatmul.msk.f32.gmra.mxu2 %vm6713_vm7, %v7048_v49  ;;  %10231 = vmatmul.msk.f32.gmra.mxu3 %vm6882_vm12, %v7161_v57 }
 0xbee   : > { %7630 = vmatpush.msra.mxu3 %v15205_v11 }
 0xbf0   : > { %7631 = vmatpush.msra.mxu3 %v15209_v51 }
 0xbf2   : > { %7632 = vmatpush.msra.mxu3 %v15211_v29  ;;  %v7018_v43 = vpop.f32.mrf.mxu2 }
 0xbf3   : > { %v7051_v15 = vadd.f32 %v7050_v6, %v7018_v43  ;;  %v7455_v6 = vld [vmem:[#allocation5 + $0x168] sm:$0xff] }
 0xbf4   : > { %7633 = vmatpush.msra.mxu3 %v15213_v14  ;;  %10251 = vmatmul.msk.f32.gmra.mxu1 %vm6882_vm12, %v7455_v6 }
 0xbf5   : > { %10222 = vmatmul.msk.f32.gmra.mxu2 %vm6713_vm7, %v7051_v15  ;;  %10232 = vmatmul.msk.f32.gmra.mxu3 %vm6882_vm12, %v7163_v0  ;;  %v7345_v15 = vpop.f32.mrf.mxu1  ;;  %v7450_v0 = vld [vmem:[#allocation5 + $0x140] sm:$0xff] }
 0xbf6   : > { %7634 = vmatpush.msra.mxu3 %v15217_v9 }
 0xbf8   : > { %7635 = vmatpush.msra.mxu3 %v15219_v25 }
 0xbfa   : > { %7636 = vmatpush.msra.mxu3 %v15221_v28  ;;  %v7021_v35 = vpop.f32.mrf.mxu2 }
 0xbfb   : > { %v7054_v61 = vadd.f32 %v7053_v26, %v7021_v35  ;;  %v7457_v35 = vld [vmem:[#allocation5 + $0x178] sm:$0xff] }
 0xbfc   : > { %7637 = vmatpush.msra.mxu3 %v15225_v37  ;;  %10252 = vmatmul.msk.f32.gmra.mxu1 %vm6882_vm12, %v7457_v35  ;;  %v7747_v35 = vld [vmem:[#allocation5 + $0x1f8] sm:$0xff] }
 0xbfd   : > { %10223 = vmatmul.msk.f32.gmra.mxu2 %vm6713_vm7, %v7054_v61  ;;  %10233 = vmatmul.msk.f32.gmra.mxu3 %vm6882_vm12, %v7165_v48 }
 0xc05   : > { %7197 = vmatmul.f32.vlgmr.msra.gmra.mxu2 %v7156_v62  ;;  %v7348_v62 = vpop.f32.mrf.mxu1 }
 0xc06   : > { %7571 = vmatpush.msra.mxu2 %v7543_v38  ;;  %v7459_v38 = vld [vmem:[#allocation5 + $0x188] sm:$0xf] }
 0xc07   : > { %10253 = vmatmul.msk.f32.gmra.mxu1 %vm6882_vm12, %v7459_v38  ;;  %v7749_v38 = vld [vmem:[#allocation5 + $0x208] sm:$0xff] }
 0xc08   : > { %7572 = vmatpush.msra.mxu2 %v7542_v44  ;;  %v7837_v44 = vld [vmem:[#allocation11 + $0xd8] sm:$0xff] }
 0xc0a   : > { %7573 = vmatpush.msra.mxu2 %v7541_v32  ;;  %v7836_v32 = vld [vmem:[#allocation11 + $0xd0] sm:$0xff] }
 0xc0c   : > { %7574 = vmatpush.msra.mxu2 %v7540_v58  ;;  %v7835_v58 = vld [vmem:[#allocation11 + $0xc8] sm:$0xff] }
 0xc0d   : > { %7200 = vmatmul.f32.gmra.mxu2 %v7158_v7 }
 0xc15   : > { %7203 = vmatmul.f32.gmra.mxu2 %v7160_v31  ;;  %v7452_v31 = vld [vmem:[#allocation5 + $0x150] sm:$0xff] }
 0xc1d   : > { %7206 = vmatmul.f32.gmra.mxu2 %v7162_v22 }
 0xc25   : > { %7209 = vmatmul.f32.gmra.mxu2 %v7164_v60  ;;  %v7834_v60 = vld [vmem:[#allocation11 + $0xc0] sm:$0xff] }
 0xc2d   : > { %10239 = vmatmul.msk.f32.vlgmr.msrb.gmra.mxu2 %vm6882_vm12, %v7304_v56  ;;  %v7351_v56 = vpop.f32.mrf.mxu1 }
 0xc2e   : > { %7769 = vmatpush.msrb.mxu2 %v15185_v1 }
 0xc30   : > { %7770 = vmatpush.msrb.mxu2 %v15187_v52 }
 0xc32   : > { %7771 = vmatpush.msrb.mxu2 %v15191_v3 }
 0xc34   : > { %7772 = vmatpush.msrb.mxu2 %v15193_v17 }
 0xc35   : > { %10240 = vmatmul.msk.f32.gmra.mxu2 %vm6882_vm12, %v7306_v27 }
 0xc36   : > { %7773 = vmatpush.msrb.mxu2 %v15195_v59 }
 0xc38   : > { %7774 = vmatpush.msrb.mxu2 %v15197_v46  ;;  %v15388_v2 = vpop.f32.mrf.mxu3 }
 0xc3a   : > { %7775 = vmatpush.msrb.mxu2 %v15201_v20 }
 0xc3c   : > { %7776 = vmatpush.msrb.mxu2 %v15203_v53 }
 0xc3d   : > { %10241 = vmatmul.msk.f32.gmra.mxu2 %vm6882_vm12, %v7308_v39  ;;  %v7454_v39 = vld [vmem:[#allocation5 + $0x160] sm:$0xff] }
 0xc3e   : > { %7777 = vmatpush.msrb.mxu2 %v15205_v11 }
 0xc40   : > { %7778 = vmatpush.msrb.mxu2 %v15209_v51  ;;  %v15390_v30 = vpop.f32.mrf.mxu3 }
 0xc42   : > { %7779 = vmatpush.msrb.mxu2 %v15211_v29 }
 0xc44   : > { %7780 = vmatpush.msrb.mxu2 %v15213_v14 }
 0xc45   : > { %10242 = vmatmul.msk.f32.gmra.mxu2 %vm6882_vm12, %v7310_v47 }
 0xc46   : > { %7781 = vmatpush.msrb.mxu2 %v15217_v9 }
 0xc48   : > { %7782 = vmatpush.msrb.mxu2 %v15219_v25  ;;  %v15394_v33 = vpop.f32.mrf.mxu3 }
 0xc4a   : > { %7783 = vmatpush.msrb.mxu2 %v15221_v28 }
 0xc4c   : > { %7784 = vmatpush.msrb.mxu2 %v15225_v37 }
 0xc4d   : > { %10243 = vmatmul.msk.f32.gmra.mxu2 %vm6882_vm12, %v7312_v42  ;;  %v7354_v42 = vpop.f32.mrf.mxu1 }
 0xc50   : > { %v15398_v63 = vpop.f32.mrf.mxu3 }
 0xc58   : > { %v15402_v12 = vpop.f32.mrf.mxu3 }
 0xc60   : > { %v15392_v24 = vpop.f32.mrf.mxu2  ;;  %v7230_v10 = vpop.f32.mrf.mxu3 }
 0xc68   : > { %v15396_v23 = vpop.f32.mrf.mxu2  ;;  %v7233_v36 = vpop.f32.mrf.mxu3 }
 0xc70   : > { %v15400_v50 = vpop.f32.mrf.mxu2  ;;  %v7236_v21 = vpop.f32.mrf.mxu3 }
 0xc78   : > { %v15404_v40 = vpop.f32.mrf.mxu2  ;;  %v7239_v45 = vpop.f32.mrf.mxu3 }
 0xc80   : > { %v15406_v5 = vpop.f32.mrf.mxu2  ;;  %v7242_v43 = vpop.f32.mrf.mxu3 }
 0xc88   : > { %v7198_v19 = vpop.f32.mrf.mxu2 }
 0xc89   : > { %v7231_v4 = vadd.f32 %v7230_v10, %v7198_v19  ;;  %v7456_v19 = vld [vmem:[#allocation5 + $0x170] sm:$0xff] }
 0xc8b   : > { %10234 = vmatmul.msk.f32.vlgmr.msra.gmra.mxu0 %vm6713_vm7, %v7231_v4  ;;  %v7357_v4 = vpop.f32.mrf.mxu1 }
 0xc8c   : > { %7668 = vmatpush.msra.mxu0 %v15183_v34 }
 0xc8e   : > { %7669 = vmatpush.msra.mxu0 %v15189_v54 }
 0xc90   : > { %v7201_v41 = vpop.f32.mrf.mxu2 }
 0xc91   : > { %v7234_v16 = vadd.f32 %v7233_v36, %v7201_v41 }
 0xc93   : > { %10235 = vmatmul.msk.f32.gmra.mxu0 %vm6713_vm7, %v7234_v16  ;;  %v7458_v16 = vld [vmem:[#allocation5 + $0x180] sm:$0xf] }
 0xc98   : > { %v7204_v55 = vpop.f32.mrf.mxu2 }
 0xc99   : > { %v7237_v13 = vadd.f32 %v7236_v21, %v7204_v55  ;;  %v7597_v55 = vld [vmem:[#allocation5 + $0x190] sm:$0xff] }
 0xc9b   : > { %10236 = vmatmul.msk.f32.gmra.mxu0 %vm6713_vm7, %v7237_v13  ;;  %v7598_v13 = vld [vmem:[#allocation5 + $0x198] sm:$0xff] }
 0xca0   : > { %v7207_v49 = vpop.f32.mrf.mxu2 }
 0xca1   : > { %v7240_v8 = vadd.f32 %v7239_v45, %v7207_v49  ;;  %v7600_v45 = vld [vmem:[#allocation5 + $0x1a8] sm:$0xff]  ;;  %v7601_v49 = vld [vmem:[#allocation5 + $0x1b0] sm:$0xff] }
 0xca3   : > { %10237 = vmatmul.msk.f32.gmra.mxu0 %vm6713_vm7, %v7240_v8  ;;  %v7602_v8 = vld [vmem:[#allocation5 + $0x1b8] sm:$0xff] }
 0xca8   : > { %v7210_v57 = vpop.f32.mrf.mxu2 }
 0xca9   : > { %v7243_v26 = vadd.f32 %v7242_v43, %v7210_v57  ;;  %v7745_v43 = vld [vmem:[#allocation5 + $0x1e8] sm:$0xff] }
 0xcab   : > { %10238 = vmatmul.msk.f32.gmra.mxu0 %vm6713_vm7, %v7243_v26 }
 0xcb0   : > { %v7377_v61 = vpop.f32.mrf.mxu2 }
 0xcb1   : > { %v7378_v48 = vadd.f32 %v7377_v61, %v7345_v15 }
 0xcb3   : > { %10244 = vmatmul.msk.f32.vlgmr.msrb.gmra.mxu3 %vm6713_vm7, %v7378_v48  ;;  %7491 = vmatmul.f32.vlgmr.msrb.gmra.mxu0 %v7450_v0 }
 0xcb4   : > { %7815 = vmatpush.msrb.mxu3 %v15183_v34  ;;  %7865 = vmatpush.msrb.mxu0 %v7837_v44 }
 0xcb6   : > { %7816 = vmatpush.msrb.mxu3 %v15189_v54  ;;  %7866 = vmatpush.msrb.mxu0 %v7836_v32 }
 0xcb8   : > { %v7380_v7 = vpop.f32.mrf.mxu2  ;;  %7867 = vmatpush.msrb.mxu0 %v7835_v58 }
 0xcb9   : > { %v7381_v22 = vadd.f32 %v7380_v7, %v7348_v62 }
 0xcba   : > { %7868 = vmatpush.msrb.mxu0 %v7834_v60  ;;  %v7744_v60 = vld [vmem:[#allocation5 + $0x1e0] sm:$0xff] }
 0xcbb   : > { %10245 = vmatmul.msk.f32.gmra.mxu3 %vm6713_vm7, %v7381_v22  ;;  %7494 = vmatmul.f32.gmra.mxu0 %v7452_v31  ;;  %v7751_v31 = vld [vmem:[#allocation5 + $0x218] sm:$0xff] }
 0xcc0   : > { %v7383_v27 = vpop.f32.mrf.mxu2 }
 0xcc1   : > { %v7384_v47 = vadd.f32 %v7383_v27, %v7351_v56  ;;  %v7753_v27 = vld [vmem:[#allocation5 + $0x228] sm:$0xf] }
 0xcc3   : > { %10246 = vmatmul.msk.f32.gmra.mxu3 %vm6713_vm7, %v7384_v47  ;;  %7497 = vmatmul.f32.gmra.mxu0 %v7454_v39 }
 0xcc8   : > { %v7386_v10 = vpop.f32.mrf.mxu2 }
 0xcc9   : > { %v7387_v36 = vadd.f32 %v7386_v10, %v7354_v42  ;;  %v7746_v42 = vld [vmem:[#allocation5 + $0x1f0] sm:$0xff] }
 0xccb   : > { %10247 = vmatmul.msk.f32.gmra.mxu3 %vm6713_vm7, %v7387_v36  ;;  %7500 = vmatmul.f32.gmra.mxu0 %v7456_v19 }
 0xcd0   : > { %v7389_v41 = vpop.f32.mrf.mxu2 }
 0xcd1   : > { %v7390_v21 = vadd.f32 %v7389_v41, %v7357_v4  ;;  %v7748_v4 = vld [vmem:[#allocation5 + $0x200] sm:$0xff] }
 0xcd3   : > { %10248 = vmatmul.msk.f32.gmra.mxu3 %vm6713_vm7, %v7390_v21  ;;  %7503 = vmatmul.f32.gmra.mxu0 %v7458_v16 }
 0xcdb   : > { %7638 = vmatmul.f32.vlgmr.msra.gmra.mxu3 %v7597_v55  ;;  %10259 = vmatmul.msk.f32.vlgmr.msra.gmra.mxu0 %vm6882_vm12, %v7598_v13  ;;  %v7750_v55 = vld [vmem:[#allocation5 + $0x210] sm:$0xff] }
 0xcdc   : > { %8063 = vmatpush.msra.mxu0 %v15185_v1  ;;  %v7603_v1 = vld [vmem:[#allocation5 + $0x1c0] sm:$0xff] }
 0xcde   : > { %8064 = vmatpush.msra.mxu0 %v15187_v52  ;;  %v7604_v52 = vld [vmem:[#allocation5 + $0x1c8] sm:$0xff] }
 0xce0   : > { %8065 = vmatpush.msra.mxu0 %v15191_v3  ;;  %v7605_v3 = vld [vmem:[#allocation5 + $0x1d0] sm:$0xf] }
 0xce2   : > { %8066 = vmatpush.msra.mxu0 %v15193_v17  ;;  %v7606_v17 = vld [vmem:[#allocation5 + $0x1d8] sm:$0xf] }
 0xce3   : > { %7641 = vmatmul.f32.gmra.mxu3 %v7599_v18  ;;  %10260 = vmatmul.msk.f32.gmra.mxu0 %vm6882_vm12, %v7600_v45 }
 0xce4   : > { %8067 = vmatpush.msra.mxu0 %v15195_v59 }
 0xce6   : > { %8068 = vmatpush.msra.mxu0 %v15197_v46 }
 0xce8   : > { %8069 = vmatpush.msra.mxu0 %v15201_v20 }
 0xcea   : > { %8070 = vmatpush.msra.mxu0 %v15203_v53 }
 0xceb   : > { %7644 = vmatmul.f32.gmra.mxu3 %v7601_v49  ;;  %10261 = vmatmul.msk.f32.gmra.mxu0 %vm6882_vm12, %v7602_v8 }
 0xcec   : > { %8071 = vmatpush.msra.mxu0 %v15205_v11  ;;  %v7524_v11 = vpop.f32.mrf.mxu1 }
 0xcee   : > { %8072 = vmatpush.msra.mxu0 %v15209_v51 }
 0xcf0   : > { %8073 = vmatpush.msra.mxu0 %v15211_v29 }
 0xcf2   : > { %8074 = vmatpush.msra.mxu0 %v15213_v14 }
 0xcf3   : > { %7647 = vmatmul.f32.gmra.mxu3 %v7603_v1  ;;  %10262 = vmatmul.msk.f32.gmra.mxu0 %vm6882_vm12, %v7604_v52  ;;  %v7892_v1 = vld [vmem:[#allocation5 + $0x238] sm:$0xff]  ;;  %v7891_v52 = vld [vmem:[#allocation5 + $0x230] sm:$0xff] }
 0xcf4   : > { %8075 = vmatpush.msra.mxu0 %v15217_v9  ;;  %v7527_v14 = vpop.f32.mrf.mxu1 }
 0xcf6   : > { %8076 = vmatpush.msra.mxu0 %v15219_v25 }
 0xcf8   : > { %8077 = vmatpush.msra.mxu0 %v15221_v28 }
 0xcfa   : > { %8078 = vmatpush.msra.mxu0 %v15225_v37 }
 0xcfb   : > { %7650 = vmatmul.f32.gmra.mxu3 %v7605_v3  ;;  %10263 = vmatmul.msk.f32.gmra.mxu0 %vm6882_vm12, %v7606_v17  ;;  %v7894_v3 = vld [vmem:[#allocation5 + $0x248] sm:$0xff]  ;;  %v7893_v17 = vld [vmem:[#allocation5 + $0x240] sm:$0xff] }
 0xcfc   : > { %v7530_v6 = vpop.f32.mrf.mxu1 }
 0xd03   : > { %10269 = vmatmul.msk.f32.vlgmr.msrb.gmra.mxu3 %vm6882_vm12, %v7745_v43 }
 0xd04   : > { %v7533_v61 = vpop.f32.mrf.mxu1 }
 0xd08   : > { %v15447_v59 = vpop.f32.mrf.mxu0 }
 0xd0b   : > { %10270 = vmatmul.msk.f32.gmra.mxu3 %vm6882_vm12, %v7747_v35 }
 0xd0c   : > { %v7536_v32 = vpop.f32.mrf.mxu1 }
 0xd10   : > { %v15449_v46 = vpop.f32.mrf.mxu0 }
 0xd13   : > { %10271 = vmatmul.msk.f32.gmra.mxu3 %vm6882_vm12, %v7749_v38 }
 0xd18   : > { %v15451_v20 = vpop.f32.mrf.mxu0 }
 0xd1b   : > { %10272 = vmatmul.msk.f32.gmra.mxu3 %vm6882_vm12, %v7751_v31 }
 0xd20   : > { %v15453_v53 = vpop.f32.mrf.mxu0 }
 0xd23   : > { %10273 = vmatmul.msk.f32.gmra.mxu3 %vm6882_vm12, %v7753_v27  ;;  %v7982_v27 = vld [vmem:[#allocation11 + $0xe8] sm:$0xff] }
 0xd28   : > { %v15455_v51 = vpop.f32.mrf.mxu0 }
 0xd30   : > { %v7492_v29 = vpop.f32.mrf.mxu0 }
 0xd31   : > { %v7525_v9 = vadd.f32 %v7524_v11, %v7492_v29  ;;  %v7896_v11 = vld [vmem:[#allocation5 + $0x258] sm:$0xff]  ;;  %v7895_v29 = vld [vmem:[#allocation5 + $0x250] sm:$0xff] }
 0xd33   : > { %10254 = vmatmul.msk.f32.vlgmr.msra.gmra.mxu2 %vm6713_vm7, %v7525_v9  ;;  %v7897_v9 = vld [vmem:[#allocation5 + $0x260] sm:$0xff] }
 0xd34   : > { %7962 = vmatpush.msra.mxu2 %v15183_v34 }
 0xd36   : > { %7963 = vmatpush.msra.mxu2 %v15189_v54  ;;  %v15460_v25 = vpop.f32.mrf.mxu3 }
 0xd38   : > { %v7495_v28 = vpop.f32.mrf.mxu0 }
 0xd39   : > { %v7528_v37 = vadd.f32 %v7527_v14, %v7495_v28  ;;  %v7898_v14 = vld [vmem:[#allocation5 + $0x268] sm:$0xff]  ;;  %v7900_v28 = vld [vmem:[#allocation5 + $0x278] sm:$0xf] }
 0xd3b   : > { %10255 = vmatmul.msk.f32.gmra.mxu2 %vm6713_vm7, %v7528_v37  ;;  %v7899_v37 = vld [vmem:[#allocation5 + $0x270] sm:$0xf] }
 0xd3e   : > { %v15464_v15 = vpop.f32.mrf.mxu3 }
 0xd40   : > { %v7498_v57 = vpop.f32.mrf.mxu0 }
 0xd41   : > { %v7531_v26 = vadd.f32 %v7530_v6, %v7498_v57 }
 0xd43   : > { %10256 = vmatmul.msk.f32.gmra.mxu2 %vm6713_vm7, %v7531_v26 }
 0xd46   : > { %v15468_v0 = vpop.f32.mrf.mxu3 }
 0xd48   : > { %v7501_v62 = vpop.f32.mrf.mxu0 }
 0xd49   : > { %v7534_v48 = vadd.f32 %v7533_v61, %v7501_v62 }
 0xd4b   : > { %10257 = vmatmul.msk.f32.gmra.mxu2 %vm6713_vm7, %v7534_v48 }
 0xd4e   : > { %v15472_v44 = vpop.f32.mrf.mxu3 }
 0xd50   : > { %v7504_v58 = vpop.f32.mrf.mxu0 }
 0xd51   : > { %v7537_v7 = vadd.f32 %v7536_v32, %v7504_v58  ;;  %v7984_v58 = vld [vmem:[#allocation11 + $0xf8] sm:$0xff] }
 0xd52   : > { %8012 = vmatpush.msra.mxu3 %v7984_v58  ;;  %v8044_v58 = vld [vmem:[#allocation5 + $0x2b0] sm:$0xff] }
 0xd53   : > { %10258 = vmatmul.msk.f32.gmra.mxu2 %vm6713_vm7, %v7537_v7  ;;  %v7983_v7 = vld [vmem:[#allocation11 + $0xf0] sm:$0xff] }
 0xd54   : > { %8013 = vmatpush.msra.mxu3 %v7983_v7 }
 0xd56   : > { %v15476_v22 = vpop.f32.mrf.mxu3  ;;  %8014 = vmatpush.msra.mxu3 %v7982_v27  ;;  %v8046_v27 = vld [vmem:[#allocation5 + $0x2c0] sm:$0xf] }
 0xd58   : > { %v7671_v56 = vpop.f32.mrf.mxu0 }
 0xd5b   : > { %7785 = vmatmul.f32.vlgmr.msrb.gmra.mxu2 %v7744_v60 }
 0xd5e   : > { %v7639_v39 = vpop.f32.mrf.mxu3 }
 0xd5f   : > { %v7672_v47 = vadd.f32 %v7671_v56, %v7639_v39  ;;  %v7981_v39 = vld [vmem:[#allocation11 + $0xe0] sm:$0xff] }
 0xd60   : > { %v7674_v10 = vpop.f32.mrf.mxu0  ;;  %8015 = vmatpush.msra.mxu3 %v7981_v39 }
 0xd61   : > { %10264 = vmatmul.msk.f32.vlgmr.msra.gmra.mxu1 %vm6713_vm7, %v7672_v47 }
 0xd62   : > { %8109 = vmatpush.msra.mxu1 %v15183_v34  ;;  %v7752_v34 = vld [vmem:[#allocation5 + $0x220] sm:$0xf] }
 0xd63   : > { %7788 = vmatmul.f32.gmra.mxu2 %v7746_v42  ;;  %v8039_v42 = vld [vmem:[#allocation5 + $0x288] sm:$0xff] }
 0xd64   : > { %8110 = vmatpush.msra.mxu1 %v15189_v54 }
 0xd66   : > { %v7642_v19 = vpop.f32.mrf.mxu3 }
 0xd67   : > { %v7675_v36 = vadd.f32 %v7674_v10, %v7642_v19 }
 0xd68   : > { %v7677_v41 = vpop.f32.mrf.mxu0 }
 0xd69   : > { %10265 = vmatmul.msk.f32.gmra.mxu1 %vm6713_vm7, %v7675_v36 }
 0xd6b   : > { %7791 = vmatmul.f32.gmra.mxu2 %v7748_v4  ;;  %v8041_v4 = vld [vmem:[#allocation5 + $0x298] sm:$0xff] }
 0xd6e   : > { %v7645_v16 = vpop.f32.mrf.mxu3 }
 0xd6f   : > { %v7678_v21 = vadd.f32 %v7677_v41, %v7645_v16 }
 0xd70   : > { %v7680_v13 = vpop.f32.mrf.mxu0 }
 0xd71   : > { %10266 = vmatmul.msk.f32.gmra.mxu1 %vm6713_vm7, %v7678_v21 }
 0xd73   : > { %7794 = vmatmul.f32.gmra.mxu2 %v7750_v55 }
 0xd76   : > { %v7648_v18 = vpop.f32.mrf.mxu3 }
 0xd77   : > { %v7681_v45 = vadd.f32 %v7680_v13, %v7648_v18  ;;  %v8043_v13 = vld [vmem:[#allocation5 + $0x2a8] sm:$0xff] }
 0xd78   : > { %v7683_v54 = vpop.f32.mrf.mxu0 }
 0xd79   : > { %10267 = vmatmul.msk.f32.gmra.mxu1 %vm6713_vm7, %v7681_v45 }
 0xd7b   : > { %7797 = vmatmul.f32.gmra.mxu2 %v7752_v34 }
 0xd7e   : > { %v7651_v49 = vpop.f32.mrf.mxu3 }
 0xd7f   : > { %v7684_v8 = vadd.f32 %v7683_v54, %v7651_v49  ;;  %v8045_v49 = vld [vmem:[#allocation5 + $0x2b8] sm:$0xff] }
 0xd81   : > { %10268 = vmatmul.msk.f32.gmra.mxu1 %vm6713_vm7, %v7684_v8 }
 0xd83   : > { %10279 = vmatmul.msk.f32.vlgmr.msra.gmra.mxu2 %vm6882_vm12, %v7892_v1 }
 0xd86   : > { %v7818_v35 = vpop.f32.mrf.mxu3 }
 0xd89   : > { %7932 = vmatmul.f32.vlgmr.msrb.gmra.mxu1 %v7891_v52  ;;  %v8038_v52 = vld [vmem:[#allocation5 + $0x280] sm:$0xff] }
 0xd8b   : > { %10280 = vmatmul.msk.f32.gmra.mxu2 %vm6882_vm12, %v7894_v3 }
 0xd8e   : > { %v7821_v62 = vpop.f32.mrf.mxu3 }
 0xd91   : > { %7935 = vmatmul.f32.gmra.mxu1 %v7893_v17  ;;  %v8047_v17 = vld [vmem:[#allocation5 + $0x2c8] sm:$0xf] }
 0xd93   : > { %10281 = vmatmul.msk.f32.gmra.mxu2 %vm6882_vm12, %v7896_v11 }
 0xd96   : > { %v7824_v47 = vpop.f32.mrf.mxu3 }
 0xd99   : > { %7938 = vmatmul.f32.gmra.mxu1 %v7895_v29 }
 0xd9b   : > { %10282 = vmatmul.msk.f32.gmra.mxu2 %vm6882_vm12, %v7898_v14  ;;  %v8040_v14 = vld [vmem:[#allocation5 + $0x290] sm:$0xff] }
 0xd9e   : > { %v7827_v41 = vpop.f32.mrf.mxu3 }
 0xda1   : > { %7941 = vmatmul.f32.gmra.mxu1 %v7897_v9 }
 0xda3   : > { %10283 = vmatmul.msk.f32.gmra.mxu2 %vm6882_vm12, %v7900_v28 }
 0xda6   : > { %v7830_v18 = vpop.f32.mrf.mxu3 }
 0xda9   : > { %7944 = vmatmul.f32.gmra.mxu1 %v7899_v37 }
 0xdb1   : > { %10289 = vmatmul.msk.f32.vlgmr.msra.gmra.mxu1 %vm6882_vm12, %v8039_v42  ;;  %v8131_v42 = vld [vmem:[#allocation11 + $0x118] sm:$0xff] }
 0xdb2   : > { %8159 = vmatpush.msrb.mxu2 %v8131_v42 }
 0xdb6   : > { %v15491_v6 = vpop.f32.mrf.mxu2 }
 0xdb9   : > { %10290 = vmatmul.msk.f32.gmra.mxu1 %vm6882_vm12, %v8041_v4  ;;  %v8129_v4 = vld [vmem:[#allocation11 + $0x108] sm:$0xff] }
 0xdbe   : > { %v15493_v43 = vpop.f32.mrf.mxu2 }
 0xdc1   : > { %10291 = vmatmul.msk.f32.gmra.mxu1 %vm6882_vm12, %v8043_v13 }
 0xdc6   : > { %v15495_v57 = vpop.f32.mrf.mxu2 }
 0xdc9   : > { %10292 = vmatmul.msk.f32.gmra.mxu1 %vm6882_vm12, %v8045_v49 }
 0xdce   : > { %v15497_v26 = vpop.f32.mrf.mxu2 }
 0xdd1   : > { %10293 = vmatmul.msk.f32.gmra.mxu1 %vm6882_vm12, %v8047_v17 }
 0xdd6   : > { %v15499_v61 = vpop.f32.mrf.mxu2 }
 0xdde   : > { %v15501_v48 = vpop.f32.mrf.mxu1  ;;  %v7786_v38 = vpop.f32.mrf.mxu2 }
 0xddf   : > { %v7819_v32 = vadd.f32 %v7818_v35, %v7786_v38  ;;  %v8042_v35 = vld [vmem:[#allocation5 + $0x2a0] sm:$0xff] }
 0xde1   : > { %10274 = vmatmul.msk.f32.vlgmr.msrb.gmra.mxu0 %vm6713_vm7, %v7819_v32 }
 0xde6   : > { %v15504_v31 = vpop.f32.mrf.mxu1  ;;  %v7789_v60 = vpop.f32.mrf.mxu2 }
 0xde7   : > { %v7822_v56 = vadd.f32 %v7821_v62, %v7789_v60 }
 0xde9   : > { %10275 = vmatmul.msk.f32.gmra.mxu0 %vm6713_vm7, %v7822_v56 }
 0xdee   : > { %v15508_v10 = vpop.f32.mrf.mxu1  ;;  %v7792_v19 = vpop.f32.mrf.mxu2 }
 0xdef   : > { %v7825_v36 = vadd.f32 %v7824_v47, %v7792_v19  ;;  %v8130_v19 = vld [vmem:[#allocation11 + $0x110] sm:$0xff] }
 0xdf0   : > { %8160 = vmatpush.msrb.mxu2 %v8130_v19 }
 0xdf1   : > { %10276 = vmatmul.msk.f32.gmra.mxu0 %vm6713_vm7, %v7825_v36 }
 0xdf2   : > { %8161 = vmatpush.msrb.mxu2 %v8129_v4 }
 0xdf6   : > { %v15512_v16 = vpop.f32.mrf.mxu1  ;;  %v7795_v21 = vpop.f32.mrf.mxu2 }
 0xdf7   : > { %v7828_v55 = vadd.f32 %v7827_v41, %v7795_v21  ;;  %v8128_v41 = vld [vmem:[#allocation11 + $0x100] sm:$0xff] }
 0xdf8   : > { %8162 = vmatpush.msrb.mxu2 %v8128_v41 }
 0xdf9   : > { %10277 = vmatmul.msk.f32.gmra.mxu0 %vm6713_vm7, %v7828_v55 }
 0xdfe   : > { %v15516_v45 = vpop.f32.mrf.mxu1  ;;  %v7798_v34 = vpop.f32.mrf.mxu2 }
 0xdff   : > { %v7831_v54 = vadd.f32 %v7830_v18, %v7798_v34 }
 0xe01   : > { %10278 = vmatmul.msk.f32.gmra.mxu0 %vm6713_vm7, %v7831_v54 }
 0xe06   : > { %v7933_v8 = vpop.f32.mrf.mxu1  ;;  %v7965_v1 = vpop.f32.mrf.mxu2 }
 0xe07   : > { %v7966_v3 = vadd.f32 %v7965_v1, %v7933_v8 }
 0xe09   : > { %10284 = vmatmul.msk.f32.vlgmr.msra.gmra.mxu3 %vm6713_vm7, %v7966_v3  ;;  %8079 = vmatmul.f32.vlgmr.msra.gmra.mxu0 %v8038_v52 }
 0xe0e   : > { %v7936_v11 = vpop.f32.mrf.mxu1  ;;  %v7968_v29 = vpop.f32.mrf.mxu2 }
 0xe0f   : > { %v7969_v9 = vadd.f32 %v7968_v29, %v7936_v11 }
 0xe11   : > { %10285 = vmatmul.msk.f32.gmra.mxu3 %vm6713_vm7, %v7969_v9  ;;  %8082 = vmatmul.f32.gmra.mxu0 %v8040_v14 }
 0xe16   : > { %v7939_v28 = vpop.f32.mrf.mxu1  ;;  %v7971_v37 = vpop.f32.mrf.mxu2 }
 0xe17   : > { %v7972_v62 = vadd.f32 %v7971_v37, %v7939_v28 }
 0xe19   : > { %10286 = vmatmul.msk.f32.gmra.mxu3 %vm6713_vm7, %v7972_v62  ;;  %8085 = vmatmul.f32.gmra.mxu0 %v8042_v35  ;;  %v7141_v35 = vadd.f32 %v15388_v2, %v15392_v24  ;;  %v15545_v2 = vld [vmem:[#allocation17] ss:$0 sm:$0xff] }
 0xe1e   : > { %v7942_v38 = vpop.f32.mrf.mxu1  ;;  %v7974_v32 = vpop.f32.mrf.mxu2 }
 0xe1f   : > { %v7975_v7 = vadd.f32 %v7974_v32, %v7942_v38  ;;  %v7297_v38 = vadd.f32 %v15447_v59, %v7141_v35 }
 0xe21   : > { %10287 = vmatmul.msk.f32.gmra.mxu3 %vm6713_vm7, %v7975_v7  ;;  %8088 = vmatmul.f32.gmra.mxu0 %v8044_v58  ;;  %v7444_v32 = vadd.f32 %v15460_v25, %v7297_v38  ;;  %v7144_v7 = vadd.f32 %v15390_v30, %v15396_v23 }
 0xe23   : > { %v7591_v58 = vadd.f32 %v15491_v6, %v7444_v32  ;;  %v7147_v6 = vadd.f32 %v15394_v33, %v15400_v50  ;;  %v7150_v33 = vadd.f32 %v15398_v63, %v15404_v40  ;;  %v7153_v63 = vadd.f32 %v15402_v12, %v15406_v5 }
 0xe26   : > { %v7945_v60 = vpop.f32.mrf.mxu1  ;;  %v7977_v56 = vpop.f32.mrf.mxu2 }
 0xe27   : > { %v7978_v39 = vadd.f32 %v7977_v56, %v7945_v60  ;;  %v7738_v60 = vadd.f32 %v15501_v48, %v7591_v58  ;;  %v7298_v56 = vadd.f32 %v15449_v46, %v7144_v7  ;;  %v7299_v46 = vadd.f32 %v15451_v20, %v7147_v6 }
 0xe28   : > { %v7300_v20 = vadd.f32 %v15453_v53, %v7150_v33 }
 0xe29   : > { %10288 = vmatmul.msk.f32.gmra.mxu3 %vm6713_vm7, %v7978_v39  ;;  %8091 = vmatmul.f32.gmra.mxu0 %v8046_v27  ;;  %v7445_v42 = vadd.f32 %v15464_v15, %v7298_v56  ;;  %v7446_v15 = vadd.f32 %v15468_v0, %v7299_v46 }
 0xe2a   : > { %v7447_v0 = vadd.f32 %v15472_v44, %v7300_v20 }
 0xe2b   : > { %v7592_v59 = vadd.f32 %v15493_v43, %v7445_v42 }
 0xe2d   : > { %v7739_v30 = vadd.f32 %v15504_v31, %v7592_v59 }
 0xe2e   : > { %v8112_v13 = vpop.f32.mrf.mxu1 }
 0xe36   : > { %v8115_v54 = vpop.f32.mrf.mxu1 }
 0xe3e   : > { %v8118_v52 = vpop.f32.mrf.mxu1 }
 0xe46   : > { %v8121_v11 = vpop.f32.mrf.mxu1 }
 0xe4e   : > { %v8124_v9 = vpop.f32.mrf.mxu1 }
 0xe5e   : > { %v7870_v47 = vpop.f32.mrf.mxu0 }
 0xe5f   : > { %v7885_v27 = vadd.f32 %v7870_v47, %v7738_v60 }
 0xe66   : > { %v7873_v36 = vpop.f32.mrf.mxu0 }
 0xe67   : > { %v7886_v48 = vadd.f32 %v7873_v36, %v7739_v30 }
 0xe6e   : > { %v7876_v21 = vpop.f32.mrf.mxu0 }
 0xe76   : > { %v15526_v55 = vpop.f32.mrf.mxu0 }
 0xe7e   : > { %v15528_v18 = vpop.f32.mrf.mxu0 }
 0xe86   : > { %v8080_v34 = vpop.f32.mrf.mxu0 }
 0xe87   : > { %v8113_v49 = vadd.f32 %v8112_v13, %v8080_v34  ;;  %v7593_v34 = vadd.f32 %v15495_v57, %v7446_v15  ;;  %v7594_v57 = vadd.f32 %v15497_v26, %v7447_v0 }
 0xe89   : > { %10294 = vmatmul.msk.f32.vlgmr.msrb.gmra.mxu2 %vm6713_vm7, %v8113_v49  ;;  %v7740_v50 = vadd.f32 %v15508_v10, %v7593_v34  ;;  %v7741_v40 = vadd.f32 %v15512_v16, %v7594_v57 }
 0xe8b   : > { %v7887_v36 = vadd.f32 %v7876_v21, %v7740_v50  ;;  %v7301_v21 = vadd.f32 %v15455_v51, %v7153_v63  ;;  %v7888_v44 = vadd.f32 %v15526_v55, %v7741_v40 }
 0xe8c   : > { %v8017_v62 = vpop.f32.mrf.mxu3 }
 0xe8d   : > { %v8032_v19 = vadd.f32 %v8017_v62, %v7885_v27 }
 0xe8e   : > { %v8083_v8 = vpop.f32.mrf.mxu0 }
 0xe8f   : > { %v8116_v1 = vadd.f32 %v8115_v54, %v8083_v8 }
 0xe91   : > { %10295 = vmatmul.msk.f32.gmra.mxu2 %vm6713_vm7, %v8116_v1 }
 0xe94   : > { %v8020_v39 = vpop.f32.mrf.mxu3 }
 0xe95   : > { %v8033_v4 = vadd.f32 %v8020_v39, %v7886_v48 }
 0xe96   : > { %v8086_v3 = vpop.f32.mrf.mxu0 }
 0xe97   : > { %v8119_v17 = vadd.f32 %v8118_v52, %v8086_v3 }
 0xe99   : > { %10296 = vmatmul.msk.f32.gmra.mxu2 %vm6713_vm7, %v8119_v17 }
 0xe9c   : > { %v8023_v41 = vpop.f32.mrf.mxu3 }
 0xe9d   : > { %v8034_v8 = vadd.f32 %v8023_v41, %v7887_v36  ;;  %v11453_v41 = vmov 36.0  }
 0xe9e   : > { %v8089_v29 = vpop.f32.mrf.mxu0 }
 0xe9f   : > { %v8122_v14 = vadd.f32 %v8121_v11, %v8089_v29 }
 0xea1   : > { %10297 = vmatmul.msk.f32.gmra.mxu2 %vm6713_vm7, %v8122_v14  ;;  %v7448_v14 = vadd.f32 %v15476_v22, %v7301_v21 }
 0xea3   : > { %v7595_v12 = vadd.f32 %v15499_v61, %v7448_v14  ;;  %v8329_v14 = vld [vmem:[#allocation13 + $0x18] sm:$0xff] }
 0xea4   : > { %v8026_v17 = vpop.f32.mrf.mxu3  ;;  %8414 = vmatpush.msrb.mxu1 %v8329_v14 }
 0xea5   : > { %v8035_v26 = vadd.f32 %v8026_v17, %v7888_v44  ;;  %v7742_v51 = vadd.f32 %v15516_v45, %v7595_v12 }
 0xea6   : > { %v8092_v28 = vpop.f32.mrf.mxu0 }
 0xea7   : > { %v8125_v37 = vadd.f32 %v8124_v9, %v8092_v28  ;;  %v7889_v38 = vadd.f32 %v15528_v18, %v7742_v51  ;;  %v8326_v51 = vld [vmem:[#allocation13] sm:$0xff] }
 0xea9   : > { %10298 = vmatmul.msk.f32.gmra.mxu2 %vm6713_vm7, %v8125_v37 }
 0xeac   : > { %v8029_v22 = vpop.f32.mrf.mxu3 }
 0xead   : > { %v8036_v60 = vadd.f32 %v8029_v22, %v7889_v38 }
 0xf0c   : > { %v8164_v24 = vpop.f32.mrf.mxu2 }
 0xf0d   : > { %v8179_v25 = vadd.f32 %v8164_v24, %v8032_v19 }
 0xf0f   : > { %v8188_v23 = vadd.f32 %v15545_v2, %v8179_v25 }
 0xf11   : > { %v8198_v47 = vmin.f32 %v8188_v23, 0.0  ;;  %vm8193_vm14 = vcmp.gt.f32.partialorder %v8188_v23, 0.0 }
 0xf13   : > { %v8203_v54 = vmul.f32 1.442695, %v8198_v47 }
 0xf14   : > { %v8167_v13 = vpop.f32.mrf.mxu2 }
 0xf15   : > { %v8180_v43 = vadd.f32 %v8167_v13, %v8033_v4  ;;  %10622 = vpow2.f32 %v8203_v54 }
 0xf17   : > { %v8189_v31 = vadd.f32 %v15545_v2, %v8180_v43 }
 0xf19   : > { %v8199_v49 = vmin.f32 %v8189_v31, 0.0  ;;  %vm8194_vm13 = vcmp.gt.f32.partialorder %v8189_v31, 0.0 }
 0xf1b   : > { %v8205_v1 = vmul.f32 1.442695, %v8199_v49  ;;  %v10623_v10 = vpop.eup %10622 }
 0xf1c   : > { %v8170_v52 = vpop.f32.mrf.mxu2  ;;  %v10299_v9 = vadd.f32 -1.0, %v10623_v10 }
 0xf1d   : > { %10624 = vpow2.f32 %v8205_v1  ;;  %v8181_v3 = vadd.f32 %v8170_v52, %v8034_v8 }
 0xf1e   : > { %v15573_v55 = vsel %vm8193_vm14, %v8188_v23, %v10299_v9 }
 0xf1f   : > { %v8190_v53 = vadd.f32 %v15545_v2, %v8181_v3  ;;  %v8247_v61 = vmul.f32 %v15573_v55, %v15573_v55  ;;  %v8223_v27 = vsel %vm6713_vm7, %v15573_v55, 0.0 }
 0xf21   : > { %v8200_v11 = vmin.f32 %v8190_v53, 0.0  ;;  %vm8195_vm15 = vcmp.gt.f32.partialorder %v8190_v53, 0.0  ;;  %v8252_v24 = vsel %vm6713_vm7, %v8247_v61, 0.0 }
 0xf23   : > { %v10625_v29 = vpop.eup %10624  ;;  %v8207_v28 = vmul.f32 1.442695, %v8200_v11 }
 0xf24   : > { %v10300_v37 = vadd.f32 -1.0, %v10625_v29  ;;  %v8173_v35 = vpop.f32.mrf.mxu2 }
 0xf25   : > { %10626 = vpow2.f32 %v8207_v28  ;;  %v8182_v5 = vadd.f32 %v8173_v35, %v8035_v26  ;;  %v8327_v35 = vld [vmem:[#allocation13 + $0x8] sm:$0xff] }
 0xf26   : > { %v15570_v16 = vsel %vm8194_vm13, %v8189_v31, %v10300_v37  ;;  %v8328_v37 = vld [vmem:[#allocation13 + $0x10] sm:$0xff] }
 0xf27   : > { %v8191_v62 = vadd.f32 %v15545_v2, %v8182_v5  ;;  %v8248_v32 = vmul.f32 %v15570_v16, %v15570_v16  ;;  %v8224_v56 = vsel %vm6713_vm7, %v15570_v16, 0.0  ;;  %8415 = vmatpush.msrb.mxu1 %v8328_v37  ;;  %v8528_v37 = vld [vmem:[#allocation13 + $0x70] sm:$0xff] }
 0xf28   : > { %v8225_v59 = vadd.f32 %v8224_v56, %v8223_v27 }
 0xf29   : > { %v8201_v58 = vmin.f32 %v8191_v62, 0.0  ;;  %v8253_v18 = vsel %vm6713_vm7, %v8248_v32, 0.0  ;;  %vm8196_vm0 = vcmp.gt.f32.partialorder %v8191_v62, 0.0  ;;  %8416 = vmatpush.msrb.mxu1 %v8327_v35  ;;  %v8527_v35 = vld [vmem:[#allocation13 + $0x68] sm:$0xff] }
 0xf2a   : > { %v8254_v46 = vadd.f32 %v8253_v18, %v8252_v24 }
 0xf2b   : > { %v10627_v7 = vpop.eup %10626  ;;  %v8209_v45 = vmul.f32 1.442695, %v8201_v58  ;;  %8417 = vmatpush.msrb.mxu1 %v8326_v51  ;;  %v8596_v51 = vld [vmem:[#allocation13 + $0x90] sm:$0xff] }
 0xf2c   : > { %v10301_v39 = vadd.f32 -1.0, %v10627_v7  ;;  %v8176_v42 = vpop.f32.mrf.mxu2 }
 0xf2d   : > { %10628 = vpow2.f32 %v8209_v45  ;;  %v8183_v19 = vadd.f32 %v8176_v42, %v8036_v60 }
 0xf2e   : > { %v15587_v25 = vsel %vm8195_vm15, %v8190_v53, %v10301_v39  ;;  %10630 = vrcp.f32 %v11453_v41  ;;  %v8331_v41 = vld [vmem:[#allocation7 + $0x10] sm:$0xff] }
 0xf2f   : > { %v8226_v6 = vsel %vm6713_vm7, %v15587_v25, 0.0  ;;  %v8249_v30 = vmul.f32 %v15587_v25, %v15587_v25  ;;  %v8192_v23 = vadd.f32 %v15545_v2, %v8183_v19 }
 0xf30   : > { %v8227_v48 = vadd.f32 %v8226_v6, %v8225_v59 }
 0xf31   : > { %v8255_v47 = vsel %vm6713_vm7, %v8249_v30, 0.0  ;;  %v8202_v15 = vmin.f32 %v8192_v23, 0.0  ;;  %vm8197_vm3 = vcmp.gt.f32.partialorder %v8192_v23, 0.0 }
 0xf32   : > { %v8256_v4 = vadd.f32 %v8255_v47, %v8254_v46 }
 0xf33   : > { %v10629_v13 = vpop.eup %10628  ;;  %v8211_v34 = vmul.f32 1.442695, %v8202_v15 }
 0xf34   : > { %v10302_v43 = vadd.f32 -1.0, %v10629_v13  ;;  %v10631_v50 = vpop.eup %10630  ;;  %v8332_v13 = vld [vmem:[#allocation7 + $0x18] sm:$0x1] }
 0xf35   : > { %10632 = vpow2.f32 %v8211_v34  ;;  %v8240_v0 = vmul.f32 36.0, %v10631_v50  ;;  %vm8244_vm4 = vweird.f32 %v10631_v50  ;;  %v8426_v34 = vld [vmem:[#allocation7 + $0x20] sm:$0xff] }
 0xf36   : > { %v15595_v54 = vsel %vm8196_vm0, %v8191_v62, %v10302_v43  ;;  %v8427_v43 = vld [vmem:[#allocation7 + $0x28] sm:$0x1]  ;;  %vm8971_vm0 = vcmask 1040384  }
 0xf37   : > { %v8228_v33 = vsel %vm6713_vm7, %v15595_v54, 0.0  ;;  %v8250_v2 = vmul.f32 %v15595_v54, %v15595_v54  ;;  %v8241_v57 = vsub.f32 1.0, %v8240_v0 }
 0xf38   : > { %v8229_v31 = vadd.f32 %v8228_v33, %v8227_v48  ;;  %v8366_v33 = vld [vmem:[#allocation13 + $0x38] sm:$0xff] }
 0xf39   : > { %v8257_v20 = vsel %vm6713_vm7, %v8250_v2, 0.0  ;;  %v8242_v10 = vmul.f32 %v10631_v50, %v8241_v57  ;;  %8385 = vmatpush.msrb.mxu0 %v8366_v33  ;;  %v8365_v2 = vld [vmem:[#allocation13 + $0x30] sm:$0xff] }
 0xf3a   : > { %v8258_v36 = vadd.f32 %v8257_v20, %v8256_v4  ;;  %v8292_v4 = vld [vmem:[#allocation7 + $0x8] sm:$0x1] }
 0xf3b   : > { %v10633_v49 = vpop.eup %10632  ;;  %v8243_v26 = vadd.f32 %v10631_v50, %v8242_v10  ;;  %8386 = vmatpush.msrb.mxu0 %v8365_v2  ;;  %v8563_v20 = vld [vmem:[#allocation7 + $0x48] sm:$0x1] }
 0xf3c   : > { %v10303_v8 = vadd.f32 -1.0, %v10633_v49  ;;  %v8460_v49 = vld [vmem:[#allocation13 + $0x50] sm:$0xff] }
 0xf3d   : > { %v8245_v62 = vsel %vm8244_vm4, %v10631_v50, %v8243_v26  ;;  %v8364_v50 = vld [vmem:[#allocation13 + $0x28] sm:$0xff]  ;;  %v8835_v10 = vld [vmem:[#allocation7 + $0x88] sm:$0x1]  ;;  %v8766_v26 = vld [vmem:[#allocation7 + $0x70] sm:$0xff] }
 0xf3e   : > { %v8222_v1 = vsel %vm8197_vm3, %v8192_v23, %v10303_v8  ;;  %8387 = vmatpush.msrb.mxu0 %v8364_v50  ;;  %v8459_v8 = vld [vmem:[#allocation13 + $0x48] sm:$0xff]  ;;  %vm8967_vm3 = vcmask 72704  }
 0xf3f   : > { %v8231_v52 = vsel %vm8230_vm2, %v8222_v1, 0.0  ;;  %v8251_v3 = vmul.f32 %v8222_v1, %v8222_v1 }
 0xf40   : > { %v8232_v17 = vadd.f32 %v8231_v52, %v8229_v31  ;;  %v8363_v31 = vld [vmem:[#allocation13 + $0x20] sm:$0xff] }
 0xf41   : > { %v8259_v63 = vsel %vm8230_vm2, %v8251_v3, 0.0  ;;  %8388 = vmatpush.msrb.mxu0 %v8363_v31  ;;  %v8458_v52 = vld [vmem:[#allocation13 + $0x40] sm:$0xff]  ;;  %v8699_v3 = vld [vmem:[#allocation7 + $0x68] sm:$0x1] }
 0xf42   : > { %v8233_v40 = vrot.slane %v8232_v17, 4  ;;  %v8260_v53 = vadd.f32 %v8259_v63, %v8258_v36  ;;  %v8461_v36 = vld [vmem:[#allocation13 + $0x58] sm:$0xff]  ;;  %v8834_v63 = vld [vmem:[#allocation7 + $0x80] sm:$0xff] }
 0xf43   : > { %8480 = vmatpush.msra.mxu0 %v8461_v36 }
 0xf44   : > { %v8234_v21 = vadd.f32 %v8233_v40, %v8232_v17  ;;  %v8261_v44 = vrot.slane %v8260_v53, 4  ;;  %v8494_v17 = vld [vmem:[#allocation7 + $0x30] sm:$0xff] }
 0xf45   : > { %8481 = vmatpush.msra.mxu0 %v8460_v49 }
 0xf46   : > { %v8235_v11 = vrot.slane %v8234_v21, 2  ;;  %v8262_v29 = vadd.f32 %v8261_v44, %v8260_v53  ;;  %v8495_v53 = vld [vmem:[#allocation7 + $0x38] sm:$0x1]  ;;  %v8630_v44 = vld [vmem:[#allocation7 + $0x50] sm:$0xff] }
 0xf47   : > { %8482 = vmatpush.msra.mxu0 %v8459_v8 }
 0xf48   : > { %v8236_v9 = vadd.f32 %v8235_v11, %v8234_v21  ;;  %v8263_v28 = vrot.slane %v8262_v29, 2 }
 0xf49   : > { %8483 = vmatpush.msra.mxu0 %v8458_v52 }
 0xf4a   : > { %v8237_v12 = vrot.slane %v8236_v9, 1  ;;  %v8264_v5 = vadd.f32 %v8263_v28, %v8262_v29  ;;  %v8631_v29 = vld [vmem:[#allocation7 + $0x58] sm:$0x1]  ;;  %v8529_v28 = vld [vmem:[#allocation13 + $0x78] sm:$0xff] }
 0xf4b   : > { %8548 = vmatpush.msra.mxu2 %v8529_v28 }
 0xf4c   : > { %v8238_v22 = vadd.f32 %v8237_v12, %v8236_v9  ;;  %v8265_v38 = vrot.slane %v8264_v5, 1  ;;  %v8767_v9 = vld [vmem:[#allocation7 + $0x78] sm:$0x1] }
 0xf4d   : > { %8549 = vmatpush.msra.mxu2 %v8528_v37  ;;  %v8526_v12 = vld [vmem:[#allocation13 + $0x60] sm:$0xff] }
 0xf4e   : > { %v8246_v32 = vmul.f32 %v8245_v62, %v8238_v22  ;;  %v8266_v58 = vadd.f32 %v8265_v38, %v8264_v5  ;;  %v8597_v5 = vld [vmem:[#allocation13 + $0x98] sm:$0xff]  ;;  %v8594_v38 = vld [vmem:[#allocation13 + $0x80] sm:$0xff] }
 0xf4f   : > { %8550 = vmatpush.msra.mxu2 %v8527_v35 }
 0xf50   : > { %v8267_v61 = vmul.f32 %v8266_v58, %v8245_v62  ;;  %v8268_v7 = vmul.f32 %v8246_v32, %v8246_v32  ;;  %v8271_v60 = vsub.f32 %v15570_v16, %v8246_v32  ;;  %v8272_v56 = vsub.f32 %v15587_v25, %v8246_v32  ;;  %v8595_v62 = vld [vmem:[#allocation13 + $0x88] sm:$0xff]  ;;  %v8664_v58 = vld [vmem:[#allocation13 + $0xb0] sm:$0xff] }
 0xf51   : > { %v8273_v45 = vsub.f32 %v15595_v54, %v8246_v32  ;;  %v8274_v27 = vsub.f32 %v8222_v1, %v8246_v32  ;;  %v8270_v23 = vsub.f32 %v15573_v55, %v8246_v32  ;;  %v8291_v55 = vld [vmem:[#allocation7] sm:$0xff]  ;;  %8551 = vmatpush.msra.mxu2 %v8526_v12  ;;  %v8665_v32 = vld [vmem:[#allocation13 + $0xb8] sm:$0xff] }
 0xf52   : > { %v8269_v39 = vsub.f32 %v8267_v61, %v8268_v7  ;;  %v8562_v54 = vld [vmem:[#allocation7 + $0x40] sm:$0xff] }
 0xf53   : > { %v8698_v1 = vld [vmem:[#allocation7 + $0x60] sm:$0xff]  ;;  %8684 = vmatpush.msrb.mxu2 %v8665_v32 }
 0xf54   : > { %v8275_v42 = vadd.f32 1e-05, %v8269_v39  ;;  %v8663_v61 = vld [vmem:[#allocation13 + $0xa8] sm:$0xff] }
 0xf55   : > { %8685 = vmatpush.msrb.mxu2 %v8664_v58  ;;  %v8731_v39 = vld [vmem:[#allocation13 + $0xc8] sm:$0xff] }
 0xf56   : > { %10634 = vrsqrt.f32 %v8275_v42  ;;  %vm8282_vm6 = vweird.f32 %v8275_v42 }
 0xf57   : > { %8686 = vmatpush.msrb.mxu2 %v8663_v61 }
 0xf5c   : > { %v10635_v18 = vpop.eup %10634 }
 0xf5d   : > { %v8277_v19 = vmul.f32 %v10635_v18, %v8275_v42  ;;  %vm8283_vm5 = vweird.f32 %v10635_v18 }
 0xf5e   : > { %vm8284_vm8 = vmor %vm8282_vm6, %vm8283_vm5 }
 0xf5f   : > { %v8278_v24 = vmul.f32 %v10635_v18, %v8277_v19  ;;  %v8730_v19 = vld [vmem:[#allocation13 + $0xc0] sm:$0xff] }
 0xf61   : > { %v8279_v59 = vmul.f32 0.5, %v8278_v24  ;;  %v8801_v24 = vld [vmem:[#allocation13 + $0xf8] sm:$0xff] }
 0xf63   : > { %v8280_v6 = vsub.f32 1.5, %v8279_v59 }
 0xf65   : > { %v8281_v30 = vmul.f32 %v10635_v18, %v8280_v6 }
 0xf67   : > { %v8285_v16 = vsel %vm8284_vm8, %v10635_v18, %v8281_v30  ;;  %v8800_v30 = vld [vmem:[#allocation13 + $0xf0] sm:$0xff] }
 0xf68   : > { %v15608_v46 = vmul.f32 %v8285_v16, %v8270_v23  ;;  %v15610_v25 = vmul.f32 %v8285_v16, %v8271_v60  ;;  %v15612_v48 = vmul.f32 %v8285_v16, %v8272_v56  ;;  %v15614_v47 = vmul.f32 %v8285_v16, %v8273_v45  ;;  %v8662_v56 = vld [vmem:[#allocation13 + $0xa0] sm:$0xff]  ;;  %v8733_v45 = vld [vmem:[#allocation13 + $0xd8] sm:$0xff] }
 0xf69   : > { %v15616_v15 = vmul.f32 %v8285_v16, %v8274_v27  ;;  %8687 = vmatpush.msrb.mxu2 %v8662_v56  ;;  %v8732_v27 = vld [vmem:[#allocation13 + $0xd0] sm:$0xff]  ;;  %v8869_v23 = vld [vmem:[#allocation13 + $0x118] sm:$0xff] }
 0xf6a   : > { %v8868_v16 = vld [vmem:[#allocation13 + $0x110] sm:$0xff] }
 0xf6b   : > { %10304 = vmatpush.msk.msrb.mxu3 %vm1844_vm1, %v15616_v15  ;;  %10319 = vmatpush.msk.msra.mxu1 %vm1844_vm1, %v15616_v15 }
 0xf6d   : > { %8315 = vmatpush.msrb.mxu3 %v15614_v47  ;;  %8514 = vmatpush.msra.mxu1 %v15614_v47 }
 0xf6f   : > { %8316 = vmatpush.msrb.mxu3 %v15612_v48  ;;  %8515 = vmatpush.msra.mxu1 %v15612_v48 }
 0xf71   : > { %8317 = vmatpush.msrb.mxu3 %v15610_v25  ;;  %8516 = vmatpush.msra.mxu1 %v15610_v25 }
 0xf73   : > { %8318 = vmatpush.msrb.mxu3 %v15608_v46  ;;  %8517 = vmatpush.msra.mxu1 %v15608_v46 }
 0xf74   : > { %10305 = vmatmul.msk.f32.vlgmr.msrb.gmra.mxu3 %vm8293_vm9, %v8291_v55  ;;  %v8866_v55 = vld [vmem:[#allocation13 + $0x100] sm:$0xff] }
 0xf75   : > { %10307 = vmatpush.msk.msra.mxu3 %vm1844_vm1, %v15616_v15 }
 0xf77   : > { %8351 = vmatpush.msra.mxu3 %v15614_v47 }
 0xf79   : > { %8352 = vmatpush.msra.mxu3 %v15612_v48 }
 0xf7b   : > { %8353 = vmatpush.msra.mxu3 %v15610_v25 }
 0xf7c   : > { %10306 = vmatmul.msk.f32.gmra.mxu3 %vm8293_vm9, %v8292_v4 }
 0xf7d   : > { %8354 = vmatpush.msra.mxu3 %v15608_v46 }
 0xf7f   : > { %10314 = vmatpush.msk.msrb.mxu3 %vm1844_vm1, %v15616_v15 }
 0xf81   : > { %8446 = vmatpush.msrb.mxu3 %v15614_v47 }
 0xf83   : > { %8447 = vmatpush.msrb.mxu3 %v15612_v48 }
 0xf84   : > { %10308 = vmatmul.msk.f32.vlgmr.msra.gmra.mxu3 %vm8293_vm9, %v8331_v41 }
 0xf85   : > { %8448 = vmatpush.msrb.mxu3 %v15610_v25 }
 0xf87   : > { %8449 = vmatpush.msrb.mxu3 %v15608_v46 }
 0xf89   : > { %10324 = vmatpush.msk.msra.mxu3 %vm1844_vm1, %v15616_v15 }
 0xf8b   : > { %8582 = vmatpush.msra.mxu3 %v15614_v47 }
 0xf8c   : > { %10309 = vmatmul.msk.f32.gmra.mxu3 %vm8293_vm9, %v8332_v13 }
 0xf8d   : > { %8583 = vmatpush.msra.mxu3 %v15612_v48 }
 0xf8f   : > { %8584 = vmatpush.msra.mxu3 %v15610_v25 }
 0xf91   : > { %8585 = vmatpush.msra.mxu3 %v15608_v46 }
 0xf94   : > { %10315 = vmatmul.msk.f32.vlgmr.msrb.gmra.mxu3 %vm8293_vm9, %v8426_v34 }
 0xf95   : > { %10334 = vmatpush.msk.msrb.mxu3 %vm1844_vm1, %v15616_v15 }
 0xf97   : > { %8718 = vmatpush.msrb.mxu3 %v15614_v47 }
 0xf99   : > { %8719 = vmatpush.msrb.mxu3 %v15612_v48 }
 0xf9b   : > { %8720 = vmatpush.msrb.mxu3 %v15610_v25 }
 0xf9c   : > { %10316 = vmatmul.msk.f32.gmra.mxu3 %vm8293_vm9, %v8427_v43 }
 0xf9d   : > { %8721 = vmatpush.msrb.mxu3 %v15608_v46 }
 0xfa4   : > { %10325 = vmatmul.msk.f32.vlgmr.msra.gmra.mxu3 %vm8293_vm9, %v8562_v54 }
 0xfa5   : > { %10344 = vmatpush.msk.msra.mxu3 %vm1844_vm1, %v15616_v15 }
 0xfa7   : > { %8854 = vmatpush.msra.mxu3 %v15614_v47 }
 0xfa9   : > { %8855 = vmatpush.msra.mxu3 %v15612_v48 }
 0xfab   : > { %8856 = vmatpush.msra.mxu3 %v15610_v25 }
 0xfac   : > { %10326 = vmatmul.msk.f32.gmra.mxu3 %vm8293_vm9, %v8563_v20 }
 0xfad   : > { %8857 = vmatpush.msra.mxu3 %v15608_v46 }
 0xfb4   : > { %10335 = vmatmul.msk.f32.vlgmr.msrb.gmra.mxu3 %vm8293_vm9, %v8698_v1 }
 0xfbc   : > { %10336 = vmatmul.msk.f32.gmra.mxu3 %vm8293_vm9, %v8699_v3 }
 0xfc4   : > { %10345 = vmatmul.msk.f32.vlgmr.msra.gmra.mxu3 %vm8293_vm9, %v8834_v63 }
 0xfcc   : > { %10346 = vmatmul.msk.f32.gmra.mxu3 %vm8293_vm9, %v8835_v10 }
 0xff7   : > { %v8320_v0 = vpop.f32.mrf.mxu3 }
 0xff8   : > { %10312 = vmatmul.msk.f32.vlgmr.msrb.gmra.mxu1 %vm6713_vm7, %v8320_v0 }
 0xff9   : > { %10329 = vmatpush.msk.msrb.mxu1 %vm1844_vm1, %v15616_v15 }
 0xffb   : > { %8650 = vmatpush.msrb.mxu1 %v15614_v47 }
 0xffd   : > { %8651 = vmatpush.msrb.mxu1 %v15612_v48 }
 0xfff   : > { %8652 = vmatpush.msrb.mxu1 %v15610_v25  ;;  %v8323_v57 = vpop.f32.mrf.mxu3 }
0x1000   : > { %10313 = vmatmul.msk.f32.gmra.mxu1 %vm6713_vm7, %v8323_v57 }
0x1001   : > { %8653 = vmatpush.msrb.mxu1 %v15608_v46 }
0x1007   : > { %v8356_v40 = vpop.f32.mrf.mxu3 }
0x1008   : > { %10320 = vmatmul.msk.f32.vlgmr.msra.gmra.mxu1 %vm8293_vm9, %v8494_v17  ;;  %10310 = vmatmul.msk.f32.vlgmr.msrb.gmra.mxu0 %vm6713_vm7, %v8356_v40 }
0x1009   : > { %10339 = vmatpush.msk.msra.mxu1 %vm1844_vm1, %v15616_v15  ;;  %8616 = vmatpush.msrb.mxu0 %v8597_v5 }
0x100b   : > { %8786 = vmatpush.msra.mxu1 %v15614_v47  ;;  %8617 = vmatpush.msrb.mxu0 %v8596_v51 }
0x100d   : > { %8787 = vmatpush.msra.mxu1 %v15612_v48  ;;  %8618 = vmatpush.msrb.mxu0 %v8595_v62  ;;  %v8798_v48 = vld [vmem:[#allocation13 + $0xe0] sm:$0xff] }
0x100f   : > { %8788 = vmatpush.msra.mxu1 %v15610_v25  ;;  %v8359_v21 = vpop.f32.mrf.mxu3  ;;  %8619 = vmatpush.msrb.mxu0 %v8594_v38  ;;  %v8867_v25 = vld [vmem:[#allocation13 + $0x108] sm:$0xff] }
0x1010   : > { %10321 = vmatmul.msk.f32.gmra.mxu1 %vm8293_vm9, %v8495_v53  ;;  %10311 = vmatmul.msk.f32.gmra.mxu0 %vm6713_vm7, %v8359_v21 }
0x1011   : > { %8789 = vmatpush.msra.mxu1 %v15608_v46  ;;  %v8799_v46 = vld [vmem:[#allocation13 + $0xe8] sm:$0xff] }
0x1017   : > { %v8451_v11 = vpop.f32.mrf.mxu3 }
0x1018   : > { %10330 = vmatmul.msk.f32.vlgmr.msrb.gmra.mxu1 %vm8293_vm9, %v8630_v44  ;;  %10317 = vmatmul.msk.f32.vlgmr.msra.gmra.mxu0 %vm6713_vm7, %v8451_v11 }
0x1019   : > { %8752 = vmatpush.msra.mxu0 %v8733_v45 }
0x101b   : > { %8753 = vmatpush.msra.mxu0 %v8732_v27 }
0x101d   : > { %8754 = vmatpush.msra.mxu0 %v8731_v39 }
0x101f   : > { %v8454_v14 = vpop.f32.mrf.mxu3  ;;  %8755 = vmatpush.msra.mxu0 %v8730_v19 }
0x1020   : > { %10331 = vmatmul.msk.f32.gmra.mxu1 %vm8293_vm9, %v8631_v29  ;;  %10318 = vmatmul.msk.f32.gmra.mxu0 %vm6713_vm7, %v8454_v14 }
0x1027   : > { %v8587_v22 = vpop.f32.mrf.mxu3 }
0x1028   : > { %10340 = vmatmul.msk.f32.vlgmr.msra.gmra.mxu1 %vm8293_vm9, %v8766_v26  ;;  %10327 = vmatmul.msk.f32.vlgmr.msrb.gmra.mxu0 %vm6713_vm7, %v8587_v22 }
0x1029   : > { %8888 = vmatpush.msrb.mxu0 %v8869_v23 }
0x102b   : > { %8889 = vmatpush.msrb.mxu0 %v8868_v16 }
0x102d   : > { %8890 = vmatpush.msrb.mxu0 %v8867_v25 }
0x102f   : > { %v8590_v60 = vpop.f32.mrf.mxu3  ;;  %8891 = vmatpush.msrb.mxu0 %v8866_v55 }
0x1030   : > { %10341 = vmatmul.msk.f32.gmra.mxu1 %vm8293_vm9, %v8767_v9  ;;  %10328 = vmatmul.msk.f32.gmra.mxu0 %vm6713_vm7, %v8590_v60  ;;  %v10580_v9 = vld [vmem:[#allocation19] ss:$0 sm:$0xff]  ;;  %vm9619_vm9 = vcmask 516096  }
0x1037   : > { %v8723_v18 = vpop.f32.mrf.mxu3 }
0x1038   : > { %10337 = vmatmul.msk.f32.vlgmr.msra.gmra.mxu0 %vm6713_vm7, %v8723_v18 }
0x103f   : > { %v8726_v6 = vpop.f32.mrf.mxu3 }
0x1040   : > { %10338 = vmatmul.msk.f32.gmra.mxu0 %vm6713_vm7, %v8726_v6 }
0x1047   : > { %v8859_v15 = vpop.f32.mrf.mxu3 }
0x1048   : > { %10347 = vmatmul.msk.f32.vlgmr.msrb.gmra.mxu0 %vm6713_vm7, %v8859_v15 }
0x104f   : > { %v8862_v41 = vpop.f32.mrf.mxu3 }
0x1050   : > { %10348 = vmatmul.msk.f32.gmra.mxu0 %vm6713_vm7, %v8862_v41 }
0x1075   : > { %v8419_v7 = vpop.f32.mrf.mxu1 }
0x107d   : > { %v8422_v42 = vpop.f32.mrf.mxu1 }
0x1085   : > { %v8519_v59 = vpop.f32.mrf.mxu1  ;;  %v8390_v54 = vpop.f32.mrf.mxu0 }
0x1086   : > { %10322 = vmatmul.msk.f32.vlgmr.msra.gmra.mxu2 %vm6713_vm7, %v8519_v59  ;;  %v8420_v1 = vadd.f32 %v8419_v7, %v8390_v54  ;;  %v11454_v7 = vmov 9.0  }
0x1087   : > { %8820 = vmatpush.msra.mxu2 %v8801_v24 }
0x1089   : > { %8821 = vmatpush.msra.mxu2 %v8800_v30 }
0x108b   : > { %8822 = vmatpush.msra.mxu2 %v8799_v46 }
0x108d   : > { %v8522_v47 = vpop.f32.mrf.mxu1  ;;  %8823 = vmatpush.msra.mxu2 %v8798_v48  ;;  %v8393_v33 = vpop.f32.mrf.mxu0 }
0x108e   : > { %10323 = vmatmul.msk.f32.gmra.mxu2 %vm6713_vm7, %v8522_v47  ;;  %v8423_v63 = vadd.f32 %v8422_v42, %v8393_v33 }
0x1095   : > { %v8655_v4 = vpop.f32.mrf.mxu1  ;;  %v8485_v2 = vpop.f32.mrf.mxu0 }
0x1096   : > { %10332 = vmatmul.msk.f32.vlgmr.msrb.gmra.mxu2 %vm6713_vm7, %v8655_v4  ;;  %v8491_v52 = vadd.f32 %v8485_v2, %v8420_v1 }
0x109d   : > { %v8658_v13 = vpop.f32.mrf.mxu1  ;;  %v8488_v50 = vpop.f32.mrf.mxu0 }
0x109e   : > { %10333 = vmatmul.msk.f32.gmra.mxu2 %vm6713_vm7, %v8658_v13  ;;  %v8492_v53 = vadd.f32 %v8488_v50, %v8423_v63 }
0x10a5   : > { %v8791_v34 = vpop.f32.mrf.mxu1  ;;  %v8621_v31 = vpop.f32.mrf.mxu0 }
0x10a6   : > { %10342 = vmatmul.msk.f32.vlgmr.msra.gmra.mxu2 %vm6713_vm7, %v8791_v34 }
0x10ad   : > { %v8794_v43 = vpop.f32.mrf.mxu1  ;;  %v8624_v36 = vpop.f32.mrf.mxu0 }
0x10ae   : > { %10343 = vmatmul.msk.f32.gmra.mxu2 %vm6713_vm7, %v8794_v43 }
0x10b5   : > { %v8757_v0 = vpop.f32.mrf.mxu0 }
0x10bd   : > { %v8760_v57 = vpop.f32.mrf.mxu0 }
0x10c5   : > { %v8893_v44 = vpop.f32.mrf.mxu0 }
0x10cd   : > { %v8896_v62 = vpop.f32.mrf.mxu0 }
0x1109   : > { %v8553_v20 = vpop.f32.mrf.mxu2 }
0x110a   : > { %v8559_v3 = vadd.f32 %v8553_v20, %v8491_v52 }
0x110c   : > { %v8627_v40 = vadd.f32 %v8621_v31, %v8559_v3 }
0x1111   : > { %v8556_v49 = vpop.f32.mrf.mxu2 }
0x1112   : > { %v8560_v21 = vadd.f32 %v8556_v49, %v8492_v53 }
0x1114   : > { %v8628_v14 = vadd.f32 %v8624_v36, %v8560_v21 }
0x1119   : > { %v8689_v8 = vpop.f32.mrf.mxu2 }
0x111a   : > { %v8695_v10 = vadd.f32 %v8689_v8, %v8627_v40 }
0x111c   : > { %v8763_v11 = vadd.f32 %v8757_v0, %v8695_v10 }
0x1121   : > { %v8692_v17 = vpop.f32.mrf.mxu2 }
0x1122   : > { %v8696_v28 = vadd.f32 %v8692_v17, %v8628_v14 }
0x1124   : > { %v8764_v12 = vadd.f32 %v8760_v57, %v8696_v28  ;;  %v9076_v28 = vld [vmem:[#allocation8 + $0x8] sm:$0xf] }
0x1129   : > { %v8825_v29 = vpop.f32.mrf.mxu2 }
0x112a   : > { %v8831_v26 = vadd.f32 %v8825_v29, %v8763_v11 }
0x112c   : > { %v8899_v37 = vadd.f32 %v8893_v44, %v8831_v26  ;;  %v9000_v26 = vld [vmem:[#allocation8 + $0x4] sm:$0xf] }
0x112e   : > { %v8905_v35 = vadd.f32 %v10580_v9, %v8899_v37  ;;  %v8966_v37 = vld [vmem:[#allocation8] sm:$0xf] }
0x1130   : > { %v8909_v5 = vmin.f32 %v8905_v35, 0.0  ;;  %vm8907_vm1 = vcmp.gt.f32.partialorder %v8905_v35, 0.0 }
0x1131   : > { %v8828_v51 = vpop.f32.mrf.mxu2 }
0x1132   : > { %v8911_v22 = vmul.f32 1.442695, %v8909_v5  ;;  %v8832_v38 = vadd.f32 %v8828_v51, %v8764_v12  ;;  %v9026_v12 = vld [vmem:[#allocation14 + $0x28] sm:$0xff]  ;;  %v9025_v5 = vld [vmem:[#allocation14 + $0x20] sm:$0xff] }
0x1133   : > { %v9184_v51 = vld [vmem:[#allocation8 + $0x10] sm:$0xf] }
0x1134   : > { %10636 = vpow2.f32 %v8911_v22  ;;  %v8900_v32 = vadd.f32 %v8896_v62, %v8832_v38  ;;  %v8998_v62 = vld [vmem:[#allocation14 + $0x18] sm:$0xff]  ;;  %v8997_v22 = vld [vmem:[#allocation14 + $0x10] sm:$0xff]  ;;  %v8996_v38 = vld [vmem:[#allocation14 + $0x8] sm:$0xff] }
0x1135   : > { %10638 = vrcp.f32 %v11454_v7  ;;  %v9102_v7 = vld [vmem:[#allocation14 + $0x48] sm:$0xff] }
0x1136   : > { %v8906_v58 = vadd.f32 %v10580_v9, %v8900_v32  ;;  %v9028_v9 = vld [vmem:[#allocation14 + $0x38] sm:$0xff]  ;;  %v8995_v32 = vld [vmem:[#allocation14] sm:$0xff] }
0x1138   : > { %v8910_v61 = vmin.f32 %v8906_v58, 0.0  ;;  %vm8908_vm11 = vcmp.gt.f32.partialorder %v8906_v58, 0.0 }
0x113a   : > { %v10637_v60 = vpop.eup %10636  ;;  %v8913_v56 = vmul.f32 1.442695, %v8910_v61  ;;  %v9103_v61 = vld [vmem:[#allocation14 + $0x50] sm:$0xff] }
0x113b   : > { %v10349_v45 = vadd.f32 -1.0, %v10637_v60  ;;  %v10639_v27 = vpop.eup %10638  ;;  %v9101_v60 = vld [vmem:[#allocation14 + $0x40] sm:$0xff] }
0x113c   : > { %10640 = vpow2.f32 %v8913_v56  ;;  %v8930_v18 = vmul.f32 9.0, %v10639_v27  ;;  %vm8934_vm12 = vweird.f32 %v10639_v27  ;;  %v9292_v56 = vld [vmem:[#allocation8 + $0x18] sm:$0xf] }
0x113d   : > { %v8917_v39 = vsel %vm8907_vm1, %v8905_v35, %v10349_v45  ;;  %v9027_v35 = vld [vmem:[#allocation14 + $0x30] sm:$0xff]  ;;  %v9400_v45 = vld [vmem:[#allocation8 + $0x20] sm:$0xf] }
0x113e   : > { %v8937_v24 = vmul.f32 %v8917_v39, %v8917_v39  ;;  %v8919_v6 = vsel %vm6713_vm7, %v8917_v39, 0.0  ;;  %v8931_v23 = vsub.f32 1.0, %v8930_v18  ;;  %v9130_v18 = vld [vmem:[#allocation8 + $0xc] sm:$0xf] }
0x1140   : > { %v8939_v25 = vsel %vm6713_vm7, %v8937_v24, 0.0  ;;  %v8932_v55 = vmul.f32 %v10639_v27, %v8931_v23  ;;  %v9346_v24 = vld [vmem:[#allocation8 + $0x1c] sm:$0xf]  ;;  %v9155_v23 = vld [vmem:[#allocation14 + $0x60] sm:$0xff] }
0x1142   : > { %v10641_v42 = vpop.eup %10640  ;;  %v8933_v43 = vadd.f32 %v10639_v27, %v8932_v55 }
0x1143   : > { %v10350_v19 = vadd.f32 -1.0, %v10641_v42 }
0x1144   : > { %v8935_v31 = vsel %vm8934_vm12, %v10639_v27, %v8933_v43  ;;  %v9318_v43 = vld [vmem:[#allocation14 + $0xc8] sm:$0xff] }
0x1145   : > { %v8918_v59 = vsel %vm8908_vm11, %v8906_v58, %v10350_v19  ;;  %v9104_v58 = vld [vmem:[#allocation14 + $0x58] sm:$0xff]  ;;  %v9238_v19 = vld [vmem:[#allocation8 + $0x14] sm:$0xf] }
0x1146   : > { %v8921_v30 = vsel %vm8920_vm10, %v8918_v59, 0.0  ;;  %v8938_v16 = vmul.f32 %v8918_v59, %v8918_v59  ;;  %9120 = vmatpush.msra.mxu0 %v9104_v58 }
0x1147   : > { %v8922_v46 = vadd.f32 %v8921_v30, %v8919_v6  ;;  %v9157_v6 = vld [vmem:[#allocation14 + $0x70] sm:$0xff]  ;;  %v9156_v30 = vld [vmem:[#allocation14 + $0x68] sm:$0xff] }
0x1148   : > { %v8940_v48 = vsel %vm8920_vm10, %v8938_v16, 0.0  ;;  %9121 = vmatpush.msra.mxu0 %v9103_v61  ;;  %v9212_v16 = vld [vmem:[#allocation14 + $0x98] sm:$0xff] }
0x1149   : > { %v8923_v47 = vrot.slane %v8922_v46, 4  ;;  %v8941_v15 = vadd.f32 %v8940_v48, %v8939_v25  ;;  %v9211_v25 = vld [vmem:[#allocation14 + $0x90] sm:$0xff] }
0x114a   : > { %9122 = vmatpush.msra.mxu0 %v9102_v7  ;;  %v9265_v48 = vld [vmem:[#allocation14 + $0xb0] sm:$0xff] }
0x114b   : > { %v8924_v4 = vadd.f32 %v8923_v47, %v8922_v46  ;;  %v8942_v41 = vrot.slane %v8941_v15, 4  ;;  %v9266_v46 = vld [vmem:[#allocation14 + $0xb8] sm:$0xff]  ;;  %v9210_v47 = vld [vmem:[#allocation14 + $0x88] sm:$0xff] }
0x114c   : > { %9123 = vmatpush.msra.mxu0 %v9101_v60 }
0x114d   : > { %v8925_v13 = vrot.slane %v8924_v4, 2  ;;  %v8943_v34 = vadd.f32 %v8942_v41, %v8941_v15  ;;  %v9264_v15 = vld [vmem:[#allocation14 + $0xa8] sm:$0xff]  ;;  %v9263_v41 = vld [vmem:[#allocation14 + $0xa0] sm:$0xff] }
0x114e   : > { %9228 = vmatpush.msrb.mxu0 %v9212_v16 }
0x114f   : > { %v8926_v54 = vadd.f32 %v8925_v13, %v8924_v4  ;;  %v8944_v33 = vrot.slane %v8943_v34, 2  ;;  %v9209_v4 = vld [vmem:[#allocation14 + $0x80] sm:$0xff]  ;;  %v9320_v13 = vld [vmem:[#allocation14 + $0xd8] sm:$0xff] }
0x1150   : > { %9229 = vmatpush.msrb.mxu0 %v9211_v25  ;;  %v9536_v25 = vld [vmem:[#allocation22 + $0x38] sm:$0xff] }
0x1151   : > { %v8927_v2 = vrot.slane %v8926_v54, 1  ;;  %v8945_v50 = vadd.f32 %v8944_v33, %v8943_v34  ;;  %v9319_v34 = vld [vmem:[#allocation14 + $0xd0] sm:$0xff] }
0x1152   : > { %9230 = vmatpush.msrb.mxu0 %v9210_v47 }
0x1153   : > { %v8928_v20 = vadd.f32 %v8927_v2, %v8926_v54  ;;  %v8946_v36 = vrot.slane %v8945_v50, 1  ;;  %v9317_v54 = vld [vmem:[#allocation14 + $0xc0] sm:$0xff]  ;;  %v9428_v2 = vld [vmem:[#allocation14 + $0x118] sm:$0xff] }
0x1154   : > { %9231 = vmatpush.msrb.mxu0 %v9209_v4  ;;  %v9505_v4 = vld [vmem:[#allocation22 + $0x8] sm:$0xff] }
0x1155   : > { %v8936_v49 = vmul.f32 %v8935_v31, %v8928_v20  ;;  %v8947_v0 = vadd.f32 %v8946_v36, %v8945_v50  ;;  %v9427_v50 = vld [vmem:[#allocation14 + $0x110] sm:$0xff]  ;;  %v9425_v20 = vld [vmem:[#allocation14 + $0x100] sm:$0xff] }
0x1157   : > { %v8948_v8 = vmul.f32 %v8947_v0, %v8935_v31  ;;  %v8949_v1 = vmul.f32 %v8936_v49, %v8936_v49  ;;  %v8951_v52 = vsub.f32 %v8917_v39, %v8936_v49  ;;  %v8952_v57 = vsub.f32 %v8918_v59, %v8936_v49  ;;  %v9158_v59 = vld [vmem:[#allocation14 + $0x78] sm:$0xff]  ;;  %v9426_v31 = vld [vmem:[#allocation14 + $0x108] sm:$0xff] }
0x1158   : > { %v9374_v0 = vld [vmem:[#allocation14 + $0xf8] sm:$0xff] }
0x1159   : > { %v8950_v3 = vsub.f32 %v8948_v8, %v8949_v1  ;;  %v9373_v1 = vld [vmem:[#allocation14 + $0xf0] sm:$0xff] }
0x115b   : > { %v8953_v17 = vadd.f32 1e-05, %v8950_v3 }
0x115d   : > { %10642 = vrsqrt.f32 %v8953_v17  ;;  %vm8960_vm14 = vweird.f32 %v8953_v17 }
0x1163   : > { %v10643_v63 = vpop.eup %10642 }
0x1164   : > { %v8955_v40 = vmul.f32 %v10643_v63, %v8953_v17  ;;  %vm8961_vm13 = vweird.f32 %v10643_v63 }
0x1165   : > { %vm8962_vm15 = vmor %vm8960_vm14, %vm8961_vm13 }
0x1166   : > { %v8956_v53 = vmul.f32 %v10643_v63, %v8955_v40 }
0x1168   : > { %v8957_v10 = vmul.f32 0.5, %v8956_v53 }
0x116a   : > { %v8958_v21 = vsub.f32 1.5, %v8957_v10 }
0x116c   : > { %v8959_v44 = vmul.f32 %v10643_v63, %v8958_v21 }
0x116e   : > { %v8963_v11 = vsel %vm8962_vm15, %v10643_v63, %v8959_v44 }
0x116f   : > { %v15710_v29 = vmul.f32 %v8963_v11, %v8951_v52  ;;  %v8965_v14 = vmul.f32 %v8963_v11, %v8952_v57  ;;  %v9372_v52 = vld [vmem:[#allocation14 + $0xe8] sm:$0xff]  ;;  %v9371_v57 = vld [vmem:[#allocation14 + $0xe0] sm:$0xff] }
0x1171   : > { %10351 = vmatpush.msk.msrb.mxu1 %vm8971_vm0, %v8965_v14  ;;  %10353 = vmatpush.msk.msrb.mxu2 %vm8971_vm0, %v8965_v14 }
0x1172   : > { %10357 = vmatpush.msk.msrb.mxu3 %vm8971_vm0, %v8965_v14 }
0x1173   : > { %8990 = vmatpush.msrb.mxu1 %v15710_v29  ;;  %9019 = vmatpush.msrb.mxu2 %v15710_v29 }
0x1174   : > { %9095 = vmatpush.msrb.mxu3 %v15710_v29  ;;  %10354 = vmatmul.msk.f32.vlgmr.msrb.gmra.mxu2 %vm8967_vm3, %v9000_v26 }
0x1175   : > { %9044 = vmatpush.msra.mxu1 %v9028_v9  ;;  %10358 = vmatmul.msk.f32.vlgmr.msrb.gmra.mxu3 %vm8967_vm3, %v9076_v28 }
0x1176   : > { %10363 = vmatpush.msk.msra.mxu3 %vm8971_vm0, %v8965_v14  ;;  %10352 = vmatmul.msk.f32.vlgmr.msrb.gmra.mxu1 %vm8967_vm3, %v8966_v37 }
0x1177   : > { %9045 = vmatpush.msra.mxu1 %v9027_v35  ;;  %9067 = vmatpush.msra.mxu2 %v8998_v62 }
0x1178   : > { %9203 = vmatpush.msra.mxu3 %v15710_v29 }
0x1179   : > { %9046 = vmatpush.msra.mxu1 %v9026_v12  ;;  %9068 = vmatpush.msra.mxu2 %v8997_v22  ;;  %v11455_v22 = vmov 4.0  }
0x117a   : > { %10369 = vmatpush.msk.msrb.mxu3 %vm8971_vm0, %v8965_v14  ;;  %10644 = vrcp.f32 %v11455_v22 }
0x117b   : > { %9047 = vmatpush.msra.mxu1 %v9025_v5  ;;  %9069 = vmatpush.msra.mxu2 %v8996_v38  ;;  %v10581_v5 = vld [vmem:[#allocation20] ss:$0 sm:$0xff] }
0x117c   : > { %9311 = vmatpush.msrb.mxu3 %v15710_v29 }
0x117d   : > { %10360 = vmatpush.msk.msrb.mxu1 %vm8971_vm0, %v8965_v14  ;;  %10364 = vmatmul.msk.f32.vlgmr.msra.gmra.mxu3 %vm8967_vm3, %v9184_v51 }
0x117e   : > { %10375 = vmatpush.msk.msra.mxu3 %vm8971_vm0, %v8965_v14  ;;  %9070 = vmatpush.msra.mxu2 %v8995_v32 }
0x117f   : > { %9149 = vmatpush.msrb.mxu1 %v15710_v29 }
0x1180   : > { %9419 = vmatpush.msra.mxu3 %v15710_v29  ;;  %9174 = vmatpush.msrb.mxu2 %v9158_v59  ;;  %v10645_v58 = vpop.eup %10644 }
0x1181   : > { %v9472_v61 = vmul.f32 4.0, %v10645_v58  ;;  %vm9476_vm5 = vweird.f32 %v10645_v58 }
0x1182   : > { %9175 = vmatpush.msrb.mxu2 %v9157_v6  ;;  %v9507_v6 = vld [vmem:[#allocation22 + $0x18] sm:$0xff] }
0x1184   : > { %9176 = vmatpush.msrb.mxu2 %v9156_v30 }
0x1185   : > { %10370 = vmatmul.msk.f32.vlgmr.msrb.gmra.mxu3 %vm8967_vm3, %v9292_v56  ;;  %v9473_v56 = vsub.f32 1.0, %v9472_v61 }
0x1186   : > { %9177 = vmatpush.msrb.mxu2 %v9155_v23 }
0x118d   : > { %10376 = vmatmul.msk.f32.vlgmr.msra.gmra.mxu3 %vm8967_vm3, %v9400_v45 }
0x11f3   : > { %v8992_v27 = vpop.f32.mrf.mxu1 }
0x11f4   : > { %10356 = vmatmul.msk.f32.vlgmr.msra.gmra.mxu2 %vm6713_vm7, %v8992_v27 }
0x11f5   : > { %9282 = vmatpush.msra.mxu2 %v9266_v46  ;;  %v9506_v46 = vld [vmem:[#allocation22 + $0x10] sm:$0xff] }
0x11f7   : > { %v9021_v39 = vpop.f32.mrf.mxu2  ;;  %9283 = vmatpush.msra.mxu2 %v9265_v48  ;;  %v9565_v48 = vld [vmem:[#allocation22 + $0x58] sm:$0xff] }
0x11f8   : > { %10355 = vmatmul.msk.f32.vlgmr.msra.gmra.mxu1 %vm6713_vm7, %v9021_v39  ;;  %v9097_v42 = vpop.f32.mrf.mxu3  ;;  %9581 = vmatpush.msrb.mxu3 %v9565_v48 }
0x11f9   : > { %10366 = vmatpush.msk.msra.mxu1 %vm8971_vm0, %v8965_v14  ;;  %10359 = vmatmul.msk.f32.vlgmr.msra.gmra.mxu0 %vm6713_vm7, %v9097_v42 }
0x11fa   : > { %9284 = vmatpush.msra.mxu2 %v9264_v15  ;;  %9336 = vmatpush.msra.mxu0 %v9320_v13  ;;  %v9564_v13 = vld [vmem:[#allocation22 + $0x50] sm:$0xff] }
0x11fb   : > { %9257 = vmatpush.msra.mxu1 %v15710_v29  ;;  %9582 = vmatpush.msrb.mxu3 %v9564_v13 }
0x11fc   : > { %9285 = vmatpush.msra.mxu2 %v9263_v41  ;;  %9337 = vmatpush.msra.mxu0 %v9319_v34  ;;  %v9535_v41 = vld [vmem:[#allocation22 + $0x30] sm:$0xff] }
0x11fd   : > { %v9593_v34 = vld [vmem:[#allocation22 + $0x70] sm:$0xff] }
0x11fe   : > { %9338 = vmatpush.msra.mxu0 %v9318_v43  ;;  %v9504_v43 = vld [vmem:[#allocation22] sm:$0xff] }
0x1200   : > { %10361 = vmatmul.msk.f32.vlgmr.msrb.gmra.mxu1 %vm8967_vm3, %v9130_v18  ;;  %v9205_v55 = vpop.f32.mrf.mxu3  ;;  %9339 = vmatpush.msra.mxu0 %v9317_v54  ;;  %v9474_v18 = vmul.f32 %v10645_v58, %v9473_v56 }
0x1201   : > { %10372 = vmatpush.msk.msrb.mxu1 %vm8971_vm0, %v8965_v14  ;;  %10365 = vmatmul.msk.f32.vlgmr.msrb.gmra.mxu0 %vm6713_vm7, %v9205_v55  ;;  %v9594_v55 = vld [vmem:[#allocation22 + $0x78] sm:$0xff] }
0x1202   : > { %9444 = vmatpush.msrb.mxu0 %v9428_v2  ;;  %v9475_v16 = vadd.f32 %v10645_v58, %v9474_v18  ;;  %v9534_v2 = vld [vmem:[#allocation22 + $0x28] sm:$0xff] }
0x1203   : > { %9365 = vmatpush.msrb.mxu1 %v15710_v29 }
0x1204   : > { %9445 = vmatpush.msrb.mxu0 %v9427_v50  ;;  %v9563_v50 = vld [vmem:[#allocation22 + $0x48] sm:$0xff] }
0x1205   : > { %9583 = vmatpush.msrb.mxu3 %v9563_v50 }
0x1206   : > { %9446 = vmatpush.msrb.mxu0 %v9426_v31  ;;  %v9592_v31 = vld [vmem:[#allocation22 + $0x68] sm:$0xff] }
0x1208   : > { %10367 = vmatmul.msk.f32.vlgmr.msra.gmra.mxu1 %vm8967_vm3, %v9238_v19  ;;  %v9313_v33 = vpop.f32.mrf.mxu3  ;;  %9447 = vmatpush.msrb.mxu0 %v9425_v20  ;;  %v9477_v20 = vsel %vm9476_vm5, %v10645_v58, %v9475_v16 }
0x1209   : > { %10371 = vmatmul.msk.f32.vlgmr.msra.gmra.mxu0 %vm6713_vm7, %v9313_v33  ;;  %9523 = vmatpush.msra.mxu1 %v9507_v6 }
0x120a   : > { %9610 = vmatpush.msra.mxu0 %v9594_v55 }
0x120b   : > { %9524 = vmatpush.msra.mxu1 %v9506_v46 }
0x120c   : > { %9611 = vmatpush.msra.mxu0 %v9593_v34 }
0x120d   : > { %9525 = vmatpush.msra.mxu1 %v9505_v4 }
0x120e   : > { %9612 = vmatpush.msra.mxu0 %v9592_v31 }
0x120f   : > { %9526 = vmatpush.msra.mxu1 %v9504_v43 }
0x1210   : > { %10373 = vmatmul.msk.f32.vlgmr.msrb.gmra.mxu1 %vm8967_vm3, %v9346_v24  ;;  %v9421_v36 = vpop.f32.mrf.mxu3 }
0x1211   : > { %10377 = vmatmul.msk.f32.vlgmr.msrb.gmra.mxu0 %vm6713_vm7, %v9421_v36  ;;  %v9533_v36 = vld [vmem:[#allocation22 + $0x20] sm:$0xff] }
0x1275   : > { %v9049_v49 = vpop.f32.mrf.mxu1 }
0x1276   : > { %v9125_v63 = vpop.f32.mrf.mxu0 }
0x1277   : > { %v9072_v40 = vpop.f32.mrf.mxu2 }
0x1278   : > { %v9073_v10 = vadd.f32 %v9072_v40, %v9049_v49 }
0x127a   : > { %v9128_v44 = vadd.f32 %v9125_v63, %v9073_v10 }
0x127d   : > { %v9151_v8 = vpop.f32.mrf.mxu1 }
0x127e   : > { %10362 = vmatmul.msk.f32.vlgmr.msrb.gmra.mxu2 %vm6713_vm7, %v9151_v8  ;;  %v9233_v53 = vpop.f32.mrf.mxu0  ;;  %v9562_v8 = vld [vmem:[#allocation22 + $0x40] sm:$0xff] }
0x127f   : > { %9390 = vmatpush.msrb.mxu2 %v9374_v0  ;;  %9584 = vmatpush.msrb.mxu3 %v9562_v8 }
0x1281   : > { %9391 = vmatpush.msrb.mxu2 %v9373_v1  ;;  %v9591_v1 = vld [vmem:[#allocation22 + $0x60] sm:$0xff] }
0x1282   : > { %9613 = vmatpush.msra.mxu0 %v9591_v1 }
0x1283   : > { %9392 = vmatpush.msrb.mxu2 %v9372_v52 }
0x1285   : > { %v9259_v3 = vpop.f32.mrf.mxu1  ;;  %9393 = vmatpush.msrb.mxu2 %v9371_v57 }
0x1286   : > { %10368 = vmatmul.msk.f32.vlgmr.msra.gmra.mxu2 %vm6713_vm7, %v9259_v3  ;;  %v9341_v29 = vpop.f32.mrf.mxu0 }
0x1287   : > { %9552 = vmatpush.msra.mxu2 %v9536_v25 }
0x1289   : > { %9553 = vmatpush.msra.mxu2 %v9535_v41 }
0x128b   : > { %9554 = vmatpush.msra.mxu2 %v9534_v2 }
0x128d   : > { %v9367_v17 = vpop.f32.mrf.mxu1  ;;  %9555 = vmatpush.msra.mxu2 %v9533_v36 }
0x128e   : > { %10374 = vmatmul.msk.f32.vlgmr.msrb.gmra.mxu2 %vm6713_vm7, %v9367_v17  ;;  %v9449_v35 = vpop.f32.mrf.mxu0 }
0x1301   : > { %v9179_v21 = vpop.f32.mrf.mxu2 }
0x1302   : > { %v9182_v11 = vadd.f32 %v9179_v21, %v9128_v44 }
0x1304   : > { %v9236_v26 = vadd.f32 %v9233_v53, %v9182_v11 }
0x1309   : > { %v9287_v14 = vpop.f32.mrf.mxu2 }
0x130a   : > { %v9290_v9 = vadd.f32 %v9287_v14, %v9236_v26 }
0x130c   : > { %v9344_v28 = vadd.f32 %v9341_v29, %v9290_v9 }
0x1311   : > { %v9395_v37 = vpop.f32.mrf.mxu2 }
0x1312   : > { %v9398_v12 = vadd.f32 %v9395_v37, %v9344_v28 }
0x1314   : > { %v9452_v51 = vadd.f32 %v9449_v35, %v9398_v12  ;;  %v9503_v12 = vld [vmem:[#allocation23] sm:$0x1] }
0x1316   : > { %v9457_v62 = vadd.f32 %v10581_v5, %v9452_v51 }
0x1318   : > { %v9459_v38 = vmin.f32 %v9457_v62, 0.0  ;;  %vm9458_vm4 = vcmp.gt.f32.partialorder %v9457_v62, 0.0 }
0x131a   : > { %v9460_v32 = vmul.f32 1.442695, %v9459_v38 }
0x131c   : > { %10646 = vpow2.f32 %v9460_v32 }
0x1322   : > { %v10647_v7 = vpop.eup %10646 }
0x1323   : > { %v10378_v60 = vadd.f32 -1.0, %v10647_v7 }
0x1325   : > { %v15748_v45 = vsel %vm9458_vm4, %v9457_v62, %v10378_v60 }
0x1326   : > { %v9464_v27 = vsel %vm8230_vm2, %v15748_v45, 0.0  ;;  %v9479_v39 = vmul.f32 %v15748_v45, %v15748_v45 }
0x1327   : > { %v9465_v42 = vrot.slane %v9464_v27, 4 }
0x1328   : > { %v9480_v19 = vsel %vm8230_vm2, %v9479_v39, 0.0 }
0x1329   : > { %v9466_v24 = vadd.f32 %v9465_v42, %v9464_v27  ;;  %v9481_v59 = vrot.slane %v9480_v19, 4 }
0x132b   : > { %v9467_v30 = vrot.slane %v9466_v24, 2  ;;  %v9482_v23 = vadd.f32 %v9481_v59, %v9480_v19 }
0x132d   : > { %v9468_v47 = vadd.f32 %v9467_v30, %v9466_v24  ;;  %v9483_v15 = vrot.slane %v9482_v23, 2 }
0x132f   : > { %v9469_v54 = vrot.slane %v9468_v47, 1  ;;  %v9484_v33 = vadd.f32 %v9483_v15, %v9482_v23 }
0x1331   : > { %v9470_v49 = vadd.f32 %v9469_v54, %v9468_v47  ;;  %v9485_v0 = vrot.slane %v9484_v33, 1 }
0x1333   : > { %v9478_v52 = vmul.f32 %v9477_v20, %v9470_v49  ;;  %v9486_v57 = vadd.f32 %v9485_v0, %v9484_v33 }
0x1335   : > { %v9487_v3 = vmul.f32 %v9486_v57, %v9477_v20  ;;  %v9488_v17 = vmul.f32 %v9478_v52, %v9478_v52  ;;  %v9490_v14 = vsub.f32 %v15748_v45, %v9478_v52 }
0x1337   : > { %v9489_v63 = vsub.f32 %v9487_v3, %v9488_v17 }
0x1339   : > { %v9491_v40 = vadd.f32 1e-05, %v9489_v63 }
0x133b   : > { %10648 = vrsqrt.f32 %v9491_v40  ;;  %vm9498_vm6 = vweird.f32 %v9491_v40 }
0x1341   : > { %v10649_v53 = vpop.eup %10648 }
0x1342   : > { %v9493_v10 = vmul.f32 %v10649_v53, %v9491_v40  ;;  %vm9499_vm2 = vweird.f32 %v10649_v53 }
0x1343   : > { %vm9500_vm8 = vmor %vm9498_vm6, %vm9499_vm2 }
0x1344   : > { %v9494_v21 = vmul.f32 %v10649_v53, %v9493_v10 }
0x1346   : > { %v9495_v44 = vmul.f32 0.5, %v9494_v21 }
0x1348   : > { %v9496_v11 = vsub.f32 1.5, %v9495_v44 }
0x134a   : > { %v9497_v29 = vmul.f32 %v10649_v53, %v9496_v11 }
0x134c   : > { %v9501_v26 = vsel %vm9500_vm8, %v10649_v53, %v9497_v29 }
0x134d   : > { %v9502_v9 = vmul.f32 %v9501_v26, %v9490_v14 }
0x134f   : > { %10379 = vmatmul.msk.f32.vlgmr.msra.gmra.mxu1 %vm6713_vm7, %v9502_v9  ;;  %v9537_v28 = vrot.slane %v9502_v9, 1  ;;  %v9566_v37 = vrot.slane %v9502_v9, 2  ;;  %v9595_v35 = vrot.slane %v9502_v9, 3 }
0x1351   : > { %10380 = vmatmul.msk.f32.vlgmr.msra.gmra.mxu2 %vm6713_vm7, %v9537_v28  ;;  %10381 = vmatmul.msk.f32.vlgmr.msrb.gmra.mxu3 %vm6713_vm7, %v9566_v37 }
0x1352   : > { %10382 = vmatmul.msk.f32.vlgmr.msra.gmra.mxu0 %vm6713_vm7, %v9595_v35 }
0x13cc   : > { %v9528_v5 = vpop.f32.mrf.mxu1 }
0x13cd   : > { %v9531_v51 = vadd.f32 %v9528_v5, %v9503_v12 }
0x13cf   : > { %v9615_v58 = vpop.f32.mrf.mxu0 }
0x13d4   : > { %v9557_v62 = vpop.f32.mrf.mxu2  ;;  %v9586_v38 = vpop.f32.mrf.mxu3 }
0x13d5   : > { %v9560_v22 = vadd.f32 %v9557_v62, %v9531_v51 }
0x13d7   : > { %v9589_v32 = vadd.f32 %v9586_v38, %v9560_v22 }
0x13d9   : > { %v9618_v61 = vadd.f32 %v9615_v58, %v9589_v32 }
0x13db   : > { %9620 = vst.msk [vmem:[%s708_s26] sm:$0x1] %vm9619_vm9, %v9618_v61 }
0x13dc   : > { %11361 = shalt.err (!%p11358_p8)
}
0x13dd   : > { %10442 = dma.vmem_to_hbm [thread:$0]  (%p11574_p5), %s9633_s21, 16, %s9635_s24, %s9622_s29  }
0x13de PF: > { %s16264_s20 = sld [smem:[#allocation37_spill]] }
0x13df   : > { %s16265_s23 = sld [smem:[#allocation35_spill]] }
0x13e4   : > { %p10519_p9 = scmp.ge.s32.totalorder %s16264_s20, 2 }
0x13e5   : > { %s9646_s1 = sand.u32 1, %s16265_s23  }
0x13e6   : > { %p10488_p10 = pnand %p10519_p9, %p11578_p6  ;;  %s9647_s25 = scalar_lea.sflag [#allocation4], %s9646_s1 }
0x13e8   : > { %p10489_p11 = pneg %p10488_p10 }
0x13ea   : > { %11411 = dma.done.wait (%p10489_p11), %s9647_s25, 16  }
0x13eb   : > { %11413 = vsyncadd (%p10489_p11), %s9647_s25, 4294967280  ;;  %s16267_s21 = sld [smem:[#allocation38_spill]]  ;;  %s16270_s18 = smov %s11420_s19 }
0x13ec   : > { %s16268_s28 = sld [smem:[#allocation36_spill]] }
0x13ed   : > { %s16269_s20 = sld [smem:[#allocation39_spill]] }
0x13f1   : > { %p33_p12 = scmp.ge.s32.totalorder %s16267_s21, 4  }
0x13f2   : > { %s16271_s19 = smov %s16268_s28 }
0x13f3   :  { %35 = sbr.rel (!%p33_p12) target bundleno = 17 (0x11), region = 239 }
0x13f8   :  { %9652 = vsyncpa [#allocation3], 1 }
0x13f9   :  { %9654 = vsyncpa [#allocation3 + $0x1], 1 }
0x13fa   :  { %9655 = vsyncpa [#allocation6], 1 }
0x13fb   :  { %9656 = vsyncpa [#allocation9], 1 }
0x13fc   :  { %9657 = vsyncpa [#allocation12], 1 }
0x13fd   :  { %9658 = vsyncpa [#allocation15], 1 }
0x13fe   :  { %9659 = vsyncpa [#allocation18], 1 }
0x13ff   :  { %9660 = vsyncpa [#allocation21], 1 }
0x1400   :  { %9661 = vsyncpa [#allocation24], 1 }
0x1401   :  { %9662 = vsyncpa [#allocation4], 1 }
0x1402   :  { %9664 = vsyncpa [#allocation4 + $0x1], 1 }

</bundles_post_ra>
